<compile_context>
chip_gen: v7x
topology: tpu7x:2x2x1
jax: 0.10.0
libtpu: 0.0.40
codegen_flags: <defaults>
</compile_context>

<pallas_src>
import math

import jax
import jax.numpy as jnp
from jax.experimental import pallas as pl
from jax.experimental.pallas import tpu as pltpu

NHEAD = 8
LN_EPS = 1e-5  # PyTorch LayerNorm default


# --------------------------------------------------------------- causal conv --

def _conv_kernel(x_ref, w_ref, b_ref, o_ref):
    """One batch element: y[co, to*V+v] = b[co] + sum_{k,ci} w[co,k*Cin+ci] * x[k*Cin+ci, to*V+v]."""
    o_ref[0] = (jnp.dot(w_ref[...], x_ref[0], preferred_element_type=jnp.float32)
                + b_ref[...])                               # (Cout, 1) broadcasts over lanes


def causal_conv2d(x, w, b):
    """Conv2d(c_in, c_out, kernel=(Kt,1)), no padding (enable_padding=False path)."""
    B, Cin, T, V = x.shape
    Cout, _, Kt, _ = w.shape
    To = T - Kt + 1
    # wrapper-side im2col pre-stack (Kt is tiny): one K = Kt*Cin MXU contraction in-kernel
    # instead of Kt lane-unaligned shifted-window matmuls.
    xs = jnp.concatenate([x[:, :, k:k + To, :] for k in range(Kt)], axis=1)
    xs = xs.reshape(B, Kt * Cin, To * V).astype(jnp.bfloat16)
    wk = jnp.transpose(w[..., 0], (0, 2, 1)).reshape(Cout, Kt * Cin).astype(jnp.bfloat16)
    b2 = b.reshape(Cout, 1).astype(jnp.float32)
    y = pl.pallas_call(
        _conv_kernel,
        grid=(B,),
        in_specs=[pl.BlockSpec((1, Kt * Cin, To * V), lambda i: (i, 0, 0)),
                  pl.BlockSpec((Cout, Kt * Cin), lambda i: (0, 0)),
                  pl.BlockSpec((Cout, 1), lambda i: (0, 0))],
        out_specs=pl.BlockSpec((1, Cout, To * V), lambda i: (i, 0, 0)),
        out_shape=jax.ShapeDtypeStruct((B, Cout, To * V), jnp.float32),
        compiler_params=pltpu.CompilerParams(
            dimension_semantics=("parallel",),
            vmem_limit_bytes=32 * 1024 * 1024),
    )(xs, wk, b2)
    return y.reshape(B, Cout, To, V)


# ------------------------------------------------- fused transformer block ----

def _fused_block_kernel(x_ref, pe_ref, g_ref, wqkv_ref, bqkv_ref, wstk_ref, vecs_ref,
                        o_ref, sc_ref):
    To, Mt, C = x_ref.shape
    R = To * Mt

    def layernorm(v, gg, bb):
        mu = jnp.mean(v, axis=-1, keepdims=True)
        vc = v - mu
        var = jnp.mean(vc * vc, axis=-1, keepdims=True)
        return vc * jax.lax.rsqrt(var + LN_EPS) * gg + bb

    # ---- PE add + packed QKV projection over the whole time-flattened slab --------------
    src = (x_ref[...] + pe_ref[...]).reshape(R, C)            # (R, C) f32, R = To*Mt
    qkv = jnp.dot(src.astype(jnp.bfloat16), wqkv_ref[...],
                  preferred_element_type=jnp.float32) + bqkv_ref[...]   # (R, 3C)
    q3 = qkv[:, 0:C].reshape(To, Mt, C)          # softmax scale pre-folded into wq / bq
    k3 = qkv[:, C:2 * C].reshape(To, Mt, C)
    v3 = qkv[:, 2 * C:3 * C].reshape(To, Mt, C)

    # ---- attention: batched over all queries, short unrolled loop over keys --------------
    # g is a (C, C) 0/1 block-diagonal head mask: (q*k) @ g broadcasts each head's score to
    # all of that head's lanes, so the softmax / context math stays lane-dense end to end.
    g = g_ref[...]
    mx = None
    for s in range(To):                                        # pass 1: scores + running max
        prod = (q3 * k3[s][None, :, :]).reshape(R, C)          # k_s broadcast over queries
        sc = jnp.dot(prod, g, preferred_element_type=jnp.float32)   # (R, C), f32 MXU
        sc_ref[s] = sc                                         # stage in VMEM scratch
        mx = sc if mx is None else jnp.maximum(mx, sc)

    den = jnp.zeros((R, C), jnp.float32)
    ctx = jnp.zeros((To, Mt, C), jnp.float32)
    for s in range(To):                                        # pass 2: exp / sum / context
        ex = jnp.exp(sc_ref[s] - mx)
        den = den + ex
        ctx = ctx + ex.reshape(To, Mt, C) * v3[s][None, :, :]
    ctx = ctx.reshape(R, C) * pl.reciprocal(den, approx=True)  # EUP slot, off the VALU

    # ---- out-projection, residual + LN1, FFN, residual + LN2: one slab pass each ---------
    vecs = vecs_ref[...]                                       # (8, C) packed bias/gain rows
    bo = vecs[0:1]; f1 = vecs[1:2]; f2 = vecs[2:3]
    g1 = vecs[3:4]; b1 = vecs[4:5]; g2 = vecs[5:6]; b2 = vecs[6:7]

    attn = jnp.dot(ctx.astype(jnp.bfloat16), wstk_ref[0],
                   preferred_element_type=jnp.float32) + bo
    src_res = (x_ref[...] + pe_ref[...]).reshape(R, C)         # recompute: cheaper than keeping live
    x1 = layernorm(attn + src_res, g1, b1)
    hh = jnp.maximum(jnp.dot(x1.astype(jnp.bfloat16), wstk_ref[1],
                             preferred_element_type=jnp.float32) + f1, 0.0)
    y2 = jnp.dot(hh.astype(jnp.bfloat16), wstk_ref[2],
                 preferred_element_type=jnp.float32) + f2
    o_ref[...] = layernorm(y2 + x1, g2, b2).reshape(To, Mt, C)


def _fused_block_vmem_bytes(To, tm, C):
    r = To * tm
    io = 2 * 2 * To * tm * C * 4              # x + out blocks, double-buffered, f32
    scr = To * r * C * 4                      # per-key score scratch (single buffer)
    wts = 2 * (C * 3 * C + 3 * C * C)         # bf16 packed QKV + stacked wo/w1/w2
    misc = 4 * (C * C + 8 * C + 3 * C + 2 * To * C)
    return io + scr + wts + misc


def _tpu_info():
    """(# TensorCores per chip, VMEM capacity bytes) with conservative fallbacks."""
    cores, vmem = 1, 128 * 1024 * 1024
    try:
        info = pltpu.get_tpu_info()
        for name in ("vmem_capacity_bytes", "vmem_bytes", "vmem_size_bytes"):
            v = getattr(info, name, None)
            if v:
                vmem = int(v)
                break
        for name in ("num_tensorcores", "tensorcores_per_chip", "num_cores",
                     "cores_per_chip"):
            c = getattr(info, name, None)
            if c:
                cores = int(c)
                break
    except Exception:   # API drift / not queryable: fall back to 1-TC, 128 MiB behaviour
        pass
    return max(1, cores), vmem


def _pick_tile_m(M, To, C, n_tc, budget_bytes, cap=512):
    """Multiple-of-8 tile over the transformer batch axis (M = B * n_vertex).

    1-TC parts (v5e/v6e): one grid step when the whole slab fits the budget.
    multi-TC parts (v7x-style): at least n_tc "parallel" steps so every core gets work.
    The caller pads M up to a multiple of the returned tile, so an awkward M never
    silently becomes a single oversized block.
    """
    m8 = max(8, ((M + 7) // 8) * 8)
    tm = min(m8, max(8, (cap // 8) * 8))
    if n_tc > 1:
        per_core = -(-m8 // n_tc)
        tm = min(tm, max(8, ((per_core + 7) // 8) * 8))
    while tm > 8 and _fused_block_vmem_bytes(To, tm, C) > budget_bytes:
        tm -= 8
    return tm


def fused_transformer_block(xp, params, nhead=NHEAD):
    """MultiheadAttention(nhead=8) + FFN + residuals + LayerNorms, fused (eval mode)."""
    To, M, C = xp.shape
    H = nhead
    Dh = C // H
    scale = 1.0 / math.sqrt(Dh)

    # packed QKV weight (torch (3C, C) layout -> (C, 3C)), softmax scale folded into q
    ipw = params["in_proj_w"].astype(jnp.float32)
    ipb = params["in_proj_b"].astype(jnp.float32)
    wqkv = jnp.concatenate([ipw[:C].T * scale, ipw[C:2 * C].T, ipw[2 * C:].T],
                           axis=1).astype(jnp.bfloat16)                       # (C, 3C)
    bqkv = jnp.concatenate([ipb[:C] * scale, ipb[C:2 * C], ipb[2 * C:]]
                           ).reshape(1, 3 * C).astype(jnp.float32)

    F = params["ffn_w1"].shape[0]
    assert F == C, "TemporalConvLayer always uses dim_feedforward == d_model"
    wstk = jnp.stack([params["out_proj_w"].T, params["ffn_w1"].T,
                      params["ffn_w2"].T]).astype(jnp.bfloat16)               # (3, C, C)
    vecs = jnp.stack([params["out_proj_b"], params["ffn_b1"], params["ffn_b2"],
                      params["ln1_g"], params["ln1_b"], params["ln2_g"],
                      params["ln2_b"], jnp.zeros((C,), jnp.float32)]
                     ).astype(jnp.float32)                                    # (8, C)

    # (C, C) block-diagonal 0/1 head mask keeps every attention intermediate lane-dense
    head_of = jnp.arange(C, dtype=jnp.int32) // Dh
    g = (head_of[:, None] == head_of[None, :]).astype(jnp.float32)

    pe = params["pe"][:To].astype(jnp.float32)                                # (To, 1, C)

    n_tc, vmem_cap = _tpu_info()
    tile_m = _pick_tile_m(M, To, C, n_tc, budget_bytes=vmem_cap // 4)
    Mp = pl.cdiv(M, tile_m) * tile_m
    xpad = xp.astype(jnp.float32)
    if Mp != M:            # rows of the transformer batch axis are independent: pad + slice
        xpad = jnp.pad(xpad, ((0, 0), (0, Mp - M), (0, 0)))

    blk = _fused_block_vmem_bytes(To, tile_m, C)
    vmem_limit = int(min(vmem_cap * 3 // 4, max(32 * 1024 * 1024, 2 * blk)))

    Rtot = To * Mp
    flops = (2 * Rtot * C * 3 * C            # packed QKV
             + To * 2 * Rtot * C * C         # per-key score matmuls
             + 2 * Rtot * C * C              # out-projection
             + 4 * Rtot * C * F              # FFN
             + 14 * Rtot * C * To)           # elementwise attention / softmax / LN
    transc = To * Rtot * C + Rtot * C + 2 * Rtot
    bytes_accessed = (8 * Rtot * C + 2 * (3 * C * C + 3 * C * C)
                      + 4 * (C * C + 9 * C + 2 * To * C))

    out = pl.pallas_call(
        _fused_block_kernel,
        grid=(Mp // tile_m,),
        in_specs=[pl.BlockSpec((To, tile_m, C), lambda i: (0, i, 0)),
                  pl.BlockSpec((To, 1, C), lambda i: (0, 0, 0)),
                  pl.BlockSpec((C, C), lambda i: (0, 0)),
                  pl.BlockSpec((C, 3 * C), lambda i: (0, 0)),
                  pl.BlockSpec((1, 3 * C), lambda i: (0, 0)),
                  pl.BlockSpec((3, C, C), lambda i: (0, 0, 0)),
                  pl.BlockSpec((8, C), lambda i: (0, 0))],
        out_specs=pl.BlockSpec((To, tile_m, C), lambda i: (0, i, 0)),
        out_shape=jax.ShapeDtypeStruct((To, Mp, C), jnp.float32),
        scratch_shapes=[pltpu.VMEM((To, To * tile_m, C), jnp.float32)],
        compiler_params=pltpu.CompilerParams(
            dimension_semantics=("parallel",),
            vmem_limit_bytes=vmem_limit),
        cost_estimate=pl.CostEstimate(flops=int(flops), transcendentals=int(transc),
                                      bytes_accessed=int(bytes_accessed)),
    )(xpad, pe, g, wqkv, bqkv, wstk, vecs)
    if Mp != M:
        out = out[:, :M, :]
    return out


# ------------------------------------------------------------------ module ----

def temporal_conv_layer(x, params):
    """Forward of TemporalConvLayer (all act_func branches are identical in the reference)."""
    y = causal_conv2d(x, params["conv_w"], params["conv_b"])          # (B, C, To, V)
    B, C, To, V = y.shape
    # exact reproduction of torch `.reshape(timestep, -1, d_model)` (flat, scrambled reshape)
    xp = y.reshape(To, B * V, C)
    out = fused_transformer_block(xp, params)                         # (To, B*V, C)
    return out.reshape(B, C, To, V)                                   # flat reshape back


# ------------------------------------------------------------------- params ---

def make_positional_encoding(max_len, d_model):
    position = jnp.arange(max_len, dtype=jnp.float32)[:, None]
    div_term = jnp.exp(jnp.arange(0, d_model, 2, dtype=jnp.float32)
                       * (-math.log(10000.0) / d_model))
    pe = jnp.zeros((max_len, d_model), jnp.float32)
    pe = pe.at[:, 0::2].set(jnp.sin(position * div_term))
    pe = pe.at[:, 1::2].set(jnp.cos(position * div_term))
    return pe[:, None, :]                                             # (max_len, 1, d)


def init_params(key, Kt, c_in, c_out):
    ks = jax.random.split(key, 8)
    s = 0.1
    return {
        "conv_w": s * jax.random.normal(ks[0], (c_out, c_in, Kt, 1), jnp.float32),
        "conv_b": s * jax.random.normal(ks[1], (c_out,), jnp.float32),
        "in_proj_w": s * jax.random.normal(ks[2], (3 * c_out, c_out), jnp.float32),
        "in_proj_b": s * jax.random.normal(ks[3], (3 * c_out,), jnp.float32),
        "out_proj_w": s * jax.random.normal(ks[4], (c_out, c_out), jnp.float32),
        "out_proj_b": jnp.zeros((c_out,), jnp.float32),
        "ln1_g": jnp.ones((c_out,), jnp.float32),
        "ln1_b": jnp.zeros((c_out,), jnp.float32),
        # dim_feedforward = c_out in the reference module (torch (out, in) layouts)
        "ffn_w1": s * jax.random.normal(ks[5], (c_out, c_out), jnp.float32),
        "ffn_b1": s * jax.random.normal(ks[6], (c_out,), jnp.float32),
        "ffn_w2": s * jax.random.normal(ks[7], (c_out, c_out), jnp.float32),
        "ffn_b2": jnp.zeros((c_out,), jnp.float32),
        "ln2_g": jnp.ones((c_out,), jnp.float32),
        "ln2_b": jnp.zeros((c_out,), jnp.float32),
        "pe": make_positional_encoding(5000, c_out),
    }


# --------------------------------------------------------------------- main ---

if __name__ == "__main__":
    # Small shapes consistent with the module: NCHW input, c_out divisible by nhead=8.
    B, c_in, T, V = 2, 4, 8, 16
    Kt, c_out = 3, 64

    key = jax.random.PRNGKey(0)
    kx, kp = jax.random.split(key)
    x = jax.random.normal(kx, (B, c_in, T, V), jnp.float32)
    params = init_params(kp, Kt, c_in, c_out)

    fwd = jax.jit(temporal_conv_layer)
    out = jax.block_until_ready(fwd(x, params))

    To = T - Kt + 1
    assert out.shape == (B, c_out, To, V), out.shape
    assert bool(jnp.all(jnp.isfinite(out)))
    print("KERNEL_OK")
</pallas_src>

<mosaic_0001>
module attributes {stable_mosaic.version = 11 : i64} {
  func.func @_conv_kernel(%arg0: i32, %arg1: memref<1x12x96xbf16, #tpu.memory_space<vmem>>, %arg2: memref<64x12xbf16, #tpu.memory_space<vmem>>, %arg3: memref<64x1xf32, #tpu.memory_space<vmem>>, %arg4: memref<1x64x96xf32, #tpu.memory_space<vmem>>) attributes {dimension_semantics = [#tpu.dimension_semantics<parallel>], iteration_bounds = array<i64: 2>, scalar_prefetch = 0 : i64, scratch_operands = 0 : i64, tpu.core_type = #tpu.core_type<tc>, window_params = [{transform_indices = @transform_0, window_bounds = array<i64: 1, 12, 96>}, {pipeline_mode = #tpu.pipeline_mode<synchronous>, transform_indices = @transform_1, window_bounds = array<i64: 64, 12>}, {pipeline_mode = #tpu.pipeline_mode<synchronous>, transform_indices = @transform_2, window_bounds = array<i64: 64, 1>}, {transform_indices = @transform_3, window_bounds = array<i64: 1, 64, 96>}]} {
    %c0 = arith.constant 0 : index
    %c0_0 = arith.constant 0 : index
    %0 = vector.load %arg2[%c0, %c0_0] : memref<64x12xbf16, #tpu.memory_space<vmem>>, vector<64x12xbf16>
    %c0_1 = arith.constant 0 : index
    %c0_2 = arith.constant 0 : index
    %c0_3 = arith.constant 0 : index
    %1 = vector.load %arg1[%c0_1, %c0_2, %c0_3] : memref<1x12x96xbf16, #tpu.memory_space<vmem>>, vector<1x12x96xbf16>
    %2 = vector.shape_cast %1 : vector<1x12x96xbf16> to vector<12x96xbf16>
    %cst = arith.constant dense<0.000000e+00> : vector<64x96xf32>
    %3 = tpu.matmul %0, %2, %cst {dimension_numbers = #tpu.dot_dimension_numbers<[1], [0], [0], [1], [0, 0, 1, 1], [], []>} : vector<64x12xbf16>, vector<12x96xbf16>, vector<64x96xf32> -> vector<64x96xf32>
    %c0_4 = arith.constant 0 : index
    %c0_5 = arith.constant 0 : index
    %4 = vector.load %arg3[%c0_4, %c0_5] : memref<64x1xf32, #tpu.memory_space<vmem>>, vector<64x1xf32>
    %5 = vector.broadcast %4 : vector<64x1xf32> to vector<64x96xf32>
    %6 = arith.addf %3, %5 : vector<64x96xf32>
    %c0_6 = arith.constant 0 : index
    %c0_7 = arith.constant 0 : index
    %c0_8 = arith.constant 0 : index
    %7 = vector.load %arg4[%c0_6, %c0_7, %c0_8] : memref<1x64x96xf32, #tpu.memory_space<vmem>>, vector<1x64x96xf32>
    %8 = vector.shape_cast %7 : vector<1x64x96xf32> to vector<64x96xf32>
    %9 = vector.shape_cast %6 : vector<64x96xf32> to vector<1x64x96xf32>
    tpu.vector_store %arg4[%c0_6, %c0_7, %c0_8], %9 {strides = array<i32>} : memref<1x64x96xf32, #tpu.memory_space<vmem>>, vector<1x64x96xf32>,
    return
  }
  func.func @transform_0(%arg0: i32) -> (i32, i32, i32) {
    %c0_i32 = arith.constant 0 : i32
    %c0_i32_0 = arith.constant 0 : i32
    %c0_i32_1 = arith.constant 0 : i32
    return %arg0, %c0_i32, %c0_i32_0 : i32, i32, i32
  }
  func.func @transform_1(%arg0: i32) -> (i32, i32) {
    %c0_i32 = arith.constant 0 : i32
    %c0_i32_0 = arith.constant 0 : i32
    %c0_i32_1 = arith.constant 0 : i32
    return %c0_i32, %c0_i32_0 : i32, i32
  }
  func.func @transform_2(%arg0: i32) -> (i32, i32) {
    %c0_i32 = arith.constant 0 : i32
    %c0_i32_0 = arith.constant 0 : i32
    %c0_i32_1 = arith.constant 0 : i32
    return %c0_i32, %c0_i32_0 : i32, i32
  }
  func.func @transform_3(%arg0: i32) -> (i32, i32, i32) {
    %c0_i32 = arith.constant 0 : i32
    %c0_i32_0 = arith.constant 0 : i32
    %c0_i32_1 = arith.constant 0 : i32
    return %arg0, %c0_i32, %c0_i32_0 : i32, i32, i32
  }
}

module attributes {stable_mosaic.version = 11 : i64} {
  func.func @_fused_block_kernel(%arg0: i32, %arg1: memref<6x32x64xf32, #tpu.memory_space<vmem>>, %arg2: memref<6x1x64xf32, #tpu.memory_space<vmem>>, %arg3: memref<64x64xf32, #tpu.memory_space<vmem>>, %arg4: memref<64x192xbf16, #tpu.memory_space<vmem>>, %arg5: memref<1x192xf32, #tpu.memory_space<vmem>>, %arg6: memref<3x64x64xbf16, #tpu.memory_space<vmem>>, %arg7: memref<8x64xf32, #tpu.memory_space<vmem>>, %arg8: memref<6x32x64xf32, #tpu.memory_space<vmem>>, %arg9: memref<6x192x64xf32, #tpu.memory_space<vmem>>) attributes {dimension_semantics = [#tpu.dimension_semantics<parallel>], iteration_bounds = array<i64: 1>, scalar_prefetch = 0 : i64, scratch_operands = 1 : i64, tpu.core_type = #tpu.core_type<tc>, window_params = [{transform_indices = @transform_0, window_bounds = array<i64: 6, 32, 64>}, {pipeline_mode = #tpu.pipeline_mode<synchronous>, transform_indices = @transform_1, window_bounds = array<i64: 6, 1, 64>}, {pipeline_mode = #tpu.pipeline_mode<synchronous>, transform_indices = @transform_2, window_bounds = array<i64: 64, 64>}, {pipeline_mode = #tpu.pipeline_mode<synchronous>, transform_indices = @transform_3, window_bounds = array<i64: 64, 192>}, {pipeline_mode = #tpu.pipeline_mode<synchronous>, transform_indices = @transform_4, window_bounds = array<i64: 1, 192>}, {pipeline_mode = #tpu.pipeline_mode<synchronous>, transform_indices = @transform_5, window_bounds = array<i64: 3, 64, 64>}, {pipeline_mode = #tpu.pipeline_mode<synchronous>, transform_indices = @transform_6, window_bounds = array<i64: 8, 64>}, {transform_indices = @transform_7, window_bounds = array<i64: 6, 32, 64>}]} {
    %c0 = arith.constant 0 : index
    %c0_0 = arith.constant 0 : index
    %c0_1 = arith.constant 0 : index
    %0 = vector.load %arg1[%c0, %c0_0, %c0_1] : memref<6x32x64xf32, #tpu.memory_space<vmem>>, vector<6x32x64xf32>
    %c0_2 = arith.constant 0 : index
    %c0_3 = arith.constant 0 : index
    %c0_4 = arith.constant 0 : index
    %1 = vector.load %arg2[%c0_2, %c0_3, %c0_4] : memref<6x1x64xf32, #tpu.memory_space<vmem>>, vector<6x1x64xf32>
    %2 = vector.broadcast %1 : vector<6x1x64xf32> to vector<6x32x64xf32>
    %3 = arith.addf %0, %2 : vector<6x32x64xf32>
    %4 = vector.shape_cast %3 : vector<6x32x64xf32> to vector<192x64xf32>
    %5 = arith.truncf %4 : vector<192x64xf32> to vector<192x64xbf16>
    %c0_5 = arith.constant 0 : index
    %c0_6 = arith.constant 0 : index
    %6 = vector.load %arg4[%c0_5, %c0_6] : memref<64x192xbf16, #tpu.memory_space<vmem>>, vector<64x192xbf16>
    %cst = arith.constant dense<0.000000e+00> : vector<192x192xf32>
    %7 = tpu.matmul %5, %6, %cst {dimension_numbers = #tpu.dot_dimension_numbers<[1], [0], [0], [1], [0, 0, 1, 1], [], []>} : vector<192x64xbf16>, vector<64x192xbf16>, vector<192x192xf32> -> vector<192x192xf32>
    %c0_7 = arith.constant 0 : index
    %c0_8 = arith.constant 0 : index
    %8 = vector.load %arg5[%c0_7, %c0_8] : memref<1x192xf32, #tpu.memory_space<vmem>>, vector<1x192xf32>
    %9 = vector.broadcast %8 : vector<1x192xf32> to vector<192x192xf32>
    %10 = arith.addf %7, %9 : vector<192x192xf32>
    %11 = vector.extract_strided_slice %10 {offsets = [0, 0], sizes = [192, 64], strides = [1, 1]} : vector<192x192xf32> to vector<192x64xf32>
    %12 = vector.shape_cast %11 : vector<192x64xf32> to vector<6x32x64xf32>
    %13 = vector.extract_strided_slice %10 {offsets = [0, 64], sizes = [192, 64], strides = [1, 1]} : vector<192x192xf32> to vector<192x64xf32>
    %14 = vector.shape_cast %13 : vector<192x64xf32> to vector<6x32x64xf32>
    %15 = vector.extract_strided_slice %10 {offsets = [0, 128], sizes = [192, 64], strides = [1, 1]} : vector<192x192xf32> to vector<192x64xf32>
    %16 = vector.shape_cast %15 : vector<192x64xf32> to vector<6x32x64xf32>
    %c0_9 = arith.constant 0 : index
    %c0_10 = arith.constant 0 : index
    %17 = vector.load %arg3[%c0_9, %c0_10] : memref<64x64xf32, #tpu.memory_space<vmem>>, vector<64x64xf32>
    %18 = vector.extract_strided_slice %14 {offsets = [0, 0, 0], sizes = [1, 32, 64], strides = [1, 1, 1]} : vector<6x32x64xf32> to vector<1x32x64xf32>
    %19 = vector.shape_cast %18 : vector<1x32x64xf32> to vector<32x64xf32>
    %20 = vector.shape_cast %19 : vector<32x64xf32> to vector<1x32x64xf32>
    %21 = vector.broadcast %20 : vector<1x32x64xf32> to vector<6x32x64xf32>
    %22 = arith.mulf %12, %21 : vector<6x32x64xf32>
    %23 = vector.shape_cast %22 : vector<6x32x64xf32> to vector<192x64xf32>
    %cst_11 = arith.constant dense<0.000000e+00> : vector<192x64xf32>
    %24 = tpu.matmul %23, %17, %cst_11 {dimension_numbers = #tpu.dot_dimension_numbers<[1], [0], [0], [1], [0, 0, 1, 1], [], []>} : vector<192x64xf32>, vector<64x64xf32>, vector<192x64xf32> -> vector<192x64xf32>
    %c0_12 = arith.constant 0 : index
    %c0_13 = arith.constant 0 : index
    %c0_14 = arith.constant 0 : index
    %25 = vector.load %arg9[%c0_12, %c0_13, %c0_14] : memref<6x192x64xf32, #tpu.memory_space<vmem>>, vector<1x192x64xf32>
    %26 = vector.shape_cast %25 : vector<1x192x64xf32> to vector<192x64xf32>
    %27 = vector.shape_cast %24 : vector<192x64xf32> to vector<1x192x64xf32>
    tpu.vector_store %arg9[%c0_12, %c0_13, %c0_14], %27 {strides = array<i32>} : memref<6x192x64xf32, #tpu.memory_space<vmem>>, vector<1x192x64xf32>,
    %28 = vector.extract_strided_slice %14 {offsets = [1, 0, 0], sizes = [1, 32, 64], strides = [1, 1, 1]} : vector<6x32x64xf32> to vector<1x32x64xf32>
    %29 = vector.shape_cast %28 : vector<1x32x64xf32> to vector<32x64xf32>
    %30 = vector.shape_cast %29 : vector<32x64xf32> to vector<1x32x64xf32>
    %31 = vector.broadcast %30 : vector<1x32x64xf32> to vector<6x32x64xf32>
    %32 = arith.mulf %12, %31 : vector<6x32x64xf32>
    %33 = vector.shape_cast %32 : vector<6x32x64xf32> to vector<192x64xf32>
    %cst_15 = arith.constant dense<0.000000e+00> : vector<192x64xf32>
    %34 = tpu.matmul %33, %17, %cst_15 {dimension_numbers = #tpu.dot_dimension_numbers<[1], [0], [0], [1], [0, 0, 1, 1], [], []>} : vector<192x64xf32>, vector<64x64xf32>, vector<192x64xf32> -> vector<192x64xf32>
    %c1 = arith.constant 1 : index
    %c0_16 = arith.constant 0 : index
    %c0_17 = arith.constant 0 : index
    %35 = vector.load %arg9[%c1, %c0_16, %c0_17] : memref<6x192x64xf32, #tpu.memory_space<vmem>>, vector<1x192x64xf32>
    %36 = vector.shape_cast %35 : vector<1x192x64xf32> to vector<192x64xf32>
    %37 = vector.shape_cast %34 : vector<192x64xf32> to vector<1x192x64xf32>
    tpu.vector_store %arg9[%c1, %c0_16, %c0_17], %37 {strides = array<i32>} : memref<6x192x64xf32, #tpu.memory_space<vmem>>, vector<1x192x64xf32>,
    %38 = arith.maximumf %24, %34 : vector<192x64xf32>
    %39 = vector.extract_strided_slice %14 {offsets = [2, 0, 0], sizes = [1, 32, 64], strides = [1, 1, 1]} : vector<6x32x64xf32> to vector<1x32x64xf32>
    %40 = vector.shape_cast %39 : vector<1x32x64xf32> to vector<32x64xf32>
    %41 = vector.shape_cast %40 : vector<32x64xf32> to vector<1x32x64xf32>
    %42 = vector.broadcast %41 : vector<1x32x64xf32> to vector<6x32x64xf32>
    %43 = arith.mulf %12, %42 : vector<6x32x64xf32>
    %44 = vector.shape_cast %43 : vector<6x32x64xf32> to vector<192x64xf32>
    %cst_18 = arith.constant dense<0.000000e+00> : vector<192x64xf32>
    %45 = tpu.matmul %44, %17, %cst_18 {dimension_numbers = #tpu.dot_dimension_numbers<[1], [0], [0], [1], [0, 0, 1, 1], [], []>} : vector<192x64xf32>, vector<64x64xf32>, vector<192x64xf32> -> vector<192x64xf32>
    %c2 = arith.constant 2 : index
    %c0_19 = arith.constant 0 : index
    %c0_20 = arith.constant 0 : index
    %46 = vector.load %arg9[%c2, %c0_19, %c0_20] : memref<6x192x64xf32, #tpu.memory_space<vmem>>, vector<1x192x64xf32>
    %47 = vector.shape_cast %46 : vector<1x192x64xf32> to vector<192x64xf32>
    %48 = vector.shape_cast %45 : vector<192x64xf32> to vector<1x192x64xf32>
    tpu.vector_store %arg9[%c2, %c0_19, %c0_20], %48 {strides = array<i32>} : memref<6x192x64xf32, #tpu.memory_space<vmem>>, vector<1x192x64xf32>,
    %49 = arith.maximumf %38, %45 : vector<192x64xf32>
    %50 = vector.extract_strided_slice %14 {offsets = [3, 0, 0], sizes = [1, 32, 64], strides = [1, 1, 1]} : vector<6x32x64xf32> to vector<1x32x64xf32>
    %51 = vector.shape_cast %50 : vector<1x32x64xf32> to vector<32x64xf32>
    %52 = vector.shape_cast %51 : vector<32x64xf32> to vector<1x32x64xf32>
    %53 = vector.broadcast %52 : vector<1x32x64xf32> to vector<6x32x64xf32>
    %54 = arith.mulf %12, %53 : vector<6x32x64xf32>
    %55 = vector.shape_cast %54 : vector<6x32x64xf32> to vector<192x64xf32>
    %cst_21 = arith.constant dense<0.000000e+00> : vector<192x64xf32>
    %56 = tpu.matmul %55, %17, %cst_21 {dimension_numbers = #tpu.dot_dimension_numbers<[1], [0], [0], [1], [0, 0, 1, 1], [], []>} : vector<192x64xf32>, vector<64x64xf32>, vector<192x64xf32> -> vector<192x64xf32>
    %c3 = arith.constant 3 : index
    %c0_22 = arith.constant 0 : index
    %c0_23 = arith.constant 0 : index
    %57 = vector.load %arg9[%c3, %c0_22, %c0_23] : memref<6x192x64xf32, #tpu.memory_space<vmem>>, vector<1x192x64xf32>
    %58 = vector.shape_cast %57 : vector<1x192x64xf32> to vector<192x64xf32>
    %59 = vector.shape_cast %56 : vector<192x64xf32> to vector<1x192x64xf32>
    tpu.vector_store %arg9[%c3, %c0_22, %c0_23], %59 {strides = array<i32>} : memref<6x192x64xf32, #tpu.memory_space<vmem>>, vector<1x192x64xf32>,
    %60 = arith.maximumf %49, %56 : vector<192x64xf32>
    %61 = vector.extract_strided_slice %14 {offsets = [4, 0, 0], sizes = [1, 32, 64], strides = [1, 1, 1]} : vector<6x32x64xf32> to vector<1x32x64xf32>
    %62 = vector.shape_cast %61 : vector<1x32x64xf32> to vector<32x64xf32>
    %63 = vector.shape_cast %62 : vector<32x64xf32> to vector<1x32x64xf32>
    %64 = vector.broadcast %63 : vector<1x32x64xf32> to vector<6x32x64xf32>
    %65 = arith.mulf %12, %64 : vector<6x32x64xf32>
    %66 = vector.shape_cast %65 : vector<6x32x64xf32> to vector<192x64xf32>
    %cst_24 = arith.constant dense<0.000000e+00> : vector<192x64xf32>
    %67 = tpu.matmul %66, %17, %cst_24 {dimension_numbers = #tpu.dot_dimension_numbers<[1], [0], [0], [1], [0, 0, 1, 1], [], []>} : vector<192x64xf32>, vector<64x64xf32>, vector<192x64xf32> -> vector<192x64xf32>
    %c4 = arith.constant 4 : index
    %c0_25 = arith.constant 0 : index
    %c0_26 = arith.constant 0 : index
    %68 = vector.load %arg9[%c4, %c0_25, %c0_26] : memref<6x192x64xf32, #tpu.memory_space<vmem>>, vector<1x192x64xf32>
    %69 = vector.shape_cast %68 : vector<1x192x64xf32> to vector<192x64xf32>
    %70 = vector.shape_cast %67 : vector<192x64xf32> to vector<1x192x64xf32>
    tpu.vector_store %arg9[%c4, %c0_25, %c0_26], %70 {strides = array<i32>} : memref<6x192x64xf32, #tpu.memory_space<vmem>>, vector<1x192x64xf32>,
    %71 = arith.maximumf %60, %67 : vector<192x64xf32>
    %72 = vector.extract_strided_slice %14 {offsets = [5, 0, 0], sizes = [1, 32, 64], strides = [1, 1, 1]} : vector<6x32x64xf32> to vector<1x32x64xf32>
    %73 = vector.shape_cast %72 : vector<1x32x64xf32> to vector<32x64xf32>
    %74 = vector.shape_cast %73 : vector<32x64xf32> to vector<1x32x64xf32>
    %75 = vector.broadcast %74 : vector<1x32x64xf32> to vector<6x32x64xf32>
    %76 = arith.mulf %12, %75 : vector<6x32x64xf32>
    %77 = vector.shape_cast %76 : vector<6x32x64xf32> to vector<192x64xf32>
    %cst_27 = arith.constant dense<0.000000e+00> : vector<192x64xf32>
    %78 = tpu.matmul %77, %17, %cst_27 {dimension_numbers = #tpu.dot_dimension_numbers<[1], [0], [0], [1], [0, 0, 1, 1], [], []>} : vector<192x64xf32>, vector<64x64xf32>, vector<192x64xf32> -> vector<192x64xf32>
    %c5 = arith.constant 5 : index
    %c0_28 = arith.constant 0 : index
    %c0_29 = arith.constant 0 : index
    %79 = vector.load %arg9[%c5, %c0_28, %c0_29] : memref<6x192x64xf32, #tpu.memory_space<vmem>>, vector<1x192x64xf32>
    %80 = vector.shape_cast %79 : vector<1x192x64xf32> to vector<192x64xf32>
    %81 = vector.shape_cast %78 : vector<192x64xf32> to vector<1x192x64xf32>
    tpu.vector_store %arg9[%c5, %c0_28, %c0_29], %81 {strides = array<i32>} : memref<6x192x64xf32, #tpu.memory_space<vmem>>, vector<1x192x64xf32>,
    %82 = arith.maximumf %71, %78 : vector<192x64xf32>
    %cst_30 = arith.constant 0.000000e+00 : f32
    %83 = vector.broadcast %cst_30 : f32 to vector<192x64xf32>
    %cst_31 = arith.constant 0.000000e+00 : f32
    %84 = vector.broadcast %cst_31 : f32 to vector<6x32x64xf32>
    %c0_32 = arith.constant 0 : index
    %c0_33 = arith.constant 0 : index
    %c0_34 = arith.constant 0 : index
    %85 = vector.load %arg9[%c0_32, %c0_33, %c0_34] : memref<6x192x64xf32, #tpu.memory_space<vmem>>, vector<1x192x64xf32>
    %86 = vector.shape_cast %85 : vector<1x192x64xf32> to vector<192x64xf32>
    %87 = arith.subf %86, %82 : vector<192x64xf32>
    %88 = math.exp %87 : vector<192x64xf32>
    %89 = arith.addf %83, %88 : vector<192x64xf32>
    %90 = vector.shape_cast %88 : vector<192x64xf32> to vector<6x32x64xf32>
    %91 = vector.extract_strided_slice %16 {offsets = [0, 0, 0], sizes = [1, 32, 64], strides = [1, 1, 1]} : vector<6x32x64xf32> to vector<1x32x64xf32>
    %92 = vector.shape_cast %91 : vector<1x32x64xf32> to vector<32x64xf32>
    %93 = vector.shape_cast %92 : vector<32x64xf32> to vector<1x32x64xf32>
    %94 = vector.broadcast %93 : vector<1x32x64xf32> to vector<6x32x64xf32>
    %95 = arith.mulf %90, %94 : vector<6x32x64xf32>
    %96 = arith.addf %84, %95 : vector<6x32x64xf32>
    %c1_35 = arith.constant 1 : index
    %c0_36 = arith.constant 0 : index
    %c0_37 = arith.constant 0 : index
    %97 = vector.load %arg9[%c1_35, %c0_36, %c0_37] : memref<6x192x64xf32, #tpu.memory_space<vmem>>, vector<1x192x64xf32>
    %98 = vector.shape_cast %97 : vector<1x192x64xf32> to vector<192x64xf32>
    %99 = arith.subf %98, %82 : vector<192x64xf32>
    %100 = math.exp %99 : vector<192x64xf32>
    %101 = arith.addf %89, %100 : vector<192x64xf32>
    %102 = vector.shape_cast %100 : vector<192x64xf32> to vector<6x32x64xf32>
    %103 = vector.extract_strided_slice %16 {offsets = [1, 0, 0], sizes = [1, 32, 64], strides = [1, 1, 1]} : vector<6x32x64xf32> to vector<1x32x64xf32>
    %104 = vector.shape_cast %103 : vector<1x32x64xf32> to vector<32x64xf32>
    %105 = vector.shape_cast %104 : vector<32x64xf32> to vector<1x32x64xf32>
    %106 = vector.broadcast %105 : vector<1x32x64xf32> to vector<6x32x64xf32>
    %107 = arith.mulf %102, %106 : vector<6x32x64xf32>
    %108 = arith.addf %96, %107 : vector<6x32x64xf32>
    %c2_38 = arith.constant 2 : index
    %c0_39 = arith.constant 0 : index
    %c0_40 = arith.constant 0 : index
    %109 = vector.load %arg9[%c2_38, %c0_39, %c0_40] : memref<6x192x64xf32, #tpu.memory_space<vmem>>, vector<1x192x64xf32>
    %110 = vector.shape_cast %109 : vector<1x192x64xf32> to vector<192x64xf32>
    %111 = arith.subf %110, %82 : vector<192x64xf32>
    %112 = math.exp %111 : vector<192x64xf32>
    %113 = arith.addf %101, %112 : vector<192x64xf32>
    %114 = vector.shape_cast %112 : vector<192x64xf32> to vector<6x32x64xf32>
    %115 = vector.extract_strided_slice %16 {offsets = [2, 0, 0], sizes = [1, 32, 64], strides = [1, 1, 1]} : vector<6x32x64xf32> to vector<1x32x64xf32>
    %116 = vector.shape_cast %115 : vector<1x32x64xf32> to vector<32x64xf32>
    %117 = vector.shape_cast %116 : vector<32x64xf32> to vector<1x32x64xf32>
    %118 = vector.broadcast %117 : vector<1x32x64xf32> to vector<6x32x64xf32>
    %119 = arith.mulf %114, %118 : vector<6x32x64xf32>
    %120 = arith.addf %108, %119 : vector<6x32x64xf32>
    %c3_41 = arith.constant 3 : index
    %c0_42 = arith.constant 0 : index
    %c0_43 = arith.constant 0 : index
    %121 = vector.load %arg9[%c3_41, %c0_42, %c0_43] : memref<6x192x64xf32, #tpu.memory_space<vmem>>, vector<1x192x64xf32>
    %122 = vector.shape_cast %121 : vector<1x192x64xf32> to vector<192x64xf32>
    %123 = arith.subf %122, %82 : vector<192x64xf32>
    %124 = math.exp %123 : vector<192x64xf32>
    %125 = arith.addf %113, %124 : vector<192x64xf32>
    %126 = vector.shape_cast %124 : vector<192x64xf32> to vector<6x32x64xf32>
    %127 = vector.extract_strided_slice %16 {offsets = [3, 0, 0], sizes = [1, 32, 64], strides = [1, 1, 1]} : vector<6x32x64xf32> to vector<1x32x64xf32>
    %128 = vector.shape_cast %127 : vector<1x32x64xf32> to vector<32x64xf32>
    %129 = vector.shape_cast %128 : vector<32x64xf32> to vector<1x32x64xf32>
    %130 = vector.broadcast %129 : vector<1x32x64xf32> to vector<6x32x64xf32>
    %131 = arith.mulf %126, %130 : vector<6x32x64xf32>
    %132 = arith.addf %120, %131 : vector<6x32x64xf32>
    %c4_44 = arith.constant 4 : index
    %c0_45 = arith.constant 0 : index
    %c0_46 = arith.constant 0 : index
    %133 = vector.load %arg9[%c4_44, %c0_45, %c0_46] : memref<6x192x64xf32, #tpu.memory_space<vmem>>, vector<1x192x64xf32>
    %134 = vector.shape_cast %133 : vector<1x192x64xf32> to vector<192x64xf32>
    %135 = arith.subf %134, %82 : vector<192x64xf32>
    %136 = math.exp %135 : vector<192x64xf32>
    %137 = arith.addf %125, %136 : vector<192x64xf32>
    %138 = vector.shape_cast %136 : vector<192x64xf32> to vector<6x32x64xf32>
    %139 = vector.extract_strided_slice %16 {offsets = [4, 0, 0], sizes = [1, 32, 64], strides = [1, 1, 1]} : vector<6x32x64xf32> to vector<1x32x64xf32>
    %140 = vector.shape_cast %139 : vector<1x32x64xf32> to vector<32x64xf32>
    %141 = vector.shape_cast %140 : vector<32x64xf32> to vector<1x32x64xf32>
    %142 = vector.broadcast %141 : vector<1x32x64xf32> to vector<6x32x64xf32>
    %143 = arith.mulf %138, %142 : vector<6x32x64xf32>
    %144 = arith.addf %132, %143 : vector<6x32x64xf32>
    %c5_47 = arith.constant 5 : index
    %c0_48 = arith.constant 0 : index
    %c0_49 = arith.constant 0 : index
    %145 = vector.load %arg9[%c5_47, %c0_48, %c0_49] : memref<6x192x64xf32, #tpu.memory_space<vmem>>, vector<1x192x64xf32>
    %146 = vector.shape_cast %145 : vector<1x192x64xf32> to vector<192x64xf32>
    %147 = arith.subf %146, %82 : vector<192x64xf32>
    %148 = math.exp %147 : vector<192x64xf32>
    %149 = arith.addf %137, %148 : vector<192x64xf32>
    %150 = vector.shape_cast %148 : vector<192x64xf32> to vector<6x32x64xf32>
    %151 = vector.extract_strided_slice %16 {offsets = [5, 0, 0], sizes = [1, 32, 64], strides = [1, 1, 1]} : vector<6x32x64xf32> to vector<1x32x64xf32>
    %152 = vector.shape_cast %151 : vector<1x32x64xf32> to vector<32x64xf32>
    %153 = vector.shape_cast %152 : vector<32x64xf32> to vector<1x32x64xf32>
    %154 = vector.broadcast %153 : vector<1x32x64xf32> to vector<6x32x64xf32>
    %155 = arith.mulf %150, %154 : vector<6x32x64xf32>
    %156 = arith.addf %144, %155 : vector<6x32x64xf32>
    %157 = vector.shape_cast %156 : vector<6x32x64xf32> to vector<192x64xf32>
    %158 = tpu.reciprocal %149 {approx = true} : vector<192x64xf32> -> vector<192x64xf32>
    %159 = arith.mulf %157, %158 : vector<192x64xf32>
    %c0_50 = arith.constant 0 : index
    %c0_51 = arith.constant 0 : index
    %160 = vector.load %arg7[%c0_50, %c0_51] : memref<8x64xf32, #tpu.memory_space<vmem>>, vector<8x64xf32>
    %161 = vector.extract_strided_slice %160 {offsets = [0, 0], sizes = [1, 64], strides = [1, 1]} : vector<8x64xf32> to vector<1x64xf32>
    %162 = vector.extract_strided_slice %160 {offsets = [1, 0], sizes = [1, 64], strides = [1, 1]} : vector<8x64xf32> to vector<1x64xf32>
    %163 = vector.extract_strided_slice %160 {offsets = [2, 0], sizes = [1, 64], strides = [1, 1]} : vector<8x64xf32> to vector<1x64xf32>
    %164 = vector.extract_strided_slice %160 {offsets = [3, 0], sizes = [1, 64], strides = [1, 1]} : vector<8x64xf32> to vector<1x64xf32>
    %165 = vector.extract_strided_slice %160 {offsets = [4, 0], sizes = [1, 64], strides = [1, 1]} : vector<8x64xf32> to vector<1x64xf32>
    %166 = vector.extract_strided_slice %160 {offsets = [5, 0], sizes = [1, 64], strides = [1, 1]} : vector<8x64xf32> to vector<1x64xf32>
    %167 = vector.extract_strided_slice %160 {offsets = [6, 0], sizes = [1, 64], strides = [1, 1]} : vector<8x64xf32> to vector<1x64xf32>
    %168 = arith.truncf %159 : vector<192x64xf32> to vector<192x64xbf16>
    %c0_52 = arith.constant 0 : index
    %c0_53 = arith.constant 0 : index
    %c0_54 = arith.constant 0 : index
    %169 = vector.load %arg6[%c0_52, %c0_53, %c0_54] : memref<3x64x64xbf16, #tpu.memory_space<vmem>>, vector<1x64x64xbf16>
    %170 = vector.shape_cast %169 : vector<1x64x64xbf16> to vector<64x64xbf16>
    %cst_55 = arith.constant dense<0.000000e+00> : vector<192x64xf32>
    %171 = tpu.matmul %168, %170, %cst_55 {dimension_numbers = #tpu.dot_dimension_numbers<[1], [0], [0], [1], [0, 0, 1, 1], [], []>} : vector<192x64xbf16>, vector<64x64xbf16>, vector<192x64xf32> -> vector<192x64xf32>
    %172 = vector.broadcast %161 : vector<1x64xf32> to vector<192x64xf32>
    %173 = arith.addf %171, %172 : vector<192x64xf32>
    %c0_56 = arith.constant 0 : index
    %c0_57 = arith.constant 0 : index
    %c0_58 = arith.constant 0 : index
    %174 = vector.load %arg1[%c0_56, %c0_57, %c0_58] : memref<6x32x64xf32, #tpu.memory_space<vmem>>, vector<6x32x64xf32>
    %c0_59 = arith.constant 0 : index
    %c0_60 = arith.constant 0 : index
    %c0_61 = arith.constant 0 : index
    %175 = vector.load %arg2[%c0_59, %c0_60, %c0_61] : memref<6x1x64xf32, #tpu.memory_space<vmem>>, vector<6x1x64xf32>
    %176 = vector.broadcast %175 : vector<6x1x64xf32> to vector<6x32x64xf32>
    %177 = arith.addf %174, %176 : vector<6x32x64xf32>
    %178 = vector.shape_cast %177 : vector<6x32x64xf32> to vector<192x64xf32>
    %179 = arith.addf %173, %178 : vector<192x64xf32>
    %cst_62 = arith.constant dense<0.000000e+00> : vector<192xf32>
    %180 = vector.multi_reduction <add>, %179, %cst_62 [1] : vector<192x64xf32> to vector<192xf32>
    %181 = vector.shape_cast %180 : vector<192xf32> to vector<192x1xf32>
    %cst_63 = arith.constant 6.400000e+01 : f32
    %182 = vector.broadcast %cst_63 : f32 to vector<192x1xf32>
    %183 = arith.divf %181, %182 : vector<192x1xf32>
    %184 = vector.broadcast %183 : vector<192x1xf32> to vector<192x64xf32>
    %185 = arith.subf %179, %184 : vector<192x64xf32>
    %186 = arith.mulf %185, %185 : vector<192x64xf32>
    %cst_64 = arith.constant dense<0.000000e+00> : vector<192xf32>
    %187 = vector.multi_reduction <add>, %186, %cst_64 [1] : vector<192x64xf32> to vector<192xf32>
    %188 = vector.shape_cast %187 : vector<192xf32> to vector<192x1xf32>
    %cst_65 = arith.constant 6.400000e+01 : f32
    %189 = vector.broadcast %cst_65 : f32 to vector<192x1xf32>
    %190 = arith.divf %188, %189 : vector<192x1xf32>
    %cst_66 = arith.constant 9.99999974E-6 : f32
    %191 = vector.broadcast %cst_66 : f32 to vector<192x1xf32>
    %192 = arith.addf %190, %191 : vector<192x1xf32>
    %193 = math.rsqrt %192 : vector<192x1xf32>
    %194 = vector.broadcast %193 : vector<192x1xf32> to vector<192x64xf32>
    %195 = arith.mulf %185, %194 : vector<192x64xf32>
    %196 = vector.broadcast %164 : vector<1x64xf32> to vector<192x64xf32>
    %197 = arith.mulf %195, %196 : vector<192x64xf32>
    %198 = vector.broadcast %165 : vector<1x64xf32> to vector<192x64xf32>
    %199 = arith.addf %197, %198 : vector<192x64xf32>
    %200 = arith.truncf %199 : vector<192x64xf32> to vector<192x64xbf16>
    %c1_67 = arith.constant 1 : index
    %c0_68 = arith.constant 0 : index
    %c0_69 = arith.constant 0 : index
    %201 = vector.load %arg6[%c1_67, %c0_68, %c0_69] : memref<3x64x64xbf16, #tpu.memory_space<vmem>>, vector<1x64x64xbf16>
    %202 = vector.shape_cast %201 : vector<1x64x64xbf16> to vector<64x64xbf16>
    %cst_70 = arith.constant dense<0.000000e+00> : vector<192x64xf32>
    %203 = tpu.matmul %200, %202, %cst_70 {dimension_numbers = #tpu.dot_dimension_numbers<[1], [0], [0], [1], [0, 0, 1, 1], [], []>} : vector<192x64xbf16>, vector<64x64xbf16>, vector<192x64xf32> -> vector<192x64xf32>
    %204 = vector.broadcast %162 : vector<1x64xf32> to vector<192x64xf32>
    %205 = arith.addf %203, %204 : vector<192x64xf32>
    %cst_71 = arith.constant 0.000000e+00 : f32
    %206 = vector.broadcast %cst_71 : f32 to vector<192x64xf32>
    %207 = arith.maximumf %205, %206 : vector<192x64xf32>
    %208 = arith.truncf %207 : vector<192x64xf32> to vector<192x64xbf16>
    %c2_72 = arith.constant 2 : index
    %c0_73 = arith.constant 0 : index
    %c0_74 = arith.constant 0 : index
    %209 = vector.load %arg6[%c2_72, %c0_73, %c0_74] : memref<3x64x64xbf16, #tpu.memory_space<vmem>>, vector<1x64x64xbf16>
    %210 = vector.shape_cast %209 : vector<1x64x64xbf16> to vector<64x64xbf16>
    %cst_75 = arith.constant dense<0.000000e+00> : vector<192x64xf32>
    %211 = tpu.matmul %208, %210, %cst_75 {dimension_numbers = #tpu.dot_dimension_numbers<[1], [0], [0], [1], [0, 0, 1, 1], [], []>} : vector<192x64xbf16>, vector<64x64xbf16>, vector<192x64xf32> -> vector<192x64xf32>
    %212 = vector.broadcast %163 : vector<1x64xf32> to vector<192x64xf32>
    %213 = arith.addf %211, %212 : vector<192x64xf32>
    %214 = arith.addf %213, %199 : vector<192x64xf32>
    %cst_76 = arith.constant dense<0.000000e+00> : vector<192xf32>
    %215 = vector.multi_reduction <add>, %214, %cst_76 [1] : vector<192x64xf32> to vector<192xf32>
    %216 = vector.shape_cast %215 : vector<192xf32> to vector<192x1xf32>
    %cst_77 = arith.constant 6.400000e+01 : f32
    %217 = vector.broadcast %cst_77 : f32 to vector<192x1xf32>
    %218 = arith.divf %216, %217 : vector<192x1xf32>
    %219 = vector.broadcast %218 : vector<192x1xf32> to vector<192x64xf32>
    %220 = arith.subf %214, %219 : vector<192x64xf32>
    %221 = arith.mulf %220, %220 : vector<192x64xf32>
    %cst_78 = arith.constant dense<0.000000e+00> : vector<192xf32>
    %222 = vector.multi_reduction <add>, %221, %cst_78 [1] : vector<192x64xf32> to vector<192xf32>
    %223 = vector.shape_cast %222 : vector<192xf32> to vector<192x1xf32>
    %cst_79 = arith.constant 6.400000e+01 : f32
    %224 = vector.broadcast %cst_79 : f32 to vector<192x1xf32>
    %225 = arith.divf %223, %224 : vector<192x1xf32>
    %cst_80 = arith.constant 9.99999974E-6 : f32
    %226 = vector.broadcast %cst_80 : f32 to vector<192x1xf32>
    %227 = arith.addf %225, %226 : vector<192x1xf32>
    %228 = math.rsqrt %227 : vector<192x1xf32>
    %229 = vector.broadcast %228 : vector<192x1xf32> to vector<192x64xf32>
    %230 = arith.mulf %220, %229 : vector<192x64xf32>
    %231 = vector.broadcast %166 : vector<1x64xf32> to vector<192x64xf32>
    %232 = arith.mulf %230, %231 : vector<192x64xf32>
    %233 = vector.broadcast %167 : vector<1x64xf32> to vector<192x64xf32>
    %234 = arith.addf %232, %233 : vector<192x64xf32>
    %235 = vector.shape_cast %234 : vector<192x64xf32> to vector<6x32x64xf32>
    %c0_81 = arith.constant 0 : index
    %c0_82 = arith.constant 0 : index
    %c0_83 = arith.constant 0 : index
    %236 = vector.load %arg8[%c0_81, %c0_82, %c0_83] : memref<6x32x64xf32, #tpu.memory_space<vmem>>, vector<6x32x64xf32>
    tpu.vector_store %arg8[%c0_81, %c0_82, %c0_83], %235 {strides = array<i32>} : memref<6x32x64xf32, #tpu.memory_space<vmem>>, vector<6x32x64xf32>,
    return
  }
  func.func @transform_0(%arg0: i32) -> (i32, i32, i32) {
    %c0_i32 = arith.constant 0 : i32
    %c0_i32_0 = arith.constant 0 : i32
    %c0_i32_1 = arith.constant 0 : i32
    return %c0_i32, %arg0, %c0_i32_0 : i32, i32, i32
  }
  func.func @transform_1(%arg0: i32) -> (i32, i32, i32) {
    %c0_i32 = arith.constant 0 : i32
    %c0_i32_0 = arith.constant 0 : i32
    %c0_i32_1 = arith.constant 0 : i32
    %c0_i32_2 = arith.constant 0 : i32
    return %c0_i32, %c0_i32_0, %c0_i32_1 : i32, i32, i32
  }
  func.func @transform_2(%arg0: i32) -> (i32, i32) {
    %c0_i32 = arith.constant 0 : i32
    %c0_i32_0 = arith.constant 0 : i32
    %c0_i32_1 = arith.constant 0 : i32
    return %c0_i32, %c0_i32_0 : i32, i32
  }
  func.func @transform_3(%arg0: i32) -> (i32, i32) {
    %c0_i32 = arith.constant 0 : i32
    %c0_i32_0 = arith.constant 0 : i32
    %c0_i32_1 = arith.constant 0 : i32
    return %c0_i32, %c0_i32_0 : i32, i32
  }
  func.func @transform_4(%arg0: i32) -> (i32, i32) {
    %c0_i32 = arith.constant 0 : i32
    %c0_i32_0 = arith.constant 0 : i32
    %c0_i32_1 = arith.constant 0 : i32
    return %c0_i32, %c0_i32_0 : i32, i32
  }
  func.func @transform_5(%arg0: i32) -> (i32, i32, i32) {
    %c0_i32 = arith.constant 0 : i32
    %c0_i32_0 = arith.constant 0 : i32
    %c0_i32_1 = arith.constant 0 : i32
    %c0_i32_2 = arith.constant 0 : i32
    return %c0_i32, %c0_i32_0, %c0_i32_1 : i32, i32, i32
  }
  func.func @transform_6(%arg0: i32) -> (i32, i32) {
    %c0_i32 = arith.constant 0 : i32
    %c0_i32_0 = arith.constant 0 : i32
    %c0_i32_1 = arith.constant 0 : i32
    return %c0_i32, %c0_i32_0 : i32, i32
  }
  func.func @transform_7(%arg0: i32) -> (i32, i32, i32) {
    %c0_i32 = arith.constant 0 : i32
    %c0_i32_0 = arith.constant 0 : i32
    %c0_i32_1 = arith.constant 0 : i32
    return %c0_i32, %arg0, %c0_i32_0 : i32, i32, i32
  }
}

</mosaic_0001>

<bundles_post_ra>
// kernel: temporal_conv_layer.2
= control target key start
LH: loop header
LB: loop body
LE: loop exit
PB: predicated region body
PF: predicated region fallthrough
CT: control target
= control target key end

     0   :  { %s487_s12 = smov 0   ;;  %s556_s0 = inlined_call_operand.vmem [shape: bf16[2,12,96], index: 0, kind: input, shape index: {}]   ;;  %s557_s1 = inlined_call_operand.vmem [shape: bf16[64,12], index: 1, kind: input, shape index: {}]   ;;  %s558_s2 = inlined_call_operand.vmem [shape: f32[64,1], index: 2, kind: input, shape index: {}]   ;;  %s559_s3 = inlined_call_operand.vmem [shape: f32[2,64,96], index: 3, kind: output, shape index: {}]  }
   0x1 LB: > { %s401_s13 = sadd.s32 4294967295, %s464_s12   ;;  %p405_p0 = scmp.ge.s32.totalorder %s464_s12, 1  ;;  %s464_s12 = sphi %s487_s12, %s13_s12  }
   0x2   : > { %p137_p1 = scmp.lt.s32.totalorder %s464_s12, 3 }
   0x4   : > { %p138_p2 = pnand %p405_p0, %p137_p1 }
   0x5   : > { %p161_p3 = scmp.lt.s32.totalorder (!%p138_p2), %s401_s13, 1  ;;  %v454_v0 = vld [vmem:[%s557_s1] sm:$0xff] (!%p138_p2)   ;;  %vm255_vm0 = vcmask (!%p138_p2), 97280   ;;  %v455_v1 = vld [vmem:[%s557_s1 + $0x10] sm:$0xff] (!%p138_p2)   ;;  %v466_v2 = vmov (!%p138_p2), 0   ;;  %vm268_vm1 = vcmask (!%p138_p2), 1045504  }
   0x6   : > { %141 = sbr.rel (%p138_p2) target bundleno = 239 (0xef), region = 32  ;;  %430 = vmatprep.mubr.msk.bf16.mxu0 (!%p138_p2), %vm255_vm0, %v454_v0  ;;  %434 = vmatprep.mubr.msk.bf16.mxu1 (!%p138_p2), %vm255_vm0, %v455_v1  ;;  %v184_v3 = vld [vmem:[%s558_s2 + $0x10] sm:$0xff] (!%p138_p2)  ;;  %v182_v4 = vld [vmem:[%s558_s2] sm:$0xff] (!%p138_p2)  ;;  %v185_v6 = vld [vmem:[%s558_s2 + $0x18] sm:$0xff] (!%p138_p2)  ;;  %vm337_vm2 = vcmask (!%p138_p2), 785408  }
   0x7   : > { %452 = vset.pattern.permute.xlu1 (!%p138_p2), %v466_v2  ;;  %451 = vset.pattern.permute.xlu0 (!%p138_p2), %v466_v2  ;;  %v183_v7 = vld [vmem:[%s558_s2 + $0x8] sm:$0xff] (!%p138_p2)  ;;  %v457_v10 = vld [vmem:[%s557_s1 + $0x18] sm:$0xff] (!%p138_p2)   ;;  %v186_v12 = vld [vmem:[%s558_s2 + $0x20] sm:$0xff] (!%p138_p2) }
   0x8   : > { %202 = vperm.xlu1 (!%p138_p2), %452, %v184_v3   ;;  %192 = vperm.xlu0 (!%p138_p2), %451, %v182_v4   ;;  %v456_v9 = vld [vmem:[%s557_s1 + $0x8] sm:$0xff] (!%p138_p2)   ;;  %v189_v13 = vld [vmem:[%s558_s2 + $0x38] sm:$0xff] (!%p138_p2)  ;;  %v188_v14 = vld [vmem:[%s558_s2 + $0x30] sm:$0xff] (!%p138_p2) }
   0x9   : > { %v187_v11 = vld [vmem:[%s558_s2 + $0x28] sm:$0xff] (!%p138_p2) }
   0xc   : > { %207 = vperm.xlu1 (!%p138_p2), %452, %v185_v6   ;;  %197 = vperm.xlu0 (!%p138_p2), %451, %v183_v7  }
   0xd   : > { %s561_s13 = smov (!%p161_p3, %s401_s13), 1 }
   0xe   : > { %s421_s18 = sshll.u32 %s561_s13, 3  ;;  %s422_s17 = sshll.u32 %s561_s13, 6 }
   0xf   : > { %s165_s25 = scalar_lea.vmem %s556_s0, %s421_s18  ;;  %s170_s20 = scalar_lea.vmem %s559_s3, %s422_s17 }
  0x10   : > { %v453_v5 = vld [vmem:[%s165_s25] sm:$0x3f]   ;;  %217 = vperm.xlu1 %452, %v187_v11   ;;  %212 = vperm.xlu0 %451, %v186_v12  }
  0x11   : > { %440 = vmatprep.subr.msk.bf16.mxu0 %vm268_vm1, %v453_v5  ;;  %441 = vmatprep.subr.msk.bf16.mxu1 %vm268_vm1, %v453_v5  ;;  %v270_v8 = vsel %vm268_vm1, %v453_v5, 0 }
  0x12   : > { %429 = vmatpush3.bf16.msra.mxu0 %v270_v8  ;;  %439 = vmatpush3.bf16.msra.mxu1 %v270_v8 }
  0x14   : > { %227 = vperm.xlu1 %452, %v189_v13   ;;  %222 = vperm.xlu0 %451, %v188_v14  }
  0x15   : > { %431 = vmatmul.mubr.msk.bf16.vlgmr.msra.gmra.mrb[0].mxu0 %vm255_vm0, %v456_v9  ;;  %435 = vmatmul.mubr.msk.bf16.vlgmr.msra.gmra.mrb[0].mxu1 %vm255_vm0, %v457_v10 }
  0x87   : > { %v203_v15 = vpop.permute.xlu1 %202  ;;  %v193_v16 = vpop.permute.xlu0 %192 }
  0x8b   : > { %v208_v17 = vpop.permute.xlu1 %207  ;;  %v198_v18 = vpop.permute.xlu0 %197 }
  0x8f   : > { %v218_v19 = vpop.permute.xlu1 %217  ;;  %v213_v20 = vpop.permute.xlu0 %212 }
  0x93   : > { %v228_v21 = vpop.permute.xlu1 %227  ;;  %v223_v22 = vpop.permute.xlu0 %222 }
  0xe8   : > { %v432_v23 = vpop.f32.mrb[0].mxu0  ;;  %v436_v24 = vpop.f32.mrb[0].mxu1 }
  0xe9   : > { %v315_v25 = vadd.f32 %v432_v23, %v203_v15  ;;  %v331_v26 = vadd.f32 %v436_v24, %v223_v22  ;;  %v306_v27 = vpop.f32.mrb[1].mxu0  ;;  %v322_v28 = vpop.f32.mrb[1].mxu1 }
  0xea   : > { %v307_v29 = vadd.f32 %v306_v27, %v193_v16  ;;  %v323_v30 = vadd.f32 %v322_v28, %v213_v20  ;;  %v433_v31 = vpop.f32.mrb[2].mxu0  ;;  %v437_v32 = vpop.f32.mrb[2].mxu1 }
  0xeb   : > { %340 = vst.msk [vmem:[%s170_s20 + $0x10] sm:$0xff] %vm337_vm2, %v315_v25  ;;  %344 = vst.msk [vmem:[%s170_s20 + $0x30] sm:$0xff] %vm337_vm2, %v331_v26  ;;  %v318_v33 = vadd.f32 %v433_v31, %v208_v17  ;;  %v334_v34 = vadd.f32 %v437_v32, %v228_v21  ;;  %v309_v35 = vpop.f32.mrb[3].mxu0  ;;  %v325_v36 = vpop.f32.mrb[3].mxu1 }
  0xec   : > { %338 = vst.msk [vmem:[%s170_s20] sm:$0xff] %vm337_vm2, %v307_v29  ;;  %342 = vst.msk [vmem:[%s170_s20 + $0x20] sm:$0xff] %vm337_vm2, %v323_v30  ;;  %v310_v37 = vadd.f32 %v309_v35, %v198_v18  ;;  %v326_v38 = vadd.f32 %v325_v36, %v218_v19 }
  0xed   : > { %341 = vst.msk [vmem:[%s170_s20 + $0x18] sm:$0xff] %vm337_vm2, %v318_v33  ;;  %345 = vst.msk [vmem:[%s170_s20 + $0x38] sm:$0xff] %vm337_vm2, %v334_v34 }
  0xee   : > { %339 = vst.msk [vmem:[%s170_s20 + $0x8] sm:$0xff] %vm337_vm2, %v310_v37  ;;  %343 = vst.msk [vmem:[%s170_s20 + $0x28] sm:$0xff] %vm337_vm2, %v326_v38 }
  0xef PF: > { %s13_s12 = sadd.s32 1, %s464_s12  }
  0xf0   : > { %p10_p4 = scmp.ge.s32.totalorder %s13_s12, 4  }
  0xf2   :  { %12 = sbr.rel (!%p10_p4) target bundleno = 1 (0x1), region = 62 }

// kernel: temporal_conv_layer.3
= control target key start
LH: loop header
LB: loop body
LE: loop exit
PB: predicated region body
PF: predicated region fallthrough
CT: control target
= control target key end

     0   :  { %v6515_v1 = vmov 0   ;;  %vm189_vm0 = vcmask 523264   ;;  %s10427_s3 = inlined_call_operand.vmem [shape: bf16[64,192], index: 3, kind: input, shape index: {}]   ;;  %s10428_s0 = inlined_call_operand.vmem [shape: f32[6,32,64], index: 0, kind: input, shape index: {}]   ;;  %s10429_s1 = inlined_call_operand.vmem [shape: f32[6,1,64], index: 1, kind: input, shape index: {}]   ;;  %s10430_s2 = inlined_call_operand.vmem [shape: f32[64,64], index: 2, kind: input, shape index: {}]   ;;  %s10431_s4 = inlined_call_operand.vmem [shape: f32[1,192], index: 4, kind: input, shape index: {}]   ;;  %s10432_s5 = inlined_call_operand.vmem [shape: bf16[3,64,64], index: 5, kind: input, shape index: {}]   ;;  %s10433_s6 = inlined_call_operand.vmem [shape: f32[8,64], index: 6, kind: input, shape index: {}]   ;;  %s10434_s7 = inlined_call_operand.vmem [shape: f32[6,32,64], index: 7, kind: output, shape index: {}]  }
   0x1   :  { %v6057_v0 = vld [vmem:[%s10427_s3 + $0x4] ss:$8 sps:$4 sm:$0xff]   ;;  %258 = vmatprep.mubr.bf16.mxu0 %v6515_v1  ;;  %348 = vmatprep.mubr.bf16.mxu1 %v6515_v1  ;;  %v6059_v2 = vld [vmem:[%s10427_s3] ss:$8 sps:$4 sm:$0xff]   ;;  %v6060_v3 = vld [vmem:[%s10427_s3 + $0x14] ss:$8 sps:$4 sm:$0xff]  }
   0x2   :  { %226 = vmatprep.subr.bf16.mxu0 %v6057_v0  ;;  %6047 = vmatprep.subr.bf16.mxu1 %v6057_v0  ;;  %v6062_v4 = vld [vmem:[%s10427_s3 + $0x10] ss:$8 sps:$4 sm:$0xff]   ;;  %v6063_v5 = vld [vmem:[%s10427_s3 + $0x24] ss:$8 sps:$4 sm:$0xff]   ;;  %v6065_v6 = vld [vmem:[%s10427_s3 + $0x20] ss:$8 sps:$4 sm:$0xff]  }
   0x3   :  { %227 = vmatpush1.bf16.msra.mxu0 %v6059_v2  ;;  %6051 = vmatpush1.bf16.msra.mxu1 %v6059_v2  ;;  %v27_v7 = vld [vmem:[%s10428_s0] sm:$0xff]  ;;  %v28_v8 = vld [vmem:[%s10428_s0 + $0x8] sm:$0xff]  ;;  %v6066_v10 = vld [vmem:[%s10427_s3 + $0x34] ss:$8 sps:$4 sm:$0xff]  }
   0x4   :  { %228 = vmatprep.subr.bf16.mxu0 %v6060_v3  ;;  %6048 = vmatprep.subr.bf16.mxu1 %v6060_v3  ;;  %v5063_v9 = vld [vmem:[%s10429_s1] ss:$0 sm:$0xff]  ;;  %v6068_v13 = vld [vmem:[%s10427_s3 + $0x30] ss:$8 sps:$4 sm:$0xff]   ;;  %v6601_v16 = vld [vmem:[%s10429_s1 + $0x4] ss:$0 sm:$0xff] }
   0x5   :  { %v93_v11 = vadd.f32 %v5063_v9, %v27_v7  ;;  %v94_v12 = vadd.f32 %v5063_v9, %v28_v8  ;;  %v45_v14 = vld [vmem:[%s10428_s0 + $0x90] sm:$0xff]  ;;  %v46_v15 = vld [vmem:[%s10428_s0 + $0x98] sm:$0xff]  ;;  %v47_v23 = vld [vmem:[%s10428_s0 + $0xa0] sm:$0xff] }
   0x6   :  { %v111_v17 = vadd.f32 %v6601_v16, %v45_v14  ;;  %v112_v18 = vadd.f32 %v6601_v16, %v46_v15  ;;  %v29_v20 = vld [vmem:[%s10428_s0 + $0x10] sm:$0xff]  ;;  %v30_v21 = vld [vmem:[%s10428_s0 + $0x18] sm:$0xff]  ;;  %v48_v24 = vld [vmem:[%s10428_s0 + $0xa8] sm:$0xff] }
   0x7   :  { %229 = vmatpush1.bf16.msra.mxu0 %v6062_v4  ;;  %6052 = vmatpush1.bf16.msra.mxu1 %v6062_v4  ;;  %v117_v19 = vpack.c.bf16 %v94_v12, %v93_v11  ;;  %v5068_v25 = vld [vmem:[%s10429_s1 + $0x5] ss:$0 sm:$0xff]  ;;  %v95_v26 = vadd.f32 %v5063_v9, %v29_v20  ;;  %v96_v27 = vadd.f32 %v5063_v9, %v30_v21  ;;  %v32_v32 = vld [vmem:[%s10428_s0 + $0x28] sm:$0xff]  ;;  %v5064_v33 = vld [vmem:[%s10429_s1 + $0x1] ss:$0 sm:$0xff]  ;;  %v139_v20 = vlaneseq }
   0x8   :  { %230 = vmatprep.subr.bf16.mxu0 %v6063_v5  ;;  %6049 = vmatprep.subr.bf16.mxu1 %v6063_v5  ;;  %v126_v22 = vpack.c.bf16 %v112_v18, %v111_v17  ;;  %v113_v28 = vadd.f32 %v5068_v25, %v47_v23  ;;  %v114_v29 = vadd.f32 %v5068_v25, %v48_v24  ;;  %v31_v31 = vld [vmem:[%s10428_s0 + $0x20] sm:$0xff]  ;;  %v49_v35 = vld [vmem:[%s10428_s0 + $0xb0] sm:$0xff]  ;;  %v50_v36 = vld [vmem:[%s10428_s0 + $0xb8] sm:$0xff] }
   0x9   :  { %v118_v30 = vpack.c.bf16 %v96_v27, %v95_v26  ;;  %v97_v37 = vadd.f32 %v5064_v33, %v31_v31  ;;  %v98_v38 = vadd.f32 %v5064_v33, %v32_v32  ;;  %v115_v39 = vadd.f32 %v5068_v25, %v49_v35  ;;  %v33_v42 = vld [vmem:[%s10428_s0 + $0x30] sm:$0xff]  ;;  %v34_v43 = vld [vmem:[%s10428_s0 + $0x38] sm:$0xff]  ;;  %v35_v48 = vld [vmem:[%s10428_s0 + $0x40] sm:$0xff] }
   0xa   :  { %v127_v34 = vpack.c.bf16 %v114_v29, %v113_v28  ;;  %v116_v40 = vadd.f32 %v5068_v25, %v50_v36  ;;  %v99_v45 = vadd.f32 %v5064_v33, %v33_v42  ;;  %v100_v46 = vadd.f32 %v5064_v33, %v34_v43  ;;  %v36_v49 = vld [vmem:[%s10428_s0 + $0x48] sm:$0xff]  ;;  %v5065_v50 = vld [vmem:[%s10429_s1 + $0x2] ss:$0 sm:$0xff]  ;;  %v37_v54 = vld [vmem:[%s10428_s0 + $0x50] sm:$0xff] }
   0xb   :  { %231 = vmatpush1.bf16.msra.mxu0 %v6065_v6  ;;  %6053 = vmatpush1.bf16.msra.mxu1 %v6065_v6  ;;  %v119_v41 = vpack.c.bf16 %v98_v38, %v97_v37  ;;  %v101_v51 = vadd.f32 %v5065_v50, %v35_v48  ;;  %v102_v52 = vadd.f32 %v5065_v50, %v36_v49  ;;  %v38_v55 = vld [vmem:[%s10428_s0 + $0x58] sm:$0xff]  ;;  %v39_v59 = vld [vmem:[%s10428_s0 + $0x60] sm:$0xff]  ;;  %v40_v60 = vld [vmem:[%s10428_s0 + $0x68] sm:$0xff]  ;;  %v6737_v21 = vshrl.u32 %v139_v20, 7 }
   0xc   :  { %232 = vmatprep.subr.bf16.mxu0 %v6066_v10  ;;  %6050 = vmatprep.subr.bf16.mxu1 %v6066_v10  ;;  %v128_v44 = vpack.c.bf16 %v116_v40, %v115_v39  ;;  %v120_v47 = vpack.c.bf16 %v100_v46, %v99_v45  ;;  %v103_v56 = vadd.f32 %v5065_v50, %v37_v54  ;;  %v5066_v61 = vld [vmem:[%s10429_s1 + $0x3] ss:$0 sm:$0xff]  ;;  %v41_v2 = vld [vmem:[%s10428_s0 + $0x70] sm:$0xff]  ;;  %v42_v3 = vld [vmem:[%s10428_s0 + $0x78] sm:$0xff] }
   0xd   :  { %v121_v53 = vpack.c.bf16 %v102_v52, %v101_v51  ;;  %v104_v57 = vadd.f32 %v5065_v50, %v38_v55  ;;  %v105_v62 = vadd.f32 %v5066_v61, %v39_v59  ;;  %v106_v63 = vadd.f32 %v5066_v61, %v40_v60  ;;  %v43_v7 = vld [vmem:[%s10428_s0 + $0x80] sm:$0xff]  ;;  %v44_v8 = vld [vmem:[%s10428_s0 + $0x88] sm:$0xff]  ;;  %v381_v14 = vld [vmem:[%s10430_s2 + $0x10] sm:$0xff]  ;;  %10592 = vst [vmem:[#allocation3_spill] sm:$0xff] %v6737_v21 }
   0xe   :  { %v107_v4 = vadd.f32 %v5066_v61, %v41_v2  ;;  %v108_v5 = vadd.f32 %v5066_v61, %v42_v3  ;;  %v109_v9 = vadd.f32 %v6601_v16, %v43_v7  ;;  %v110_v10 = vadd.f32 %v6601_v16, %v44_v8  ;;  %v379_v12 = vld [vmem:[%s10430_s2] sm:$0xff]  ;;  %v384_v18 = vld [vmem:[%s10430_s2 + $0x28] sm:$0xff]  ;;  %v386_v23 = vld [vmem:[%s10430_s2 + $0x38] sm:$0xff] }
   0xf   :  { %233 = vmatpush1.bf16.msra.mxu0 %v6068_v13  ;;  %6054 = vmatpush1.bf16.msra.mxu1 %v6068_v13  ;;  %v122_v58 = vpack.c.bf16 %v104_v57, %v103_v56  ;;  %v123_v0 = vpack.c.bf16 %v106_v63, %v105_v62  ;;  %v380_v13 = vld [vmem:[%s10430_s2 + $0x8] sm:$0xff]  ;;  %v383_v17 = vld [vmem:[%s10430_s2 + $0x20] sm:$0xff]  ;;  %v10435_v25 = vsub.s32 0, %v6737_v21 }
  0x10   :  { %v124_v6 = vpack.c.bf16 %v108_v5, %v107_v4  ;;  %v125_v11 = vpack.c.bf16 %v110_v10, %v109_v9  ;;  %v6710_v15 = vpack.c.bf16 %v380_v13, %v379_v12  ;;  %v137_v26 = vld [vmem:[%s10431_s4] sm:$0x3] }
  0x11   :  { %v6759_v27 = vrot.slane %v137_v26, %v10435_v25 }
  0x12   :  { %5077 = vmatmul.mubr.msk.bf16.vlgmr.msra.gmra.mrb[0].mxu0 %vm189_vm0, %v117_v19  ;;  %5086 = vmatmul.mubr.msk.bf16.vlgmr.msra.gmra.mrb[0].mxu1 %vm189_vm0, %v126_v22  ;;  %v6728_v19 = vpack.c.bf16 %v384_v18, %v383_v17  ;;  %v385_v22 = vld [vmem:[%s10430_s2 + $0x30] sm:$0xff] }
  0x13   :  { %268 = vmatprep.mubr.bf16.mxu0 %v6515_v1  ;;  %358 = vmatprep.mubr.bf16.mxu1 %v6515_v1  ;;  %v6745_v24 = vpack.c.bf16 %v386_v23, %v385_v22 }
  0x14   :  { %5952 = vmatprep.subr.bf16.mxu1 %v6710_v15  ;;  %5984 = vmatprep.subr.bf16.mxu0 %v6710_v15 }
  0x15   :  { %5954 = vmatpush3.bf16.msra.mxu1 %v6710_v15  ;;  %5986 = vmatpush3.bf16.msra.mxu0 %v6710_v15 }
  0x1a   :  { %5078 = vmatmul.mubr.msk.bf16.gmra.mrb[4].mxu0 %vm189_vm0, %v118_v30  ;;  %5087 = vmatmul.mubr.msk.bf16.gmra.mrb[4].mxu1 %vm189_vm0, %v127_v34 }
  0x1b   :  { %278 = vmatprep.mubr.bf16.mxu0 %v6515_v1  ;;  %368 = vmatprep.mubr.bf16.mxu1 %v6515_v1 }
  0x22   :  { %5079 = vmatmul.mubr.msk.bf16.gmra.mrb[8].mxu0 %vm189_vm0, %v119_v41  ;;  %5088 = vmatmul.mubr.msk.bf16.gmra.mrb[8].mxu1 %vm189_vm0, %v128_v44 }
  0x23   :  { %288 = vmatprep.mubr.bf16.mxu0 %v6515_v1 }
  0x2a   :  { %5080 = vmatmul.mubr.msk.bf16.gmra.mrb[12].mxu0 %vm189_vm0, %v120_v47 }
  0x2b   :  { %298 = vmatprep.mubr.bf16.mxu0 %v6515_v1 }
  0x32   :  { %5081 = vmatmul.mubr.msk.bf16.gmra.mrb[16].mxu0 %vm189_vm0, %v121_v53 }
  0x33   :  { %308 = vmatprep.mubr.bf16.mxu0 %v6515_v1 }
  0x3a   :  { %5082 = vmatmul.mubr.msk.bf16.gmra.mrb[20].mxu0 %vm189_vm0, %v122_v58 }
  0x3b   :  { %318 = vmatprep.mubr.bf16.mxu0 %v6515_v1 }
  0x42   :  { %5083 = vmatmul.mubr.msk.bf16.gmra.mrb[24].mxu0 %vm189_vm0, %v123_v0 }
  0x43   :  { %328 = vmatprep.mubr.bf16.mxu0 %v6515_v1 }
  0x4a   :  { %5084 = vmatmul.mubr.msk.bf16.gmra.mrb[28].mxu0 %vm189_vm0, %v124_v6 }
  0x4b   :  { %338 = vmatprep.mubr.bf16.mxu0 %v6515_v1  ;;  %v382_v1 = vld [vmem:[%s10430_s2 + $0x18] sm:$0xff]  ;;  %s6516_s2 = smov 64  }
  0x4c   :  { %v6715_v16 = vpack.c.bf16 %v382_v1, %v381_v14 }
  0x4e   :  { %5956 = vmatprep.subr.bf16.mxu1 %v6715_v16  ;;  %5988 = vmatprep.subr.bf16.mxu0 %v6715_v16 }
  0x4f   :  { %5958 = vmatpush3.bf16.msra.mxu1 %v6715_v16  ;;  %5990 = vmatpush3.bf16.msra.mxu0 %v6715_v16 }
  0x50   :  { %5960 = vmatprep.subr.bf16.mxu1 %v6728_v19  ;;  %5992 = vmatprep.subr.bf16.mxu0 %v6728_v19 }
  0x52   :  { %5085 = vmatmul.mubr.msk.bf16.gmra.mrb[32].mxu0 %vm189_vm0, %v125_v11 }
  0x53   :  { %5962 = vmatpush3.bf16.msra.mxu1 %v6728_v19  ;;  %5994 = vmatpush3.bf16.msra.mxu0 %v6728_v19 }
  0x54   :  { %5964 = vmatprep.subr.bf16.mxu1 %v6745_v24  ;;  %5996 = vmatprep.subr.bf16.mxu0 %v6745_v24 }
  0x57   :  { %5966 = vmatpush3.bf16.msra.mxu1 %v6745_v24  ;;  %5998 = vmatpush3.bf16.msra.mxu0 %v6745_v24 }
  0x58   :  { %5968 = vmatprep.subr.bf16.mxu1 %v6710_v15  ;;  %6016 = vmatprep.subr.bf16.mxu0 %v6710_v15 }
  0xe5   :  { %v260_v28 = vpop.f32.mrb[0].mxu0  ;;  %v6766_v31 = vpop.f32.mrb[0].mxu1 }
  0xe6   :  { %v6762_v29 = vadd.f32 %v260_v28, %v6759_v27  ;;  %v6764_v30 = vpop.f32.mrb[1].mxu0  ;;  %v6768_v33 = vpop.f32.mrb[1].mxu1 }
  0xe7   :  { %v264_v32 = vpop.f32.mrb[2].mxu0  ;;  %v6774_v35 = vpop.f32.mrb[2].mxu1 }
  0xe8   :  { %v6770_v34 = vpop.f32.mrb[3].mxu0  ;;  %391 = vrot.lane.b32.xlu0 %v6762_v29, %s6516_s2  ;;  %v6776_v36 = vpop.f32.mrb[3].mxu1  ;;  %v6779_v37 = vadd.f32 %v264_v32, %v6759_v27 }
  0xec   :  { %393 = vrot.lane.b32.xlu0 %v6779_v37, %s6516_s2 }
  0xed   :  { %v270_v38 = vpop.f32.mrb[4].mxu0  ;;  %v360_v41 = vpop.f32.mrb[4].mxu1 }
  0xee   :  { %v6784_v39 = vadd.f32 %v270_v38, %v6759_v27  ;;  %v6786_v40 = vpop.f32.mrb[5].mxu0  ;;  %v6788_v43 = vpop.f32.mrb[5].mxu1  ;;  %v6888_v38 = vadd.f32 %v360_v41, %v6759_v27 }
  0xef   :  { %v274_v42 = vpop.f32.mrb[6].mxu0  ;;  %v364_v45 = vpop.f32.mrb[6].mxu1 }
  0xf0   :  { %v6790_v44 = vpop.f32.mrb[7].mxu0  ;;  %395 = vrot.lane.b32.xlu1 %v6784_v39, %s6516_s2  ;;  %v6794_v46 = vpop.f32.mrb[7].mxu1  ;;  %v6797_v47 = vadd.f32 %v274_v42, %v6759_v27 }
  0xf4   :  { %397 = vrot.lane.b32.xlu1 %v6797_v47, %s6516_s2 }
  0xf5   :  { %v280_v48 = vpop.f32.mrb[8].mxu0  ;;  %v6806_v51 = vpop.f32.mrb[8].mxu1 }
  0xf6   :  { %v6802_v49 = vadd.f32 %v280_v48, %v6759_v27  ;;  %v6804_v50 = vpop.f32.mrb[9].mxu0  ;;  %v6808_v53 = vpop.f32.mrb[9].mxu1  ;;  %v6895_v48 = vadd.f32 %v364_v45, %v6759_v27 }
  0xf7   :  { %v284_v52 = vpop.f32.mrb[10].mxu0  ;;  %v374_v56 = vpop.f32.mrb[10].mxu1 }
  0xf8   :  { %v6811_v54 = vadd.f32 %v284_v52, %v6759_v27  ;;  %712 = vrot.lane.b32.xlu0 %v6802_v49, %s6516_s2  ;;  %v6815_v55 = vpop.f32.mrb[11].mxu0  ;;  %v6824_v60 = vpop.f32.mrb[11].mxu1 }
  0xfa   :  { %714 = vrot.lane.b32.xlu1 %v6811_v54, %s6516_s2 }
  0xfd   :  { %v290_v57 = vpop.f32.mrb[12].mxu0 }
  0xfe   :  { %v6820_v58 = vadd.f32 %v290_v57, %v6759_v27  ;;  %v6822_v59 = vpop.f32.mrb[13].mxu0 }
  0xff   :  { %v294_v61 = vpop.f32.mrb[14].mxu0 }
 0x100   :  { %v6827_v62 = vadd.f32 %v294_v61, %v6759_v27  ;;  %716 = vrot.lane.b32.xlu0 %v6820_v58, %s6516_s2  ;;  %v6831_v63 = vpop.f32.mrb[15].mxu0 }
 0x102   :  { %718 = vrot.lane.b32.xlu1 %v6827_v62, %s6516_s2 }
 0x105   :  { %v300_v0 = vpop.f32.mrb[16].mxu0 }
 0x106   :  { %v6836_v2 = vadd.f32 %v300_v0, %v6759_v27  ;;  %v6838_v3 = vpop.f32.mrb[17].mxu0  ;;  %v6908_v0 = vadd.f32 %v6766_v31, %v6759_v27  ;;  %v6927_v31 = vadd.f32 %v6806_v51, %v6759_v27 }
 0x107   :  { %v304_v4 = vpop.f32.mrb[18].mxu0 }
 0x108   :  { %v6841_v5 = vadd.f32 %v304_v4, %v6759_v27  ;;  %1058 = vrot.lane.b32.xlu0 %v6836_v2, %s6516_s2  ;;  %v6845_v6 = vpop.f32.mrb[19].mxu0 }
 0x109   :  { %10593 = vst [vmem:[#allocation4_spill] sm:$0xff] %v6845_v6 }
 0x10a   :  { %1060 = vrot.lane.b32.xlu1 %v6841_v5, %s6516_s2 }
 0x10d   :  { %v310_v7 = vpop.f32.mrb[20].mxu0 }
 0x10e   :  { %v6850_v8 = vadd.f32 %v310_v7, %v6759_v27  ;;  %v6852_v9 = vpop.f32.mrb[21].mxu0  ;;  %v6919_v7 = vadd.f32 %v6774_v35, %v6759_v27 }
 0x10f   :  { %10594 = vst [vmem:[#allocation5_spill] sm:$0xff] %v6852_v9  ;;  %v314_v10 = vpop.f32.mrb[22].mxu0 }
 0x110   :  { %v6855_v11 = vadd.f32 %v314_v10, %v6759_v27  ;;  %1062 = vrot.lane.b32.xlu0 %v6850_v8, %s6516_s2  ;;  %v6859_v12 = vpop.f32.mrb[23].mxu0  ;;  %v6932_v10 = vadd.f32 %v374_v56, %v6759_v27 }
 0x111   :  { %10595 = vst [vmem:[#allocation6_spill] sm:$0xff] %v6859_v12 }
 0x112   :  { %1064 = vrot.lane.b32.xlu1 %v6855_v11, %s6516_s2 }
 0x115   :  { %v320_v13 = vpop.f32.mrb[24].mxu0 }
 0x116   :  { %v6864_v14 = vadd.f32 %v320_v13, %v6759_v27  ;;  %v6866_v1 = vpop.f32.mrb[25].mxu0 }
 0x117   :  { %10596 = vst [vmem:[#allocation7_spill] sm:$0xff] %v6866_v1  ;;  %v324_v17 = vpop.f32.mrb[26].mxu0 }
 0x118   :  { %v6869_v18 = vadd.f32 %v324_v17, %v6759_v27  ;;  %1404 = vrot.lane.b32.xlu0 %v6864_v14, %s6516_s2  ;;  %v6873_v20 = vpop.f32.mrb[27].mxu0 }
 0x119   :  { %10597 = vst [vmem:[#allocation8_spill] sm:$0xff] %v6873_v20 }
 0x11a   :  { %1406 = vrot.lane.b32.xlu1 %v6869_v18, %s6516_s2 }
 0x11d   :  { %v330_v22 = vpop.f32.mrb[28].mxu0 }
 0x11e   :  { %v6878_v23 = vadd.f32 %v330_v22, %v6759_v27  ;;  %v6880_v26 = vpop.f32.mrb[29].mxu0 }
 0x11f   :  { %10598 = vst [vmem:[#allocation9_spill] sm:$0xff] %v6880_v26  ;;  %v334_v28 = vpop.f32.mrb[30].mxu0 }
 0x120   :  { %v6883_v32 = vadd.f32 %v334_v28, %v6759_v27  ;;  %1408 = vrot.lane.b32.xlu0 %v6878_v23, %s6516_s2  ;;  %v6890_v42 = vpop.f32.mrb[31].mxu0 }
 0x121   :  { %10599 = vst [vmem:[#allocation10_spill] sm:$0xff] %v6890_v42 }
 0x122   :  { %1410 = vrot.lane.b32.xlu1 %v6883_v32, %s6516_s2 }
 0x124   :  { %2096 = vrot.lane.b32.xlu0 %v6888_v38, %s6516_s2 }
 0x125   :  { %v340_v52 = vpop.f32.mrb[32].mxu0 }
 0x126   :  { %v6900_v57 = vadd.f32 %v340_v52, %v6759_v27  ;;  %v6902_v61 = vpop.f32.mrb[33].mxu0  ;;  %2098 = vrot.lane.b32.xlu1 %v6895_v48, %s6516_s2 }
 0x127   :  { %10600 = vst [vmem:[#allocation11_spill] sm:$0xff] %v6902_v61  ;;  %v344_v41 = vpop.f32.mrb[34].mxu0 }
 0x128   :  { %v6911_v45 = vadd.f32 %v344_v41, %v6759_v27  ;;  %1750 = vrot.lane.b32.xlu0 %v6900_v57, %s6516_s2  ;;  %v6915_v4 = vpop.f32.mrb[35].mxu0 }
 0x129   :  { %10601 = vst [vmem:[#allocation12_spill] sm:$0xff] %v6915_v4 }
 0x12a   :  { %1752 = vrot.lane.b32.xlu1 %v6911_v45, %s6516_s2 }
 0x12c   :  { %1754 = vrot.lane.b32.xlu0 %v6908_v0, %s6516_s2 }
 0x12e   :  { %1756 = vrot.lane.b32.xlu1 %v6919_v7, %s6516_s2 }
 0x130   :  { %2100 = vrot.lane.b32.xlu0 %v6927_v31, %s6516_s2 }
 0x132   :  { %2102 = vrot.lane.b32.xlu1 %v6932_v10, %s6516_s2 }
 0x15a   :  { %v6938_v35 = vpop.permute.xlu0 %391 }
 0x15b   :  { %v403_v13 = vmul.f32 %v6938_v35, %v6762_v29  ;;  %v407_v52 = vmul.f32 %v6938_v35, %v6802_v49 }
 0x15d   :  { %5559 = vmatprep.mubr.msk.f32.mxu1 %vm189_vm0, %v403_v13 }
 0x15e   :  { %v6943_v51 = vpop.permute.xlu0 %393 }
 0x15f   :  { %v404_v17 = vmul.f32 %v6943_v51, %v6779_v37  ;;  %v408_v41 = vmul.f32 %v6943_v51, %v6811_v54 }
 0x161   :  { %5560 = vmatmul.mubr.msk.f32.vlgmr.msra.gmra.mrb[12].mxu1 %vm189_vm0, %v404_v17 }
 0x162   :  { %v6948_v27 = vpop.permute.xlu1 %395  ;;  %5970 = vmatpush3.bf16.msra.mxu1 %v6710_v15 }
 0x163   :  { %v405_v56 = vmul.f32 %v6948_v27, %v6784_v39  ;;  %5972 = vmatprep.subr.bf16.mxu1 %v6715_v16  ;;  %v409_v13 = vmul.f32 %v6948_v27, %v6820_v58  ;;  %v417_v26 = vmul.f32 %v6948_v27, %v6878_v23  ;;  %v421_v1 = vmul.f32 %v6948_v27, %v6908_v0 }
 0x165   :  { %5562 = vmatprep.mubr.msk.f32.mxu1 %vm189_vm0, %v405_v56  ;;  %v411_v56 = vmul.f32 %v6938_v35, %v6836_v2 }
 0x166   :  { %v6955_v22 = vpop.permute.xlu1 %397  ;;  %5974 = vmatpush3.bf16.msra.mxu1 %v6715_v16 }
 0x167   :  { %v406_v28 = vmul.f32 %v6955_v22, %v6797_v47  ;;  %5976 = vmatprep.subr.bf16.mxu1 %v6728_v19  ;;  %v410_v17 = vmul.f32 %v6955_v22, %v6827_v62  ;;  %v422_v12 = vmul.f32 %v6955_v22, %v6919_v7 }
 0x169   :  { %5563 = vmatmul.mubr.msk.f32.gmra.mrb[14].mxu1 %vm189_vm0, %v406_v28 }
 0x16a   :  { %5565 = vmatprep.mubr.msk.f32.mxu1 %vm189_vm0, %v407_v52  ;;  %5978 = vmatpush3.bf16.msra.mxu1 %v6728_v19  ;;  %v6980_v28 = vpop.permute.xlu0 %712  ;;  %v412_v52 = vmul.f32 %v6943_v51, %v6841_v5 }
 0x16b   :  { %5980 = vmatprep.subr.bf16.mxu1 %v6745_v24 }
 0x16d   :  { %5566 = vmatmul.mubr.msk.f32.gmra.mrb[16].mxu1 %vm189_vm0, %v408_v41  ;;  %v6985_v41 = vpop.permute.xlu1 %714 }
 0x16e   :  { %5568 = vmatprep.mubr.msk.f32.mxu1 %vm189_vm0, %v409_v13  ;;  %5982 = vmatpush3.bf16.msra.mxu1 %v6745_v24  ;;  %v413_v13 = vmul.f32 %v6948_v27, %v6850_v8 }
 0x16f   :  { %6000 = vmatprep.subr.bf16.mxu1 %v6710_v15 }
 0x171   :  { %5569 = vmatmul.mubr.msk.f32.gmra.mrb[18].mxu1 %vm189_vm0, %v410_v17  ;;  %v414_v17 = vmul.f32 %v6955_v22, %v6855_v11 }
 0x172   :  { %5571 = vmatprep.mubr.msk.f32.mxu1 %vm189_vm0, %v411_v56  ;;  %v6990_v25 = vpop.permute.xlu0 %716  ;;  %v415_v56 = vmul.f32 %v6938_v35, %v6864_v14 }
 0x174   :  { %v6995_v4 = vpop.permute.xlu1 %718 }
 0x175   :  { %5572 = vmatmul.mubr.msk.f32.gmra.mrb[20].mxu1 %vm189_vm0, %v412_v52  ;;  %v416_v52 = vmul.f32 %v6943_v51, %v6869_v18 }
 0x176   :  { %5574 = vmatprep.mubr.msk.f32.mxu1 %vm189_vm0, %v413_v13 }
 0x179   :  { %5575 = vmatmul.mubr.msk.f32.gmra.mrb[22].mxu1 %vm189_vm0, %v414_v17  ;;  %v418_v17 = vmul.f32 %v6955_v22, %v6883_v32 }
 0x17a   :  { %5577 = vmatprep.mubr.msk.f32.mxu1 %vm189_vm0, %v415_v56  ;;  %v7001_v61 = vpop.permute.xlu0 %1058  ;;  %v419_v56 = vmul.f32 %v6938_v35, %v6900_v57 }
 0x17b   :  { %v1070_v13 = vmul.f32 %v7001_v61, %v6762_v29 }
 0x17c   :  { %v7007_v42 = vpop.permute.xlu1 %1060 }
 0x17d   :  { %v1071_v20 = vmul.f32 %v7007_v42, %v6779_v37  ;;  %5578 = vmatmul.mubr.msk.f32.gmra.mrb[24].mxu1 %vm189_vm0, %v416_v52  ;;  %5663 = vmatprep.mubr.msk.f32.mxu0 %vm189_vm0, %v1070_v13 }
 0x17e   :  { %5580 = vmatprep.mubr.msk.f32.mxu1 %vm189_vm0, %v417_v26  ;;  %v420_v26 = vmul.f32 %v6943_v51, %v6911_v45 }
 0x17f   :  { %5664 = vmatmul.mubr.msk.f32.vlgmr.msra.gmra.mrb[36].mxu0 %vm189_vm0, %v1071_v20 }
 0x180   :  { %6018 = vmatpush3.bf16.msra.mxu0 %v6710_v15 }
 0x181   :  { %5581 = vmatmul.mubr.msk.f32.gmra.mrb[26].mxu1 %vm189_vm0, %v418_v17  ;;  %6020 = vmatprep.subr.bf16.mxu0 %v6715_v16 }
 0x182   :  { %5583 = vmatprep.mubr.msk.f32.mxu1 %vm189_vm0, %v419_v56  ;;  %v7025_v52 = vpop.permute.xlu0 %1062  ;;  %v1074_v56 = vmul.f32 %v7001_v61, %v6802_v49 }
 0x183   :  { %v1072_v20 = vmul.f32 %v7025_v52, %v6784_v39 }
 0x184   :  { %v7031_v13 = vpop.permute.xlu1 %1064  ;;  %6022 = vmatpush3.bf16.msra.mxu0 %v6715_v16 }
 0x185   :  { %5584 = vmatmul.mubr.msk.f32.gmra.mrb[28].mxu1 %vm189_vm0, %v420_v26  ;;  %5666 = vmatprep.mubr.msk.f32.mxu0 %vm189_vm0, %v1072_v20  ;;  %v1073_v17 = vmul.f32 %v7031_v13, %v6797_v47  ;;  %v423_v26 = vmul.f32 %v6938_v35, %v6888_v38  ;;  %v1076_v20 = vmul.f32 %v7025_v52, %v6820_v58 }
 0x186   :  { %5586 = vmatprep.mubr.msk.f32.mxu1 %vm189_vm0, %v421_v1  ;;  %6024 = vmatprep.subr.bf16.mxu0 %v6728_v19  ;;  %v1075_v1 = vmul.f32 %v7007_v42, %v6811_v54  ;;  %v1077_v35 = vmul.f32 %v7031_v13, %v6827_v62 }
 0x187   :  { %5667 = vmatmul.mubr.msk.f32.gmra.mrb[38].mxu0 %vm189_vm0, %v1073_v17  ;;  %v424_v17 = vmul.f32 %v6943_v51, %v6895_v48  ;;  %v426_v51 = vmul.f32 %v6955_v22, %v6932_v10  ;;  %v726_v22 = vmul.f32 %v6990_v25, %v6784_v39 }
 0x188   :  { %5669 = vmatprep.mubr.msk.f32.mxu0 %vm189_vm0, %v1074_v56  ;;  %6026 = vmatpush3.bf16.msra.mxu0 %v6728_v19  ;;  %v1078_v56 = vmul.f32 %v7001_v61, %v6836_v2 }
 0x189   :  { %5587 = vmatmul.mubr.msk.f32.gmra.mrb[30].mxu1 %vm189_vm0, %v422_v12  ;;  %6028 = vmatprep.subr.bf16.mxu0 %v6745_v24  ;;  %v425_v12 = vmul.f32 %v6948_v27, %v6927_v31  ;;  %v724_v27 = vmul.f32 %v6980_v28, %v6762_v29 }
 0x18a   :  { %5589 = vmatprep.mubr.msk.f32.mxu1 %vm189_vm0, %v423_v26  ;;  %v1079_v26 = vmul.f32 %v7007_v42, %v6841_v5 }
 0x18b   :  { %5670 = vmatmul.mubr.msk.f32.gmra.mrb[40].mxu0 %vm189_vm0, %v1075_v1  ;;  %v1080_v1 = vmul.f32 %v7025_v52, %v6850_v8 }
 0x18c   :  { %5672 = vmatprep.mubr.msk.f32.mxu0 %vm189_vm0, %v1076_v20  ;;  %6030 = vmatpush3.bf16.msra.mxu0 %v6745_v24  ;;  %v725_v20 = vmul.f32 %v6985_v41, %v6779_v37 }
 0x18d   :  { %5590 = vmatmul.mubr.msk.f32.gmra.mrb[32].mxu1 %vm189_vm0, %v424_v17  ;;  %v1081_v17 = vmul.f32 %v7031_v13, %v6855_v11 }
 0x18e   :  { %5592 = vmatprep.mubr.msk.f32.mxu1 %vm189_vm0, %v425_v12  ;;  %v1082_v12 = vmul.f32 %v7001_v61, %v6864_v14 }
 0x18f   :  { %5673 = vmatmul.mubr.msk.f32.gmra.mrb[42].mxu0 %vm189_vm0, %v1077_v35  ;;  %v727_v35 = vmul.f32 %v6995_v4, %v6797_v47 }
 0x190   :  { %5675 = vmatprep.mubr.msk.f32.mxu0 %vm189_vm0, %v1078_v56  ;;  %v728_v56 = vmul.f32 %v6980_v28, %v6802_v49 }
 0x191   :  { %5593 = vmatmul.mubr.msk.f32.gmra.mrb[34].mxu1 %vm189_vm0, %v426_v51  ;;  %v7103_v51 = vpop.permute.xlu0 %1404 }
 0x192   :  { %5611 = vmatprep.mubr.msk.f32.mxu1 %vm189_vm0, %v724_v27  ;;  %v1083_v27 = vmul.f32 %v7007_v42, %v6869_v18 }
 0x193   :  { %5676 = vmatmul.mubr.msk.f32.gmra.mrb[44].mxu0 %vm189_vm0, %v1079_v26  ;;  %v1084_v26 = vmul.f32 %v7025_v52, %v6878_v23 }
 0x194   :  { %5678 = vmatprep.mubr.msk.f32.mxu0 %vm189_vm0, %v1080_v1  ;;  %v729_v1 = vmul.f32 %v6985_v41, %v6811_v54 }
 0x195   :  { %5612 = vmatmul.mubr.msk.f32.vlgmr.msra.gmra.mrb[36].mxu1 %vm189_vm0, %v725_v20  ;;  %v7116_v20 = vpop.permute.xlu1 %1406 }
 0x196   :  { %6002 = vmatpush3.bf16.msra.mxu1 %v6710_v15  ;;  %5614 = vmatprep.mubr.msk.f32.mxu1 %vm189_vm0, %v726_v22  ;;  %v730_v22 = vmul.f32 %v6990_v25, %v6820_v58 }
 0x197   :  { %5679 = vmatmul.mubr.msk.f32.gmra.mrb[46].mxu0 %vm189_vm0, %v1081_v17  ;;  %6004 = vmatprep.subr.bf16.mxu1 %v6715_v16  ;;  %v7121_v17 = vpop.permute.xlu0 %1408 }
 0x198   :  { %5681 = vmatprep.mubr.msk.f32.mxu0 %vm189_vm0, %v1082_v12  ;;  %v1085_v12 = vmul.f32 %v7031_v13, %v6883_v32 }
 0x199   :  { %5615 = vmatmul.mubr.msk.f32.gmra.mrb[38].mxu1 %vm189_vm0, %v727_v35  ;;  %v1086_v35 = vmul.f32 %v7001_v61, %v6900_v57 }
 0x19a   :  { %5617 = vmatprep.mubr.msk.f32.mxu1 %vm189_vm0, %v728_v56  ;;  %6006 = vmatpush3.bf16.msra.mxu1 %v6715_v16  ;;  %v731_v56 = vmul.f32 %v6995_v4, %v6827_v62 }
 0x19b   :  { %5682 = vmatmul.mubr.msk.f32.gmra.mrb[48].mxu0 %vm189_vm0, %v1083_v27  ;;  %6008 = vmatprep.subr.bf16.mxu1 %v6728_v19  ;;  %v7134_v27 = vpop.permute.xlu1 %1410 }
 0x19c   :  { %5684 = vmatprep.mubr.msk.f32.mxu0 %vm189_vm0, %v1084_v26  ;;  %v732_v26 = vmul.f32 %v6980_v28, %v6836_v2 }
 0x19d   :  { %5618 = vmatmul.mubr.msk.f32.gmra.mrb[40].mxu1 %vm189_vm0, %v729_v1  ;;  %v1087_v1 = vmul.f32 %v7007_v42, %v6911_v45 }
 0x19e   :  { %5620 = vmatprep.mubr.msk.f32.mxu1 %vm189_vm0, %v730_v22  ;;  %6010 = vmatpush3.bf16.msra.mxu1 %v6728_v19  ;;  %v1088_v22 = vmul.f32 %v7025_v52, %v6908_v0 }
 0x19f   :  { %5685 = vmatmul.mubr.msk.f32.gmra.mrb[50].mxu0 %vm189_vm0, %v1085_v12  ;;  %6012 = vmatprep.subr.bf16.mxu1 %v6745_v24  ;;  %v7146_v12 = vpop.permute.xlu0 %2096  ;;  %v7158_v9 = vpop.permute.xlu1 %2098 }
 0x1a0   :  { %5687 = vmatprep.mubr.msk.f32.mxu0 %vm189_vm0, %v1086_v35  ;;  %v733_v35 = vmul.f32 %v6985_v41, %v6841_v5 }
 0x1a1   :  { %5621 = vmatmul.mubr.msk.f32.gmra.mrb[42].mxu1 %vm189_vm0, %v731_v56  ;;  %v734_v56 = vmul.f32 %v6990_v25, %v6850_v8 }
 0x1a2   :  { %5623 = vmatprep.mubr.msk.f32.mxu1 %vm189_vm0, %v732_v26  ;;  %6014 = vmatpush3.bf16.msra.mxu1 %v6745_v24  ;;  %v1089_v26 = vmul.f32 %v7031_v13, %v6919_v7 }
 0x1a3   :  { %5688 = vmatmul.mubr.msk.f32.gmra.mrb[52].mxu0 %vm189_vm0, %v1087_v1  ;;  %6032 = vmatprep.subr.bf16.mxu1 %v6710_v15  ;;  %v1090_v1 = vmul.f32 %v7001_v61, %v6888_v38  ;;  %v7169_v6 = vpop.permute.xlu0 %1750  ;;  %v1092_v61 = vmul.f32 %v7025_v52, %v6927_v31 }
 0x1a4   :  { %5690 = vmatprep.mubr.msk.f32.mxu0 %vm189_vm0, %v1088_v22  ;;  %v735_v22 = vmul.f32 %v6995_v4, %v6855_v11  ;;  %v1762_v52 = vmul.f32 %v7169_v6, %v6762_v29 }
 0x1a5   :  { %5624 = vmatmul.mubr.msk.f32.gmra.mrb[44].mxu1 %vm189_vm0, %v733_v35  ;;  %v736_v35 = vmul.f32 %v6980_v28, %v6864_v14 }
 0x1a6   :  { %5626 = vmatprep.mubr.msk.f32.mxu1 %vm189_vm0, %v734_v56  ;;  %v1091_v56 = vmul.f32 %v7007_v42, %v6895_v48  ;;  %v1093_v42 = vmul.f32 %v7031_v13, %v6932_v10 }
 0x1a7   :  { %5691 = vmatmul.mubr.msk.f32.gmra.mrb[54].mxu0 %vm189_vm0, %v1089_v26  ;;  %v737_v26 = vmul.f32 %v6985_v41, %v6869_v18 }
 0x1a8   :  { %5693 = vmatprep.mubr.msk.f32.mxu0 %vm189_vm0, %v1090_v1  ;;  %v7180_v1 = vpop.permute.xlu1 %1752 }
 0x1a9   :  { %5627 = vmatmul.mubr.msk.f32.gmra.mrb[46].mxu1 %vm189_vm0, %v735_v22  ;;  %v738_v22 = vmul.f32 %v6990_v25, %v6878_v23  ;;  %v1763_v13 = vmul.f32 %v7180_v1, %v6779_v37 }
 0x1aa   :  { %5629 = vmatprep.mubr.msk.f32.mxu1 %vm189_vm0, %v736_v35  ;;  %v7191_v35 = vpop.permute.xlu0 %1754 }
 0x1ab   :  { %5694 = vmatmul.mubr.msk.f32.gmra.mrb[56].mxu0 %vm189_vm0, %v1091_v56  ;;  %v739_v56 = vmul.f32 %v6995_v4, %v6883_v32 }
 0x1ac   :  { %5696 = vmatprep.mubr.msk.f32.mxu0 %vm189_vm0, %v1092_v61  ;;  %v740_v61 = vmul.f32 %v6980_v28, %v6900_v57 }
 0x1ad   :  { %5630 = vmatmul.mubr.msk.f32.gmra.mrb[48].mxu1 %vm189_vm0, %v737_v26  ;;  %v7202_v26 = vpop.permute.xlu1 %1756 }
 0x1ae   :  { %5632 = vmatprep.mubr.msk.f32.mxu1 %vm189_vm0, %v738_v22  ;;  %v1764_v22 = vmul.f32 %v7191_v35, %v6784_v39 }
 0x1af   :  { %5697 = vmatmul.mubr.msk.f32.gmra.mrb[58].mxu0 %vm189_vm0, %v1093_v42  ;;  %v741_v42 = vmul.f32 %v6985_v41, %v6911_v45 }
 0x1b0   :  { %5767 = vmatprep.mubr.msk.f32.mxu0 %vm189_vm0, %v1762_v52  ;;  %v742_v52 = vmul.f32 %v6990_v25, %v6908_v0 }
 0x1b1   :  { %5633 = vmatmul.mubr.msk.f32.gmra.mrb[50].mxu1 %vm189_vm0, %v739_v56  ;;  %v1765_v56 = vmul.f32 %v7202_v26, %v6797_v47 }
 0x1b2   :  { %5635 = vmatprep.mubr.msk.f32.mxu1 %vm189_vm0, %v740_v61  ;;  %v1766_v61 = vmul.f32 %v7169_v6, %v6802_v49 }
 0x1b3   :  { %5768 = vmatmul.mubr.msk.f32.vlgmr.msra.gmra.mrb[60].mxu0 %vm189_vm0, %v1763_v13  ;;  %v743_v13 = vmul.f32 %v6995_v4, %v6919_v7 }
 0x1b4   :  { %5770 = vmatprep.mubr.msk.f32.mxu0 %vm189_vm0, %v1764_v22  ;;  %v744_v22 = vmul.f32 %v6980_v28, %v6888_v38  ;;  %v746_v28 = vmul.f32 %v6990_v25, %v6927_v31  ;;  %v1416_v25 = vmul.f32 %v7103_v51, %v6762_v29 }
 0x1b5   :  { %5636 = vmatmul.mubr.msk.f32.gmra.mrb[52].mxu1 %vm189_vm0, %v741_v42  ;;  %v1767_v42 = vmul.f32 %v7180_v1, %v6811_v54 }
 0x1b6   :  { %5638 = vmatprep.mubr.msk.f32.mxu1 %vm189_vm0, %v742_v52  ;;  %v1768_v52 = vmul.f32 %v7191_v35, %v6820_v58 }
 0x1b7   :  { %5771 = vmatmul.mubr.msk.f32.gmra.mrb[62].mxu0 %vm189_vm0, %v1765_v56  ;;  %v745_v56 = vmul.f32 %v6985_v41, %v6895_v48  ;;  %v747_v41 = vmul.f32 %v6995_v4, %v6932_v10  ;;  %v1418_v4 = vmul.f32 %v7121_v17, %v6784_v39 }
 0x1b8   :  { %5773 = vmatprep.mubr.msk.f32.mxu0 %vm189_vm0, %v1766_v61  ;;  %v1769_v61 = vmul.f32 %v7202_v26, %v6827_v62 }
 0x1b9   :  { %5639 = vmatmul.mubr.msk.f32.gmra.mrb[54].mxu1 %vm189_vm0, %v743_v13  ;;  %v1770_v13 = vmul.f32 %v7169_v6, %v6836_v2 }
 0x1ba   :  { %5641 = vmatprep.mubr.msk.f32.mxu1 %vm189_vm0, %v744_v22  ;;  %v1771_v22 = vmul.f32 %v7180_v1, %v6841_v5 }
 0x1bb   :  { %5774 = vmatmul.mubr.msk.f32.gmra.mrb[64].mxu0 %vm189_vm0, %v1767_v42  ;;  %v1772_v42 = vmul.f32 %v7191_v35, %v6850_v8 }
 0x1bc   :  { %5776 = vmatprep.mubr.msk.f32.mxu0 %vm189_vm0, %v1768_v52  ;;  %v1417_v52 = vmul.f32 %v7116_v20, %v6779_v37 }
 0x1bd   :  { %5642 = vmatmul.mubr.msk.f32.gmra.mrb[56].mxu1 %vm189_vm0, %v745_v56  ;;  %v1773_v56 = vmul.f32 %v7202_v26, %v6855_v11 }
 0x1be   :  { %5644 = vmatprep.mubr.msk.f32.mxu1 %vm189_vm0, %v746_v28  ;;  %v1774_v28 = vmul.f32 %v7169_v6, %v6864_v14 }
 0x1bf   :  { %5777 = vmatmul.mubr.msk.f32.gmra.mrb[66].mxu0 %vm189_vm0, %v1769_v61  ;;  %v1419_v61 = vmul.f32 %v7134_v27, %v6797_v47 }
 0x1c0   :  { %5779 = vmatprep.mubr.msk.f32.mxu0 %vm189_vm0, %v1770_v13  ;;  %v1420_v13 = vmul.f32 %v7103_v51, %v6802_v49 }
 0x1c1   :  { %5645 = vmatmul.mubr.msk.f32.gmra.mrb[58].mxu1 %vm189_vm0, %v747_v41  ;;  %v1776_v41 = vmul.f32 %v7191_v35, %v6878_v23 }
 0x1c2   :  { %5715 = vmatprep.mubr.msk.f32.mxu1 %vm189_vm0, %v1416_v25  ;;  %v1421_v25 = vmul.f32 %v7116_v20, %v6811_v54 }
 0x1c3   :  { %5780 = vmatmul.mubr.msk.f32.gmra.mrb[68].mxu0 %vm189_vm0, %v1771_v22  ;;  %v1422_v22 = vmul.f32 %v7121_v17, %v6820_v58 }
 0x1c4   :  { %5782 = vmatprep.mubr.msk.f32.mxu0 %vm189_vm0, %v1772_v42  ;;  %v1777_v42 = vmul.f32 %v7202_v26, %v6883_v32 }
 0x1c5   :  { %5716 = vmatmul.mubr.msk.f32.vlgmr.msra.gmra.mrb[60].mxu1 %vm189_vm0, %v1417_v52  ;;  %v1423_v52 = vmul.f32 %v7134_v27, %v6827_v62 }
 0x1c6   :  { %6034 = vmatpush3.bf16.msra.mxu1 %v6710_v15  ;;  %5718 = vmatprep.mubr.msk.f32.mxu1 %vm189_vm0, %v1418_v4  ;;  %v1775_v15 = vmul.f32 %v7180_v1, %v6869_v18  ;;  %v1424_v4 = vmul.f32 %v7103_v51, %v6836_v2 }
 0x1c7   :  { %5783 = vmatmul.mubr.msk.f32.gmra.mrb[70].mxu0 %vm189_vm0, %v1773_v56  ;;  %6036 = vmatprep.subr.bf16.mxu1 %v6715_v16  ;;  %v1779_v56 = vmul.f32 %v7180_v1, %v6911_v45 }
 0x1c8   :  { %5785 = vmatprep.mubr.msk.f32.mxu0 %vm189_vm0, %v1774_v28  ;;  %v1425_v28 = vmul.f32 %v7116_v20, %v6841_v5 }
 0x1c9   :  { %5719 = vmatmul.mubr.msk.f32.gmra.mrb[62].mxu1 %vm189_vm0, %v1419_v61  ;;  %v1426_v61 = vmul.f32 %v7121_v17, %v6850_v8 }
 0x1ca   :  { %5721 = vmatprep.mubr.msk.f32.mxu1 %vm189_vm0, %v1420_v13  ;;  %6038 = vmatpush3.bf16.msra.mxu1 %v6715_v16  ;;  %v1778_v16 = vmul.f32 %v7169_v6, %v6900_v57  ;;  %v1781_v13 = vmul.f32 %v7202_v26, %v6919_v7 }
 0x1cb   :  { %5786 = vmatmul.mubr.msk.f32.gmra.mrb[72].mxu0 %vm189_vm0, %v1775_v15  ;;  %6040 = vmatprep.subr.bf16.mxu1 %v6728_v19  ;;  %v1427_v15 = vmul.f32 %v7134_v27, %v6855_v11 }
 0x1cc   :  { %5788 = vmatprep.mubr.msk.f32.mxu0 %vm189_vm0, %v1776_v41  ;;  %v1428_v41 = vmul.f32 %v7103_v51, %v6864_v14 }
 0x1cd   :  { %5722 = vmatmul.mubr.msk.f32.gmra.mrb[64].mxu1 %vm189_vm0, %v1421_v25  ;;  %v1783_v25 = vmul.f32 %v7180_v1, %v6895_v48  ;;  %v1785_v1 = vmul.f32 %v7202_v26, %v6932_v10  ;;  %v1434_v26 = vmul.f32 %v7121_v17, %v6908_v0 }
 0x1ce   :  { %5724 = vmatprep.mubr.msk.f32.mxu1 %vm189_vm0, %v1422_v22  ;;  %6042 = vmatpush3.bf16.msra.mxu1 %v6728_v19  ;;  %v1780_v19 = vmul.f32 %v7191_v35, %v6908_v0  ;;  %v1429_v22 = vmul.f32 %v7116_v20, %v6869_v18 }
 0x1cf   :  { %5789 = vmatmul.mubr.msk.f32.gmra.mrb[74].mxu0 %vm189_vm0, %v1777_v42  ;;  %6044 = vmatprep.subr.bf16.mxu1 %v6745_v24  ;;  %v1430_v42 = vmul.f32 %v7121_v17, %v6878_v23 }
 0x1d0   :  { %5791 = vmatprep.mubr.msk.f32.mxu0 %vm189_vm0, %v1778_v16  ;;  %v1432_v16 = vmul.f32 %v7103_v51, %v6900_v57 }
 0x1d1   :  { %5725 = vmatmul.mubr.msk.f32.gmra.mrb[66].mxu1 %vm189_vm0, %v1423_v52  ;;  %v1433_v52 = vmul.f32 %v7116_v20, %v6911_v45 }
 0x1d2   :  { %5727 = vmatprep.mubr.msk.f32.mxu1 %vm189_vm0, %v1424_v4  ;;  %6046 = vmatpush3.bf16.msra.mxu1 %v6745_v24  ;;  %v1782_v24 = vmul.f32 %v7169_v6, %v6888_v38  ;;  %v1784_v6 = vmul.f32 %v7191_v35, %v6927_v31  ;;  %v1431_v35 = vmul.f32 %v7134_v27, %v6883_v32 }
 0x1d3   :  { %5792 = vmatmul.mubr.msk.f32.gmra.mrb[76].mxu0 %vm189_vm0, %v1779_v56  ;;  %v1435_v4 = vmul.f32 %v7134_v27, %v6919_v7  ;;  %v1436_v56 = vmul.f32 %v7103_v51, %v6888_v38  ;;  %v2108_v51 = vmul.f32 %v7146_v12, %v6762_v29  ;;  %v2112_v29 = vmul.f32 %v7146_v12, %v6802_v49 }
 0x1d4   :  { %5794 = vmatprep.mubr.msk.f32.mxu0 %vm189_vm0, %v1780_v19  ;;  %v1437_v19 = vmul.f32 %v7116_v20, %v6895_v48  ;;  %v2109_v20 = vmul.f32 %v7158_v9, %v6779_v37  ;;  %v2117_v49 = vmul.f32 %v7158_v9, %v6841_v5 }
 0x1d5   :  { %5728 = vmatmul.mubr.msk.f32.gmra.mrb[68].mxu1 %vm189_vm0, %v1425_v28  ;;  %v1438_v28 = vmul.f32 %v7121_v17, %v6927_v31 }
 0x1d6   :  { %5730 = vmatprep.mubr.msk.f32.mxu1 %vm189_vm0, %v1426_v61  ;;  %v1439_v61 = vmul.f32 %v7134_v27, %v6932_v10 }
 0x1d7   :  { %5795 = vmatmul.mubr.msk.f32.gmra.mrb[78].mxu0 %vm189_vm0, %v1781_v13  ;;  %v2101_v13 = vpop.permute.xlu0 %2100 }
 0x1d8   :  { %5797 = vmatprep.mubr.msk.f32.mxu0 %vm189_vm0, %v1782_v24  ;;  %v2103_v24 = vpop.permute.xlu1 %2102  ;;  %v2110_v17 = vmul.f32 %v2101_v13, %v6784_v39  ;;  %v2114_v37 = vmul.f32 %v2101_v13, %v6820_v58  ;;  %v2122_v5 = vmul.f32 %v2101_v13, %v6878_v23 }
 0x1d9   :  { %5731 = vmatmul.mubr.msk.f32.gmra.mrb[70].mxu1 %vm189_vm0, %v1427_v15  ;;  %v2111_v27 = vmul.f32 %v2103_v24, %v6797_v47  ;;  %v2113_v15 = vmul.f32 %v7158_v9, %v6811_v54  ;;  %v2115_v39 = vmul.f32 %v2103_v24, %v6827_v62  ;;  %v2116_v47 = vmul.f32 %v7146_v12, %v6836_v2 }
 0x1da   :  { %5733 = vmatprep.mubr.msk.f32.mxu1 %vm189_vm0, %v1428_v41  ;;  %v2118_v54 = vmul.f32 %v2101_v13, %v6850_v8  ;;  %v2119_v58 = vmul.f32 %v2103_v24, %v6855_v11  ;;  %v2120_v62 = vmul.f32 %v7146_v12, %v6864_v14  ;;  %v2121_v2 = vmul.f32 %v7158_v9, %v6869_v18 }
 0x1db   :  { %5798 = vmatmul.mubr.msk.f32.gmra.mrb[80].mxu0 %vm189_vm0, %v1783_v25  ;;  %v2123_v8 = vmul.f32 %v2103_v24, %v6883_v32  ;;  %v2124_v11 = vmul.f32 %v7146_v12, %v6900_v57  ;;  %v2125_v14 = vmul.f32 %v7158_v9, %v6911_v45  ;;  %v2126_v18 = vmul.f32 %v2101_v13, %v6908_v0  ;;  %v6069_v25 = vld [vmem:[%s10432_s5] sm:$0xff]  }
 0x1dc   :  { %5800 = vmatprep.mubr.msk.f32.mxu0 %vm189_vm0, %v1784_v6  ;;  %v2127_v23 = vmul.f32 %v2103_v24, %v6919_v7  ;;  %v2128_v32 = vmul.f32 %v7146_v12, %v6888_v38  ;;  %v2129_v57 = vmul.f32 %v7158_v9, %v6895_v48  ;;  %v2130_v45 = vmul.f32 %v2101_v13, %v6927_v31 }
 0x1dd   :  { %5734 = vmatmul.mubr.msk.f32.gmra.mrb[72].mxu1 %vm189_vm0, %v1429_v22  ;;  %v2131_v0 = vmul.f32 %v2103_v24, %v6932_v10  ;;  %5855 = vmatprep.subr.bf16.mxu0 %v6069_v25 }
 0x1de   :  { %5736 = vmatprep.mubr.msk.f32.mxu1 %vm189_vm0, %v1430_v42  ;;  %5856 = vmatpush3.bf16.msra.mxu0 %v6069_v25 }
 0x1df   :  { %5801 = vmatmul.mubr.msk.f32.gmra.mrb[82].mxu0 %vm189_vm0, %v1785_v1 }
 0x1e1   :  { %5737 = vmatmul.mubr.msk.f32.gmra.mrb[74].mxu1 %vm189_vm0, %v1431_v35 }
 0x1e2   :  { %5739 = vmatprep.mubr.msk.f32.mxu1 %vm189_vm0, %v1432_v16 }
 0x1e5   :  { %5740 = vmatmul.mubr.msk.f32.gmra.mrb[76].mxu1 %vm189_vm0, %v1433_v52 }
 0x1e6   :  { %5742 = vmatprep.mubr.msk.f32.mxu1 %vm189_vm0, %v1434_v26 }
 0x1e9   :  { %5743 = vmatmul.mubr.msk.f32.gmra.mrb[78].mxu1 %vm189_vm0, %v1435_v4 }
 0x1ea   :  { %5745 = vmatprep.mubr.msk.f32.mxu1 %vm189_vm0, %v1436_v56 }
 0x1ed   :  { %5746 = vmatmul.mubr.msk.f32.gmra.mrb[80].mxu1 %vm189_vm0, %v1437_v19 }
 0x1ee   :  { %5748 = vmatprep.mubr.msk.f32.mxu1 %vm189_vm0, %v1438_v28 }
 0x1f1   :  { %5749 = vmatmul.mubr.msk.f32.gmra.mrb[82].mxu1 %vm189_vm0, %v1439_v61 }
 0x1f2   :  { %5819 = vmatprep.mubr.msk.f32.mxu1 %vm189_vm0, %v2108_v51 }
 0x1f5   :  { %5820 = vmatmul.mubr.msk.f32.vlgmr.msra.gmra.mrb[84].mxu1 %vm189_vm0, %v2109_v20 }
 0x1f6   :  { %5822 = vmatprep.mubr.msk.f32.mxu1 %vm189_vm0, %v2110_v17 }
 0x1f9   :  { %5823 = vmatmul.mubr.msk.f32.gmra.mrb[86].mxu1 %vm189_vm0, %v2111_v27 }
 0x1fa   :  { %5825 = vmatprep.mubr.msk.f32.mxu1 %vm189_vm0, %v2112_v29 }
 0x1fd   :  { %5826 = vmatmul.mubr.msk.f32.gmra.mrb[88].mxu1 %vm189_vm0, %v2113_v15 }
 0x1fe   :  { %5828 = vmatprep.mubr.msk.f32.mxu1 %vm189_vm0, %v2114_v37 }
 0x201   :  { %5829 = vmatmul.mubr.msk.f32.gmra.mrb[90].mxu1 %vm189_vm0, %v2115_v39 }
 0x202   :  { %5831 = vmatprep.mubr.msk.f32.mxu1 %vm189_vm0, %v2116_v47 }
 0x205   :  { %5832 = vmatmul.mubr.msk.f32.gmra.mrb[92].mxu1 %vm189_vm0, %v2117_v49 }
 0x206   :  { %5834 = vmatprep.mubr.msk.f32.mxu1 %vm189_vm0, %v2118_v54 }
 0x209   :  { %5835 = vmatmul.mubr.msk.f32.gmra.mrb[94].mxu1 %vm189_vm0, %v2119_v58 }
 0x20a   :  { %5837 = vmatprep.mubr.msk.f32.mxu1 %vm189_vm0, %v2120_v62 }
 0x20d   :  { %5838 = vmatmul.mubr.msk.f32.gmra.mrb[96].mxu1 %vm189_vm0, %v2121_v2 }
 0x20e   :  { %5840 = vmatprep.mubr.msk.f32.mxu1 %vm189_vm0, %v2122_v5 }
 0x211   :  { %5841 = vmatmul.mubr.msk.f32.gmra.mrb[98].mxu1 %vm189_vm0, %v2123_v8 }
 0x212   :  { %5843 = vmatprep.mubr.msk.f32.mxu1 %vm189_vm0, %v2124_v11 }
 0x215   :  { %5844 = vmatmul.mubr.msk.f32.gmra.mrb[100].mxu1 %vm189_vm0, %v2125_v14 }
 0x216   :  { %5846 = vmatprep.mubr.msk.f32.mxu1 %vm189_vm0, %v2126_v18 }
 0x219   :  { %5847 = vmatmul.mubr.msk.f32.gmra.mrb[102].mxu1 %vm189_vm0, %v2127_v23 }
 0x21a   :  { %5849 = vmatprep.mubr.msk.f32.mxu1 %vm189_vm0, %v2128_v32 }
 0x21d   :  { %5850 = vmatmul.mubr.msk.f32.gmra.mrb[104].mxu1 %vm189_vm0, %v2129_v57 }
 0x21e   :  { %5852 = vmatprep.mubr.msk.f32.mxu1 %vm189_vm0, %v2130_v45 }
 0x221   :  { %5853 = vmatmul.mubr.msk.f32.gmra.mrb[106].mxu1 %vm189_vm0, %v2131_v0 }
 0x234   :  { %v7432_v7 = vpop.f32.mrb[12].mxu1 }
 0x235   :  { %685 = vst.msk [vmem:[#allocation2 + $0x8] sm:$0xff] %vm189_vm0, %v7432_v7  ;;  %v7436_v38 = vpop.f32.mrb[13].mxu1 }
 0x236   :  { %684 = vst.msk [vmem:[#allocation2] sm:$0xff] %vm189_vm0, %v7436_v38 }
 0x23c   :  { %v7440_v9 = vpop.f32.mrb[14].mxu1 }
 0x23d   :  { %687 = vst.msk [vmem:[#allocation2 + $0x18] sm:$0xff] %vm189_vm0, %v7440_v9  ;;  %v7444_v48 = vpop.f32.mrb[15].mxu1 }
 0x23e   :  { %686 = vst.msk [vmem:[#allocation2 + $0x10] sm:$0xff] %vm189_vm0, %v7444_v48 }
 0x240   :  { %v7448_v31 = vpop.f32.mrb[16].mxu1 }
 0x241   :  { %689 = vst.msk [vmem:[#allocation2 + $0x28] sm:$0xff] %vm189_vm0, %v7448_v31  ;;  %v7452_v10 = vpop.f32.mrb[17].mxu1 }
 0x242   :  { %688 = vst.msk [vmem:[#allocation2 + $0x20] sm:$0xff] %vm189_vm0, %v7452_v10 }
 0x244   :  { %v7456_v12 = vpop.f32.mrb[18].mxu1 }
 0x245   :  { %691 = vst.msk [vmem:[#allocation2 + $0x38] sm:$0xff] %vm189_vm0, %v7456_v12  ;;  %v7460_v41 = vpop.f32.mrb[19].mxu1 }
 0x246   :  { %690 = vst.msk [vmem:[#allocation2 + $0x30] sm:$0xff] %vm189_vm0, %v7460_v41 }
 0x248   :  { %v7467_v6 = vpop.f32.mrb[20].mxu1 }
 0x249   :  { %693 = vst.msk [vmem:[#allocation2 + $0x48] sm:$0xff] %vm189_vm0, %v7467_v6  ;;  %v7471_v22 = vpop.f32.mrb[21].mxu1 }
 0x24a   :  { %692 = vst.msk [vmem:[#allocation2 + $0x40] sm:$0xff] %vm189_vm0, %v7471_v22 }
 0x24c   :  { %v7475_v42 = vpop.f32.mrb[22].mxu1 }
 0x24d   :  { %695 = vst.msk [vmem:[#allocation2 + $0x58] sm:$0xff] %vm189_vm0, %v7475_v42  ;;  %v7479_v1 = vpop.f32.mrb[23].mxu1 }
 0x24e   :  { %694 = vst.msk [vmem:[#allocation2 + $0x50] sm:$0xff] %vm189_vm0, %v7479_v1 }
 0x250   :  { %v7483_v35 = vpop.f32.mrb[24].mxu1 }
 0x251   :  { %697 = vst.msk [vmem:[#allocation2 + $0x68] sm:$0xff] %vm189_vm0, %v7483_v35  ;;  %v7487_v16 = vpop.f32.mrb[25].mxu1 }
 0x252   :  { %696 = vst.msk [vmem:[#allocation2 + $0x60] sm:$0xff] %vm189_vm0, %v7487_v16  ;;  %v5665_v52 = vpop.f32.mrb[36].mxu0 }
 0x253   :  { %1353 = vst.msk [vmem:[#allocation2 + $0x188] sm:$0xff] %vm189_vm0, %v5665_v52  ;;  %v1232_v26 = vpop.f32.mrb[37].mxu0 }
 0x254   :  { %1352 = vst.msk [vmem:[#allocation2 + $0x180] sm:$0xff] %vm189_vm0, %v1232_v26  ;;  %v7493_v4 = vpop.f32.mrb[26].mxu1 }
 0x255   :  { %699 = vst.msk [vmem:[#allocation2 + $0x78] sm:$0xff] %vm189_vm0, %v7493_v4  ;;  %v7497_v56 = vpop.f32.mrb[27].mxu1 }
 0x256   :  { %698 = vst.msk [vmem:[#allocation2 + $0x70] sm:$0xff] %vm189_vm0, %v7497_v56 }
 0x258   :  { %v7501_v19 = vpop.f32.mrb[28].mxu1 }
 0x259   :  { %701 = vst.msk [vmem:[#allocation2 + $0x88] sm:$0xff] %vm189_vm0, %v7501_v19  ;;  %v7505_v28 = vpop.f32.mrb[29].mxu1 }
 0x25a   :  { %700 = vst.msk [vmem:[#allocation2 + $0x80] sm:$0xff] %vm189_vm0, %v7505_v28  ;;  %v5668_v61 = vpop.f32.mrb[38].mxu0 }
 0x25b   :  { %1355 = vst.msk [vmem:[#allocation2 + $0x198] sm:$0xff] %vm189_vm0, %v5668_v61  ;;  %v1242_v51 = vpop.f32.mrb[39].mxu0 }
 0x25c   :  { %1354 = vst.msk [vmem:[#allocation2 + $0x190] sm:$0xff] %vm189_vm0, %v1242_v51  ;;  %v7511_v13 = vpop.f32.mrb[30].mxu1 }
 0x25d   :  { %703 = vst.msk [vmem:[#allocation2 + $0x98] sm:$0xff] %vm189_vm0, %v7511_v13  ;;  %v7515_v20 = vpop.f32.mrb[31].mxu1 }
 0x25e   :  { %702 = vst.msk [vmem:[#allocation2 + $0x90] sm:$0xff] %vm189_vm0, %v7515_v20  ;;  %v5671_v24 = vpop.f32.mrb[40].mxu0 }
 0x25f   :  { %1357 = vst.msk [vmem:[#allocation2 + $0x1a8] sm:$0xff] %vm189_vm0, %v5671_v24  ;;  %v1252_v17 = vpop.f32.mrb[41].mxu0 }
 0x260   :  { %1356 = vst.msk [vmem:[#allocation2 + $0x1a0] sm:$0xff] %vm189_vm0, %v1252_v17  ;;  %v7521_v27 = vpop.f32.mrb[32].mxu1 }
 0x261   :  { %705 = vst.msk [vmem:[#allocation2 + $0xa8] sm:$0xff] %vm189_vm0, %v7521_v27  ;;  %v7525_v29 = vpop.f32.mrb[33].mxu1 }
 0x262   :  { %704 = vst.msk [vmem:[#allocation2 + $0xa0] sm:$0xff] %vm189_vm0, %v7525_v29  ;;  %v5674_v15 = vpop.f32.mrb[42].mxu0 }
 0x263   :  { %1359 = vst.msk [vmem:[#allocation2 + $0x1b8] sm:$0xff] %vm189_vm0, %v5674_v15  ;;  %v1262_v37 = vpop.f32.mrb[43].mxu0 }
 0x264   :  { %1358 = vst.msk [vmem:[#allocation2 + $0x1b0] sm:$0xff] %vm189_vm0, %v1262_v37  ;;  %v7531_v39 = vpop.f32.mrb[34].mxu1 }
 0x265   :  { %707 = vst.msk [vmem:[#allocation2 + $0xb8] sm:$0xff] %vm189_vm0, %v7531_v39  ;;  %v7535_v47 = vpop.f32.mrb[35].mxu1 }
 0x266   :  { %706 = vst.msk [vmem:[#allocation2 + $0xb0] sm:$0xff] %vm189_vm0, %v7535_v47  ;;  %v7539_v49 = vpop.f32.mrb[44].mxu0 }
 0x267   :  { %1361 = vst.msk [vmem:[#allocation2 + $0x1c8] sm:$0xff] %vm189_vm0, %v7539_v49  ;;  %v7543_v54 = vpop.f32.mrb[45].mxu0 }
 0x268   :  { %1360 = vst.msk [vmem:[#allocation2 + $0x1c0] sm:$0xff] %vm189_vm0, %v7543_v54  ;;  %v5613_v58 = vpop.f32.mrb[36].mxu1 }
 0x269   :  { %1007 = vst.msk [vmem:[#allocation2 + $0xc8] sm:$0xff] %vm189_vm0, %v5613_v58  ;;  %v1031_v62 = vmax.f32 %v7432_v7, %v5613_v58  ;;  %v886_v2 = vpop.f32.mrb[37].mxu1 }
 0x26a   :  { %1006 = vst.msk [vmem:[#allocation2 + $0xc0] sm:$0xff] %vm189_vm0, %v886_v2  ;;  %v1030_v5 = vmax.f32 %v7436_v38, %v886_v2  ;;  %v7551_v8 = vpop.f32.mrb[46].mxu0 }
 0x26b   :  { %1363 = vst.msk [vmem:[#allocation2 + $0x1d8] sm:$0xff] %vm189_vm0, %v7551_v8  ;;  %v7555_v11 = vpop.f32.mrb[47].mxu0  ;;  %v7557_v14 = vmax.f32 %v1031_v62, %v5665_v52 }
 0x26c   :  { %1362 = vst.msk [vmem:[#allocation2 + $0x1d0] sm:$0xff] %vm189_vm0, %v7555_v11  ;;  %v5616_v18 = vpop.f32.mrb[38].mxu1  ;;  %v7561_v23 = vmax.f32 %v1030_v5, %v1232_v26 }
 0x26d   :  { %1009 = vst.msk [vmem:[#allocation2 + $0xd8] sm:$0xff] %vm189_vm0, %v5616_v18  ;;  %v1033_v32 = vmax.f32 %v7440_v9, %v5616_v18  ;;  %v896_v57 = vpop.f32.mrb[39].mxu1 }
 0x26e   :  { %1008 = vst.msk [vmem:[#allocation2 + $0xd0] sm:$0xff] %vm189_vm0, %v896_v57  ;;  %v1032_v45 = vmax.f32 %v7444_v48, %v896_v57  ;;  %v7567_v0 = vpop.f32.mrb[48].mxu0 }
 0x26f   :  { %1365 = vst.msk [vmem:[#allocation2 + $0x1e8] sm:$0xff] %vm189_vm0, %v7567_v0  ;;  %v7571_v7 = vpop.f32.mrb[49].mxu0  ;;  %v7573_v38 = vmax.f32 %v1033_v32, %v5668_v61 }
 0x270   :  { %1364 = vst.msk [vmem:[#allocation2 + $0x1e0] sm:$0xff] %vm189_vm0, %v7571_v7  ;;  %v5619_v25 = vpop.f32.mrb[40].mxu1  ;;  %v7577_v52 = vmax.f32 %v1032_v45, %v1242_v51  ;;  %v6070_v51 = vld [vmem:[%s10432_s5 + $0x8] sm:$0xff]  }
 0x271   :  { %1011 = vst.msk [vmem:[#allocation2 + $0xe8] sm:$0xff] %vm189_vm0, %v5619_v25  ;;  %v1035_v9 = vmax.f32 %v7448_v31, %v5619_v25  ;;  %v906_v48 = vpop.f32.mrb[41].mxu1  ;;  %5857 = vmatprep.subr.bf16.mxu0 %v6070_v51 }
 0x272   :  { %1010 = vst.msk [vmem:[#allocation2 + $0xe0] sm:$0xff] %vm189_vm0, %v906_v48  ;;  %v1034_v26 = vmax.f32 %v7452_v10, %v906_v48  ;;  %v7583_v58 = vpop.f32.mrb[50].mxu0  ;;  %5858 = vmatpush3.bf16.msra.mxu0 %v6070_v51 }
 0x273   :  { %1367 = vst.msk [vmem:[#allocation2 + $0x1f8] sm:$0xff] %vm189_vm0, %v7583_v58  ;;  %v7587_v61 = vpop.f32.mrb[51].mxu0  ;;  %v7589_v62 = vmax.f32 %v1035_v9, %v5671_v24 }
 0x274   :  { %1366 = vst.msk [vmem:[#allocation2 + $0x1f0] sm:$0xff] %vm189_vm0, %v7587_v61  ;;  %v5622_v31 = vpop.f32.mrb[42].mxu1  ;;  %v7596_v2 = vmax.f32 %v1034_v26, %v1252_v17 }
 0x275   :  { %1013 = vst.msk [vmem:[#allocation2 + $0xf8] sm:$0xff] %vm189_vm0, %v5622_v31  ;;  %v1037_v10 = vmax.f32 %v7456_v12, %v5622_v31  ;;  %v916_v5 = vpop.f32.mrb[43].mxu1 }
 0x276   :  { %1012 = vst.msk [vmem:[#allocation2 + $0xf0] sm:$0xff] %vm189_vm0, %v916_v5  ;;  %v1036_v24 = vmax.f32 %v7460_v41, %v916_v5  ;;  %v7602_v18 = vpop.f32.mrb[52].mxu0 }
 0x277   :  { %1369 = vst.msk [vmem:[#allocation2 + $0x208] sm:$0xff] %vm189_vm0, %v7602_v18  ;;  %v7606_v32 = vpop.f32.mrb[53].mxu0  ;;  %v7608_v17 = vmax.f32 %v1037_v10, %v5674_v15 }
 0x278   :  { %1368 = vst.msk [vmem:[#allocation2 + $0x200] sm:$0xff] %vm189_vm0, %v7606_v32  ;;  %v5625_v12 = vpop.f32.mrb[44].mxu1  ;;  %v7612_v57 = vmax.f32 %v1036_v24, %v1262_v37 }
 0x279   :  { %1015 = vst.msk [vmem:[#allocation2 + $0x108] sm:$0xff] %vm189_vm0, %v5625_v12  ;;  %v1039_v41 = vmax.f32 %v7467_v6, %v5625_v12  ;;  %v926_v45 = vpop.f32.mrb[45].mxu1 }
 0x27a   :  { %1014 = vst.msk [vmem:[#allocation2 + $0x100] sm:$0xff] %vm189_vm0, %v926_v45  ;;  %v1038_v25 = vmax.f32 %v7471_v22, %v926_v45  ;;  %v7618_v9 = vpop.f32.mrb[54].mxu0 }
 0x27b   :  { %1371 = vst.msk [vmem:[#allocation2 + $0x218] sm:$0xff] %vm189_vm0, %v7618_v9  ;;  %v7622_v15 = vpop.f32.mrb[55].mxu0  ;;  %v7625_v48 = vmax.f32 %v1039_v41, %v7539_v49 }
 0x27c   :  { %1370 = vst.msk [vmem:[#allocation2 + $0x210] sm:$0xff] %vm189_vm0, %v7622_v15  ;;  %v5628_v37 = vpop.f32.mrb[46].mxu1  ;;  %v7630_v6 = vmax.f32 %v1038_v25, %v7543_v54 }
 0x27d   :  { %1017 = vst.msk [vmem:[#allocation2 + $0x118] sm:$0xff] %vm189_vm0, %v5628_v37  ;;  %v1041_v22 = vmax.f32 %v7475_v42, %v5628_v37  ;;  %v936_v26 = vpop.f32.mrb[47].mxu1 }
 0x27e   :  { %1016 = vst.msk [vmem:[#allocation2 + $0x110] sm:$0xff] %vm189_vm0, %v936_v26  ;;  %v1040_v51 = vmax.f32 %v7479_v1, %v936_v26  ;;  %v7636_v31 = vpop.f32.mrb[56].mxu0 }
 0x27f   :  { %1373 = vst.msk [vmem:[#allocation2 + $0x228] sm:$0xff] %vm189_vm0, %v7636_v31  ;;  %v7640_v49 = vpop.f32.mrb[57].mxu0  ;;  %v7643_v10 = vmax.f32 %v1041_v22, %v7551_v8 }
 0x280   :  { %1372 = vst.msk [vmem:[#allocation2 + $0x220] sm:$0xff] %vm189_vm0, %v7640_v49  ;;  %v5631_v54 = vpop.f32.mrb[48].mxu1  ;;  %v7648_v42 = vmax.f32 %v1040_v51, %v7555_v11 }
 0x281   :  { %1019 = vst.msk [vmem:[#allocation2 + $0x128] sm:$0xff] %vm189_vm0, %v5631_v54  ;;  %v1043_v1 = vmax.f32 %v7483_v35, %v5631_v54  ;;  %v946_v5 = vpop.f32.mrb[49].mxu1 }
 0x282   :  { %1018 = vst.msk [vmem:[#allocation2 + $0x120] sm:$0xff] %vm189_vm0, %v946_v5  ;;  %v1042_v24 = vmax.f32 %v7487_v16, %v946_v5  ;;  %v7654_v12 = vpop.f32.mrb[58].mxu0 }
 0x283   :  { %1375 = vst.msk [vmem:[#allocation2 + $0x238] sm:$0xff] %vm189_vm0, %v7654_v12  ;;  %v7658_v8 = vpop.f32.mrb[59].mxu0  ;;  %v7661_v41 = vmax.f32 %v1043_v1, %v7567_v0 }
 0x284   :  { %1374 = vst.msk [vmem:[#allocation2 + $0x230] sm:$0xff] %vm189_vm0, %v7658_v8  ;;  %v5634_v11 = vpop.f32.mrb[50].mxu1  ;;  %v7666_v35 = vmax.f32 %v1042_v24, %v7571_v7 }
 0x285   :  { %1021 = vst.msk [vmem:[#allocation2 + $0x138] sm:$0xff] %vm189_vm0, %v5634_v11  ;;  %v1045_v16 = vmax.f32 %v7493_v4, %v5634_v11  ;;  %v956_v45 = vpop.f32.mrb[51].mxu1 }
 0x286   :  { %1020 = vst.msk [vmem:[#allocation2 + $0x130] sm:$0xff] %vm189_vm0, %v956_v45  ;;  %v1044_v25 = vmax.f32 %v7497_v56, %v956_v45  ;;  %v7672_v37 = vpop.f32.mrb[60].mxu0 }
 0x287   :  { %2045 = vst.msk [vmem:[#allocation2 + $0x308] sm:$0xff] %vm189_vm0, %v7672_v37  ;;  %v7676_v0 = vpop.f32.mrb[61].mxu0  ;;  %v7679_v22 = vmax.f32 %v1045_v16, %v7583_v58 }
 0x288   :  { %2044 = vst.msk [vmem:[#allocation2 + $0x300] sm:$0xff] %vm189_vm0, %v7676_v0  ;;  %v5637_v7 = vpop.f32.mrb[52].mxu1  ;;  %v7684_v4 = vmax.f32 %v1044_v25, %v7587_v61 }
 0x289   :  { %1023 = vst.msk [vmem:[#allocation2 + $0x148] sm:$0xff] %vm189_vm0, %v5637_v7  ;;  %v1047_v56 = vmax.f32 %v7501_v19, %v5637_v7  ;;  %v966_v26 = vpop.f32.mrb[53].mxu1 }
 0x28a   :  { %1022 = vst.msk [vmem:[#allocation2 + $0x140] sm:$0xff] %vm189_vm0, %v966_v26  ;;  %v1046_v51 = vmax.f32 %v7505_v28, %v966_v26  ;;  %v7690_v54 = vpop.f32.mrb[62].mxu0 }
 0x28b   :  { %2047 = vst.msk [vmem:[#allocation2 + $0x318] sm:$0xff] %vm189_vm0, %v7690_v54  ;;  %v7694_v58 = vpop.f32.mrb[63].mxu0  ;;  %v7697_v1 = vmax.f32 %v1047_v56, %v7602_v18 }
 0x28c   :  { %2046 = vst.msk [vmem:[#allocation2 + $0x310] sm:$0xff] %vm189_vm0, %v7694_v58  ;;  %v5640_v61 = vpop.f32.mrb[54].mxu1  ;;  %v7702_v19 = vmax.f32 %v1046_v51, %v7606_v32 }
 0x28d   :  { %1025 = vst.msk [vmem:[#allocation2 + $0x158] sm:$0xff] %vm189_vm0, %v5640_v61  ;;  %v1049_v28 = vmax.f32 %v7511_v13, %v5640_v61  ;;  %v976_v5 = vpop.f32.mrb[55].mxu1 }
 0x28e   :  { %1024 = vst.msk [vmem:[#allocation2 + $0x150] sm:$0xff] %vm189_vm0, %v976_v5  ;;  %v1048_v24 = vmax.f32 %v7515_v20, %v976_v5  ;;  %v7708_v11 = vpop.f32.mrb[64].mxu0 }
 0x28f   :  { %2049 = vst.msk [vmem:[#allocation2 + $0x328] sm:$0xff] %vm189_vm0, %v7708_v11  ;;  %v7712_v18 = vpop.f32.mrb[65].mxu0  ;;  %v7715_v16 = vmax.f32 %v1049_v28, %v7618_v9 }
 0x290   :  { %2048 = vst.msk [vmem:[#allocation2 + $0x320] sm:$0xff] %vm189_vm0, %v7712_v18  ;;  %v5643_v32 = vpop.f32.mrb[56].mxu1  ;;  %v7720_v13 = vmax.f32 %v1048_v24, %v7622_v15 }
 0x291   :  { %1027 = vst.msk [vmem:[#allocation2 + $0x168] sm:$0xff] %vm189_vm0, %v5643_v32  ;;  %v1051_v20 = vmax.f32 %v7521_v27, %v5643_v32  ;;  %v986_v45 = vpop.f32.mrb[57].mxu1 }
 0x292   :  { %1026 = vst.msk [vmem:[#allocation2 + $0x160] sm:$0xff] %vm189_vm0, %v986_v45  ;;  %v1050_v25 = vmax.f32 %v7525_v29, %v986_v45  ;;  %v7726_v7 = vpop.f32.mrb[66].mxu0 }
 0x293   :  { %2051 = vst.msk [vmem:[#allocation2 + $0x338] sm:$0xff] %vm189_vm0, %v7726_v7  ;;  %v7730_v9 = vpop.f32.mrb[67].mxu0  ;;  %v7733_v56 = vmax.f32 %v1051_v20, %v7636_v31  ;;  %v6071_v31 = vld [vmem:[%s10432_s5 + $0x10] sm:$0xff]  }
 0x294   :  { %2050 = vst.msk [vmem:[#allocation2 + $0x330] sm:$0xff] %vm189_vm0, %v7730_v9  ;;  %v5646_v15 = vpop.f32.mrb[58].mxu1  ;;  %v7738_v27 = vmax.f32 %v1050_v25, %v7640_v49  ;;  %5859 = vmatprep.subr.bf16.mxu0 %v6071_v31 }
 0x295   :  { %1029 = vst.msk [vmem:[#allocation2 + $0x178] sm:$0xff] %vm189_vm0, %v5646_v15  ;;  %v1053_v29 = vmax.f32 %v7531_v39, %v5646_v15  ;;  %v996_v26 = vpop.f32.mrb[59].mxu1  ;;  %5860 = vmatpush3.bf16.msra.mxu0 %v6071_v31 }
 0x296   :  { %1028 = vst.msk [vmem:[#allocation2 + $0x170] sm:$0xff] %vm189_vm0, %v996_v26  ;;  %v1052_v51 = vmax.f32 %v7535_v47, %v996_v26  ;;  %v7744_v61 = vpop.f32.mrb[68].mxu0 }
 0x297   :  { %2053 = vst.msk [vmem:[#allocation2 + $0x348] sm:$0xff] %vm189_vm0, %v7744_v61  ;;  %v7751_v49 = vpop.f32.mrb[69].mxu0  ;;  %v7754_v28 = vmax.f32 %v1053_v29, %v7654_v12 }
 0x298   :  { %2052 = vst.msk [vmem:[#allocation2 + $0x340] sm:$0xff] %vm189_vm0, %v7751_v49  ;;  %v5717_v39 = vpop.f32.mrb[60].mxu1  ;;  %v7759_v47 = vmax.f32 %v1052_v51, %v7658_v8 }
 0x299   :  { %1699 = vst.msk [vmem:[#allocation2 + $0x248] sm:$0xff] %vm189_vm0, %v5717_v39  ;;  %v1723_v5 = vmax.f32 %v7557_v14, %v5717_v39  ;;  %v1578_v24 = vpop.f32.mrb[61].mxu1 }
 0x29a   :  { %1698 = vst.msk [vmem:[#allocation2 + $0x240] sm:$0xff] %vm189_vm0, %v1578_v24  ;;  %v1722_v32 = vmax.f32 %v7561_v23, %v1578_v24  ;;  %v7765_v12 = vpop.f32.mrb[70].mxu0 }
 0x29b   :  { %2055 = vst.msk [vmem:[#allocation2 + $0x358] sm:$0xff] %vm189_vm0, %v7765_v12  ;;  %v7769_v20 = vpop.f32.mrb[71].mxu0  ;;  %v7772_v8 = vmax.f32 %v1723_v5, %v7672_v37 }
 0x29c   :  { %2054 = vst.msk [vmem:[#allocation2 + $0x350] sm:$0xff] %vm189_vm0, %v7769_v20  ;;  %v5720_v14 = vpop.f32.mrb[62].mxu1  ;;  %v7777_v45 = vmax.f32 %v1722_v32, %v7676_v0 }
 0x29d   :  { %1701 = vst.msk [vmem:[#allocation2 + $0x258] sm:$0xff] %vm189_vm0, %v5720_v14  ;;  %v1725_v23 = vmax.f32 %v7573_v38, %v5720_v14  ;;  %v1588_v25 = vpop.f32.mrb[63].mxu1 }
 0x29e   :  { %1700 = vst.msk [vmem:[#allocation2 + $0x250] sm:$0xff] %vm189_vm0, %v1588_v25  ;;  %v1724_v15 = vmax.f32 %v7577_v52, %v1588_v25  ;;  %v7783_v29 = vpop.f32.mrb[72].mxu0 }
 0x29f   :  { %2057 = vst.msk [vmem:[#allocation2 + $0x368] sm:$0xff] %vm189_vm0, %v7783_v29  ;;  %v7787_v37 = vpop.f32.mrb[73].mxu0  ;;  %v7790_v26 = vmax.f32 %v1725_v23, %v7690_v54 }
 0x2a0   :  { %2056 = vst.msk [vmem:[#allocation2 + $0x360] sm:$0xff] %vm189_vm0, %v7787_v37  ;;  %v5723_v0 = vpop.f32.mrb[64].mxu1  ;;  %v7795_v38 = vmax.f32 %v1724_v15, %v7694_v58 }
 0x2a1   :  { %1703 = vst.msk [vmem:[#allocation2 + $0x268] sm:$0xff] %vm189_vm0, %v5723_v0  ;;  %v1727_v52 = vmax.f32 %v7589_v62, %v5723_v0  ;;  %v1598_v51 = vpop.f32.mrb[65].mxu1 }
 0x2a2   :  { %1702 = vst.msk [vmem:[#allocation2 + $0x260] sm:$0xff] %vm189_vm0, %v1598_v51  ;;  %v1726_v31 = vmax.f32 %v7596_v2, %v1598_v51  ;;  %v5790_v39 = vpop.f32.mrb[74].mxu0 }
 0x2a3   :  { %2059 = vst.msk [vmem:[#allocation2 + $0x378] sm:$0xff] %vm189_vm0, %v5790_v39  ;;  %v1994_v54 = vpop.f32.mrb[75].mxu0  ;;  %v7803_v5 = vmax.f32 %v1727_v52, %v7708_v11 }
 0x2a4   :  { %2058 = vst.msk [vmem:[#allocation2 + $0x370] sm:$0xff] %vm189_vm0, %v1994_v54  ;;  %v5726_v58 = vpop.f32.mrb[66].mxu1  ;;  %v7807_v24 = vmax.f32 %v1726_v31, %v7712_v18 }
 0x2a5   :  { %1705 = vst.msk [vmem:[#allocation2 + $0x278] sm:$0xff] %vm189_vm0, %v5726_v58  ;;  %v1729_v62 = vmax.f32 %v7608_v17, %v5726_v58  ;;  %v1608_v32 = vpop.f32.mrb[67].mxu1 }
 0x2a6   :  { %1704 = vst.msk [vmem:[#allocation2 + $0x270] sm:$0xff] %vm189_vm0, %v1608_v32  ;;  %v1728_v2 = vmax.f32 %v7612_v57, %v1608_v32  ;;  %v5793_v14 = vpop.f32.mrb[76].mxu0 }
 0x2a7   :  { %2061 = vst.msk [vmem:[#allocation2 + $0x388] sm:$0xff] %vm189_vm0, %v5793_v14  ;;  %v2004_v11 = vpop.f32.mrb[77].mxu0  ;;  %v7815_v23 = vmax.f32 %v1729_v62, %v7726_v7 }
 0x2a8   :  { %2060 = vst.msk [vmem:[#allocation2 + $0x380] sm:$0xff] %vm189_vm0, %v2004_v11  ;;  %v5729_v18 = vpop.f32.mrb[68].mxu1  ;;  %v7819_v25 = vmax.f32 %v1728_v2, %v7730_v9 }
 0x2a9   :  { %1707 = vst.msk [vmem:[#allocation2 + $0x288] sm:$0xff] %vm189_vm0, %v5729_v18  ;;  %v1731_v17 = vmax.f32 %v7625_v48, %v5729_v18  ;;  %v1618_v15 = vpop.f32.mrb[69].mxu1 }
 0x2aa   :  { %1706 = vst.msk [vmem:[#allocation2 + $0x280] sm:$0xff] %vm189_vm0, %v1618_v15  ;;  %v1730_v57 = vmax.f32 %v7630_v6, %v1618_v15  ;;  %v5796_v0 = vpop.f32.mrb[78].mxu0 }
 0x2ab   :  { %2063 = vst.msk [vmem:[#allocation2 + $0x398] sm:$0xff] %vm189_vm0, %v5796_v0  ;;  %v2014_v7 = vpop.f32.mrb[79].mxu0  ;;  %v7827_v52 = vmax.f32 %v1731_v17, %v7744_v61 }
 0x2ac   :  { %2062 = vst.msk [vmem:[#allocation2 + $0x390] sm:$0xff] %vm189_vm0, %v2014_v7  ;;  %v5732_v9 = vpop.f32.mrb[70].mxu1  ;;  %v7831_v51 = vmax.f32 %v1730_v57, %v7751_v49 }
 0x2ad   :  { %1709 = vst.msk [vmem:[#allocation2 + $0x298] sm:$0xff] %vm189_vm0, %v5732_v9  ;;  %v1733_v48 = vmax.f32 %v7643_v10, %v5732_v9  ;;  %v1628_v31 = vpop.f32.mrb[71].mxu1 }
 0x2ae   :  { %1708 = vst.msk [vmem:[#allocation2 + $0x290] sm:$0xff] %vm189_vm0, %v1628_v31  ;;  %v1732_v6 = vmax.f32 %v7648_v42, %v1628_v31  ;;  %v5799_v58 = vpop.f32.mrb[80].mxu0 }
 0x2af   :  { %2065 = vst.msk [vmem:[#allocation2 + $0x3a8] sm:$0xff] %vm189_vm0, %v5799_v58  ;;  %v2024_v61 = vpop.f32.mrb[81].mxu0  ;;  %v7839_v62 = vmax.f32 %v1733_v48, %v7765_v12 }
 0x2b0   :  { %2064 = vst.msk [vmem:[#allocation2 + $0x3a0] sm:$0xff] %vm189_vm0, %v2024_v61  ;;  %v5735_v49 = vpop.f32.mrb[72].mxu1  ;;  %v7843_v32 = vmax.f32 %v1732_v6, %v7769_v20 }
 0x2b1   :  { %1711 = vst.msk [vmem:[#allocation2 + $0x2a8] sm:$0xff] %vm189_vm0, %v5735_v49  ;;  %v1735_v10 = vmax.f32 %v7661_v41, %v5735_v49  ;;  %v1638_v2 = vpop.f32.mrb[73].mxu1 }
 0x2b2   :  { %1710 = vst.msk [vmem:[#allocation2 + $0x2a0] sm:$0xff] %vm189_vm0, %v1638_v2  ;;  %v1734_v42 = vmax.f32 %v7666_v35, %v1638_v2  ;;  %v5802_v18 = vpop.f32.mrb[82].mxu0 }
 0x2b3   :  { %2067 = vst.msk [vmem:[#allocation2 + $0x3b8] sm:$0xff] %vm189_vm0, %v5802_v18  ;;  %v2034_v12 = vpop.f32.mrb[83].mxu0  ;;  %v7851_v17 = vmax.f32 %v1735_v10, %v7783_v29  ;;  %v10436_v10 = vsub.s32 1, %v6737_v21 }
 0x2b4   :  { %2066 = vst.msk [vmem:[#allocation2 + $0x3b0] sm:$0xff] %vm189_vm0, %v2034_v12  ;;  %v5738_v20 = vpop.f32.mrb[74].mxu1  ;;  %v7855_v15 = vmax.f32 %v1734_v42, %v7787_v37 }
 0x2b5   :  { %1713 = vst.msk [vmem:[#allocation2 + $0x2b8] sm:$0xff] %vm189_vm0, %v5738_v20  ;;  %v1737_v41 = vmax.f32 %v7679_v22, %v5738_v20  ;;  %v1648_v57 = vpop.f32.mrb[75].mxu1  ;;  %v6072_v22 = vld [vmem:[%s10432_s5 + $0x18] sm:$0xff]  }
 0x2b6   :  { %1712 = vst.msk [vmem:[#allocation2 + $0x2b0] sm:$0xff] %vm189_vm0, %v1648_v57  ;;  %v1736_v35 = vmax.f32 %v7684_v4, %v1648_v57  ;;  %5861 = vmatprep.subr.bf16.mxu0 %v6072_v22 }
 0x2b7   :  { %v7861_v9 = vmax.f32 %v1737_v41, %v5790_v39  ;;  %5862 = vmatpush3.bf16.msra.mxu0 %v6072_v22  ;;  %v2775_v22 = vld [vmem:[#allocation2 + $0x188] sm:$0xff] }
 0x2b8   :  { %v5741_v48 = vpop.f32.mrb[76].mxu1  ;;  %v7863_v29 = vmax.f32 %v1736_v35, %v1994_v54 }
 0x2b9   :  { %1715 = vst.msk [vmem:[#allocation2 + $0x2c8] sm:$0xff] %vm189_vm0, %v5741_v48  ;;  %v1739_v31 = vmax.f32 %v7697_v1, %v5741_v48  ;;  %v1658_v37 = vpop.f32.mrb[77].mxu1 }
 0x2ba   :  { %1714 = vst.msk [vmem:[#allocation2 + $0x2c0] sm:$0xff] %vm189_vm0, %v1658_v37  ;;  %v1738_v6 = vmax.f32 %v7702_v19, %v1658_v37 }
 0x2bb   :  { %v7872_v49 = vmax.f32 %v1739_v31, %v5793_v14 }
 0x2bc   :  { %v5744_v4 = vpop.f32.mrb[78].mxu1  ;;  %v7874_v39 = vmax.f32 %v1738_v6, %v2004_v11 }
 0x2bd   :  { %1717 = vst.msk [vmem:[#allocation2 + $0x2d8] sm:$0xff] %vm189_vm0, %v5744_v4  ;;  %v1741_v54 = vmax.f32 %v7715_v16, %v5744_v4  ;;  %v1668_v1 = vpop.f32.mrb[79].mxu1  ;;  %v2943_v4 = vld [vmem:[#allocation2 + $0x248] sm:$0xff] }
 0x2be   :  { %1716 = vst.msk [vmem:[#allocation2 + $0x2d0] sm:$0xff] %vm189_vm0, %v1668_v1  ;;  %v1740_v19 = vmax.f32 %v7720_v13, %v1668_v1  ;;  %v6513_v13 = vld [vmem:[%s10431_s4] sm:$0x3] }
 0x2bf   :  { %v7881_v2 = vmax.f32 %v1741_v54, %v5796_v0  ;;  %v7894_v0 = vrot.slane %v6513_v13, %v10436_v10  ;;  %v2606_v13 = vld [vmem:[#allocation2 + $0xc0] sm:$0xff] }
 0x2c0   :  { %v5747_v14 = vpop.f32.mrb[80].mxu1  ;;  %v7883_v42 = vmax.f32 %v1740_v19, %v2014_v7 }
 0x2c1   :  { %1719 = vst.msk [vmem:[#allocation2 + $0x2e8] sm:$0xff] %vm189_vm0, %v5747_v14  ;;  %v1743_v11 = vmax.f32 %v7733_v56, %v5747_v14  ;;  %v1678_v20 = vpop.f32.mrb[81].mxu1  ;;  %v7906_v48 = vadd.f32 %v6764_v30, %v7894_v0  ;;  %v7928_v30 = vadd.f32 %v6788_v43, %v7894_v0  ;;  %v2439_v43 = vld [vmem:[#allocation2 + $0x8] sm:$0xff] }
 0x2c2   :  { %1718 = vst.msk [vmem:[#allocation2 + $0x2e0] sm:$0xff] %vm189_vm0, %v1678_v20  ;;  %v1742_v16 = vmax.f32 %v7738_v27, %v1678_v20  ;;  %v3111_v14 = vld [vmem:[#allocation2 + $0x308] sm:$0xff] }
 0x2c3   :  { %v7896_v41 = vmax.f32 %v1743_v11, %v5799_v58  ;;  %v7910_v58 = vadd.f32 %v6770_v34, %v7894_v0  ;;  %10605 = vst [vmem:[#allocation16_spill] sm:$0xff] %v7928_v30  ;;  %v2438_v11 = vld [vmem:[#allocation2] sm:$0xff] }
 0x2c4   :  { %v5750_v7 = vpop.f32.mrb[82].mxu1  ;;  %v7898_v57 = vmax.f32 %v1742_v16, %v2024_v61  ;;  %v7914_v61 = vadd.f32 %v6768_v33, %v7894_v0  ;;  %v7934_v33 = vadd.f32 %v6790_v44, %v7894_v0  ;;  %v7952_v44 = vadd.f32 %v6822_v59, %v7894_v0 }
 0x2c5   :  { %1721 = vst.msk [vmem:[#allocation2 + $0x2f8] sm:$0xff] %vm189_vm0, %v5750_v7  ;;  %v1745_v56 = vmax.f32 %v7754_v28, %v5750_v7  ;;  %v1688_v35 = vpop.f32.mrb[83].mxu1  ;;  %v7920_v28 = vadd.f32 %v6786_v40, %v7894_v0  ;;  %v7942_v40 = vadd.f32 %v6794_v46, %v7894_v0  ;;  %v2607_v46 = vld [vmem:[#allocation2 + $0xc8] sm:$0xff]  ;;  %v7964_v59 = vadd.f32 %v6831_v63, %v7894_v0 }
 0x2c6   :  { %1720 = vst.msk [vmem:[#allocation2 + $0x2f0] sm:$0xff] %vm189_vm0, %v1688_v35  ;;  %v1744_v27 = vmax.f32 %v7759_v47, %v1688_v35  ;;  %10602 = vst [vmem:[#allocation13_spill] sm:$0xff] %v7914_v61  ;;  %v7924_v47 = vadd.f32 %v6776_v36, %v7894_v0  ;;  %v10616_v63 = vld [vmem:[#allocation4_spill] sm:$0xff]  ;;  %v2440_v61 = vld [vmem:[#allocation2 + $0x10] sm:$0xff] }
 0x2c7   :  { %v7916_v31 = vmax.f32 %v1745_v56, %v5802_v18  ;;  %10603 = vst [vmem:[#allocation14_spill] sm:$0xff] %v7920_v28  ;;  %10607 = vst [vmem:[#allocation18_spill] sm:$0xff] %v7934_v33  ;;  %v7938_v18 = vadd.f32 %v6804_v50, %v7894_v0  ;;  %v7956_v50 = vadd.f32 %v6808_v53, %v7894_v0  ;;  %v2947_v33 = vld [vmem:[#allocation2 + $0x268] sm:$0xff]  ;;  %v2610_v28 = vld [vmem:[#allocation2 + $0xe0] sm:$0xff] }
 0x2c8   :  { %10604 = vst [vmem:[#allocation15_spill] sm:$0xff] %v7924_v47  ;;  %v5821_v34 = vpop.f32.mrb[84].mxu1  ;;  %v7930_v37 = vmax.f32 %v1744_v27, %v2034_v12  ;;  %10609 = vst [vmem:[#allocation20_spill] sm:$0xff] %v7942_v40  ;;  %v7948_v12 = vadd.f32 %v6815_v55, %v7894_v0  ;;  %v7968_v53 = vadd.f32 %v6824_v60, %v7894_v0 }
 0x2c9   :  { %10608 = vst [vmem:[#allocation19_spill] sm:$0xff] %v7938_v18  ;;  %2391 = vst.msk [vmem:[#allocation2 + $0x3c8] sm:$0xff] %vm189_vm0, %v5821_v34  ;;  %v2415_v36 = vmax.f32 %v7772_v8, %v5821_v34  ;;  %v2270_v6 = vpop.f32.mrb[85].mxu1  ;;  %v7973_v56 = vadd.f32 %v6838_v3, %v7894_v0  ;;  %v10620_v3 = vld [vmem:[#allocation6_spill] sm:$0xff] }
 0x2ca   :  { %10606 = vst [vmem:[#allocation17_spill] sm:$0xff] %v7930_v37  ;;  %10610 = vst [vmem:[#allocation21_spill] sm:$0xff] %v7948_v12  ;;  %v7960_v8 = vmax.f32 %v7777_v45, %v2270_v6  ;;  %v2774_v45 = vld [vmem:[#allocation2 + $0x180] sm:$0xff] }
 0x2cb   :  { %10611 = vst [vmem:[#allocation22_spill] sm:$0xff] %v7952_v44  ;;  %10612 = vst [vmem:[#allocation23_spill] sm:$0xff] %v7956_v50  ;;  %v2463_v54 = vsub.f32 %v2439_v43, %v2415_v36  ;;  %v2631_v1 = vsub.f32 %v2607_v46, %v2415_v36  ;;  %v2799_v55 = vsub.f32 %v2775_v22, %v2415_v36  ;;  %v10618_v22 = vld [vmem:[#allocation5_spill] sm:$0xff]  ;;  %v2442_v44 = vld [vmem:[#allocation2 + $0x20] sm:$0xff] }
 0x2cc   :  { %2390 = vst.msk [vmem:[#allocation2 + $0x3c0] sm:$0xff] %vm189_vm0, %v2270_v6  ;;  %v2967_v19 = vsub.f32 %v2943_v4, %v2415_v36  ;;  %10613 = vst [vmem:[#allocation24_spill] sm:$0xff] %v7964_v59  ;;  %v3135_v20 = vsub.f32 %v3111_v14, %v2415_v36  ;;  %v2462_v16 = vsub.f32 %v2438_v11, %v7960_v8  ;;  %v5824_v7 = vpop.f32.mrb[86].mxu1 }
 0x2cd   :  { %10614 = vst [vmem:[#allocation25_spill] sm:$0xff] %v7968_v53  ;;  %10615 = vst [vmem:[#allocation26_spill] sm:$0xff] %v7973_v56  ;;  %v2488_v35 = vmul.f32 1.442695, %v2463_v54  ;;  %v2656_v27 = vmul.f32 1.442695, %v2631_v1  ;;  %v7978_v43 = vadd.f32 %v10616_v63, %v7894_v0  ;;  %v2630_v6 = vsub.f32 %v2606_v13, %v7960_v8 }
 0x2ce   :  { %v2824_v34 = vmul.f32 1.442695, %v2799_v55  ;;  %2393 = vst.msk [vmem:[#allocation2 + $0x3d8] sm:$0xff] %vm189_vm0, %v5824_v7  ;;  %v2992_v60 = vmul.f32 1.442695, %v2967_v19  ;;  %v2798_v46 = vsub.f32 %v2774_v45, %v7960_v8  ;;  %v7984_v4 = vadd.f32 %v10618_v22, %v7894_v0  ;;  %v2942_v55 = vld [vmem:[#allocation2 + $0x240] sm:$0xff] }
 0x2cf   :  { %10617 = vst [vmem:[#allocation4_spill] sm:$0xff] %v7978_v43  ;;  %v7988_v54 = vadd.f32 %v10620_v3, %v7894_v0  ;;  %6081 = vpow2.f32 %v2488_v35  ;;  %v3160_v1 = vmul.f32 1.442695, %v3135_v20  ;;  %v2486_v11 = vmul.f32 1.442695, %v2462_v16  ;;  %v3110_v63 = vld [vmem:[#allocation2 + $0x300] sm:$0xff] }
 0x2d0   :  { %10619 = vst [vmem:[#allocation5_spill] sm:$0xff] %v7984_v4  ;;  %6083 = vpow2.f32 %v2656_v27  ;;  %v3279_v14 = vld [vmem:[#allocation2 + $0x3c8] sm:$0xff]  ;;  %v2966_v19 = vsub.f32 %v2942_v55, %v7960_v8  ;;  %v7992_v13 = vmax.f32 %v7790_v26, %v5824_v7  ;;  %v2280_v45 = vpop.f32.mrb[87].mxu1  ;;  %v3134_v10 = vsub.f32 %v3110_v63, %v7960_v8  ;;  %v2441_v3 = vld [vmem:[#allocation2 + $0x18] sm:$0xff] }
 0x2d1   :  { %10621 = vst [vmem:[#allocation6_spill] sm:$0xff] %v7988_v54  ;;  %6085 = vpow2.f32 %v2824_v34  ;;  %v3303_v22 = vsub.f32 %v3279_v14, %v2415_v36  ;;  %2392 = vst.msk [vmem:[#allocation2 + $0x3d0] sm:$0xff] %vm189_vm0, %v2280_v45  ;;  %v7997_v20 = vmax.f32 %v7795_v38, %v2280_v45  ;;  %v5827_v35 = vpop.f32.mrb[88].mxu1  ;;  %v2654_v16 = vmul.f32 1.442695, %v2630_v6  ;;  %v2609_v26 = vld [vmem:[#allocation2 + $0xd8] sm:$0xff] }
 0x2d2   :  { %6087 = vpow2.f32 %v2992_v60  ;;  %v2822_v27 = vmul.f32 1.442695, %v2798_v46  ;;  %2395 = vst.msk [vmem:[#allocation2 + $0x3e8] sm:$0xff] %vm189_vm0, %v5827_v35  ;;  %v2290_v7 = vpop.f32.mrb[89].mxu1  ;;  %v2465_v34 = vsub.f32 %v2441_v3, %v7992_v13  ;;  %v2633_v14 = vsub.f32 %v2609_v26, %v7992_v13  ;;  %v2777_v63 = vld [vmem:[#allocation2 + $0x198] sm:$0xff]  ;;  %v10622_v6 = vld [vmem:[#allocation7_spill] sm:$0xff] }
 0x2d3   :  { %v3278_v21 = vld [vmem:[#allocation2 + $0x3c0] sm:$0xff]  ;;  %6089 = vpow2.f32 %v3160_v1  ;;  %v3328_v36 = vmul.f32 1.442695, %v3303_v22  ;;  %v2945_v53 = vld [vmem:[#allocation2 + $0x258] sm:$0xff]  ;;  %2394 = vst.msk [vmem:[#allocation2 + $0x3e0] sm:$0xff] %vm189_vm0, %v2290_v7  ;;  %v2801_v60 = vsub.f32 %v2777_v63, %v7992_v13  ;;  %v8008_v46 = vadd.f32 %v10622_v6, %v7894_v0  ;;  %v10624_v26 = vld [vmem:[#allocation8_spill] sm:$0xff] }
 0x2d4   :  { %v3302_v55 = vsub.f32 %v3278_v21, %v7960_v8  ;;  %6091 = vpow2.f32 %v2486_v11  ;;  %v2990_v38 = vmul.f32 1.442695, %v2966_v19  ;;  %v2969_v21 = vsub.f32 %v2945_v53, %v7992_v13  ;;  %v3113_v8 = vld [vmem:[#allocation2 + $0x318] sm:$0xff]  ;;  %v5830_v3 = vpop.f32.mrb[90].mxu1  ;;  %v10626_v11 = vld [vmem:[#allocation9_spill] sm:$0xff] }
 0x2d5   :  { %10623 = vst [vmem:[#allocation7_spill] sm:$0xff] %v8008_v46  ;;  %6093 = vpow2.f32 %v3328_v36  ;;  %v3158_v1 = vmul.f32 1.442695, %v3134_v10  ;;  %v3137_v45 = vsub.f32 %v3113_v8, %v7992_v13  ;;  %v3281_v22 = vld [vmem:[#allocation2 + $0x3d8] sm:$0xff]  ;;  %v8013_v50 = vadd.f32 %v10624_v26, %v7894_v0  ;;  %2397 = vst.msk [vmem:[#allocation2 + $0x3f8] sm:$0xff] %vm189_vm0, %v5830_v3  ;;  %v2300_v63 = vpop.f32.mrb[91].mxu1 }
 0x2d6   :  { %v8017_v19 = vadd.f32 %v10626_v11, %v7894_v0  ;;  %6095 = vpow2.f32 %v2654_v16  ;;  %v3326_v53 = vmul.f32 1.442695, %v3302_v55  ;;  %v10628_v36 = vld [vmem:[#allocation10_spill] sm:$0xff]  ;;  %v2492_v8 = vmul.f32 1.442695, %v2465_v34  ;;  %2396 = vst.msk [vmem:[#allocation2 + $0x3f0] sm:$0xff] %vm189_vm0, %v2300_v63 }
 0x2d7   :  { %10625 = vst [vmem:[#allocation8_spill] sm:$0xff] %v8013_v50  ;;  %v8022_v10 = vadd.f32 %v10628_v36, %v7894_v0  ;;  %6097 = vpow2.f32 %v2822_v27  ;;  %v2660_v6 = vmul.f32 1.442695, %v2633_v14  ;;  %v2828_v26 = vmul.f32 1.442695, %v2801_v60  ;;  %v2608_v16 = vld [vmem:[#allocation2 + $0xd0] sm:$0xff] }
 0x2d8   :  { %10627 = vst [vmem:[#allocation9_spill] sm:$0xff] %v8017_v19  ;;  %6099 = vpow2.f32 %v2990_v38  ;;  %v2996_v47 = vmul.f32 1.442695, %v2969_v21  ;;  %v3305_v11 = vsub.f32 %v3281_v22, %v7992_v13  ;;  %v3164_v19 = vmul.f32 1.442695, %v3137_v45  ;;  %v2776_v27 = vld [vmem:[#allocation2 + $0x190] sm:$0xff] }
 0x2d9   :  { %10629 = vst [vmem:[#allocation10_spill] sm:$0xff] %v8022_v10  ;;  %v8026_v55 = vpop.eup %6081  ;;  %6101 = vpow2.f32 %v3158_v1  ;;  %v2464_v54 = vsub.f32 %v2440_v61, %v7997_v20  ;;  %v2632_v36 = vsub.f32 %v2608_v16, %v7997_v20  ;;  %v3280_v34 = vld [vmem:[#allocation2 + $0x3d0] sm:$0xff]  ;;  %v2800_v38 = vsub.f32 %v2776_v27, %v7997_v20  ;;  %v8039_v1 = vpop.f32.mrb[92].mxu1  ;;  %v2443_v27 = vld [vmem:[#allocation2 + $0x28] sm:$0xff]  ;;  %v3114_v50 = vld [vmem:[#allocation2 + $0x320] sm:$0xff] }
 0x2da   :  { %v8030_v14 = vpop.eup %6083  ;;  %6103 = vpow2.f32 %v3326_v53  ;;  %v2944_v60 = vld [vmem:[#allocation2 + $0x250] sm:$0xff]  ;;  %v8034_v13 = vmax.f32 %v7803_v5, %v5827_v35  ;;  %v8037_v21 = vmax.f32 %v7807_v24, %v2290_v7  ;;  %v8045_v16 = vmax.f32 %v7815_v23, %v5830_v3  ;;  %2399 = vst.msk [vmem:[#allocation2 + $0x408] sm:$0xff] %vm189_vm0, %v8039_v1  ;;  %v8052_v5 = vpop.f32.mrb[93].mxu1  ;;  %v2779_v23 = vld [vmem:[#allocation2 + $0x1a8] sm:$0xff]  ;;  %v2949_v56 = vld [vmem:[#allocation2 + $0x278] sm:$0xff] }
 0x2db   :  { %10630 = vst [vmem:[#allocation27_spill] sm:$0xff] %v8030_v14  ;;  %v8041_v45 = vpop.eup %6085  ;;  %6105 = vpow2.f32 %v2492_v8  ;;  %v2968_v61 = vsub.f32 %v2944_v60, %v7997_v20  ;;  %v3112_v22 = vld [vmem:[#allocation2 + $0x310] sm:$0xff]  ;;  %v8048_v53 = vmax.f32 %v7819_v25, %v2300_v63  ;;  %v3332_v35 = vmul.f32 1.442695, %v3305_v11  ;;  %v2611_v60 = vld [vmem:[#allocation2 + $0xe8] sm:$0xff]  ;;  %2398 = vst.msk [vmem:[#allocation2 + $0x400] sm:$0xff] %vm189_vm0, %v8052_v5 }
 0x2dc   :  { %10631 = vst [vmem:[#allocation28_spill] sm:$0xff] %v8041_v45  ;;  %v8054_v24 = vpop.eup %6087  ;;  %6107 = vpow2.f32 %v2660_v6  ;;  %v3136_v7 = vsub.f32 %v3112_v22, %v7997_v20  ;;  %v3304_v8 = vsub.f32 %v3280_v34, %v7997_v20  ;;  %v8060_v25 = vpop.f32.mrb[94].mxu1  ;;  %v2490_v63 = vmul.f32 1.442695, %v2464_v54  ;;  %v3283_v11 = vld [vmem:[#allocation2 + $0x3e8] sm:$0xff] }
 0x2dd   :  { %10632 = vst [vmem:[#allocation29_spill] sm:$0xff] %v8054_v24  ;;  %v8062_v3 = vpop.eup %6089  ;;  %6109 = vpow2.f32 %v2828_v26  ;;  %v2658_v10 = vmul.f32 1.442695, %v2632_v36  ;;  %v2467_v6 = vsub.f32 %v2443_v27, %v8034_v13  ;;  %2401 = vst.msk [vmem:[#allocation2 + $0x418] sm:$0xff] %vm189_vm0, %v8060_v25  ;;  %v8067_v20 = vpop.f32.mrb[95].mxu1  ;;  %v2635_v4 = vsub.f32 %v2611_v60, %v8034_v13  ;;  %v3115_v26 = vld [vmem:[#allocation2 + $0x328] sm:$0xff] }
 0x2de   :  { %10633 = vst [vmem:[#allocation30_spill] sm:$0xff] %v8062_v3  ;;  %v8069_v34 = vpop.eup %6091  ;;  %6111 = vpow2.f32 %v2996_v47  ;;  %v2826_v22 = vmul.f32 1.442695, %v2800_v38  ;;  %v2803_v59 = vsub.f32 %v2779_v23, %v8034_v13  ;;  %2400 = vst.msk [vmem:[#allocation2 + $0x410] sm:$0xff] %vm189_vm0, %v8067_v20  ;;  %v2994_v36 = vmul.f32 1.442695, %v2968_v61 }
 0x2df   :  { %v8075_v54 = vpop.eup %6093  ;;  %6113 = vpow2.f32 %v3164_v19  ;;  %v2971_v27 = vsub.f32 %v2947_v33, %v8034_v13  ;;  %v3139_v40 = vsub.f32 %v3115_v26, %v8034_v13  ;;  %v3162_v38 = vmul.f32 1.442695, %v3136_v7  ;;  %v2778_v26 = vld [vmem:[#allocation2 + $0x1a0] sm:$0xff] }
 0x2e0   :  { %10634 = vst [vmem:[#allocation31_spill] sm:$0xff] %v8075_v54  ;;  %v8079_v47 = vpop.eup %6095  ;;  %6115 = vpow2.f32 %v3332_v35  ;;  %v3330_v60 = vmul.f32 1.442695, %v3304_v8  ;;  %v3307_v23 = vsub.f32 %v3283_v11, %v8034_v13  ;;  %v8082_v30 = vpop.f32.mrb[96].mxu1  ;;  %v2496_v19 = vmul.f32 1.442695, %v2467_v6 }
 0x2e1   :  { %v8084_v37 = vpop.eup %6097  ;;  %6117 = vpow2.f32 %v2490_v63  ;;  %v2466_v61 = vsub.f32 %v2442_v44, %v8037_v21  ;;  %v2634_v33 = vsub.f32 %v2610_v28, %v8037_v21  ;;  %v3282_v54 = vld [vmem:[#allocation2 + $0x3e0] sm:$0xff]  ;;  %2403 = vst.msk [vmem:[#allocation2 + $0x428] sm:$0xff] %vm189_vm0, %v8082_v30  ;;  %v8090_v35 = vpop.f32.mrb[97].mxu1  ;;  %v2664_v13 = vmul.f32 1.442695, %v2635_v4 }
 0x2e2   :  { %10635 = vst [vmem:[#allocation32_spill] sm:$0xff] %v8084_v37  ;;  %v8092_v7 = vpop.eup %6099  ;;  %6119 = vpow2.f32 %v2658_v10  ;;  %v2832_v8 = vmul.f32 1.442695, %v2803_v59  ;;  %v2802_v11 = vsub.f32 %v2778_v26, %v8037_v21  ;;  %v2946_v63 = vld [vmem:[#allocation2 + $0x260] sm:$0xff]  ;;  %2402 = vst.msk [vmem:[#allocation2 + $0x420] sm:$0xff] %vm189_vm0, %v8090_v35  ;;  %v3138_v59 = vsub.f32 %v3114_v50, %v8037_v21  ;;  %v2445_v26 = vld [vmem:[#allocation2 + $0x38] sm:$0xff] }
 0x2e3   :  { %10636 = vst [vmem:[#allocation33_spill] sm:$0xff] %v8092_v7  ;;  %v8097_v44 = vpop.eup %6101  ;;  %6121 = vpow2.f32 %v2826_v22  ;;  %v3000_v28 = vmul.f32 1.442695, %v2971_v27  ;;  %v3168_v6 = vmul.f32 1.442695, %v3139_v40  ;;  %v2970_v3 = vsub.f32 %v2946_v63, %v8037_v21  ;;  %v10640_v22 = vld [vmem:[#allocation11_spill] sm:$0xff] }
 0x2e4   :  { %10637 = vst [vmem:[#allocation34_spill] sm:$0xff] %v8097_v44  ;;  %v8100_v24 = vpop.eup %6103  ;;  %6123 = vpow2.f32 %v2994_v36  ;;  %v3336_v10 = vmul.f32 1.442695, %v3307_v23  ;;  %v3306_v4 = vsub.f32 %v3282_v54, %v8037_v21  ;;  %v8104_v46 = vpop.f32.mrb[98].mxu1  ;;  %v8110_v27 = vadd.f32 %v10640_v22, %v7894_v0  ;;  %v2613_v44 = vld [vmem:[#allocation2 + $0xf8] sm:$0xff] }
 0x2e5   :  { %10638 = vst [vmem:[#allocation35_spill] sm:$0xff] %v8100_v24  ;;  %v8106_v7 = vpop.eup %6105  ;;  %6125 = vpow2.f32 %v3162_v38  ;;  %v2494_v40 = vmul.f32 1.442695, %v2466_v61  ;;  %v2662_v63 = vmul.f32 1.442695, %v2634_v33  ;;  %2405 = vst.msk [vmem:[#allocation2 + $0x438] sm:$0xff] %vm189_vm0, %v8104_v46  ;;  %v2469_v54 = vsub.f32 %v2445_v26, %v8045_v16 }
 0x2e6   :  { %10639 = vst [vmem:[#allocation36_spill] sm:$0xff] %v8106_v7  ;;  %10641 = vst [vmem:[#allocation11_spill] sm:$0xff] %v8110_v27  ;;  %v8114_v36 = vpop.f32.mrb[99].mxu1  ;;  %v8116_v50 = vpop.eup %6107  ;;  %6127 = vpow2.f32 %v3330_v60  ;;  %v8118_v21 = vmul.f32 1.442695, %v2802_v11  ;;  %v2637_v23 = vsub.f32 %v2613_v44, %v8045_v16  ;;  %v2781_v22 = vld [vmem:[#allocation2 + $0x1b8] sm:$0xff] }
 0x2e7   :  { %10642 = vst [vmem:[#allocation37_spill] sm:$0xff] %v8116_v50  ;;  %2404 = vst.msk [vmem:[#allocation2 + $0x430] sm:$0xff] %vm189_vm0, %v8114_v36  ;;  %v8124_v38 = vpop.eup %6109  ;;  %v2705_v61 = vadd.f32 %v8116_v50, %v8106_v7  ;;  %6129 = vpow2.f32 %v2496_v19  ;;  %v2998_v33 = vmul.f32 1.442695, %v2970_v3  ;;  %v2805_v24 = vsub.f32 %v2781_v22, %v8045_v16  ;;  %v3117_v60 = vld [vmem:[#allocation2 + $0x338] sm:$0xff]  ;;  %v10645_v26 = vld [vmem:[#allocation12_spill] sm:$0xff] }
 0x2e8   :  { %10643 = vst [vmem:[#allocation38_spill] sm:$0xff] %v8124_v38  ;;  %v3285_v11 = vld [vmem:[#allocation2 + $0x3f8] sm:$0xff]  ;;  %v8129_v27 = vpop.eup %6111  ;;  %v8133_v44 = vadd.f32 %v10645_v26, %v7894_v0  ;;  %6131 = vpow2.f32 %v2664_v13  ;;  %v3166_v45 = vmul.f32 1.442695, %v3138_v59  ;;  %v8135_v43 = vmul.f32 1.442695, %v3306_v4 }
 0x2e9   :  { %10644 = vst [vmem:[#allocation39_spill] sm:$0xff] %v8129_v27  ;;  %v8137_v37 = vpop.f32.mrb[100].mxu1  ;;  %v8139_v50 = vpop.eup %6113  ;;  %v2873_v3 = vadd.f32 %v8124_v38, %v2705_v61  ;;  %6133 = vpow2.f32 %v2832_v8  ;;  %v2973_v19 = vsub.f32 %v2949_v56, %v8045_v16  ;;  %v3141_v22 = vsub.f32 %v3117_v60, %v8045_v16  ;;  %v2444_v7 = vld [vmem:[#allocation2 + $0x30] sm:$0xff] }
 0x2ea   :  { %10646 = vst [vmem:[#allocation12_spill] sm:$0xff] %v8133_v44  ;;  %10647 = vst [vmem:[#allocation40_spill] sm:$0xff] %v8139_v50  ;;  %v8146_v0 = vpop.f32.mrb[101].mxu1  ;;  %v8148_v13 = vpop.eup %6115  ;;  %6135 = vpow2.f32 %v3000_v28  ;;  %v2500_v59 = vmul.f32 1.442695, %v2469_v54  ;;  %v3309_v26 = vsub.f32 %v3285_v11, %v8045_v16  ;;  %v2612_v61 = vld [vmem:[#allocation2 + $0xf0] sm:$0xff]  ;;  %v2468_v38 = vsub.f32 %v2444_v7, %v8048_v53 }
 0x2eb   :  { %2407 = vst.msk [vmem:[#allocation2 + $0x448] sm:$0xff] %vm189_vm0, %v8137_v37  ;;  %10648 = vst [vmem:[#allocation41_spill] sm:$0xff] %v8148_v13  ;;  %v8150_v4 = vmul.f32 1.442695, %v2637_v23  ;;  %v2780_v8 = vld [vmem:[#allocation2 + $0x1b0] sm:$0xff]  ;;  %v8155_v56 = vpop.eup %6117  ;;  %6137 = vpow2.f32 %v3168_v6  ;;  %v2636_v13 = vsub.f32 %v2612_v61, %v8048_v53  ;;  %v3041_v7 = vadd.f32 %v8129_v27, %v2873_v3 }
 0x2ec   :  { %2406 = vst.msk [vmem:[#allocation2 + $0x440] sm:$0xff] %vm189_vm0, %v8146_v0  ;;  %10649 = vst [vmem:[#allocation42_spill] sm:$0xff] %v8155_v56  ;;  %v8157_v60 = vmul.f32 1.442695, %v2805_v24  ;;  %v2948_v28 = vld [vmem:[#allocation2 + $0x270] sm:$0xff]  ;;  %v8161_v44 = vpop.eup %6119  ;;  %6139 = vpow2.f32 %v3336_v10  ;;  %v2804_v16 = vsub.f32 %v2780_v8, %v8048_v53  ;;  %v8166_v18 = vpop.f32.mrb[102].mxu1  ;;  %v8175_v61 = vmax.f32 %v7827_v52, %v8039_v1 }
 0x2ed   :  { %v3116_v54 = vld [vmem:[#allocation2 + $0x330] sm:$0xff]  ;;  %10650 = vst [vmem:[#allocation43_spill] sm:$0xff] %v8161_v44  ;;  %v2972_v11 = vsub.f32 %v2948_v28, %v8048_v53  ;;  %v8168_v24 = vpop.eup %6121  ;;  %v2704_v6 = vadd.f32 %v8161_v44, %v8155_v56  ;;  %6141 = vpow2.f32 %v2494_v40  ;;  %2409 = vst.msk [vmem:[#allocation2 + $0x458] sm:$0xff] %vm189_vm0, %v8166_v18  ;;  %v8179_v10 = vpop.f32.mrb[103].mxu1  ;;  %v8186_v3 = vmax.f32 %v7831_v51, %v8052_v5 }
 0x2ee   :  { %v3284_v23 = vld [vmem:[#allocation2 + $0x3f0] sm:$0xff]  ;;  %v3140_v12 = vsub.f32 %v3116_v54, %v8048_v53  ;;  %10651 = vst [vmem:[#allocation44_spill] sm:$0xff] %v8168_v24  ;;  %v8181_v8 = vpop.eup %6123  ;;  %6143 = vpow2.f32 %v2662_v63  ;;  %v2447_v54 = vld [vmem:[#allocation2 + $0x48] sm:$0xff]  ;;  %v8190_v40 = vmax.f32 %v7839_v62, %v8060_v25  ;;  %2408 = vst.msk [vmem:[#allocation2 + $0x450] sm:$0xff] %vm189_vm0, %v8179_v10  ;;  %v3004_v1 = vmul.f32 1.442695, %v2973_v19 }
 0x2ef   :  { %10652 = vst [vmem:[#allocation45_spill] sm:$0xff] %v8181_v8  ;;  %v3308_v28 = vsub.f32 %v3284_v23, %v8048_v53  ;;  %v8194_v52 = vpop.eup %6125  ;;  %6145 = vpow2.f32 %v8118_v21  ;;  %v3172_v63 = vmul.f32 1.442695, %v3141_v22  ;;  %v3340_v27 = vmul.f32 1.442695, %v3309_v26  ;;  %v2783_v62 = vld [vmem:[#allocation2 + $0x1c8] sm:$0xff] }
 0x2f0   :  { %v8197_v53 = vpop.eup %6127  ;;  %v2872_v23 = vadd.f32 %v8168_v24, %v2704_v6  ;;  %6147 = vpow2.f32 %v2998_v33  ;;  %v2498_v51 = vmul.f32 1.442695, %v2468_v38  ;;  %v8200_v5 = vmul.f32 1.442695, %v2636_v13  ;;  %v8202_v25 = vpop.f32.mrb[104].mxu1  ;;  %v3287_v22 = vld [vmem:[#allocation2 + $0x408] sm:$0xff] }
 0x2f1   :  { %10653 = vst [vmem:[#allocation46_spill] sm:$0xff] %v8197_v53  ;;  %v8204_v44 = vpop.eup %6129  ;;  %6149 = vpow2.f32 %v3166_v45  ;;  %v8206_v56 = vmul.f32 1.442695, %v2804_v16  ;;  %v8208_v21 = vmul.f32 1.442695, %v2972_v11  ;;  %v2471_v19 = vsub.f32 %v2447_v54, %v8175_v61  ;;  %2411 = vst.msk [vmem:[#allocation2 + $0x468] sm:$0xff] %vm189_vm0, %v8202_v25 }
 0x2f2   :  { %10654 = vst [vmem:[#allocation47_spill] sm:$0xff] %v8204_v44  ;;  %v8213_v33 = vpop.f32.mrb[105].mxu1  ;;  %v8215_v38 = vpop.eup %6131  ;;  %v8218_v13 = vadd.f32 %v8139_v50, %v3041_v7  ;;  %6151 = vpow2.f32 %v8135_v43  ;;  %v8221_v45 = vmul.f32 1.442695, %v3140_v12  ;;  %v8223_v26 = vmul.f32 1.442695, %v3308_v28 }
 0x2f3   :  { %10655 = vst [vmem:[#allocation48_spill] sm:$0xff] %v8215_v38  ;;  %v2615_v16 = vld [vmem:[#allocation2 + $0x108] sm:$0xff]  ;;  %2410 = vst.msk [vmem:[#allocation2 + $0x460] sm:$0xff] %vm189_vm0, %v8213_v33  ;;  %v8227_v6 = vpop.eup %6133  ;;  %6153 = vpow2.f32 %v2500_v59  ;;  %v2807_v53 = vsub.f32 %v2783_v62, %v8175_v61  ;;  %v3040_v12 = vadd.f32 %v8181_v8, %v2872_v23  ;;  %v3311_v50 = vsub.f32 %v3287_v22, %v8175_v61  ;;  %v2446_v38 = vld [vmem:[#allocation2 + $0x40] sm:$0xff] }
 0x2f4   :  { %10656 = vst [vmem:[#allocation49_spill] sm:$0xff] %v8218_v13  ;;  %v2951_v11 = vld [vmem:[#allocation2 + $0x288] sm:$0xff]  ;;  %10657 = vst [vmem:[#allocation50_spill] sm:$0xff] %v8227_v6  ;;  %v2639_v54 = vsub.f32 %v2615_v16, %v8175_v61  ;;  %v8232_v43 = vpop.eup %6135  ;;  %6155 = vpow2.f32 %v8150_v4  ;;  %v2614_v6 = vld [vmem:[#allocation2 + $0x100] sm:$0xff]  ;;  %v8238_v59 = vpop.f32.mrb[106].mxu1 }
 0x2f5   :  { %v2975_v7 = vsub.f32 %v2951_v11, %v8175_v61  ;;  %v3119_v13 = vld [vmem:[#allocation2 + $0x348] sm:$0xff]  ;;  %10658 = vst [vmem:[#allocation51_spill] sm:$0xff] %v8232_v43  ;;  %v8240_v16 = vpop.eup %6137  ;;  %6157 = vpow2.f32 %v8157_v60  ;;  %v8243_v62 = vmul.f32 1.442695, %v2471_v19  ;;  %v2470_v11 = vsub.f32 %v2446_v38, %v8186_v3  ;;  %v2782_v43 = vld [vmem:[#allocation2 + $0x1c0] sm:$0xff]  ;;  %2413 = vst.msk [vmem:[#allocation2 + $0x478] sm:$0xff] %vm189_vm0, %v8238_v59 }
 0x2f6   :  { %v3143_v28 = vsub.f32 %v3119_v13, %v8175_v61  ;;  %10659 = vst [vmem:[#allocation52_spill] sm:$0xff] %v8240_v16  ;;  %v2638_v23 = vsub.f32 %v2614_v6, %v8186_v3  ;;  %v2950_v4 = vld [vmem:[#allocation2 + $0x280] sm:$0xff]  ;;  %v8249_v61 = vpop.f32.mrb[107].mxu1  ;;  %v8251_v22 = vpop.eup %6139  ;;  %6159 = vpow2.f32 %v3004_v1  ;;  %v2806_v13 = vsub.f32 %v2782_v43, %v8186_v3 }
 0x2f7   :  { %v3118_v44 = vld [vmem:[#allocation2 + $0x340] sm:$0xff]  ;;  %10660 = vst [vmem:[#allocation53_spill] sm:$0xff] %v8251_v22  ;;  %v2974_v60 = vsub.f32 %v2950_v4, %v8186_v3  ;;  %2412 = vst.msk [vmem:[#allocation2 + $0x470] sm:$0xff] %vm189_vm0, %v8249_v61  ;;  %v8258_v6 = vpop.eup %6141  ;;  %6161 = vpow2.f32 %v3172_v63  ;;  %v2672_v16 = vmul.f32 1.442695, %v2639_v54  ;;  %v8265_v1 = vadd.f32 %v8194_v52, %v3040_v12  ;;  %v2449_v54 = vld [vmem:[#allocation2 + $0x58] sm:$0xff] }
 0x2f8   :  { %v3142_v19 = vsub.f32 %v3118_v44, %v8186_v3  ;;  %v3286_v38 = vld [vmem:[#allocation2 + $0x400] sm:$0xff]  ;;  %v2840_v8 = vmul.f32 1.442695, %v2807_v53  ;;  %v8260_v24 = vmul.f32 1.442695, %v2975_v7  ;;  %v8262_v14 = vpop.eup %6143  ;;  %6163 = vpow2.f32 %v3340_v27  ;;  %v2617_v7 = vld [vmem:[#allocation2 + $0x118] sm:$0xff] }
 0x2f9   :  { %10661 = vst [vmem:[#allocation54_spill] sm:$0xff] %v8262_v14  ;;  %10662 = vst [vmem:[#allocation55_spill] sm:$0xff] %v8265_v1  ;;  %v8267_v43 = vmul.f32 1.442695, %v3143_v28  ;;  %v8269_v44 = vmul.f32 1.442695, %v3311_v50  ;;  %v8271_v4 = vpop.eup %6145  ;;  %6165 = vpow2.f32 %v2498_v51  ;;  %v3310_v53 = vsub.f32 %v3286_v38, %v8186_v3 }
 0x2fa   :  { %v8273_v22 = vmul.f32 1.442695, %v2470_v11  ;;  %v8275_v63 = vmul.f32 1.442695, %v2638_v23  ;;  %v8278_v14 = vpop.eup %6147  ;;  %6167 = vpow2.f32 %v8200_v5  ;;  %v8281_v27 = vmul.f32 1.442695, %v2806_v13 }
 0x2fb   :  { %10663 = vst [vmem:[#allocation56_spill] sm:$0xff] %v8278_v14  ;;  %v8283_v12 = vmul.f32 1.442695, %v2974_v60  ;;  %v8285_v50 = vmul.f32 1.442695, %v3142_v19  ;;  %v8287_v28 = vpop.eup %6149  ;;  %6169 = vpow2.f32 %v8206_v56  ;;  %v2473_v51 = vsub.f32 %v2449_v54, %v8190_v40  ;;  %v3289_v11 = vld [vmem:[#allocation2 + $0x418] sm:$0xff] }
 0x2fc   :  { %10664 = vst [vmem:[#allocation57_spill] sm:$0xff] %v8287_v28  ;;  %v2641_v3 = vsub.f32 %v2617_v7, %v8190_v40  ;;  %v2424_v23 = vmax.f32 %v7843_v32, %v8067_v20  ;;  %v8294_v38 = vpop.eup %6151  ;;  %6171 = vpow2.f32 %v8208_v21  ;;  %v2785_v5 = vld [vmem:[#allocation2 + $0x1d8] sm:$0xff]  ;;  %v8299_v60 = vmax.f32 %v7851_v17, %v8082_v30  ;;  %v2448_v30 = vld [vmem:[#allocation2 + $0x50] sm:$0xff] }
 0x2fd   :  { %10665 = vst [vmem:[#allocation58_spill] sm:$0xff] %v8294_v38  ;;  %v2953_v13 = vld [vmem:[#allocation2 + $0x298] sm:$0xff]  ;;  %v8303_v56 = vmax.f32 %v7855_v15, %v8090_v35  ;;  %v8307_v19 = vmax.f32 %v7861_v9, %v8104_v46  ;;  %v8309_v54 = vpop.eup %6153  ;;  %6173 = vpow2.f32 %v8221_v45  ;;  %v8312_v32 = vmul.f32 1.442695, %v3310_v53  ;;  %v2784_v7 = vld [vmem:[#allocation2 + $0x1d0] sm:$0xff] }
 0x2fe   :  { %10666 = vst [vmem:[#allocation59_spill] sm:$0xff] %v8309_v54  ;;  %v2809_v20 = vsub.f32 %v2785_v5, %v8190_v40  ;;  %v2977_v21 = vsub.f32 %v2953_v13, %v8190_v40  ;;  %v3121_v17 = vld [vmem:[#allocation2 + $0x358] sm:$0xff]  ;;  %v8316_v38 = vpop.eup %6155  ;;  %6175 = vpow2.f32 %v8223_v26  ;;  %v3313_v9 = vsub.f32 %v3289_v11, %v8190_v40  ;;  %v2616_v35 = vld [vmem:[#allocation2 + $0x110] sm:$0xff] }
 0x2ff   :  { %10667 = vst [vmem:[#allocation60_spill] sm:$0xff] %v8316_v38  ;;  %v3145_v15 = vsub.f32 %v3121_v17, %v8190_v40  ;;  %v2472_v46 = vsub.f32 %v2448_v30, %v2424_v23  ;;  %v2952_v45 = vld [vmem:[#allocation2 + $0x290] sm:$0xff]  ;;  %v8321_v54 = vpop.eup %6157  ;;  %6177 = vpow2.f32 %v8243_v62  ;;  %v2640_v5 = vsub.f32 %v2616_v35, %v2424_v23  ;;  %v2451_v35 = vld [vmem:[#allocation2 + $0x68] sm:$0xff] }
 0x300   :  { %v3288_v53 = vld [vmem:[#allocation2 + $0x410] sm:$0xff]  ;;  %10668 = vst [vmem:[#allocation61_spill] sm:$0xff] %v8321_v54  ;;  %v2808_v13 = vsub.f32 %v2784_v7, %v2424_v23  ;;  %v2976_v28 = vsub.f32 %v2952_v45, %v2424_v23  ;;  %v8324_v14 = vpop.eup %6159  ;;  %6179 = vpow2.f32 %v2672_v16  ;;  %v8326_v26 = vmul.f32 1.442695, %v2473_v51  ;;  %v2619_v7 = vld [vmem:[#allocation2 + $0x128] sm:$0xff] }
 0x301   :  { %v3120_v1 = vld [vmem:[#allocation2 + $0x350] sm:$0xff]  ;;  %10669 = vst [vmem:[#allocation62_spill] sm:$0xff] %v8324_v14  ;;  %v8328_v17 = vmul.f32 1.442695, %v2641_v3  ;;  %v8330_v11 = vpop.eup %6161  ;;  %6181 = vpow2.f32 %v2840_v8  ;;  %v8332_v30 = vmul.f32 1.442695, %v2809_v20  ;;  %v3312_v62 = vsub.f32 %v3288_v53, %v2424_v23 }
 0x302   :  { %v3144_v40 = vsub.f32 %v3120_v1, %v2424_v23  ;;  %10670 = vst [vmem:[#allocation63_spill] sm:$0xff] %v8330_v11  ;;  %v8334_v54 = vmul.f32 1.442695, %v2977_v21  ;;  %v3291_v45 = vld [vmem:[#allocation2 + $0x428] sm:$0xff]  ;;  %v8336_v38 = vpop.eup %6163  ;;  %6183 = vpow2.f32 %v8260_v24  ;;  %v8339_v16 = vmul.f32 1.442695, %v3145_v15 }
 0x303   :  { %10671 = vst [vmem:[#allocation64_spill] sm:$0xff] %v8336_v38  ;;  %v8341_v51 = vmul.f32 1.442695, %v3313_v9  ;;  %v8343_v1 = vmul.f32 1.442695, %v2472_v46  ;;  %v8345_v3 = vpop.eup %6165  ;;  %6185 = vpow2.f32 %v8267_v43  ;;  %v2475_v15 = vsub.f32 %v2451_v35, %v8299_v60  ;;  %v2787_v46 = vld [vmem:[#allocation2 + $0x1e8] sm:$0xff] }
 0x304   :  { %10672 = vst [vmem:[#allocation65_spill] sm:$0xff] %v8345_v3  ;;  %v8348_v8 = vmul.f32 1.442695, %v2640_v5  ;;  %v8350_v23 = vmul.f32 1.442695, %v2808_v13  ;;  %v8354_v21 = vpop.eup %6167  ;;  %6187 = vpow2.f32 %v8269_v44  ;;  %v2643_v9 = vsub.f32 %v2619_v7, %v8299_v60  ;;  %v2955_v53 = vld [vmem:[#allocation2 + $0x2a8] sm:$0xff] }
 0x305   :  { %v8352_v20 = vmul.f32 1.442695, %v2976_v28  ;;  %10673 = vst [vmem:[#allocation66_spill] sm:$0xff] %v8354_v21  ;;  %v8357_v24 = vmul.f32 1.442695, %v3144_v40  ;;  %v8361_v38 = vpop.eup %6169  ;;  %6189 = vpow2.f32 %v8273_v22  ;;  %v2811_v28 = vsub.f32 %v2787_v46, %v8299_v60  ;;  %v3123_v13 = vld [vmem:[#allocation2 + $0x368] sm:$0xff] }
 0x306   :  { %10674 = vst [vmem:[#allocation67_spill] sm:$0xff] %v8361_v38  ;;  %v8364_v43 = vmul.f32 1.442695, %v3312_v62  ;;  %v2979_v5 = vsub.f32 %v2955_v53, %v8299_v60  ;;  %v2450_v44 = vld [vmem:[#allocation2 + $0x60] sm:$0xff]  ;;  %v8368_v11 = vpop.eup %6171  ;;  %6191 = vpow2.f32 %v8275_v63  ;;  %v3147_v35 = vsub.f32 %v3123_v13, %v8299_v60 }
 0x307   :  { %v2786_v40 = vld [vmem:[#allocation2 + $0x1e0] sm:$0xff]  ;;  %10675 = vst [vmem:[#allocation68_spill] sm:$0xff] %v8368_v11  ;;  %v3315_v7 = vsub.f32 %v3291_v45, %v8299_v60  ;;  %v2474_v14 = vsub.f32 %v2450_v44, %v8303_v56  ;;  %v8374_v21 = vpop.eup %6173  ;;  %6193 = vpow2.f32 %v8281_v27  ;;  %v8383_v60 = vmul.f32 1.442695, %v2475_v15 }
 0x308   :  { %v2618_v22 = vld [vmem:[#allocation2 + $0x120] sm:$0xff]  ;;  %10676 = vst [vmem:[#allocation69_spill] sm:$0xff] %v8374_v21  ;;  %v2810_v53 = vsub.f32 %v2786_v40, %v8303_v56  ;;  %v8380_v3 = vpop.eup %6175  ;;  %6195 = vpow2.f32 %v8283_v12  ;;  %v8385_v45 = vmul.f32 1.442695, %v2643_v9  ;;  %v8391_v27 = vmul.f32 1.442695, %v2811_v28 }
 0x309   :  { %v2954_v62 = vld [vmem:[#allocation2 + $0x2a0] sm:$0xff]  ;;  %v2642_v46 = vsub.f32 %v2618_v22, %v8303_v56  ;;  %10677 = vst [vmem:[#allocation70_spill] sm:$0xff] %v8380_v3  ;;  %v8388_v44 = vpop.eup %6177  ;;  %6197 = vpow2.f32 %v8285_v50  ;;  %v8393_v40 = vmul.f32 1.442695, %v2979_v5  ;;  %v2621_v3 = vld [vmem:[#allocation2 + $0x138] sm:$0xff] }
 0x30a   :  { %v3290_v38 = vld [vmem:[#allocation2 + $0x420] sm:$0xff]  ;;  %v2978_v11 = vsub.f32 %v2954_v62, %v8303_v56  ;;  %10678 = vst [vmem:[#allocation71_spill] sm:$0xff] %v8388_v44  ;;  %v2453_v62 = vld [vmem:[#allocation2 + $0x78] sm:$0xff]  ;;  %v8396_v21 = vpop.eup %6179  ;;  %6199 = vpow2.f32 %v8312_v32  ;;  %v8399_v12 = vmul.f32 1.442695, %v3147_v35 }
 0x30b   :  { %v3122_v63 = vld [vmem:[#allocation2 + $0x360] sm:$0xff]  ;;  %v3314_v22 = vsub.f32 %v3290_v38, %v8303_v56  ;;  %10679 = vst [vmem:[#allocation72_spill] sm:$0xff] %v8396_v21  ;;  %v8401_v15 = vmul.f32 1.442695, %v3315_v7  ;;  %v8403_v9 = vmul.f32 1.442695, %v2474_v14  ;;  %6201 = vpow2.f32 %v8326_v26 }
 0x30c   :  { %v3146_v13 = vsub.f32 %v3122_v63, %v8303_v56  ;;  %v8405_v63 = vpop.eup %6181  ;;  %v8408_v50 = vmul.f32 1.442695, %v2642_v46  ;;  %v8410_v28 = vmul.f32 1.442695, %v2810_v53  ;;  %v8412_v38 = vmul.f32 1.442695, %v2978_v11 }
 0x30d   :  { %10680 = vst [vmem:[#allocation73_spill] sm:$0xff] %v8405_v63  ;;  %v8414_v56 = vpop.eup %6183  ;;  %6203 = vpow2.f32 %v8328_v17  ;;  %v2477_v5 = vsub.f32 %v2453_v62, %v8307_v19  ;;  %v2645_v14 = vsub.f32 %v2621_v3, %v8307_v19  ;;  %v8424_v26 = vmul.f32 1.442695, %v3314_v22  ;;  %v3293_v7 = vld [vmem:[#allocation2 + $0x438] sm:$0xff]  ;;  %v2455_v21 = vld [vmem:[#allocation2 + $0x88] sm:$0xff] }
 0x30e   :  { %10681 = vst [vmem:[#allocation74_spill] sm:$0xff] %v8414_v56  ;;  %v8417_v32 = vmul.f32 1.442695, %v3146_v13  ;;  %v8421_v35 = vpop.eup %6185  ;;  %6205 = vpow2.f32 %v8332_v30  ;;  %v2428_v11 = vmax.f32 %v7863_v29, %v8114_v36  ;;  %v8430_v46 = vmax.f32 %v7872_v49, %v8137_v37  ;;  %v2789_v53 = vld [vmem:[#allocation2 + $0x1f8] sm:$0xff]  ;;  %v3124_v56 = vld [vmem:[#allocation2 + $0x370] sm:$0xff] }
 0x30f   :  { %10682 = vst [vmem:[#allocation75_spill] sm:$0xff] %v8421_v35  ;;  %v8432_v17 = vpop.eup %6187  ;;  %6207 = vpow2.f32 %v8334_v54  ;;  %v2957_v3 = vld [vmem:[#allocation2 + $0x2b8] sm:$0xff]  ;;  %v8437_v30 = vmax.f32 %v7874_v39, %v8146_v0  ;;  %v8441_v22 = vmax.f32 %v7881_v2, %v8166_v18  ;;  %v8445_v29 = vmax.f32 %v7883_v42, %v8179_v10  ;;  %v2452_v39 = vld [vmem:[#allocation2 + $0x70] sm:$0xff] }
 0x310   :  { %10683 = vst [vmem:[#allocation76_spill] sm:$0xff] %v8432_v17  ;;  %v3125_v13 = vld [vmem:[#allocation2 + $0x378] sm:$0xff]  ;;  %v8447_v49 = vpop.eup %6189  ;;  %6209 = vpow2.f32 %v8339_v16  ;;  %v2813_v37 = vsub.f32 %v2789_v53, %v8307_v19  ;;  %v2981_v36 = vsub.f32 %v2957_v3, %v8307_v19  ;;  %v3292_v0 = vld [vmem:[#allocation2 + $0x430] sm:$0xff]  ;;  %v8456_v2 = vmul.f32 1.442695, %v2477_v5 }
 0x311   :  { %10684 = vst [vmem:[#allocation77_spill] sm:$0xff] %v8447_v49  ;;  %v3149_v54 = vsub.f32 %v3125_v13, %v8307_v19  ;;  %v8453_v62 = vpop.eup %6191  ;;  %6211 = vpow2.f32 %v8341_v51  ;;  %v8458_v42 = vmul.f32 1.442695, %v2645_v14  ;;  %v3317_v18 = vsub.f32 %v3293_v7, %v8307_v19  ;;  %v2620_v10 = vld [vmem:[#allocation2 + $0x130] sm:$0xff]  ;;  %v2623_v19 = vld [vmem:[#allocation2 + $0x148] sm:$0xff]  ;;  %v3301_v44 = vld [vmem:[#allocation2 + $0x478] sm:$0xff] }
 0x312   :  { %10685 = vst [vmem:[#allocation78_spill] sm:$0xff] %v8453_v62  ;;  %v2788_v16 = vld [vmem:[#allocation2 + $0x1f0] sm:$0xff]  ;;  %v8461_v17 = vpop.eup %6193  ;;  %6213 = vpow2.f32 %v8343_v1  ;;  %v2476_v53 = vsub.f32 %v2452_v39, %v2428_v11  ;;  %v2644_v3 = vsub.f32 %v2620_v10, %v2428_v11  ;;  %v3148_v5 = vsub.f32 %v3124_v56, %v2428_v11 }
 0x313   :  { %10686 = vst [vmem:[#allocation79_spill] sm:$0xff] %v8461_v17  ;;  %v2812_v13 = vsub.f32 %v2788_v16, %v2428_v11  ;;  %v2956_v35 = vld [vmem:[#allocation2 + $0x2b0] sm:$0xff]  ;;  %v8464_v63 = vpop.eup %6195  ;;  %6215 = vpow2.f32 %v8348_v8  ;;  %v3316_v14 = vsub.f32 %v3292_v0, %v2428_v11  ;;  %v8470_v17 = vmul.f32 1.442695, %v2813_v37  ;;  %v2959_v0 = vld [vmem:[#allocation2 + $0x2c8] sm:$0xff] }
 0x314   :  { %10687 = vst [vmem:[#allocation80_spill] sm:$0xff] %v8464_v63  ;;  %v2980_v51 = vsub.f32 %v2956_v35, %v2428_v11  ;;  %v8467_v7 = vpop.eup %6197  ;;  %6217 = vpow2.f32 %v8350_v23  ;;  %v8472_v1 = vmul.f32 1.442695, %v2981_v36  ;;  %v8474_v39 = vmul.f32 1.442695, %v3149_v54  ;;  %v2791_v11 = vld [vmem:[#allocation2 + $0x208] sm:$0xff] }
 0x315   :  { %10688 = vst [vmem:[#allocation81_spill] sm:$0xff] %v8467_v7  ;;  %v8476_v10 = vpop.eup %6199  ;;  %6219 = vpow2.f32 %v8352_v20  ;;  %v8479_v8 = vmul.f32 1.442695, %v3317_v18  ;;  %v2479_v56 = vsub.f32 %v2455_v21, %v8430_v46  ;;  %v2647_v35 = vsub.f32 %v2623_v19, %v8430_v46  ;;  %v3127_v16 = vld [vmem:[#allocation2 + $0x388] sm:$0xff] }
 0x316   :  { %10689 = vst [vmem:[#allocation82_spill] sm:$0xff] %v8476_v10  ;;  %v3295_v23 = vld [vmem:[#allocation2 + $0x448] sm:$0xff]  ;;  %v8483_v37 = vpop.eup %6201  ;;  %6221 = vpow2.f32 %v8357_v24  ;;  %v8486_v36 = vmul.f32 1.442695, %v2476_v53  ;;  %v8488_v54 = vmul.f32 1.442695, %v2644_v3  ;;  %v2815_v24 = vsub.f32 %v2791_v11, %v8430_v46 }
 0x317   :  { %10690 = vst [vmem:[#allocation83_spill] sm:$0xff] %v8483_v37  ;;  %v8490_v10 = vmul.f32 1.442695, %v2812_v13  ;;  %v8492_v20 = vpop.eup %6203  ;;  %6223 = vpow2.f32 %v8364_v43  ;;  %v8495_v21 = vmul.f32 1.442695, %v2980_v51  ;;  %v2983_v53 = vsub.f32 %v2959_v0, %v8430_v46  ;;  %v2454_v13 = vld [vmem:[#allocation2 + $0x80] sm:$0xff] }
 0x318   :  { %10691 = vst [vmem:[#allocation84_spill] sm:$0xff] %v8492_v20  ;;  %v8497_v18 = vmul.f32 1.442695, %v3148_v5  ;;  %v8499_v19 = vmul.f32 1.442695, %v3316_v14  ;;  %v8501_v7 = vpop.eup %6205  ;;  %6225 = vpow2.f32 %v8383_v60  ;;  %v3151_v3 = vsub.f32 %v3127_v16, %v8430_v46  ;;  %v3294_v20 = vld [vmem:[#allocation2 + $0x440] sm:$0xff] }
 0x319   :  { %10692 = vst [vmem:[#allocation85_spill] sm:$0xff] %v8501_v7  ;;  %v8507_v37 = vpop.eup %6207  ;;  %6227 = vpow2.f32 %v8385_v45  ;;  %v8510_v43 = vmul.f32 1.442695, %v2479_v56  ;;  %v8512_v51 = vmul.f32 1.442695, %v2647_v35  ;;  %v3319_v5 = vsub.f32 %v3295_v23, %v8430_v46  ;;  %v2622_v14 = vld [vmem:[#allocation2 + $0x140] sm:$0xff] }
 0x31a   :  { %10693 = vst [vmem:[#allocation86_spill] sm:$0xff] %v8507_v37  ;;  %v2790_v60 = vld [vmem:[#allocation2 + $0x200] sm:$0xff]  ;;  %v8515_v7 = vpop.eup %6209  ;;  %6229 = vpow2.f32 %v8391_v27  ;;  %v2478_v11 = vsub.f32 %v2454_v13, %v8437_v30  ;;  %v2646_v0 = vsub.f32 %v2622_v14, %v8437_v30  ;;  %v3318_v23 = vsub.f32 %v3294_v20, %v8437_v30  ;;  %v2625_v27 = vld [vmem:[#allocation2 + $0x158] sm:$0xff] }
 0x31b   :  { %10694 = vst [vmem:[#allocation87_spill] sm:$0xff] %v8515_v7  ;;  %v2814_v16 = vsub.f32 %v2790_v60, %v8437_v30  ;;  %v2958_v37 = vld [vmem:[#allocation2 + $0x2c0] sm:$0xff]  ;;  %v8521_v56 = vpop.eup %6211  ;;  %6231 = vpow2.f32 %v8393_v40  ;;  %v2457_v7 = vld [vmem:[#allocation2 + $0x98] sm:$0xff]  ;;  %v8530_v13 = vmul.f32 1.442695, %v2815_v24 }
 0x31c   :  { %v3126_v45 = vld [vmem:[#allocation2 + $0x380] sm:$0xff]  ;;  %10695 = vst [vmem:[#allocation88_spill] sm:$0xff] %v8521_v56  ;;  %v2982_v46 = vsub.f32 %v2958_v37, %v8437_v30  ;;  %v8527_v63 = vpop.eup %6213  ;;  %6233 = vpow2.f32 %v8399_v12  ;;  %v8532_v14 = vmul.f32 1.442695, %v2983_v53  ;;  %v8534_v60 = vmul.f32 1.442695, %v3151_v3 }
 0x31d   :  { %v3150_v35 = vsub.f32 %v3126_v45, %v8437_v30  ;;  %10696 = vst [vmem:[#allocation89_spill] sm:$0xff] %v8527_v63  ;;  %v8536_v56 = vpop.eup %6215  ;;  %6235 = vpow2.f32 %v8401_v15  ;;  %v8539_v40 = vmul.f32 1.442695, %v3319_v5  ;;  %v2481_v30 = vsub.f32 %v2457_v7, %v8441_v22  ;;  %v2793_v20 = vld [vmem:[#allocation2 + $0x218] sm:$0xff] }
 0x31e   :  { %10697 = vst [vmem:[#allocation90_spill] sm:$0xff] %v8536_v56  ;;  %v2649_v37 = vsub.f32 %v2625_v27, %v8441_v22  ;;  %v2961_v45 = vld [vmem:[#allocation2 + $0x2d8] sm:$0xff]  ;;  %v8543_v24 = vpop.eup %6217  ;;  %6237 = vpow2.f32 %v8403_v9  ;;  %v8546_v53 = vmul.f32 1.442695, %v2478_v11  ;;  %v8548_v3 = vmul.f32 1.442695, %v2646_v0 }
 0x31f   :  { %v3129_v63 = vld [vmem:[#allocation2 + $0x398] sm:$0xff]  ;;  %10698 = vst [vmem:[#allocation91_spill] sm:$0xff] %v8543_v24  ;;  %v8550_v56 = vmul.f32 1.442695, %v2814_v16  ;;  %v8552_v15 = vpop.eup %6219  ;;  %6239 = vpow2.f32 %v8408_v50  ;;  %v8555_v7 = vmul.f32 1.442695, %v2982_v46  ;;  %v2817_v9 = vsub.f32 %v2793_v20, %v8441_v22 }
 0x320   :  { %v3297_v12 = vld [vmem:[#allocation2 + $0x458] sm:$0xff]  ;;  %10699 = vst [vmem:[#allocation92_spill] sm:$0xff] %v8552_v15  ;;  %v8557_v5 = vmul.f32 1.442695, %v3150_v35  ;;  %v8559_v27 = vmul.f32 1.442695, %v3318_v23  ;;  %v8561_v62 = vpop.eup %6221  ;;  %6241 = vpow2.f32 %v8410_v28  ;;  %v2985_v11 = vsub.f32 %v2961_v45, %v8441_v22 }
 0x321   :  { %10700 = vst [vmem:[#allocation93_spill] sm:$0xff] %v8561_v62  ;;  %v3153_v0 = vsub.f32 %v3129_v63, %v8441_v22  ;;  %v2456_v16 = vld [vmem:[#allocation2 + $0x90] sm:$0xff]  ;;  %v8567_v24 = vpop.eup %6223  ;;  %6243 = vpow2.f32 %v8412_v38  ;;  %v8570_v50 = vmul.f32 1.442695, %v2481_v30  ;;  %v8572_v46 = vmul.f32 1.442695, %v2649_v37 }
 0x322   :  { %v3296_v15 = vld [vmem:[#allocation2 + $0x450] sm:$0xff]  ;;  %10701 = vst [vmem:[#allocation94_spill] sm:$0xff] %v8567_v24  ;;  %v3321_v35 = vsub.f32 %v3297_v12, %v8441_v22  ;;  %v8575_v62 = vpop.eup %6225  ;;  %6245 = vpow2.f32 %v8417_v32  ;;  %v2480_v63 = vsub.f32 %v2456_v16, %v8445_v29  ;;  %v8592_v32 = vmax.f32 %v7896_v41, %v8202_v25 }
 0x323   :  { %v2624_v23 = vld [vmem:[#allocation2 + $0x150] sm:$0xff]  ;;  %10702 = vst [vmem:[#allocation95_spill] sm:$0xff] %v8575_v62  ;;  %v8581_v30 = vpop.eup %6227  ;;  %6247 = vpow2.f32 %v8424_v26  ;;  %v3320_v12 = vsub.f32 %v3296_v15, %v8445_v29  ;;  %v8596_v16 = vmax.f32 %v7898_v57, %v8213_v33  ;;  %v8600_v26 = vmax.f32 %v7916_v31, %v8238_v59 }
 0x324   :  { %v2792_v28 = vld [vmem:[#allocation2 + $0x210] sm:$0xff]  ;;  %v2648_v20 = vsub.f32 %v2624_v23, %v8445_v29  ;;  %10703 = vst [vmem:[#allocation96_spill] sm:$0xff] %v8581_v30  ;;  %v8587_v62 = vpop.eup %6229  ;;  %6249 = vpow2.f32 %v8456_v2  ;;  %v8607_v15 = vmul.f32 1.442695, %v2985_v11  ;;  %v8609_v2 = vmul.f32 1.442695, %v3153_v0 }
 0x325   :  { %v2816_v45 = vsub.f32 %v2792_v28, %v8445_v29  ;;  %v2960_v24 = vld [vmem:[#allocation2 + $0x2d0] sm:$0xff]  ;;  %10704 = vst [vmem:[#allocation97_spill] sm:$0xff] %v8587_v62  ;;  %6251 = vpow2.f32 %v8458_v42  ;;  %v8614_v57 = vmul.f32 1.442695, %v3321_v35  ;;  %v8616_v25 = vmul.f32 1.442695, %v2480_v63 }
 0x326   :  { %v3128_v38 = vld [vmem:[#allocation2 + $0x390] sm:$0xff]  ;;  %v2984_v22 = vsub.f32 %v2960_v24, %v8445_v29  ;;  %v8602_v24 = vpop.eup %6231  ;;  %6253 = vpow2.f32 %v8470_v17  ;;  %v8618_v31 = vmul.f32 1.442695, %v2648_v20  ;;  %v8632_v17 = vmul.f32 1.442695, %v3320_v12  ;;  %v2459_v0 = vld [vmem:[#allocation2 + $0xa8] sm:$0xff] }
 0x327   :  { %v3152_v37 = vsub.f32 %v3128_v38, %v8445_v29  ;;  %10705 = vst [vmem:[#allocation98_spill] sm:$0xff] %v8602_v24  ;;  %v8605_v29 = vmul.f32 1.442695, %v2817_v9  ;;  %v8611_v41 = vpop.eup %6233  ;;  %6255 = vpow2.f32 %v8472_v1  ;;  %v8623_v59 = vmul.f32 1.442695, %v2816_v45  ;;  %v2627_v35 = vld [vmem:[#allocation2 + $0x168] sm:$0xff] }
 0x328   :  { %10706 = vst [vmem:[#allocation99_spill] sm:$0xff] %v8611_v41  ;;  %v8620_v33 = vpop.eup %6235  ;;  %v8625_v42 = vmul.f32 1.442695, %v2984_v22  ;;  %6257 = vpow2.f32 %v8474_v39  ;;  %v3299_v23 = vld [vmem:[#allocation2 + $0x468] sm:$0xff]  ;;  %v8636_v28 = vmul.f32 %v8069_v34, %v7906_v48  ;;  %v8640_v1 = vmul.f32 %v8026_v55, %v7910_v58  ;;  %v2458_v24 = vld [vmem:[#allocation2 + $0xa0] sm:$0xff] }
 0x329   :  { %10707 = vst [vmem:[#allocation100_spill] sm:$0xff] %v8620_v33  ;;  %v8627_v9 = vmul.f32 1.442695, %v3152_v37  ;;  %v8629_v11 = vpop.eup %6237  ;;  %6259 = vpow2.f32 %v8479_v8  ;;  %v2483_v20 = vsub.f32 %v2459_v0, %v8592_v32  ;;  %v2651_v39 = vsub.f32 %v2627_v35, %v8592_v32  ;;  %v2795_v45 = vld [vmem:[#allocation2 + $0x228] sm:$0xff]  ;;  %v2626_v0 = vld [vmem:[#allocation2 + $0x160] sm:$0xff] }
 0x32a   :  { %10708 = vst [vmem:[#allocation101_spill] sm:$0xff] %v8629_v11  ;;  %v8642_v63 = vpop.eup %6239  ;;  %v2963_v38 = vld [vmem:[#allocation2 + $0x2e8] sm:$0xff]  ;;  %v2702_v37 = vadd.f32 %v8079_v47, %v8069_v34  ;;  %6261 = vpow2.f32 %v8486_v36  ;;  %v2819_v33 = vsub.f32 %v2795_v45, %v8592_v32  ;;  %v3298_v62 = vld [vmem:[#allocation2 + $0x460] sm:$0xff]  ;;  %v3323_v30 = vsub.f32 %v3299_v23, %v8592_v32 }
 0x32b   :  { %10709 = vst [vmem:[#allocation102_spill] sm:$0xff] %v8642_v63  ;;  %v3131_v22 = vld [vmem:[#allocation2 + $0x3a8] sm:$0xff]  ;;  %v8649_v12 = vpop.eup %6241  ;;  %v2987_v41 = vsub.f32 %v2963_v38, %v8592_v32  ;;  %6263 = vpow2.f32 %v8488_v54  ;;  %v2482_v34 = vsub.f32 %v2458_v24, %v8596_v16  ;;  %v2794_v36 = vld [vmem:[#allocation2 + $0x220] sm:$0xff]  ;;  %v8672_v24 = vmul.f32 1.442695, %v2651_v39 }
 0x32c   :  { %10710 = vst [vmem:[#allocation103_spill] sm:$0xff] %v8649_v12  ;;  %v3155_v8 = vsub.f32 %v3131_v22, %v8592_v32  ;;  %v8655_v35 = vpop.eup %6243  ;;  %v2650_v12 = vsub.f32 %v2626_v0, %v8596_v16  ;;  %v2962_v63 = vld [vmem:[#allocation2 + $0x2e0] sm:$0xff]  ;;  %6265 = vpow2.f32 %v8490_v10  ;;  %v2818_v38 = vsub.f32 %v2794_v36, %v8596_v16 }
 0x32d   :  { %10711 = vst [vmem:[#allocation104_spill] sm:$0xff] %v8655_v35  ;;  %v3130_v45 = vld [vmem:[#allocation2 + $0x3a0] sm:$0xff]  ;;  %v8661_v11 = vpop.eup %6245  ;;  %v2986_v22 = vsub.f32 %v2962_v63, %v8596_v16  ;;  %6267 = vpow2.f32 %v8495_v21  ;;  %v8670_v32 = vmul.f32 1.442695, %v2483_v20  ;;  %v3322_v23 = vsub.f32 %v3298_v62, %v8596_v16 }
 0x32e   :  { %10712 = vst [vmem:[#allocation105_spill] sm:$0xff] %v8661_v11  ;;  %v3154_v35 = vsub.f32 %v3130_v45, %v8596_v16  ;;  %v8667_v54 = vpop.eup %6247  ;;  %6269 = vpow2.f32 %v8497_v18  ;;  %v8678_v10 = vmul.f32 1.442695, %v2819_v33  ;;  %v8680_v36 = vmul.f32 1.442695, %v2987_v41  ;;  %v2461_v45 = vld [vmem:[#allocation2 + $0xb8] sm:$0xff] }
 0x32f   :  { %10713 = vst [vmem:[#allocation106_spill] sm:$0xff] %v8667_v54  ;;  %v8675_v0 = vpop.eup %6249  ;;  %v8682_v63 = vmul.f32 1.442695, %v3155_v8  ;;  %v2629_v54 = vld [vmem:[#allocation2 + $0x178] sm:$0xff]  ;;  %6271 = vpow2.f32 %v8499_v19  ;;  %v8687_v21 = vmul.f32 1.442695, %v3323_v30  ;;  %v2485_v30 = vsub.f32 %v2461_v45, %v8600_v26 }
 0x330   :  { %10714 = vst [vmem:[#allocation107_spill] sm:$0xff] %v8675_v0  ;;  %v8684_v11 = vpop.eup %6251  ;;  %v8689_v20 = vmul.f32 1.442695, %v2482_v34  ;;  %v8691_v62 = vmul.f32 1.442695, %v2650_v12  ;;  %6273 = vpow2.f32 %v8510_v43  ;;  %v2653_v12 = vsub.f32 %v2629_v54, %v8600_v26  ;;  %v10721_v43 = vld [vmem:[#allocation27_spill] sm:$0xff] }
 0x331   :  { %10715 = vst [vmem:[#allocation108_spill] sm:$0xff] %v8684_v11  ;;  %v8693_v16 = vpop.eup %6253  ;;  %v8696_v18 = vmul.f32 1.442695, %v2818_v38  ;;  %v8698_v41 = vmul.f32 1.442695, %v2986_v22  ;;  %6275 = vpow2.f32 %v8512_v51  ;;  %v2703_v34 = vadd.f32 %v10721_v43, %v8026_v55  ;;  %v10722_v38 = vld [vmem:[#allocation19_spill] sm:$0xff] }
 0x332   :  { %10716 = vst [vmem:[#allocation109_spill] sm:$0xff] %v8693_v16  ;;  %v8700_v33 = vmul.f32 1.442695, %v3154_v35  ;;  %v8702_v39 = vpop.eup %6255  ;;  %v8705_v19 = vmul.f32 1.442695, %v3322_v23  ;;  %6277 = vpow2.f32 %v8530_v13  ;;  %v2726_v35 = vmul.f32 %v8079_v47, %v10722_v38  ;;  %v10723_v22 = vld [vmem:[#allocation21_spill] sm:$0xff] }
 0x333   :  { %10718 = vst [vmem:[#allocation111_spill] sm:$0xff] %v8702_v39  ;;  %v8709_v8 = vpop.eup %6257  ;;  %v2727_v39 = vmul.f32 %v10721_v43, %v10723_v22  ;;  %6279 = vpow2.f32 %v8532_v14  ;;  %v10725_v23 = vld [vmem:[#allocation32_spill] sm:$0xff]  ;;  %v10726_v54 = vld [vmem:[#allocation26_spill] sm:$0xff] }
 0x334   :  { %10717 = vst [vmem:[#allocation110_spill] sm:$0xff] %v8700_v33  ;;  %10719 = vst [vmem:[#allocation112_spill] sm:$0xff] %v8705_v19  ;;  %v8718_v51 = vpop.eup %6259  ;;  %v2870_v45 = vadd.f32 %v10725_v23, %v2702_v37  ;;  %v10727_v16 = vld [vmem:[#allocation4_spill] sm:$0xff]  ;;  %6281 = vpow2.f32 %v8534_v60  ;;  %v2797_v55 = vld [vmem:[#allocation2 + $0x238] sm:$0xff]  ;;  %v2750_v43 = vadd.f32 %v2726_v35, %v8636_v28 }
 0x335   :  { %10720 = vst [vmem:[#allocation113_spill] sm:$0xff] %v8709_v8  ;;  %10724 = vst [vmem:[#allocation27_spill] sm:$0xff] %v8718_v51  ;;  %v2894_v8 = vmul.f32 %v10725_v23, %v10726_v54  ;;  %v10728_v13 = vld [vmem:[#allocation28_spill] sm:$0xff]  ;;  %v8726_v0 = vpop.eup %6261  ;;  %v2965_v47 = vld [vmem:[#allocation2 + $0x2f8] sm:$0xff]  ;;  %v2751_v51 = vadd.f32 %v2727_v39, %v8640_v1  ;;  %6283 = vpow2.f32 %v8539_v40  ;;  %v2821_v23 = vsub.f32 %v2797_v55, %v8600_v26 }
 0x336   :  { %v2895_v11 = vmul.f32 %v10728_v13, %v10727_v16  ;;  %10729 = vst [vmem:[#allocation19_spill] sm:$0xff] %v8726_v0  ;;  %v2871_v14 = vadd.f32 %v10728_v13, %v2703_v34  ;;  %v8732_v37 = vpop.eup %6263  ;;  %v2989_v49 = vsub.f32 %v2965_v47, %v8600_v26  ;;  %v10731_v0 = vld [vmem:[#allocation33_spill] sm:$0xff]  ;;  %6285 = vpow2.f32 %v8546_v53  ;;  %v3133_v33 = vld [vmem:[#allocation2 + $0x3b8] sm:$0xff]  ;;  %v10733_v1 = vld [vmem:[#allocation7_spill] sm:$0xff] }
 0x337   :  { %10730 = vst [vmem:[#allocation21_spill] sm:$0xff] %v8732_v37  ;;  %v3038_v19 = vadd.f32 %v10731_v0, %v2870_v45  ;;  %v8738_v60 = vpop.eup %6265  ;;  %v2918_v28 = vadd.f32 %v2894_v8, %v2750_v43  ;;  %v3062_v39 = vmul.f32 %v10731_v0, %v10733_v1  ;;  %6287 = vpow2.f32 %v8548_v3  ;;  %v10735_v55 = vld [vmem:[#allocation29_spill] sm:$0xff]  ;;  %v10768_v37 = vld [vmem:[#allocation24_spill] sm:$0xff] }
 0x338   :  { %10732 = vst [vmem:[#allocation32_spill] sm:$0xff] %v8738_v60  ;;  %v2919_v35 = vadd.f32 %v2895_v11, %v2751_v51  ;;  %v8743_v34 = vpop.eup %6267  ;;  %v3157_v40 = vsub.f32 %v3133_v33, %v8600_v26  ;;  %v3325_v13 = vsub.f32 %v3301_v44, %v8600_v26  ;;  %v3039_v45 = vadd.f32 %v10735_v55, %v2871_v14  ;;  %v10737_v11 = vld [vmem:[#allocation8_spill] sm:$0xff]  ;;  %v10739_v44 = vld [vmem:[#allocation11_spill] sm:$0xff]  ;;  %v10740_v26 = vld [vmem:[#allocation34_spill] sm:$0xff] }
 0x339   :  { %10734 = vst [vmem:[#allocation26_spill] sm:$0xff] %v8743_v34  ;;  %v8749_v47 = vpop.eup %6269  ;;  %6289 = vpow2.f32 %v8550_v56  ;;  %v8752_v53 = vmul.f32 1.442695, %v2485_v30  ;;  %v3063_v8 = vmul.f32 %v10735_v55, %v10737_v11  ;;  %v3086_v0 = vadd.f32 %v3062_v39, %v2918_v28  ;;  %v10744_v55 = vld [vmem:[#allocation17_spill] sm:$0xff] }
 0x33a   :  { %10736 = vst [vmem:[#allocation4_spill] sm:$0xff] %v8749_v47  ;;  %v8756_v51 = vpop.eup %6271  ;;  %6291 = vpow2.f32 %v8555_v7  ;;  %v8759_v3 = vmul.f32 1.442695, %v2653_v12  ;;  %v8761_v33 = vmul.f32 1.442695, %v2821_v23  ;;  %v3230_v43 = vmul.f32 %v10740_v26, %v10739_v44  ;;  %v10743_v7 = vld [vmem:[#allocation30_spill] sm:$0xff] }
 0x33b   :  { %10738 = vst [vmem:[#allocation28_spill] sm:$0xff] %v8756_v51  ;;  %v8765_v14 = vpop.eup %6273  ;;  %6293 = vpow2.f32 %v8557_v5  ;;  %v8768_v56 = vmul.f32 1.442695, %v2989_v49  ;;  %v3087_v30 = vadd.f32 %v3063_v8, %v2919_v35  ;;  %v3206_v28 = vadd.f32 %v10740_v26, %v3038_v19  ;;  %v10748_v19 = vld [vmem:[#allocation12_spill] sm:$0xff]  ;;  %v10753_v26 = vld [vmem:[#allocation42_spill] sm:$0xff]  ;;  %v2796_v60 = vld [vmem:[#allocation2 + $0x230] sm:$0xff] }
 0x33c   :  { %10741 = vst [vmem:[#allocation33_spill] sm:$0xff] %v8765_v14  ;;  %v8771_v39 = vpop.eup %6275  ;;  %6295 = vpow2.f32 %v8559_v27  ;;  %v3207_v12 = vadd.f32 %v10743_v7, %v3039_v45  ;;  %v3254_v23 = vadd.f32 %v3230_v43, %v3086_v0  ;;  %v8777_v51 = vmax.f32 %v10744_v55, %v8249_v61  ;;  %v10750_v27 = vld [vmem:[#allocation16_spill] sm:$0xff]  ;;  %v10751_v45 = vld [vmem:[#allocation35_spill] sm:$0xff]  ;;  %v10752_v61 = vld [vmem:[#allocation14_spill] sm:$0xff] }
 0x33d   :  { %10742 = vst [vmem:[#allocation7_spill] sm:$0xff] %v8771_v39  ;;  %v8779_v47 = vpop.eup %6277  ;;  %6297 = vpow2.f32 %v8570_v50  ;;  %v8782_v49 = vmul.f32 1.442695, %v3157_v40  ;;  %v8784_v5 = vmul.f32 1.442695, %v3325_v13  ;;  %v3231_v35 = vmul.f32 %v10743_v7, %v10748_v19  ;;  %v10754_v55 = vld [vmem:[#allocation22_spill] sm:$0xff] }
 0x33e   :  { %10745 = vst [vmem:[#allocation29_spill] sm:$0xff] %v8777_v51  ;;  %10746 = vst [vmem:[#allocation8_spill] sm:$0xff] %v8779_v47  ;;  %v8788_v8 = vpop.eup %6279  ;;  %6299 = vpow2.f32 %v8572_v46  ;;  %v3398_v0 = vmul.f32 %v10751_v45, %v10750_v27  ;;  %v2560_v43 = vmul.f32 %v10753_v26, %v10752_v61  ;;  %v10755_v47 = vld [vmem:[#allocation43_spill] sm:$0xff]  ;;  %v8801_v7 = vadd.f32 %v10751_v45, %v3206_v28 }
 0x33f   :  { %10747 = vst [vmem:[#allocation11_spill] sm:$0xff] %v8784_v5  ;;  %10749 = vst [vmem:[#allocation34_spill] sm:$0xff] %v8788_v8  ;;  %v2728_v50 = vmul.f32 %v10755_v47, %v10754_v55  ;;  %v8797_v40 = vpop.eup %6281  ;;  %6301 = vpow2.f32 %v8605_v29  ;;  %v3255_v13 = vadd.f32 %v3231_v35, %v3087_v30  ;;  %v10758_v8 = vld [vmem:[#allocation20_spill] sm:$0xff]  ;;  %v10759_v39 = vld [vmem:[#allocation31_spill] sm:$0xff] }
 0x340   :  { %10756 = vst [vmem:[#allocation30_spill] sm:$0xff] %v8797_v40  ;;  %10757 = vst [vmem:[#allocation17_spill] sm:$0xff] %v8801_v7  ;;  %v3399_v46 = vmul.f32 %v10759_v39, %v10758_v8  ;;  %v8805_v14 = vpop.eup %6283  ;;  %6303 = vpow2.f32 %v8607_v15  ;;  %v8809_v26 = vadd.f32 %v10759_v39, %v3207_v12  ;;  %v8811_v34 = vadd.f32 %v3398_v0, %v3254_v23  ;;  %v2460_v47 = vld [vmem:[#allocation2 + $0xb0] sm:$0xff]  ;;  %v10763_v29 = vld [vmem:[#allocation18_spill] sm:$0xff] }
 0x341   :  { %10760 = vst [vmem:[#allocation12_spill] sm:$0xff] %v8805_v14  ;;  %v2628_v40 = vld [vmem:[#allocation2 + $0x170] sm:$0xff]  ;;  %v10764_v30 = vld [vmem:[#allocation36_spill] sm:$0xff]  ;;  %v8815_v28 = vpop.eup %6285  ;;  %6305 = vpow2.f32 %v8609_v2  ;;  %v2484_v45 = vsub.f32 %v2460_v47, %v8777_v51  ;;  %v2820_v15 = vsub.f32 %v2796_v60, %v8777_v51 }
 0x342   :  { %10761 = vst [vmem:[#allocation16_spill] sm:$0xff] %v8809_v26  ;;  %10762 = vst [vmem:[#allocation35_spill] sm:$0xff] %v8811_v34  ;;  %v2561_v35 = vmul.f32 %v10764_v30, %v10763_v29  ;;  %v2652_v14 = vsub.f32 %v2628_v40, %v8777_v51  ;;  %v8821_v39 = vpop.eup %6287  ;;  %6307 = vpow2.f32 %v8614_v57  ;;  %v2964_v12 = vld [vmem:[#allocation2 + $0x2f0] sm:$0xff]  ;;  %v10771_v2 = vld [vmem:[#allocation44_spill] sm:$0xff]  ;;  %v8833_v60 = vadd.f32 %v3399_v46, %v3255_v13 }
 0x343   :  { %10765 = vst [vmem:[#allocation14_spill] sm:$0xff] %v8815_v28  ;;  %10766 = vst [vmem:[#allocation42_spill] sm:$0xff] %v8821_v39  ;;  %v3132_v23 = vld [vmem:[#allocation2 + $0x3b0] sm:$0xff]  ;;  %v2752_v28 = vadd.f32 %v2728_v50, %v2560_v43  ;;  %v8830_v47 = vpop.eup %6289  ;;  %6309 = vpow2.f32 %v8616_v25  ;;  %v2988_v40 = vsub.f32 %v2964_v12, %v8777_v51  ;;  %v10773_v43 = vld [vmem:[#allocation38_spill] sm:$0xff]  ;;  %v8845_v25 = vmul.f32 1.442695, %v2484_v45 }
 0x344   :  { %v8824_v0 = vld [vmem:[#allocation2 + $0x470] sm:$0xff]  ;;  %v3156_v57 = vsub.f32 %v3132_v23, %v8777_v51  ;;  %v8837_v39 = vpop.eup %6291  ;;  %6311 = vpow2.f32 %v8618_v31  ;;  %v8847_v13 = vmul.f32 1.442695, %v2652_v14  ;;  %v8854_v31 = vmul.f32 1.442695, %v2820_v15  ;;  %v10781_v14 = vld [vmem:[#allocation10_spill] sm:$0xff] }
 0x345   :  { %10767 = vst [vmem:[#allocation22_spill] sm:$0xff] %v8824_v0  ;;  %v10769_v30 = vld [vmem:[#allocation37_spill] sm:$0xff]  ;;  %6313 = vpow2.f32 %v8623_v59  ;;  %v8861_v59 = vmul.f32 1.442695, %v2988_v40  ;;  %v10782_v45 = vld [vmem:[#allocation39_spill] sm:$0xff]  ;;  %v2562_v46 = vmul.f32 %v8258_v6, %v7906_v48  ;;  %v10787_v0 = vld [vmem:[#allocation48_spill] sm:$0xff] }
 0x346   :  { %v2729_v34 = vmul.f32 %v10769_v30, %v10768_v37  ;;  %v10770_v5 = vld [vmem:[#allocation5_spill] sm:$0xff]  ;;  %v10772_v30 = vld [vmem:[#allocation6_spill] sm:$0xff]  ;;  %6315 = vpow2.f32 %v8625_v42  ;;  %10776 = vst [vmem:[#allocation18_spill] sm:$0xff] %v8854_v31 }
 0x347   :  { %v2896_v26 = vmul.f32 %v10771_v2, %v10770_v5  ;;  %v2897_v50 = vmul.f32 %v10773_v43, %v10772_v30  ;;  %v8842_v2 = vpop.eup %6293  ;;  %6317 = vpow2.f32 %v8627_v9  ;;  %10780 = vst [vmem:[#allocation24_spill] sm:$0xff] %v8861_v59  ;;  %v3065_v43 = vmul.f32 %v10782_v45, %v10781_v14 }
 0x348   :  { %v2753_v7 = vadd.f32 %v2729_v34, %v2561_v35  ;;  %10774 = vst [vmem:[#allocation43_spill] sm:$0xff] %v8842_v2  ;;  %v8851_v12 = vpop.eup %6295  ;;  %v10777_v35 = vld [vmem:[#allocation9_spill] sm:$0xff]  ;;  %6319 = vpow2.f32 %v8632_v17 }
 0x349   :  { %v2920_v8 = vadd.f32 %v2896_v26, %v2752_v28  ;;  %10775 = vst [vmem:[#allocation31_spill] sm:$0xff] %v8851_v12  ;;  %v10778_v26 = vld [vmem:[#allocation45_spill] sm:$0xff]  ;;  %v8858_v23 = vpop.eup %6297  ;;  %6321 = vpow2.f32 %v8670_v32 }
 0x34a   :  { %v2921_v34 = vadd.f32 %v2897_v50, %v2753_v7  ;;  %v3064_v28 = vmul.f32 %v10778_v26, %v10777_v35  ;;  %10779 = vst [vmem:[#allocation36_spill] sm:$0xff] %v8858_v23  ;;  %v8867_v51 = vpop.eup %6299  ;;  %v10784_v7 = vld [vmem:[#allocation47_spill] sm:$0xff]  ;;  %v10785_v50 = vld [vmem:[#allocation54_spill] sm:$0xff]  ;;  %6323 = vpow2.f32 %v8672_v24 }
 0x34b   :  { %10783 = vst [vmem:[#allocation37_spill] sm:$0xff] %v8867_v51  ;;  %v2563_v15 = vmul.f32 %v10784_v7, %v7910_v58  ;;  %v2706_v26 = vadd.f32 %v10785_v50, %v8258_v6  ;;  %v8874_v9 = vpop.eup %6301  ;;  %v2707_v45 = vadd.f32 %v10787_v0, %v10784_v7  ;;  %v2730_v59 = vmul.f32 %v10785_v50, %v10722_v38  ;;  %v10792_v7 = vld [vmem:[#allocation15_spill] sm:$0xff]  ;;  %v10793_v50 = vld [vmem:[#allocation40_spill] sm:$0xff] }
 0x34c   :  { %v3088_v42 = vadd.f32 %v3064_v28, %v2920_v8  ;;  %10786 = vst [vmem:[#allocation5_spill] sm:$0xff] %v8874_v9  ;;  %v3089_v40 = vadd.f32 %v3065_v43, %v2921_v34  ;;  %v2731_v51 = vmul.f32 %v10787_v0, %v10723_v22  ;;  %v8882_v17 = vpop.eup %6303  ;;  %v8885_v8 = vmul.f32 1.442695, %v3156_v57  ;;  %v10790_v28 = vld [vmem:[#allocation13_spill] sm:$0xff]  ;;  %v10794_v0 = vld [vmem:[#allocation50_spill] sm:$0xff] }
 0x34d   :  { %10788 = vst [vmem:[#allocation44_spill] sm:$0xff] %v8882_v17  ;;  %v3232_v6 = vmul.f32 %v8194_v52, %v10790_v28  ;;  %v2874_v34 = vadd.f32 %v8271_v4, %v2706_v26  ;;  %v8890_v43 = vpop.eup %6305  ;;  %v3233_v9 = vmul.f32 %v10793_v50, %v10792_v7  ;;  %v2754_v23 = vadd.f32 %v2730_v59, %v2562_v46  ;;  %v10799_v46 = vld [vmem:[#allocation56_spill] sm:$0xff] }
 0x34e   :  { %10789 = vst [vmem:[#allocation6_spill] sm:$0xff] %v8885_v8  ;;  %10791 = vst [vmem:[#allocation38_spill] sm:$0xff] %v8890_v43  ;;  %v2875_v12 = vadd.f32 %v10794_v0, %v2707_v45  ;;  %v8896_v17 = vpop.eup %6307  ;;  %6325 = vpow2.f32 %v8678_v10  ;;  %v2755_v57 = vadd.f32 %v2731_v51, %v2563_v15  ;;  %v2898_v52 = vmul.f32 %v8271_v4, %v10726_v54  ;;  %v10797_v8 = vld [vmem:[#allocation23_spill] sm:$0xff]  ;;  %v10798_v43 = vld [vmem:[#allocation46_spill] sm:$0xff] }
 0x34f   :  { %10795 = vst [vmem:[#allocation9_spill] sm:$0xff] %v8896_v17  ;;  %v3256_v32 = vadd.f32 %v3232_v6, %v3088_v42  ;;  %v8901_v26 = vpop.eup %6309  ;;  %6327 = vpow2.f32 %v8680_v36  ;;  %v3257_v24 = vadd.f32 %v3233_v9, %v3089_v40  ;;  %v3400_v50 = vmul.f32 %v10798_v43, %v10797_v8  ;;  %v10801_v42 = vld [vmem:[#allocation51_spill] sm:$0xff]  ;;  %v10804_v40 = vld [vmem:[#allocation49_spill] sm:$0xff] }
 0x350   :  { %10796 = vst [vmem:[#allocation45_spill] sm:$0xff] %v8901_v26  ;;  %v3042_v59 = vadd.f32 %v10799_v46, %v2874_v34  ;;  %v8907_v45 = vpop.eup %6311  ;;  %6329 = vpow2.f32 %v8682_v63  ;;  %v2899_v10 = vmul.f32 %v10794_v0, %v10727_v16  ;;  %v2922_v51 = vadd.f32 %v2898_v52, %v2754_v23  ;;  %v10803_v36 = vld [vmem:[#allocation55_spill] sm:$0xff]  ;;  %v10805_v6 = vld [vmem:[#allocation41_spill] sm:$0xff]  ;;  %v10825_v26 = vld [vmem:[#allocation68_spill] sm:$0xff] }
 0x351   :  { %10800 = vst [vmem:[#allocation10_spill] sm:$0xff] %v8907_v45  ;;  %v3043_v4 = vadd.f32 %v10801_v42, %v2875_v12  ;;  %v8913_v15 = vpop.eup %6313  ;;  %6331 = vpow2.f32 %v8687_v21  ;;  %v8918_v9 = vadd.f32 %v10798_v43, %v10803_v36  ;;  %v8922_v34 = vadd.f32 %v10805_v6, %v10804_v40  ;;  %v10806_v17 = vld [vmem:[#allocation25_spill] sm:$0xff] }
 0x352   :  { %10802 = vst [vmem:[#allocation39_spill] sm:$0xff] %v8913_v15  ;;  %v3401_v63 = vmul.f32 %v10805_v6, %v10806_v17  ;;  %v8926_v45 = vpop.eup %6315  ;;  %6333 = vpow2.f32 %v8689_v20  ;;  %v8929_v12 = vadd.f32 %v3400_v50, %v3256_v32  ;;  %v2923_v23 = vadd.f32 %v2899_v10, %v2755_v57  ;;  %v10809_v36 = vld [vmem:[#allocation57_spill] sm:$0xff]  ;;  %v10811_v32 = vld [vmem:[#allocation52_spill] sm:$0xff] }
 0x353   :  { %10807 = vst [vmem:[#allocation47_spill] sm:$0xff] %v8926_v45  ;;  %v3066_v21 = vmul.f32 %v10799_v46, %v10733_v1  ;;  %v8933_v0 = vpop.eup %6317  ;;  %6335 = vpow2.f32 %v8691_v62  ;;  %v3067_v52 = vmul.f32 %v10801_v42, %v10737_v11  ;;  %v3210_v40 = vadd.f32 %v10809_v36, %v3042_v59  ;;  %v10812_v62 = vld [vmem:[#allocation65_spill] sm:$0xff]  ;;  %v10813_v46 = vld [vmem:[#allocation59_spill] sm:$0xff]  ;;  %v10814_v59 = vld [vmem:[#allocation66_spill] sm:$0xff] }
 0x354   :  { %10808 = vst [vmem:[#allocation54_spill] sm:$0xff] %v8933_v0  ;;  %v8936_v43 = vadd.f32 %v3401_v63, %v3257_v24  ;;  %v8941_v6 = vpop.eup %6319  ;;  %6337 = vpow2.f32 %v8696_v18  ;;  %v3211_v57 = vadd.f32 %v10811_v32, %v3043_v4  ;;  %v3234_v50 = vmul.f32 %v10809_v36, %v10739_v44  ;;  %v10816_v18 = vld [vmem:[#allocation110_spill] sm:$0xff] }
 0x355   :  { %10810 = vst [vmem:[#allocation48_spill] sm:$0xff] %v8941_v6  ;;  %v3090_v20 = vadd.f32 %v3066_v21, %v2922_v51  ;;  %6339 = vpow2.f32 %v8698_v41  ;;  %v2564_v24 = vmul.f32 %v10812_v62, %v10752_v61  ;;  %v2565_v10 = vmul.f32 %v10813_v46, %v10763_v29  ;;  %v8954_v63 = vpop.eup %6321  ;;  %v10817_v21 = vld [vmem:[#allocation60_spill] sm:$0xff] }
 0x356   :  { %v2708_v42 = vadd.f32 %v10814_v59, %v10812_v62  ;;  %10815 = vst [vmem:[#allocation13_spill] sm:$0xff] %v8954_v63  ;;  %6341 = vpow2.f32 %v10816_v18  ;;  %v3091_v51 = vadd.f32 %v3067_v52, %v2923_v23  ;;  %v3235_v4 = vmul.f32 %v10811_v32, %v10748_v19  ;;  %v8961_v36 = vpop.eup %6323  ;;  %v10819_v6 = vld [vmem:[#allocation112_spill] sm:$0xff]  ;;  %v10820_v63 = vld [vmem:[#allocation67_spill] sm:$0xff]  ;;  %v10822_v52 = vld [vmem:[#allocation58_spill] sm:$0xff] }
 0x357   :  { %v2709_v41 = vadd.f32 %v10817_v21, %v10813_v46  ;;  %10818 = vst [vmem:[#allocation15_spill] sm:$0xff] %v8961_v36  ;;  %6343 = vpow2.f32 %v10819_v6  ;;  %v2732_v0 = vmul.f32 %v10814_v59, %v10754_v55  ;;  %v2733_v62 = vmul.f32 %v10817_v21, %v10768_v37  ;;  %v10823_v46 = vld [vmem:[#allocation61_spill] sm:$0xff] }
 0x358   :  { %v2876_v45 = vadd.f32 %v10820_v63, %v2708_v42  ;;  %v8969_v18 = vpop.eup %6325  ;;  %6345 = vpow2.f32 %v8752_v53  ;;  %v3258_v23 = vadd.f32 %v3234_v50, %v3090_v20  ;;  %v3402_v32 = vmul.f32 %v10822_v52, %v10750_v27  ;;  %v10827_v20 = vld [vmem:[#allocation62_spill] sm:$0xff] }
 0x359   :  { %10821 = vst [vmem:[#allocation40_spill] sm:$0xff] %v8969_v18  ;;  %v2877_v36 = vadd.f32 %v10823_v46, %v2709_v41  ;;  %v8975_v15 = vpop.eup %6327  ;;  %6347 = vpow2.f32 %v8759_v3  ;;  %v2756_v6 = vadd.f32 %v2732_v0, %v2564_v24  ;;  %v2757_v59 = vadd.f32 %v2733_v62, %v2565_v10  ;;  %v10829_v0 = vld [vmem:[#allocation53_spill] sm:$0xff]  ;;  %v10835_v62 = vld [vmem:[#allocation63_spill] sm:$0xff] }
 0x35a   :  { %10824 = vst [vmem:[#allocation50_spill] sm:$0xff] %v8975_v15  ;;  %v3044_v21 = vadd.f32 %v10825_v26, %v2876_v45  ;;  %v8979_v31 = vpop.eup %6329  ;;  %6349 = vpow2.f32 %v8761_v33  ;;  %v3259_v42 = vadd.f32 %v3235_v4, %v3091_v51  ;;  %v2900_v53 = vmul.f32 %v10820_v63, %v10770_v5  ;;  %v10831_v33 = vld [vmem:[#allocation20_spill] sm:$0xff]  ;;  %v10846_v15 = vld [vmem:[#allocation70_spill] sm:$0xff] }
 0x35b   :  { %10826 = vst [vmem:[#allocation23_spill] sm:$0xff] %v8979_v31  ;;  %v3045_v50 = vadd.f32 %v10827_v20, %v2877_v36  ;;  %v8985_v18 = vpop.eup %6331  ;;  %6351 = vpow2.f32 %v8768_v56  ;;  %v3378_v3 = vadd.f32 %v10822_v52, %v3210_v40  ;;  %v8990_v24 = vadd.f32 %v10829_v0, %v3211_v57  ;;  %v10833_v56 = vld [vmem:[#allocation17_spill] sm:$0xff] }
 0x35c   :  { %10828 = vst [vmem:[#allocation46_spill] sm:$0xff] %v8985_v18  ;;  %v2901_v45 = vmul.f32 %v10823_v46, %v10772_v30  ;;  %v8994_v10 = vpop.eup %6333  ;;  %6353 = vpow2.f32 %v8782_v49  ;;  %v3403_v63 = vmul.f32 %v10829_v0, %v10831_v33  ;;  %v8999_v51 = vadd.f32 %v3402_v32, %v3258_v23  ;;  %v10834_v57 = vld [vmem:[#allocation69_spill] sm:$0xff]  ;;  %v10837_v18 = vld [vmem:[#allocation16_spill] sm:$0xff] }
 0x35d   :  { %10830 = vst [vmem:[#allocation56_spill] sm:$0xff] %v8994_v10  ;;  %v2924_v4 = vadd.f32 %v2900_v53, %v2756_v6  ;;  %v9001_v41 = vpop.eup %6335  ;;  %6355 = vrcp.f32 %v10833_v56  ;;  %v3212_v36 = vadd.f32 %v10834_v57, %v3044_v21  ;;  %v3213_v52 = vadd.f32 %v10835_v62, %v3045_v50  ;;  %v10839_v53 = vld [vmem:[#allocation11_spill] sm:$0xff]  ;;  %v10844_v56 = vld [vmem:[#allocation72_spill] sm:$0xff]  ;;  %v10850_v10 = vld [vmem:[#allocation73_spill] sm:$0xff] }
 0x35e   :  { %10832 = vst [vmem:[#allocation51_spill] sm:$0xff] %v9001_v41  ;;  %v2925_v40 = vadd.f32 %v2901_v45, %v2757_v59  ;;  %v9006_v46 = vpop.eup %6337  ;;  %6357 = vrcp.f32 %v10837_v18  ;;  %v9009_v49 = vadd.f32 %v3403_v63, %v3259_v42  ;;  %v3068_v23 = vmul.f32 %v10825_v26, %v10777_v35  ;;  %v10840_v18 = vld [vmem:[#allocation77_spill] sm:$0xff]  ;;  %v10842_v26 = vld [vmem:[#allocation71_spill] sm:$0xff] }
 0x35f   :  { %10836 = vst [vmem:[#allocation55_spill] sm:$0xff] %v9006_v46  ;;  %v3069_v32 = vmul.f32 %v10827_v20, %v10781_v14  ;;  %v9015_v6 = vpop.eup %6339  ;;  %6359 = vpow2.f32 %v10839_v53  ;;  %v3236_v59 = vmul.f32 %v10834_v57, %v10790_v28  ;;  %v3237_v21 = vmul.f32 %v10835_v62, %v10792_v7  ;;  %v10843_v20 = vld [vmem:[#allocation78_spill] sm:$0xff]  ;;  %v10849_v41 = vld [vmem:[#allocation79_spill] sm:$0xff] }
 0x360   :  { %10838 = vst [vmem:[#allocation49_spill] sm:$0xff] %v9015_v6  ;;  %v2566_v42 = vmul.f32 %v10840_v18, %v7906_v48  ;;  %v9024_v50 = vpop.eup %6341  ;;  %v3092_v0 = vadd.f32 %v3068_v23, %v2924_v4  ;;  %v2567_v45 = vmul.f32 %v10842_v26, %v7910_v58  ;;  %v2710_v63 = vadd.f32 %v10843_v20, %v10840_v18  ;;  %v10847_v6 = vld [vmem:[#allocation64_spill] sm:$0xff] }
 0x361   :  { %10841 = vst [vmem:[#allocation41_spill] sm:$0xff] %v9024_v50  ;;  %v2711_v53 = vadd.f32 %v10844_v56, %v10842_v26  ;;  %v9032_v31 = vpop.eup %6343  ;;  %v3093_v57 = vadd.f32 %v3069_v32, %v2925_v40  ;;  %v3380_v62 = vadd.f32 %v10846_v15, %v3212_v36  ;;  %v3381_v46 = vadd.f32 %v10847_v6, %v3213_v52 }
 0x362   :  { %10845 = vst [vmem:[#allocation25_spill] sm:$0xff] %v9032_v31  ;;  %v2734_v50 = vmul.f32 %v10843_v20, %v10722_v38  ;;  %v9038_v4 = vpop.eup %6345  ;;  %v3404_v23 = vmul.f32 %v10846_v15, %v10797_v8  ;;  %v2735_v18 = vmul.f32 %v10844_v56, %v10723_v22  ;;  %v2878_v26 = vadd.f32 %v10849_v41, %v2710_v63  ;;  %v10853_v63 = vld [vmem:[#allocation80_spill] sm:$0xff] }
 0x363   :  { %10848 = vst [vmem:[#allocation57_spill] sm:$0xff] %v9038_v4  ;;  %v2879_v31 = vadd.f32 %v10850_v10, %v2711_v53  ;;  %v9046_v40 = vpop.eup %6347  ;;  %6361 = vpow2.f32 %v8845_v25  ;;  %v3405_v36 = vmul.f32 %v10847_v6, %v10806_v17  ;;  %v2902_v32 = vmul.f32 %v10849_v41, %v10726_v54  ;;  %v10854_v53 = vld [vmem:[#allocation74_spill] sm:$0xff] }
 0x364   :  { %10851 = vst [vmem:[#allocation52_spill] sm:$0xff] %v9046_v40  ;;  %v2758_v52 = vadd.f32 %v2734_v50, %v2566_v42  ;;  %v9053_v20 = vpop.eup %6349  ;;  %v2759_v15 = vadd.f32 %v2735_v18, %v2567_v45  ;;  %v2903_v56 = vmul.f32 %v10850_v10, %v10727_v16  ;;  %v3046_v4 = vadd.f32 %v10853_v63, %v2878_v26  ;;  %v10856_v45 = vld [vmem:[#allocation81_spill] sm:$0xff]  ;;  %v10857_v18 = vld [vmem:[#allocation75_spill] sm:$0xff] }
 0x365   :  { %10852 = vst [vmem:[#allocation65_spill] sm:$0xff] %v9053_v20  ;;  %v3047_v2 = vadd.f32 %v10854_v53, %v2879_v31  ;;  %v9059_v40 = vpop.eup %6351  ;;  %6363 = vrcp.f32 %v8918_v9  ;;  %v3260_v25 = vadd.f32 %v3236_v59, %v3092_v0  ;;  %v3070_v42 = vmul.f32 %v10853_v63, %v10733_v1 }
 0x366   :  { %v2926_v6 = vadd.f32 %v2902_v32, %v2758_v52  ;;  %v9064_v41 = vpop.eup %6353  ;;  %6365 = vrcp.f32 %v8922_v34  ;;  %v2927_v50 = vadd.f32 %v2903_v56, %v2759_v15  ;;  %v3214_v10 = vadd.f32 %v10856_v45, %v3046_v4  ;;  %v10858_v52 = vld [vmem:[#allocation35_spill] sm:$0xff]  ;;  %v10859_v15 = vld [vmem:[#allocation82_spill] sm:$0xff] }
 0x367   :  { %10855 = vst [vmem:[#allocation59_spill] sm:$0xff] %v9064_v41  ;;  %v3215_v26 = vadd.f32 %v10857_v18, %v3047_v2  ;;  %v6356_v20 = vpop.eup %6355  ;;  %6367 = vrcp.f32 %v3378_v3  ;;  %v3261_v31 = vadd.f32 %v3237_v21, %v3093_v57  ;;  %v3071_v9 = vmul.f32 %v10854_v53, %v10737_v11  ;;  %v10861_v21 = vld [vmem:[#allocation76_spill] sm:$0xff] }
 0x368   :  { %v3094_v59 = vadd.f32 %v3070_v42, %v2926_v6  ;;  %v6358_v0 = vpop.eup %6357  ;;  %v3470_v32 = vmul.f32 %v6356_v20, %v10858_v52  ;;  %6369 = vrcp.f32 %v8990_v24  ;;  %v3238_v34 = vmul.f32 %v10856_v45, %v10739_v44  ;;  %v10862_v6 = vld [vmem:[#allocation89_spill] sm:$0xff]  ;;  %v10863_v45 = vld [vmem:[#allocation83_spill] sm:$0xff] }
 0x369   :  { %v3382_v56 = vadd.f32 %v10859_v15, %v3214_v10  ;;  %v9076_v4 = vpop.eup %6359  ;;  %v3471_v2 = vmul.f32 %v6358_v0, %v8833_v60  ;;  %6371 = vrcp.f32 %v3380_v62  ;;  %v3095_v3 = vadd.f32 %v3071_v9, %v2927_v50  ;;  %v10864_v62 = vld [vmem:[#allocation90_spill] sm:$0xff]  ;;  %v10865_v50 = vld [vmem:[#allocation84_spill] sm:$0xff] }
 0x36a   :  { %10860 = vst [vmem:[#allocation66_spill] sm:$0xff] %v9076_v4  ;;  %v3383_v57 = vadd.f32 %v10861_v21, %v3215_v26  ;;  %v3428_v63 = vadd.f32 %v3404_v23, %v3260_v25  ;;  %6373 = vrcp.f32 %v3381_v46  ;;  %v3239_v20 = vmul.f32 %v10857_v18, %v10748_v19 }
 0x36b   :  { %v3262_v53 = vadd.f32 %v3238_v34, %v3094_v59  ;;  %v3495_v24 = vpack.c.bf16 %v3471_v2, %v3470_v32  ;;  %6375 = vrcp.f32 %v3382_v56  ;;  %v2568_v42 = vmul.f32 %v10862_v6, %v10752_v61  ;;  %v10866_v59 = vld [vmem:[#allocation91_spill] sm:$0xff]  ;;  %v10867_v2 = vld [vmem:[#allocation85_spill] sm:$0xff] }
 0x36c   :  { %v2569_v10 = vmul.f32 %v10863_v45, %v10763_v29  ;;  %v3429_v52 = vadd.f32 %v3405_v36, %v3261_v31  ;;  %v3406_v60 = vmul.f32 %v10859_v15, %v10750_v27  ;;  %6377 = vrcp.f32 %v3383_v57 }
 0x36d   :  { %v2712_v46 = vadd.f32 %v10864_v62, %v10862_v6  ;;  %v9090_v23 = vpop.eup %6361  ;;  %5863 = vmatprep.mubr.msk.bf16.mxu0 %vm189_vm0, %v3495_v24  ;;  %v3263_v25 = vadd.f32 %v3239_v20, %v3095_v3  ;;  %v2713_v18 = vadd.f32 %v10865_v50, %v10863_v45  ;;  %v2736_v26 = vmul.f32 %v10864_v62, %v10754_v55  ;;  %v10868_v6 = vld [vmem:[#allocation92_spill] sm:$0xff] }
 0x36e   :  { %v2737_v36 = vmul.f32 %v10865_v50, %v10768_v37  ;;  %v3407_v31 = vmul.f32 %v10861_v21, %v10831_v33  ;;  %v3430_v9 = vadd.f32 %v3406_v60, %v3262_v53  ;;  %v2904_v32 = vmul.f32 %v10866_v59, %v10770_v5  ;;  %v10869_v53 = vld [vmem:[#allocation86_spill] sm:$0xff] }
 0x36f   :  { %v2880_v0 = vadd.f32 %v10866_v59, %v2712_v46  ;;  %v6364_v34 = vpop.eup %6363  ;;  %v2760_v15 = vadd.f32 %v2736_v26, %v2568_v42  ;;  %v2881_v3 = vadd.f32 %v10867_v2, %v2713_v18  ;;  %v2905_v57 = vmul.f32 %v10867_v2, %v10772_v30 }
 0x370   :  { %v2761_v56 = vadd.f32 %v2737_v36, %v2569_v10  ;;  %v6366_v20 = vpop.eup %6365  ;;  %v3472_v24 = vmul.f32 %v6364_v34, %v8929_v12  ;;  %v3072_v21 = vmul.f32 %v10868_v6, %v10777_v35  ;;  %v3073_v60 = vmul.f32 %v10869_v53, %v10781_v14  ;;  %v10870_v12 = vld [vmem:[#allocation93_spill] sm:$0xff] }
 0x371   :  { %v3048_v45 = vadd.f32 %v10868_v6, %v2880_v0  ;;  %v6368_v62 = vpop.eup %6367  ;;  %v3473_v42 = vmul.f32 %v6366_v20, %v8936_v43  ;;  %v2928_v10 = vadd.f32 %v2904_v32, %v2760_v15  ;;  %v3049_v50 = vadd.f32 %v10869_v53, %v2881_v3  ;;  %v10871_v15 = vld [vmem:[#allocation87_spill] sm:$0xff] }
 0x372   :  { %v2929_v46 = vadd.f32 %v2905_v57, %v2761_v56  ;;  %v6370_v18 = vpop.eup %6369  ;;  %v3474_v26 = vmul.f32 %v6368_v62, %v8999_v51  ;;  %v3431_v36 = vadd.f32 %v3407_v31, %v3263_v25  ;;  %v3240_v0 = vmul.f32 %v10870_v12, %v10790_v28  ;;  %v10872_v51 = vld [vmem:[#allocation94_spill] sm:$0xff] }
 0x373   :  { %v3216_v59 = vadd.f32 %v10870_v12, %v3048_v45  ;;  %v6372_v34 = vpop.eup %6371  ;;  %v3496_v2 = vpack.c.bf16 %v3473_v42, %v3472_v24  ;;  %v3475_v6 = vmul.f32 %v6370_v18, %v9009_v49  ;;  %v3096_v4 = vadd.f32 %v3072_v21, %v2928_v10  ;;  %v10873_v24 = vld [vmem:[#allocation101_spill] sm:$0xff]  ;;  %v10874_v49 = vld [vmem:[#allocation95_spill] sm:$0xff]  ;;  %v10876_v42 = vld [vmem:[#allocation102_spill] sm:$0xff] }
 0x374   :  { %v3097_v41 = vadd.f32 %v3073_v60, %v2929_v46  ;;  %v6374_v43 = vpop.eup %6373  ;;  %v3476_v32 = vmul.f32 %v6372_v34, %v3428_v63  ;;  %v3217_v56 = vadd.f32 %v10871_v15, %v3049_v50  ;;  %v3241_v3 = vmul.f32 %v10871_v15, %v10792_v7  ;;  %v10875_v60 = vld [vmem:[#allocation88_spill] sm:$0xff] }
 0x375   :  { %v3384_v25 = vadd.f32 %v10872_v51, %v3216_v59  ;;  %v6376_v31 = vpop.eup %6375  ;;  %5864 = vmatmul.mubr.msk.bf16.vlgmr.msra.gmra.mrb[84].mxu0 %vm189_vm0, %v3496_v2  ;;  %v3497_v57 = vpack.c.bf16 %v3475_v6, %v3474_v26  ;;  %v3477_v20 = vmul.f32 %v6374_v43, %v3429_v52  ;;  %v2570_v45 = vmul.f32 %v10873_v24, %v7906_v48  ;;  %v10877_v26 = vld [vmem:[#allocation96_spill] sm:$0xff]  ;;  %v10879_v43 = vld [vmem:[#allocation97_spill] sm:$0xff] }
 0x376   :  { %v2571_v21 = vmul.f32 %v10874_v49, %v7910_v58  ;;  %v6378_v53 = vpop.eup %6377  ;;  %v3478_v63 = vmul.f32 %v6376_v31, %v3430_v9  ;;  %v3385_v62 = vadd.f32 %v10875_v60, %v3217_v56  ;;  %v2714_v10 = vadd.f32 %v10876_v42, %v10873_v24 }
 0x377   :  { %6379 = vrcp.f32 %v3384_v25  ;;  %5867 = vmatprep.mubr.msk.bf16.mxu0 %vm189_vm0, %v3497_v57  ;;  %v3498_v46 = vpack.c.bf16 %v3477_v20, %v3476_v32  ;;  %v3479_v50 = vmul.f32 %v6378_v53, %v3431_v36  ;;  %v3264_v18 = vadd.f32 %v3240_v0, %v3096_v4  ;;  %v10878_v36 = vld [vmem:[#allocation103_spill] sm:$0xff]  ;;  %v10880_v25 = vld [vmem:[#allocation104_spill] sm:$0xff]  ;;  %v10881_v20 = vld [vmem:[#allocation98_spill] sm:$0xff] }
 0x378   :  { %v3265_v52 = vadd.f32 %v3241_v3, %v3097_v41  ;;  %6381 = vrcp.f32 %v3385_v62  ;;  %v2715_v12 = vadd.f32 %v10877_v26, %v10874_v49  ;;  %v2738_v59 = vmul.f32 %v10876_v42, %v10722_v38  ;;  %v10883_v53 = vld [vmem:[#allocation19_spill] sm:$0xff] }
 0x379   :  { %v2739_v9 = vmul.f32 %v10877_v26, %v10723_v22  ;;  %v3499_v34 = vpack.c.bf16 %v3479_v50, %v3478_v63  ;;  %v3408_v2 = vmul.f32 %v10872_v51, %v10797_v8  ;;  %v3409_v6 = vmul.f32 %v10875_v60, %v10806_v17  ;;  %v10884_v60 = vld [vmem:[#allocation107_spill] sm:$0xff]  ;;  %v10887_v26 = vld [vmem:[#allocation106_spill] sm:$0xff] }
 0x37a   :  { %v2882_v4 = vadd.f32 %v10878_v36, %v2714_v10  ;;  %v2762_v41 = vadd.f32 %v2738_v59, %v2570_v45  ;;  %v2883_v32 = vadd.f32 %v10879_v43, %v2715_v12  ;;  %v2906_v15 = vmul.f32 %v10878_v36, %v10726_v54  ;;  %v10885_v50 = vld [vmem:[#allocation99_spill] sm:$0xff]  ;;  %v10888_v59 = vld [vmem:[#allocation108_spill] sm:$0xff] }
 0x37b   :  { %v2763_v0 = vadd.f32 %v2739_v9, %v2571_v21  ;;  %6383 = vpow2.f32 %v8847_v13  ;;  %v3432_v56 = vadd.f32 %v3408_v2, %v3264_v18  ;;  %v3433_v3 = vadd.f32 %v3409_v6, %v3265_v52  ;;  %v10882_v21 = vld [vmem:[#allocation105_spill] sm:$0xff] }
 0x37c   :  { %v3050_v31 = vadd.f32 %v10880_v25, %v2882_v4  ;;  %v2907_v51 = vmul.f32 %v10879_v43, %v10727_v16  ;;  %v2930_v57 = vadd.f32 %v2906_v15, %v2762_v41  ;;  %v3051_v24 = vadd.f32 %v10881_v20, %v2883_v32  ;;  %v10886_v52 = vld [vmem:[#allocation21_spill] sm:$0xff]  ;;  %v10889_v41 = vld [vmem:[#allocation100_spill] sm:$0xff] }
 0x37d   :  { %v3074_v45 = vmul.f32 %v10880_v25, %v10733_v1  ;;  %5868 = vmatmul.mubr.msk.bf16.gmra.mrb[88].mxu0 %vm189_vm0, %v3498_v46  ;;  %v3075_v49 = vmul.f32 %v10881_v20, %v10737_v11  ;;  %v2572_v63 = vmul.f32 %v10883_v53, %v10752_v61  ;;  %v2573_v62 = vmul.f32 %v10884_v60, %v10763_v29  ;;  %v10890_v43 = vld [vmem:[#allocation32_spill] sm:$0xff] }
 0x37e   :  { %v3218_v13 = vadd.f32 %v10882_v21, %v3050_v31  ;;  %5871 = vmatprep.mubr.msk.bf16.mxu0 %vm189_vm0, %v3499_v34  ;;  %v2931_v42 = vadd.f32 %v2907_v51, %v2763_v0  ;;  %v3219_v18 = vadd.f32 %v10885_v50, %v3051_v24  ;;  %v2716_v46 = vadd.f32 %v10886_v52, %v10883_v53  ;;  %v10891_v24 = vld [vmem:[#allocation109_spill] sm:$0xff] }
 0x37f   :  { %v3098_v10 = vadd.f32 %v3074_v45, %v2930_v57  ;;  %v2717_v9 = vadd.f32 %v10888_v59, %v10884_v60  ;;  %v2740_v2 = vmul.f32 %v10886_v52, %v10754_v55  ;;  %v2741_v6 = vmul.f32 %v10888_v59, %v10768_v37  ;;  %v10892_v60 = vld [vmem:[#allocation26_spill] sm:$0xff] }
 0x380   :  { %v3386_v12 = vadd.f32 %v10887_v26, %v3218_v13  ;;  %v3242_v34 = vmul.f32 %v10882_v21, %v10739_v44  ;;  %v3243_v4 = vmul.f32 %v10885_v50, %v10748_v19  ;;  %v3387_v0 = vadd.f32 %v10889_v41, %v3219_v18 }
 0x381   :  { %v6380_v36 = vpop.eup %6379  ;;  %v2884_v32 = vadd.f32 %v10890_v43, %v2716_v46  ;;  %v2764_v25 = vadd.f32 %v2740_v2, %v2572_v63  ;;  %v2765_v31 = vadd.f32 %v2741_v6, %v2573_v62  ;;  %v3099_v57 = vadd.f32 %v3075_v49, %v2931_v42  ;;  %v10893_v63 = vld [vmem:[#allocation111_spill] sm:$0xff]  ;;  %v10894_v46 = vld [vmem:[#allocation4_spill] sm:$0xff]  ;;  %v10895_v2 = vld [vmem:[#allocation113_spill] sm:$0xff] }
 0x382   :  { %v3480_v15 = vmul.f32 %v6380_v36, %v3432_v56  ;;  %6385 = vrcp.f32 %v3386_v12  ;;  %v6382_v51 = vpop.eup %6381  ;;  %v3266_v20 = vadd.f32 %v3242_v34, %v3098_v10  ;;  %v2885_v45 = vadd.f32 %v10891_v24, %v2717_v9 }
 0x383   :  { %6387 = vrcp.f32 %v3387_v0  ;;  %v3481_v13 = vmul.f32 %v6382_v51, %v3433_v3  ;;  %v2908_v21 = vmul.f32 %v10890_v43, %v10770_v5  ;;  %v2909_v53 = vmul.f32 %v10891_v24, %v10772_v30  ;;  %v10896_v0 = vld [vmem:[#allocation28_spill] sm:$0xff]  ;;  %v10899_v51 = vld [vmem:[#allocation33_spill] sm:$0xff] }
 0x384   :  { %v3052_v50 = vadd.f32 %v10892_v60, %v2884_v32  ;;  %v3410_v56 = vmul.f32 %v10887_v26, %v10750_v27  ;;  %v3053_v62 = vadd.f32 %v10893_v63, %v2885_v45  ;;  %v3076_v49 = vmul.f32 %v10892_v60, %v10777_v35  ;;  %v10897_v32 = vld [vmem:[#allocation14_spill] sm:$0xff] }
 0x385   :  { %v3077_v42 = vmul.f32 %v10893_v63, %v10781_v14  ;;  %v9192_v3 = vpop.eup %6383  ;;  %v3500_v10 = vpack.c.bf16 %v3481_v13, %v3480_v15  ;;  %v2932_v18 = vadd.f32 %v2908_v21, %v2764_v25  ;;  %v2933_v52 = vadd.f32 %v2909_v53, %v2765_v31  ;;  %v10898_v25 = vld [vmem:[#allocation27_spill] sm:$0xff] }
 0x386   :  { %v3220_v12 = vadd.f32 %v10894_v46, %v3052_v50  ;;  %v3267_v59 = vadd.f32 %v3243_v4, %v3099_v57  ;;  %v3411_v9 = vmul.f32 %v10889_v41, %v10831_v33  ;;  %v3434_v26 = vadd.f32 %v3410_v56, %v3266_v20  ;;  %v10900_v57 = vld [vmem:[#allocation42_spill] sm:$0xff]  ;;  %v10901_v20 = vld [vmem:[#allocation7_spill] sm:$0xff]  ;;  %v10902_v50 = vld [vmem:[#allocation8_spill] sm:$0xff] }
 0x387   :  { %v3221_v6 = vadd.f32 %v10895_v2, %v3053_v62  ;;  %5872 = vmatmul.mubr.msk.bf16.gmra.mrb[92].mxu0 %vm189_vm0, %v3500_v10  ;;  %v3100_v36 = vadd.f32 %v3076_v49, %v2932_v18  ;;  %v3101_v34 = vadd.f32 %v3077_v42, %v2933_v52  ;;  %v2574_v15 = vmul.f32 %v10897_v32, %v7906_v48 }
 0x388   :  { %v3388_v43 = vadd.f32 %v10896_v0, %v3220_v12  ;;  %v2575_v4 = vmul.f32 %v10899_v51, %v7910_v58  ;;  %v2718_v41 = vadd.f32 %v10900_v57, %v10897_v32  ;;  %v2719_v24 = vadd.f32 %v10901_v20, %v10899_v51 }
 0x389   :  { %v3389_v31 = vadd.f32 %v10898_v25, %v3221_v6  ;;  %v3244_v45 = vmul.f32 %v10894_v46, %v10790_v28  ;;  %v3245_v13 = vmul.f32 %v10895_v2, %v10792_v7  ;;  %v2742_v21 = vmul.f32 %v10900_v57, %v10722_v38  ;;  %v10906_v57 = vld [vmem:[#allocation30_spill] sm:$0xff] }
 0x38a   :  { %6389 = vrcp.f32 %v3388_v43  ;;  %v2743_v53 = vmul.f32 %v10901_v20, %v10723_v22  ;;  %v2886_v60 = vadd.f32 %v8830_v47, %v2718_v41  ;;  %v2887_v56 = vadd.f32 %v10902_v50, %v2719_v24 }
 0x38b   :  { %6391 = vrcp.f32 %v3389_v31  ;;  %v3435_v62 = vadd.f32 %v3411_v9, %v3267_v59  ;;  %v3268_v49 = vadd.f32 %v3244_v45, %v3100_v36  ;;  %v2766_v42 = vadd.f32 %v2742_v21, %v2574_v15  ;;  %v10903_v31 = vld [vmem:[#allocation34_spill] sm:$0xff] }
 0x38c   :  { %v6386_v63 = vpop.eup %6385  ;;  %v2910_v10 = vmul.f32 %v8830_v47, %v10726_v54  ;;  %v3269_v46 = vadd.f32 %v3245_v13, %v3101_v34  ;;  %v2767_v12 = vadd.f32 %v2743_v53, %v2575_v4  ;;  %v3054_v2 = vadd.f32 %v8837_v39, %v2886_v60  ;;  %v10905_v34 = vld [vmem:[#allocation18_spill] sm:$0xff]  ;;  %v10907_v13 = vld [vmem:[#allocation31_spill] sm:$0xff]  ;;  %v10909_v53 = vld [vmem:[#allocation45_spill] sm:$0xff] }
 0x38d   :  { %v6388_v18 = vpop.eup %6387  ;;  %v3482_v52 = vmul.f32 %v6386_v63, %v3434_v26  ;;  %v2911_v43 = vmul.f32 %v10902_v50, %v10727_v16  ;;  %v3055_v51 = vadd.f32 %v10903_v31, %v2887_v56  ;;  %v3412_v59 = vmul.f32 %v10896_v0, %v10797_v8  ;;  %v10904_v26 = vld [vmem:[#allocation43_spill] sm:$0xff]  ;;  %v10910_v50 = vld [vmem:[#allocation36_spill] sm:$0xff] }
 0x38e   :  { %v3483_v6 = vmul.f32 %v6388_v18, %v3435_v62  ;;  %v2934_v32 = vadd.f32 %v2910_v10, %v2766_v42  ;;  %v3413_v9 = vmul.f32 %v10898_v25, %v10806_v17  ;;  %v3078_v47 = vmul.f32 %v8837_v39, %v10733_v1  ;;  %v10908_v25 = vld [vmem:[#allocation12_spill] sm:$0xff]  ;;  %v10911_v62 = vld [vmem:[#allocation10_spill] sm:$0xff]  ;;  %v10912_v42 = vld [vmem:[#allocation37_spill] sm:$0xff] }
 0x38f   :  { %v3222_v36 = vadd.f32 %v10904_v26, %v3054_v2  ;;  %6393 = vpow2.f32 %v10905_v34  ;;  %v2935_v4 = vadd.f32 %v2911_v43, %v2767_v12  ;;  %v3223_v41 = vadd.f32 %v10906_v57, %v3055_v51  ;;  %v10914_v51 = vld [vmem:[#allocation5_spill] sm:$0xff]  ;;  %v10915_v34 = vld [vmem:[#allocation24_spill] sm:$0xff] }
 0x390   :  { %v3501_v15 = vpack.c.bf16 %v3483_v6, %v3482_v52  ;;  %v3436_v20 = vadd.f32 %v3412_v59, %v3268_v49  ;;  %v3437_v24 = vadd.f32 %v3413_v9, %v3269_v46  ;;  %v3102_v45 = vadd.f32 %v3078_v47, %v2934_v32  ;;  %v10913_v32 = vld [vmem:[#allocation39_spill] sm:$0xff] }
 0x391   :  { %v3390_v21 = vadd.f32 %v10907_v13, %v3222_v36  ;;  %v3079_v0 = vmul.f32 %v10903_v31, %v10737_v11  ;;  %v3391_v39 = vadd.f32 %v10908_v25, %v3223_v41  ;;  %v2576_v60 = vmul.f32 %v10909_v53, %v10752_v61 }
 0x392   :  { %5875 = vmatprep.mubr.msk.bf16.mxu0 %vm189_vm0, %v3501_v15  ;;  %v2577_v56 = vmul.f32 %v10910_v50, %v10763_v29  ;;  %v3246_v63 = vmul.f32 %v10904_v26, %v10739_v44  ;;  %v2720_v49 = vadd.f32 %v10911_v62, %v10909_v53  ;;  %v2721_v10 = vadd.f32 %v10912_v42, %v10910_v50  ;;  %v10918_v50 = vld [vmem:[#allocation54_spill] sm:$0xff] }
 0x393   :  { %6395 = vrcp.f32 %v3390_v21  ;;  %v3103_v52 = vadd.f32 %v3079_v0, %v2935_v4  ;;  %v2744_v46 = vmul.f32 %v10911_v62, %v10754_v55  ;;  %v2745_v12 = vmul.f32 %v10912_v42, %v10768_v37  ;;  %v10916_v4 = vld [vmem:[#allocation47_spill] sm:$0xff]  ;;  %v10917_v21 = vld [vmem:[#allocation44_spill] sm:$0xff] }
 0x394   :  { %v6390_v18 = vpop.eup %6389  ;;  %6397 = vrcp.f32 %v3391_v39  ;;  %v3270_v43 = vadd.f32 %v3246_v63, %v3102_v45  ;;  %v2888_v31 = vadd.f32 %v10913_v32, %v2720_v49  ;;  %v2889_v59 = vadd.f32 %v10914_v51, %v2721_v10  ;;  %v10919_v63 = vld [vmem:[#allocation38_spill] sm:$0xff] }
 0x395   :  { %v6392_v2 = vpop.eup %6391  ;;  %v3484_v6 = vmul.f32 %v6390_v18, %v3436_v20  ;;  %v2768_v47 = vadd.f32 %v2744_v46, %v2576_v60  ;;  %v2769_v26 = vadd.f32 %v2745_v12, %v2577_v56  ;;  %v2912_v36 = vmul.f32 %v10913_v32, %v10770_v5  ;;  %v10921_v12 = vld [vmem:[#allocation9_spill] sm:$0xff] }
 0x396   :  { %v3485_v9 = vmul.f32 %v6392_v2, %v3437_v24  ;;  %6399 = vpow2.f32 %v10915_v34  ;;  %v3247_v15 = vmul.f32 %v10906_v57, %v10748_v19  ;;  %v3056_v41 = vadd.f32 %v10916_v4, %v2888_v31  ;;  %v10923_v31 = vld [vmem:[#allocation13_spill] sm:$0xff] }
 0x397   :  { %v3057_v20 = vadd.f32 %v10917_v21, %v2889_v59  ;;  %v3414_v0 = vmul.f32 %v10907_v13, %v10750_v27  ;;  %v2913_v24 = vmul.f32 %v10914_v51, %v10772_v30  ;;  %v2936_v39 = vadd.f32 %v2912_v36, %v2768_v47  ;;  %v10924_v59 = vld [vmem:[#allocation51_spill] sm:$0xff] }
 0x398   :  { %v3502_v45 = vpack.c.bf16 %v3485_v9, %v3484_v6  ;;  %v3271_v53 = vadd.f32 %v3247_v15, %v3103_v52  ;;  %v3080_v60 = vmul.f32 %v10916_v4, %v10777_v35  ;;  %v3224_v56 = vadd.f32 %v10918_v50, %v3056_v41  ;;  %v10920_v52 = vld [vmem:[#allocation48_spill] sm:$0xff]  ;;  %v10927_v4 = vld [vmem:[#allocation29_spill] sm:$0xff] }
 0x399   :  { %v3225_v57 = vadd.f32 %v10919_v63, %v3057_v20  ;;  %v9270_v62 = vpop.eup %6393  ;;  %v3415_v49 = vmul.f32 %v10908_v25, %v10831_v33  ;;  %v3438_v13 = vadd.f32 %v3414_v0, %v3270_v43  ;;  %v2937_v42 = vadd.f32 %v2913_v24, %v2769_v26  ;;  %v10922_v6 = vld [vmem:[#allocation56_spill] sm:$0xff]  ;;  %v10925_v25 = vld [vmem:[#allocation15_spill] sm:$0xff] }
 0x39a   :  { %5876 = vmatmul.mubr.msk.bf16.gmra.mrb[96].mxu0 %vm189_vm0, %v3502_v45  ;;  %v3081_v10 = vmul.f32 %v10917_v21, %v10781_v14  ;;  %v3104_v18 = vadd.f32 %v3080_v60, %v2936_v39  ;;  %v3392_v46 = vadd.f32 %v10920_v52, %v3224_v56  ;;  %v2578_v32 = vmul.f32 %v10922_v6, %v7906_v48  ;;  %v10929_v39 = vld [vmem:[#allocation55_spill] sm:$0xff]  ;;  %v10930_v60 = vld [vmem:[#allocation6_spill] sm:$0xff] }
 0x39b   :  { %v3393_v2 = vadd.f32 %v10921_v12, %v3225_v57  ;;  %v2579_v51 = vmul.f32 %v10923_v31, %v7910_v58  ;;  %v2722_v9 = vadd.f32 %v10924_v59, %v10922_v6  ;;  %v2723_v43 = vadd.f32 %v10925_v25, %v10923_v31  ;;  %v10926_v58 = vld [vmem:[#allocation22_spill] sm:$0xff] }
 0x39c   :  { %v2746_v47 = vmul.f32 %v10924_v59, %v10722_v38  ;;  %v3439_v36 = vadd.f32 %v3415_v49, %v3271_v53  ;;  %v3248_v34 = vmul.f32 %v10918_v50, %v10790_v28  ;;  %6401 = vrcp.f32 %v3392_v46 }
 0x39d   :  { %v6396_v26 = vpop.eup %6395  ;;  %v2747_v48 = vmul.f32 %v10925_v25, %v10723_v22  ;;  %v10928_v41 = vsub.f32 %v10926_v58, %v10927_v4  ;;  %v3105_v45 = vadd.f32 %v3081_v10, %v2937_v42  ;;  %6403 = vrcp.f32 %v3393_v2  ;;  %v10931_v22 = vld [vmem:[#allocation40_spill] sm:$0xff]  ;;  %v10932_v10 = vld [vmem:[#allocation49_spill] sm:$0xff] }
 0x39e   :  { %v6398_v15 = vpop.eup %6397  ;;  %v3486_v20 = vmul.f32 %v6396_v26, %v3438_v13  ;;  %v3272_v24 = vadd.f32 %v3248_v34, %v3104_v18  ;;  %v2770_v38 = vadd.f32 %v2746_v47, %v2578_v32  ;;  %v2890_v53 = vadd.f32 %v10929_v39, %v2722_v9  ;;  %v10933_v32 = vld [vmem:[#allocation50_spill] sm:$0xff]  ;;  %v10936_v26 = vld [vmem:[#allocation57_spill] sm:$0xff] }
 0x39f   :  { %v3370_v21 = vmul.f32 1.442695, %v10928_v41  ;;  %v3487_v0 = vmul.f32 %v6398_v15, %v3439_v36  ;;  %6405 = vpow2.f32 %v10930_v60  ;;  %v3249_v50 = vmul.f32 %v10919_v63, %v10792_v7  ;;  %v10937_v36 = vld [vmem:[#allocation25_spill] sm:$0xff] }
 0x3a0   :  { %v2771_v56 = vadd.f32 %v2747_v48, %v2579_v51  ;;  %v2891_v57 = vadd.f32 %v10931_v22, %v2723_v43  ;;  %v6400_v49 = vpop.eup %6399  ;;  %v3416_v13 = vmul.f32 %v10920_v52, %v10797_v8  ;;  %v2914_v42 = vmul.f32 %v10929_v39, %v10726_v54  ;;  %v10934_v52 = vld [vmem:[#allocation41_spill] sm:$0xff]  ;;  %v10935_v54 = vld [vmem:[#allocation23_spill] sm:$0xff] }
 0x3a1   :  { %v3503_v46 = vpack.c.bf16 %v3487_v0, %v3486_v20  ;;  %v3058_v18 = vadd.f32 %v10932_v10, %v2890_v53  ;;  %6407 = vpow2.f32 %v3370_v21  ;;  %v3273_v2 = vadd.f32 %v3249_v50, %v3105_v45  ;;  %v10939_v21 = vld [vmem:[#allocation46_spill] sm:$0xff]  ;;  %v10940_v0 = vld [vmem:[#allocation65_spill] sm:$0xff] }
 0x3a2   :  { %v2915_v6 = vmul.f32 %v10931_v22, %v10727_v16  ;;  %v3059_v63 = vadd.f32 %v10933_v32, %v2891_v57  ;;  %v3417_v31 = vmul.f32 %v10921_v12, %v10806_v17  ;;  %v3440_v51 = vadd.f32 %v3416_v13, %v3272_v24  ;;  %v10938_v12 = vld [vmem:[#allocation52_spill] sm:$0xff] }
 0x3a3   :  { %5879 = vmatprep.mubr.msk.bf16.mxu0 %vm189_vm0, %v3503_v46  ;;  %v2938_v59 = vadd.f32 %v2914_v42, %v2770_v38  ;;  %v3226_v9 = vadd.f32 %v10934_v52, %v3058_v18  ;;  %v2580_v47 = vmul.f32 %v9090_v23, %v10752_v61  ;;  %v2581_v16 = vmul.f32 %v10936_v26, %v10763_v29 }
 0x3a4   :  { %v2939_v25 = vadd.f32 %v2915_v6, %v2771_v56  ;;  %v3227_v43 = vadd.f32 %v10935_v54, %v3059_v63  ;;  %v2724_v48 = vadd.f32 %v9192_v3, %v9090_v23  ;;  %v2725_v15 = vadd.f32 %v10938_v12, %v10936_v26  ;;  %v10941_v6 = vld [vmem:[#allocation59_spill] sm:$0xff] }
 0x3a5   :  { %v3394_v34 = vadd.f32 %v10937_v36, %v3226_v9  ;;  %v2748_v58 = vmul.f32 %v9192_v3, %v10754_v55  ;;  %v3441_v4 = vadd.f32 %v3417_v31, %v3273_v2  ;;  %v3082_v41 = vmul.f32 %v10932_v10, %v10733_v1 }
 0x3a6   :  { %v3395_v61 = vadd.f32 %v10939_v21, %v3227_v43  ;;  %v2749_v29 = vmul.f32 %v10938_v12, %v10768_v37  ;;  %v6402_v20 = vpop.eup %6401  ;;  %v3083_v45 = vmul.f32 %v10933_v32, %v10737_v11  ;;  %v2892_v23 = vadd.f32 %v9270_v62, %v2724_v48 }
 0x3a7   :  { %6409 = vrcp.f32 %v3394_v34  ;;  %v2893_v24 = vadd.f32 %v10940_v0, %v2725_v15  ;;  %v6404_v38 = vpop.eup %6403  ;;  %v3488_v55 = vmul.f32 %v6402_v20, %v3440_v51  ;;  %v3106_v3 = vadd.f32 %v3082_v41, %v2938_v59  ;;  %v10943_v41 = vld [vmem:[#allocation3_spill] sm:$0xff]  ;;  %v3710_v20 = vld [vmem:[%s10428_s0 + $0x10] sm:$0xff] }
 0x3a8   :  { %6411 = vrcp.f32 %v3395_v61  ;;  %v2772_v39 = vadd.f32 %v2748_v58, %v2580_v47  ;;  %v3489_v1 = vmul.f32 %v6404_v38, %v3441_v4  ;;  %v3107_v53 = vadd.f32 %v3083_v45, %v2939_v25 }
 0x3a9   :  { %v2773_v60 = vadd.f32 %v2749_v29, %v2581_v16  ;;  %v3060_v50 = vadd.f32 %v6400_v49, %v2892_v23  ;;  %v6406_v56 = vpop.eup %6405  ;;  %v3250_v37 = vmul.f32 %v10934_v52, %v10739_v44  ;;  %v2916_v11 = vmul.f32 %v9270_v62, %v10770_v5  ;;  %v3709_v29 = vld [vmem:[%s10428_s0 + $0x8] sm:$0xff] }
 0x3aa   :  { %v3061_v22 = vadd.f32 %v9059_v40, %v2893_v24  ;;  %v3504_v57 = vpack.c.bf16 %v3489_v1, %v3488_v55  ;;  %v3251_v46 = vmul.f32 %v10935_v54, %v10748_v19  ;;  %v2917_v13 = vmul.f32 %v10940_v0, %v10772_v30  ;;  %v10942_v19 = vld [vmem:[#allocation66_spill] sm:$0xff] }
 0x3ab   :  { %v3228_v42 = vadd.f32 %v6406_v56, %v3060_v50  ;;  %v6408_v10 = vpop.eup %6407  ;;  %v3274_v18 = vadd.f32 %v3250_v37, %v3106_v3  ;;  %v2940_v2 = vadd.f32 %v2916_v11, %v2772_v39  ;;  %v3418_v62 = vmul.f32 %v10937_v36, %v10750_v27  ;;  %v3711_v1 = vld [vmem:[%s10428_s0 + $0x18] sm:$0xff]  ;;  %v3712_v11 = vld [vmem:[%s10428_s0 + $0x20] sm:$0xff] }
 0x3ac   :  { %v3229_v32 = vadd.f32 %v10941_v6, %v3061_v22  ;;  %5880 = vmatmul.mubr.msk.bf16.gmra.mrb[100].mxu0 %vm189_vm0, %v3504_v57  ;;  %v3275_v44 = vadd.f32 %v3251_v46, %v3107_v53  ;;  %v2941_v63 = vadd.f32 %v2917_v13, %v2773_v60  ;;  %v3084_v31 = vmul.f32 %v6400_v49, %v10777_v35  ;;  %v5250_v22 = vld [vmem:[%s10429_s1 + $0x1] ss:$0 sm:$0xff] }
 0x3ad   :  { %v3396_v5 = vadd.f32 %v6408_v10, %v3228_v42  ;;  %v3419_v30 = vmul.f32 %v10939_v21, %v10831_v33  ;;  %v3085_v59 = vmul.f32 %v9059_v40, %v10781_v14  ;;  %v3442_v52 = vadd.f32 %v3418_v62, %v3274_v18  ;;  %v3713_v42 = vld [vmem:[%s10428_s0 + $0x28] sm:$0xff] }
 0x3ae   :  { %v3397_v51 = vadd.f32 %v10942_v19, %v3229_v32  ;;  %v3108_v9 = vadd.f32 %v3084_v31, %v2940_v2  ;;  %v3252_v27 = vmul.f32 %v6406_v56, %v10790_v28  ;;  %v3253_v49 = vmul.f32 %v10941_v6, %v10792_v7  ;;  %v9364_v7 = vld [vmem:[%s10433_s6] sm:$0xff] }
 0x3af   :  { %6413 = vrcp.f32 %v3396_v5  ;;  %v3443_v54 = vadd.f32 %v3419_v30, %v3275_v44  ;;  %v3109_v43 = vadd.f32 %v3085_v59, %v2941_v63  ;;  %v3420_v14 = vmul.f32 %v6408_v10, %v10797_v8  ;;  %v3708_v8 = vld [vmem:[%s10428_s0] sm:$0xff]  ;;  %v3714_v10 = vld [vmem:[%s10428_s0 + $0x30] sm:$0xff]  ;;  %v3715_v30 = vld [vmem:[%s10428_s0 + $0x38] sm:$0xff] }
 0x3b0   :  { %6415 = vrcp.f32 %v3397_v51  ;;  %v3276_v16 = vadd.f32 %v3252_v27, %v3108_v9  ;;  %v3421_v40 = vmul.f32 %v10942_v19, %v10806_v17  ;;  %v5249_v17 = vld [vmem:[%s10429_s1] ss:$0 sm:$0xff]  ;;  %v10944_v21 = vsub.s32 0, %v10943_v41 }
 0x3b1   :  { %v6410_v25 = vpop.eup %6409  ;;  %v3277_v36 = vadd.f32 %v3253_v49, %v3109_v43  ;;  %v3774_v23 = vadd.f32 %v5249_v17, %v3708_v8  ;;  %v3775_v3 = vadd.f32 %v5249_v17, %v3709_v29  ;;  %v3776_v39 = vadd.f32 %v5249_v17, %v3710_v20  ;;  %v5251_v49 = vld [vmem:[%s10429_s1 + $0x2] ss:$0 sm:$0xff] }
 0x3b2   :  { %v6412_v47 = vpop.eup %6411  ;;  %v3490_v26 = vmul.f32 %v6410_v25, %v3442_v52  ;;  %v3444_v34 = vadd.f32 %v3420_v14, %v3276_v16  ;;  %v9375_v61 = vrot.slane %v9364_v7, %v10944_v21  ;;  %v3777_v37 = vadd.f32 %v5249_v17, %v3711_v1  ;;  %v3717_v16 = vld [vmem:[%s10428_s0 + $0x48] sm:$0xff] }
 0x3b3   :  { %v3491_v35 = vmul.f32 %v6412_v47, %v3443_v54  ;;  %v3445_v12 = vadd.f32 %v3421_v40, %v3277_v36  ;;  %v3778_v6 = vadd.f32 %v5250_v22, %v3712_v11  ;;  %v3779_v63 = vadd.f32 %v5250_v22, %v3713_v42  ;;  %v3722_v11 = vld [vmem:[%s10428_s0 + $0x70] sm:$0xff] }
 0x3b4   :  { %v3780_v51 = vadd.f32 %v5250_v22, %v3714_v10  ;;  %v3781_v54 = vadd.f32 %v5250_v22, %v3715_v30  ;;  %v3783_v8 = vadd.f32 %v5251_v49, %v3717_v16  ;;  %v3723_v10 = vld [vmem:[%s10428_s0 + $0x78] sm:$0xff]  ;;  %v3725_v16 = vld [vmem:[%s10428_s0 + $0x88] sm:$0xff] }
 0x3b5   :  { %v3505_v33 = vpack.c.bf16 %v3491_v35, %v3490_v26  ;;  %v3716_v35 = vld [vmem:[%s10428_s0 + $0x40] sm:$0xff] }
 0x3b7   :  { %5883 = vmatprep.mubr.msk.bf16.mxu0 %vm189_vm0, %v3505_v33  ;;  %v3718_v33 = vld [vmem:[%s10428_s0 + $0x50] sm:$0xff] }
 0x3b8   :  { %v3784_v17 = vadd.f32 %v5251_v49, %v3718_v33  ;;  %v3726_v33 = vld [vmem:[%s10428_s0 + $0x90] sm:$0xff] }
 0x3b9   :  { %v6414_v48 = vpop.eup %6413 }
 0x3ba   :  { %v6416_v15 = vpop.eup %6415  ;;  %v3492_v58 = vmul.f32 %v6414_v48, %v3444_v34  ;;  %v3782_v48 = vadd.f32 %v5251_v49, %v3716_v35  ;;  %v3724_v35 = vld [vmem:[%s10428_s0 + $0x80] sm:$0xff] }
 0x3bb   :  { %v3493_v28 = vmul.f32 %v6416_v15, %v3445_v12  ;;  %v3719_v12 = vld [vmem:[%s10428_s0 + $0x58] sm:$0xff] }
 0x3bc   :  { %v3785_v29 = vadd.f32 %v5251_v49, %v3719_v12  ;;  %v5253_v49 = vld [vmem:[%s10429_s1 + $0x4] ss:$0 sm:$0xff] }
 0x3bd   :  { %v3506_v4 = vpack.c.bf16 %v3493_v28, %v3492_v58 }
 0x3bf   :  { %5884 = vmatmul.mubr.msk.bf16.gmra.mrb[104].mxu0 %vm189_vm0, %v3506_v4 }
 0x448   :  { %v5865_v45 = vpop.f32.mrb[84].mxu0 }
 0x449   :  { %v3613_v0 = vpop.f32.mrb[85].mxu0  ;;  %v3622_v24 = vadd.f32 %v5865_v45, %v9375_v61 }
 0x44a   :  { %v3614_v38 = vadd.f32 %v3613_v0, %v9375_v61  ;;  %v5866_v55 = vpop.f32.mrb[86].mxu0 }
 0x44b   :  { %v3616_v53 = vpop.f32.mrb[87].mxu0  ;;  %v3625_v56 = vadd.f32 %v5866_v55, %v9375_v61  ;;  %v9402_v13 = vadd.f32 %v3776_v39, %v3622_v24 }
 0x44c   :  { %v3617_v60 = vadd.f32 %v3616_v53, %v9375_v61  ;;  %v9389_v50 = vadd.f32 %v3774_v23, %v3614_v38 }
 0x44d   :  { %v9412_v44 = vadd.f32 %v3777_v37, %v3625_v56  ;;  %v3828_v19 = vsel %vm189_vm0, %v9402_v13, 0.0  ;;  %v5252_v56 = vld [vmem:[%s10429_s1 + $0x3] ss:$0 sm:$0xff]  ;;  %v3721_v37 = vld [vmem:[%s10428_s0 + $0x68] sm:$0xff] }
 0x44e   :  { %v3822_v57 = vsel %vm189_vm0, %v9389_v50, 0.0  ;;  %v9400_v46 = vadd.f32 %v3775_v3, %v3617_v60  ;;  %v3720_v60 = vld [vmem:[%s10428_s0 + $0x60] sm:$0xff] }
 0x44f   :  { %3823 = vadd.xlane.f32.xlu0 %v3822_v57  ;;  %v3831_v25 = vsel %vm189_vm0, %v9412_v44, 0.0  ;;  %v3786_v57 = vadd.f32 %v5252_v56, %v3720_v60 }
 0x450   :  { %v5869_v18 = vpop.f32.mrb[88].mxu0  ;;  %v3825_v2 = vsel %vm189_vm0, %v9400_v46, 0.0 }
 0x451   :  { %3826 = vadd.xlane.f32.xlu1 %v3825_v2  ;;  %v3629_v32 = vpop.f32.mrb[89].mxu0  ;;  %v3638_v5 = vadd.f32 %v5869_v18, %v9375_v61 }
 0x452   :  { %v3630_v62 = vadd.f32 %v3629_v32, %v9375_v61  ;;  %v5870_v31 = vpop.f32.mrb[90].mxu0  ;;  %v3787_v32 = vadd.f32 %v5252_v56, %v3721_v37  ;;  %v5254_v37 = vld [vmem:[%s10429_s1 + $0x5] ss:$0 sm:$0xff] }
 0x453   :  { %3829 = vadd.xlane.f32.xlu0 %v3828_v19  ;;  %v3632_v59 = vpop.f32.mrb[91].mxu0  ;;  %v3641_v43 = vadd.f32 %v5870_v31, %v9375_v61  ;;  %v9431_v27 = vadd.f32 %v3780_v51, %v3638_v5  ;;  %v3789_v51 = vadd.f32 %v5252_v56, %v3723_v10 }
 0x454   :  { %v3633_v52 = vadd.f32 %v3632_v59, %v9375_v61  ;;  %v9422_v9 = vadd.f32 %v3778_v6, %v3630_v62 }
 0x455   :  { %v3840_v40 = vsel %vm189_vm0, %v9431_v27, 0.0  ;;  %v9449_v34 = vadd.f32 %v3781_v54, %v3641_v43 }
 0x456   :  { %v3834_v47 = vsel %vm189_vm0, %v9422_v9, 0.0  ;;  %v9429_v26 = vadd.f32 %v3779_v63, %v3633_v52  ;;  %v3788_v63 = vadd.f32 %v5252_v56, %v3722_v11  ;;  %v3728_v56 = vld [vmem:[%s10428_s0 + $0xa0] sm:$0xff]  ;;  %v3729_v11 = vld [vmem:[%s10428_s0 + $0xa8] sm:$0xff] }
 0x457   :  { %3832 = vadd.xlane.f32.xlu0 %v3831_v25  ;;  %3835 = vadd.xlane.f32.xlu1 %v3834_v47  ;;  %v3843_v23 = vsel %vm189_vm0, %v9449_v34, 0.0 }
 0x458   :  { %v3837_v14 = vsel %vm189_vm0, %v9429_v26, 0.0 }
 0x45a   :  { %v5873_v36 = vpop.f32.mrb[92].mxu0 }
 0x45b   :  { %v3645_v15 = vpop.f32.mrb[93].mxu0  ;;  %3838 = vadd.xlane.f32.xlu0 %v3837_v14  ;;  %3841 = vadd.xlane.f32.xlu1 %v3840_v40  ;;  %v3654_v58 = vadd.f32 %v5873_v36, %v9375_v61  ;;  %v3790_v14 = vadd.f32 %v5253_v49, %v3724_v35 }
 0x45c   :  { %v3646_v28 = vadd.f32 %v3645_v15, %v9375_v61  ;;  %v5874_v4 = vpop.f32.mrb[94].mxu0 }
 0x45d   :  { %v3648_v21 = vpop.f32.mrb[95].mxu0  ;;  %v3657_v20 = vadd.f32 %v5874_v4, %v9375_v61  ;;  %v9466_v55 = vadd.f32 %v3784_v17, %v3654_v58  ;;  %v3792_v4 = vadd.f32 %v5253_v49, %v3726_v33 }
 0x45e   :  { %v3649_v45 = vadd.f32 %v3648_v21, %v9375_v61  ;;  %v9460_v0 = vadd.f32 %v3782_v48, %v3646_v28  ;;  %v3727_v48 = vld [vmem:[%s10428_s0 + $0x98] sm:$0xff]  ;;  %v3791_v28 = vadd.f32 %v5253_v49, %v3725_v16 }
 0x45f   :  { %3844 = vadd.xlane.f32.xlu0 %v3843_v23  ;;  %v9470_v39 = vadd.f32 %v3785_v29, %v3657_v20  ;;  %v3852_v1 = vsel %vm189_vm0, %v9466_v55, 0.0  ;;  %v3793_v20 = vadd.f32 %v5253_v49, %v3727_v48 }
 0x460   :  { %v3846_v24 = vsel %vm189_vm0, %v9460_v0, 0.0  ;;  %v9464_v38 = vadd.f32 %v3783_v8, %v3649_v45 }
 0x461   :  { %3847 = vadd.xlane.f32.xlu1 %v3846_v24  ;;  %v3855_v53 = vsel %vm189_vm0, %v9470_v39, 0.0 }
 0x462   :  { %v3849_v3 = vsel %vm189_vm0, %v9464_v38, 0.0 }
 0x463   :  { %3850 = vadd.xlane.f32.xlu0 %v3849_v3 }
 0x465   :  { %3853 = vadd.xlane.f32.xlu1 %v3852_v1 }
 0x467   :  { %3856 = vadd.xlane.f32.xlu0 %v3855_v53 }
 0x46d   :  { %v5877_v22 = vpop.f32.mrb[96].mxu0 }
 0x46e   :  { %v3661_v42 = vpop.f32.mrb[97].mxu0  ;;  %v3670_v18 = vadd.f32 %v5877_v22, %v9375_v61  ;;  %v3730_v22 = vld [vmem:[%s10428_s0 + $0xb0] sm:$0xff] }
 0x46f   :  { %v3662_v2 = vadd.f32 %v3661_v42, %v9375_v61  ;;  %v5878_v6 = vpop.f32.mrb[98].mxu0  ;;  %v3794_v42 = vadd.f32 %v5254_v37, %v3728_v56 }
 0x470   :  { %v3664_v5 = vpop.f32.mrb[99].mxu0  ;;  %v3673_v62 = vadd.f32 %v5878_v6, %v9375_v61  ;;  %v9501_v52 = vadd.f32 %v3788_v63, %v3670_v18  ;;  %v3731_v18 = vld [vmem:[%s10428_s0 + $0xb8] sm:$0xff]  ;;  %v3795_v63 = vadd.f32 %v5254_v37, %v3729_v11 }
 0x471   :  { %v3665_v31 = vadd.f32 %v3664_v5, %v9375_v61  ;;  %v9495_v19 = vadd.f32 %v3786_v57, %v3662_v2  ;;  %v3796_v5 = vadd.f32 %v5254_v37, %v3730_v22 }
 0x472   :  { %v9505_v54 = vadd.f32 %v3789_v51, %v3673_v62  ;;  %v3864_v43 = vsel %vm189_vm0, %v9501_v52, 0.0 }
 0x473   :  { %v3858_v30 = vsel %vm189_vm0, %v9495_v19, 0.0  ;;  %v9499_v59 = vadd.f32 %v3787_v32, %v3665_v31 }
 0x474   :  { %3859 = vadd.xlane.f32.xlu1 %v3858_v30  ;;  %v3867_v47 = vsel %vm189_vm0, %v9505_v54, 0.0 }
 0x475   :  { %v3861_v25 = vsel %vm189_vm0, %v9499_v59, 0.0 }
 0x476   :  { %3862 = vadd.xlane.f32.xlu0 %v3861_v25  ;;  %v3797_v25 = vadd.f32 %v5254_v37, %v3731_v18 }
 0x478   :  { %3865 = vadd.xlane.f32.xlu1 %v3864_v43 }
 0x47a   :  { %3868 = vadd.xlane.f32.xlu0 %v3867_v47 }
 0x47f   :  { %v5881_v36 = vpop.f32.mrb[100].mxu0 }
 0x480   :  { %v3677_v40 = vpop.f32.mrb[101].mxu0  ;;  %v3686_v12 = vadd.f32 %v5881_v36, %v9375_v61  ;;  %v6073_v36 = vld [vmem:[%s10432_s5 + $0x20] sm:$0xff]  }
 0x481   :  { %v3678_v15 = vadd.f32 %v3677_v40, %v9375_v61  ;;  %v5882_v58 = vpop.f32.mrb[102].mxu0  ;;  %5887 = vmatprep.subr.bf16.mxu1 %v6073_v36 }
 0x482   :  { %v3680_v8 = vpop.f32.mrb[103].mxu0  ;;  %v3689_v17 = vadd.f32 %v5882_v58, %v9375_v61  ;;  %v9536_v24 = vadd.f32 %v3792_v4, %v3686_v12  ;;  %5888 = vmatpush3.bf16.msra.mxu1 %v6073_v36 }
 0x483   :  { %v3681_v21 = vadd.f32 %v3680_v8, %v9375_v61  ;;  %v9530_v29 = vadd.f32 %v3790_v14, %v3678_v15  ;;  %v6074_v14 = vld [vmem:[%s10432_s5 + $0x28] sm:$0xff]  }
 0x484   :  { %v9540_v1 = vadd.f32 %v3793_v20, %v3689_v17  ;;  %v3876_v53 = vsel %vm189_vm0, %v9536_v24, 0.0  ;;  %5889 = vmatprep.subr.bf16.mxu1 %v6074_v14 }
 0x485   :  { %v3870_v45 = vsel %vm189_vm0, %v9530_v29, 0.0  ;;  %v9534_v23 = vadd.f32 %v3791_v28, %v3681_v21 }
 0x486   :  { %3871 = vadd.xlane.f32.xlu1 %v3870_v45  ;;  %v3879_v60 = vsel %vm189_vm0, %v9540_v1, 0.0  ;;  %5890 = vmatpush3.bf16.msra.mxu1 %v6074_v14 }
 0x487   :  { %v3873_v3 = vsel %vm189_vm0, %v9534_v23, 0.0 }
 0x488   :  { %3874 = vadd.xlane.f32.xlu0 %v3873_v3 }
 0x48a   :  { %3877 = vadd.xlane.f32.xlu1 %v3876_v53 }
 0x48c   :  { %3880 = vadd.xlane.f32.xlu0 %v3879_v60 }
 0x492   :  { %v5885_v57 = vpop.f32.mrb[104].mxu0 }
 0x493   :  { %v3693_v10 = vpop.f32.mrb[105].mxu0  ;;  %v3702_v2 = vadd.f32 %v5885_v57, %v9375_v61 }
 0x494   :  { %v3694_v6 = vadd.f32 %v3693_v10, %v9375_v61  ;;  %v5886_v32 = vpop.f32.mrb[106].mxu0 }
 0x495   :  { %v3696_v62 = vpop.f32.mrb[107].mxu0  ;;  %v3705_v31 = vadd.f32 %v5886_v32, %v9375_v61  ;;  %v9571_v35 = vadd.f32 %v3796_v5, %v3702_v2 }
 0x496   :  { %v3697_v51 = vadd.f32 %v3696_v62, %v9375_v61  ;;  %v9565_v30 = vadd.f32 %v3794_v42, %v3694_v6 }
 0x497   :  { %v9575_v16 = vadd.f32 %v3797_v25, %v3705_v31  ;;  %v3888_v61 = vsel %vm189_vm0, %v9571_v35, 0.0 }
 0x498   :  { %v3882_v43 = vsel %vm189_vm0, %v9565_v30, 0.0  ;;  %v9569_v47 = vadd.f32 %v3795_v63, %v3697_v51 }
 0x499   :  { %3883 = vadd.xlane.f32.xlu1 %v3882_v43  ;;  %v3891_v33 = vsel %vm189_vm0, %v9575_v16, 0.0 }
 0x49a   :  { %v3885_v49 = vsel %vm189_vm0, %v9569_v47, 0.0 }
 0x49b   :  { %3886 = vadd.xlane.f32.xlu0 %v3885_v49 }
 0x49d   :  { %3889 = vadd.xlane.f32.xlu1 %v3888_v61 }
 0x49f   :  { %3892 = vadd.xlane.f32.xlu0 %v3891_v33 }
 0x4dc   :  { %v3824_v40 = vpop.xlane.xlu0 %3823 }
 0x4dd   :  { %v3895_v48 = vmul.f32 0.015625, %v3824_v40 }
 0x4de   :  { %v3827_v12 = vpop.xlane.xlu1 %3826 }
 0x4df   :  { %v9588_v15 = vsub.f32 %v9389_v50, %v3895_v48  ;;  %v3896_v58 = vmul.f32 0.015625, %v3827_v12 }
 0x4e0   :  { %v3830_v28 = vpop.xlane.xlu0 %3829 }
 0x4e1   :  { %v9591_v4 = vsub.f32 %v9400_v46, %v3896_v58  ;;  %v3897_v8 = vmul.f32 0.015625, %v3830_v28  ;;  %v3943_v17 = vmul.f32 %v9588_v15, %v9588_v15 }
 0x4e3   :  { %v9596_v21 = vsub.f32 %v9402_v13, %v3897_v8  ;;  %v3967_v20 = vsel %vm189_vm0, %v3943_v17, 0.0  ;;  %v3944_v45 = vmul.f32 %v9591_v4, %v9591_v4 }
 0x4e4   :  { %v3833_v3 = vpop.xlane.xlu0 %3832  ;;  %v3836_v50 = vpop.xlane.xlu1 %3835  ;;  %3968 = vadd.xlane.f32.xlu1 %v3967_v20 }
 0x4e5   :  { %v3898_v53 = vmul.f32 0.015625, %v3833_v3  ;;  %v3899_v60 = vmul.f32 0.015625, %v3836_v50  ;;  %v3970_v46 = vsel %vm189_vm0, %v3944_v45, 0.0  ;;  %v3945_v56 = vmul.f32 %v9596_v21, %v9596_v21 }
 0x4e6   :  { %3971 = vadd.xlane.f32.xlu0 %v3970_v46 }
 0x4e7   :  { %v9605_v37 = vsub.f32 %v9412_v44, %v3898_v53  ;;  %v9608_v13 = vsub.f32 %v9422_v9, %v3899_v60  ;;  %v3973_v11 = vsel %vm189_vm0, %v3945_v56, 0.0 }
 0x4e8   :  { %v3839_v22 = vpop.xlane.xlu0 %3838  ;;  %v3842_v57 = vpop.xlane.xlu1 %3841  ;;  %3974 = vadd.xlane.f32.xlu1 %v3973_v11 }
 0x4e9   :  { %v3900_v42 = vmul.f32 0.015625, %v3839_v22  ;;  %v3901_v10 = vmul.f32 0.015625, %v3842_v57  ;;  %v3946_v18 = vmul.f32 %v9605_v37, %v9605_v37  ;;  %v3947_v2 = vmul.f32 %v9608_v13, %v9608_v13 }
 0x4eb   :  { %v9616_v6 = vsub.f32 %v9429_v26, %v3900_v42  ;;  %v9619_v44 = vsub.f32 %v9431_v27, %v3901_v10  ;;  %v3976_v9 = vsel %vm189_vm0, %v3946_v18, 0.0  ;;  %v3979_v32 = vsel %vm189_vm0, %v3947_v2, 0.0 }
 0x4ec   :  { %v3845_v63 = vpop.xlane.xlu0 %3844  ;;  %3977 = vadd.xlane.f32.xlu0 %v3976_v9  ;;  %3980 = vadd.xlane.f32.xlu1 %v3979_v32 }
 0x4ed   :  { %v3902_v5 = vmul.f32 0.015625, %v3845_v63  ;;  %v3948_v62 = vmul.f32 %v9616_v6, %v9616_v6  ;;  %v3949_v31 = vmul.f32 %v9619_v44, %v9619_v44 }
 0x4ee   :  { %v3848_v51 = vpop.xlane.xlu1 %3847 }
 0x4ef   :  { %v9628_v26 = vsub.f32 %v9449_v34, %v3902_v5  ;;  %v3903_v27 = vmul.f32 0.015625, %v3848_v51  ;;  %v3982_v25 = vsel %vm189_vm0, %v3948_v62, 0.0  ;;  %v3985_v43 = vsel %vm189_vm0, %v3949_v31, 0.0  ;;  %v6076_v51 = vld [vmem:[%s10432_s5 + $0x38] sm:$0xff]  }
 0x4f0   :  { %v3851_v49 = vpop.xlane.xlu0 %3850  ;;  %3983 = vadd.xlane.f32.xlu0 %v3982_v25  ;;  %3986 = vadd.xlane.f32.xlu1 %v3985_v43 }
 0x4f1   :  { %v9633_v61 = vsub.f32 %v9460_v0, %v3903_v27  ;;  %v3904_v33 = vmul.f32 0.015625, %v3851_v49  ;;  %v3950_v36 = vmul.f32 %v9628_v26, %v9628_v26 }
 0x4f2   :  { %v3854_v14 = vpop.xlane.xlu1 %3853 }
 0x4f3   :  { %v9638_v40 = vsub.f32 %v9464_v38, %v3904_v33  ;;  %v3905_v34 = vmul.f32 0.015625, %v3854_v14  ;;  %v3988_v48 = vsel %vm189_vm0, %v3950_v36, 0.0  ;;  %v3951_v12 = vmul.f32 %v9633_v61, %v9633_v61 }
 0x4f4   :  { %v3857_v58 = vpop.xlane.xlu0 %3856  ;;  %3989 = vadd.xlane.f32.xlu0 %v3988_v48 }
 0x4f5   :  { %v9644_v28 = vsub.f32 %v9466_v55, %v3905_v34  ;;  %v3906_v0 = vmul.f32 0.015625, %v3857_v58  ;;  %v3991_v8 = vsel %vm189_vm0, %v3951_v12, 0.0  ;;  %v3952_v17 = vmul.f32 %v9638_v40, %v9638_v40 }
 0x4f6   :  { %3992 = vadd.xlane.f32.xlu1 %v3991_v8 }
 0x4f7   :  { %v9650_v38 = vsub.f32 %v9470_v39, %v3906_v0  ;;  %v3994_v20 = vsel %vm189_vm0, %v3952_v17, 0.0  ;;  %v3953_v45 = vmul.f32 %v9644_v28, %v9644_v28 }
 0x4f8   :  { %3995 = vadd.xlane.f32.xlu0 %v3994_v20 }
 0x4f9   :  { %v3997_v3 = vsel %vm189_vm0, %v3953_v45, 0.0  ;;  %v3954_v55 = vmul.f32 %v9650_v38, %v9650_v38 }
 0x4fa   :  { %3998 = vadd.xlane.f32.xlu1 %v3997_v3 }
 0x4fb   :  { %v4000_v50 = vsel %vm189_vm0, %v3954_v55, 0.0 }
 0x4fc   :  { %4001 = vadd.xlane.f32.xlu0 %v4000_v50 }
 0x501   :  { %v3860_v53 = vpop.xlane.xlu1 %3859 }
 0x502   :  { %v3907_v60 = vmul.f32 0.015625, %v3860_v53 }
 0x503   :  { %v3863_v46 = vpop.xlane.xlu0 %3862 }
 0x504   :  { %v9660_v39 = vsub.f32 %v9495_v19, %v3907_v60  ;;  %v3908_v56 = vmul.f32 0.015625, %v3863_v46 }
 0x505   :  { %v3866_v11 = vpop.xlane.xlu1 %3865 }
 0x506   :  { %v9663_v22 = vsub.f32 %v9499_v59, %v3908_v56  ;;  %v3909_v57 = vmul.f32 0.015625, %v3866_v11  ;;  %v3955_v42 = vmul.f32 %v9660_v39, %v9660_v39 }
 0x507   :  { %v3869_v10 = vpop.xlane.xlu0 %3868 }
 0x508   :  { %v9668_v18 = vsub.f32 %v9501_v52, %v3909_v57  ;;  %v3910_v2 = vmul.f32 0.015625, %v3869_v10  ;;  %v4003_v9 = vsel %vm189_vm0, %v3955_v42, 0.0  ;;  %v3956_v19 = vmul.f32 %v9663_v22, %v9663_v22  ;;  %v6075_v52 = vld [vmem:[%s10432_s5 + $0x30] sm:$0xff]  }
 0x509   :  { %4004 = vadd.xlane.f32.xlu1 %v4003_v9  ;;  %5891 = vmatprep.subr.bf16.mxu1 %v6075_v52 }
 0x50a   :  { %v9674_v32 = vsub.f32 %v9505_v54, %v3910_v2  ;;  %v4006_v59 = vsel %vm189_vm0, %v3956_v19, 0.0  ;;  %v3957_v63 = vmul.f32 %v9668_v18, %v9668_v18  ;;  %5892 = vmatpush3.bf16.msra.mxu1 %v6075_v52  ;;  %v6078_v52 = vld [vmem:[%s10432_s5 + $0x48] sm:$0xff]  }
 0x50b   :  { %4007 = vadd.xlane.f32.xlu0 %v4006_v59  ;;  %5893 = vmatprep.subr.bf16.mxu1 %v6076_v51 }
 0x50c   :  { %v4009_v5 = vsel %vm189_vm0, %v3957_v63, 0.0  ;;  %v3958_v62 = vmul.f32 %v9674_v32, %v9674_v32 }
 0x50d   :  { %4010 = vadd.xlane.f32.xlu1 %v4009_v5  ;;  %v6079_v5 = vld [vmem:[%s10432_s5 + $0x50] sm:$0xff]  }
 0x50e   :  { %v4012_v54 = vsel %vm189_vm0, %v3958_v62, 0.0  ;;  %5894 = vmatpush3.bf16.msra.mxu1 %v6076_v51  ;;  %v6080_v62 = vld [vmem:[%s10432_s5 + $0x58] sm:$0xff]  }
 0x50f   :  { %4013 = vadd.xlane.f32.xlu0 %v4012_v54 }
 0x513   :  { %v3872_v31 = vpop.xlane.xlu1 %3871 }
 0x514   :  { %v3911_v27 = vmul.f32 0.015625, %v3872_v31 }
 0x515   :  { %v3875_v25 = vpop.xlane.xlu0 %3874 }
 0x516   :  { %v9690_v43 = vsub.f32 %v9530_v29, %v3911_v27  ;;  %v3912_v49 = vmul.f32 0.015625, %v3875_v25 }
 0x517   :  { %v3878_v33 = vpop.xlane.xlu1 %3877 }
 0x518   :  { %v9693_v36 = vsub.f32 %v9534_v23, %v3912_v49  ;;  %v3913_v14 = vmul.f32 0.015625, %v3878_v33  ;;  %v3959_v34 = vmul.f32 %v9690_v43, %v9690_v43 }
 0x519   :  { %v3881_v48 = vpop.xlane.xlu0 %3880 }
 0x51a   :  { %v9698_v12 = vsub.f32 %v9536_v24, %v3913_v14  ;;  %v3914_v58 = vmul.f32 0.015625, %v3881_v48  ;;  %v4015_v0 = vsel %vm189_vm0, %v3959_v34, 0.0  ;;  %v3960_v29 = vmul.f32 %v9693_v36, %v9693_v36 }
 0x51b   :  { %4016 = vadd.xlane.f32.xlu1 %v4015_v0 }
 0x51c   :  { %v9704_v8 = vsub.f32 %v9540_v1, %v3914_v58  ;;  %v4018_v23 = vsel %vm189_vm0, %v3960_v29, 0.0  ;;  %v3961_v17 = vmul.f32 %v9698_v12, %v9698_v12 }
 0x51d   :  { %4019 = vadd.xlane.f32.xlu0 %v4018_v23  ;;  %v4137_v23 = vsub.s32 3, %v10943_v41 }
 0x51e   :  { %v4021_v20 = vsel %vm189_vm0, %v3961_v17, 0.0  ;;  %v3962_v24 = vmul.f32 %v9704_v8, %v9704_v8 }
 0x51f   :  { %4022 = vadd.xlane.f32.xlu1 %v4021_v20 }
 0x520   :  { %v4024_v45 = vsel %vm189_vm0, %v3962_v24, 0.0 }
 0x521   :  { %4025 = vadd.xlane.f32.xlu0 %v4024_v45 }
 0x526   :  { %v3884_v3 = vpop.xlane.xlu1 %3883 }
 0x527   :  { %v3915_v55 = vmul.f32 0.015625, %v3884_v3 }
 0x528   :  { %v3887_v50 = vpop.xlane.xlu0 %3886 }
 0x529   :  { %v9714_v1 = vsub.f32 %v9565_v30, %v3915_v55  ;;  %v3916_v53 = vmul.f32 0.015625, %v3887_v50  ;;  %v9751_v50 = vrot.slane %v9364_v7, %v4137_v23 }
 0x52a   :  { %v3890_v60 = vpop.xlane.xlu1 %3889 }
 0x52b   :  { %v9717_v46 = vsub.f32 %v9569_v47, %v3916_v53  ;;  %v3917_v56 = vmul.f32 0.015625, %v3890_v60  ;;  %v3963_v11 = vmul.f32 %v9714_v1, %v9714_v1  ;;  %v4165_v53 = vsub.s32 4, %v10943_v41 }
 0x52c   :  { %v3893_v57 = vpop.xlane.xlu0 %3892 }
 0x52d   :  { %v9722_v42 = vsub.f32 %v9571_v35, %v3917_v56  ;;  %v3918_v10 = vmul.f32 0.015625, %v3893_v57  ;;  %v4027_v2 = vsel %vm189_vm0, %v3963_v11, 0.0  ;;  %v3964_v30 = vmul.f32 %v9717_v46, %v9717_v46 }
 0x52e   :  { %4028 = vadd.xlane.f32.xlu1 %v4027_v2 }
 0x52f   :  { %v9728_v9 = vsub.f32 %v9575_v16, %v3918_v10  ;;  %v4030_v47 = vsel %vm189_vm0, %v3964_v30, 0.0  ;;  %v3965_v19 = vmul.f32 %v9722_v42, %v9722_v42  ;;  %v6077_v16 = vld [vmem:[%s10432_s5 + $0x40] sm:$0xff]  }
 0x530   :  { %4031 = vadd.xlane.f32.xlu0 %v4030_v47  ;;  %5919 = vmatprep.subr.bf16.mxu0 %v6077_v16 }
 0x531   :  { %v4033_v59 = vsel %vm189_vm0, %v3965_v19, 0.0  ;;  %v3966_v35 = vmul.f32 %v9728_v9, %v9728_v9  ;;  %5920 = vmatpush3.bf16.msra.mxu0 %v6077_v16  ;;  %v9757_v19 = vrot.slane %v9364_v7, %v4165_v53 }
 0x532   :  { %4034 = vadd.xlane.f32.xlu1 %v4033_v59  ;;  %5921 = vmatprep.subr.bf16.mxu0 %v6078_v52 }
 0x533   :  { %v4036_v63 = vsel %vm189_vm0, %v3966_v35, 0.0 }
 0x534   :  { %4037 = vadd.xlane.f32.xlu0 %v4036_v63 }
 0x535   :  { %5922 = vmatpush3.bf16.msra.mxu0 %v6078_v52 }
 0x536   :  { %5923 = vmatprep.subr.bf16.mxu0 %v6079_v5 }
 0x539   :  { %5924 = vmatpush3.bf16.msra.mxu0 %v6079_v5 }
 0x53a   :  { %5925 = vmatprep.subr.bf16.mxu0 %v6080_v62 }
 0x53d   :  { %5926 = vmatpush3.bf16.msra.mxu0 %v6080_v62 }
 0x571   :  { %v3969_v54 = vpop.xlane.xlu1 %3968 }
 0x572   :  { %v4039_v31 = vmul.f32 0.015625, %v3969_v54 }
 0x573   :  { %v3972_v51 = vpop.xlane.xlu0 %3971 }
 0x574   :  { %v4063_v27 = vadd.f32 1e-05, %v4039_v31  ;;  %v4040_v25 = vmul.f32 0.015625, %v3972_v51 }
 0x575   :  { %v3975_v49 = vpop.xlane.xlu1 %3974 }
 0x576   :  { %6417 = vrsqrt.f32 %v4063_v27  ;;  %v4064_v33 = vadd.f32 1e-05, %v4040_v25  ;;  %v4041_v14 = vmul.f32 0.015625, %v3975_v49 }
 0x578   :  { %6419 = vrsqrt.f32 %v4064_v33  ;;  %v4065_v34 = vadd.f32 1e-05, %v4041_v14 }
 0x579   :  { %v3978_v48 = vpop.xlane.xlu0 %3977  ;;  %v3981_v58 = vpop.xlane.xlu1 %3980 }
 0x57a   :  { %6421 = vrsqrt.f32 %v4065_v34  ;;  %v4042_v0 = vmul.f32 0.015625, %v3978_v48  ;;  %v4043_v29 = vmul.f32 0.015625, %v3981_v58 }
 0x57c   :  { %v4066_v17 = vadd.f32 1e-05, %v4042_v0  ;;  %v4067_v20 = vadd.f32 1e-05, %v4043_v29 }
 0x57d   :  { %v3984_v24 = vpop.xlane.xlu0 %3983  ;;  %v3987_v45 = vpop.xlane.xlu1 %3986 }
 0x57e   :  { %6423 = vrsqrt.f32 %v4066_v17  ;;  %v4044_v3 = vmul.f32 0.015625, %v3984_v24  ;;  %v4045_v55 = vmul.f32 0.015625, %v3987_v45 }
 0x57f   :  { %6425 = vrsqrt.f32 %v4067_v20 }
 0x580   :  { %v6418_v60 = vpop.eup %6417  ;;  %v4068_v56 = vadd.f32 1e-05, %v4044_v3  ;;  %v4069_v11 = vadd.f32 1e-05, %v4045_v55 }
 0x581   :  { %v4111_v57 = vmul.f32 %v6418_v60, %v9588_v15  ;;  %v3990_v10 = vpop.xlane.xlu0 %3989 }
 0x582   :  { %v6420_v2 = vpop.eup %6419  ;;  %6427 = vrsqrt.f32 %v4068_v56  ;;  %v4046_v30 = vmul.f32 0.015625, %v3990_v10 }
 0x583   :  { %v4112_v47 = vmul.f32 %v6420_v2, %v9591_v4  ;;  %6429 = vrsqrt.f32 %v4069_v11  ;;  %v3993_v59 = vpop.xlane.xlu1 %3992  ;;  %v4139_v35 = vmul.f32 %v9751_v50, %v4111_v57 }
 0x584   :  { %v6422_v63 = vpop.eup %6421  ;;  %v4070_v16 = vadd.f32 1e-05, %v4046_v30  ;;  %v4047_v52 = vmul.f32 0.015625, %v3993_v59 }
 0x585   :  { %v4113_v5 = vmul.f32 %v6422_v63, %v9596_v21  ;;  %v3996_v62 = vpop.xlane.xlu0 %3995  ;;  %v4140_v15 = vmul.f32 %v9751_v50, %v4112_v47  ;;  %v9763_v4 = vadd.f32 %v9757_v19, %v4139_v35 }
 0x586   :  { %6431 = vrsqrt.f32 %v4070_v16  ;;  %v4071_v54 = vadd.f32 1e-05, %v4047_v52  ;;  %v4048_v31 = vmul.f32 0.015625, %v3996_v62 }
 0x587   :  { %v3999_v51 = vpop.xlane.xlu1 %3998  ;;  %v9766_v7 = vadd.f32 %v9757_v19, %v4140_v15  ;;  %v4141_v21 = vmul.f32 %v9751_v50, %v4113_v5 }
 0x588   :  { %v6424_v27 = vpop.eup %6423  ;;  %6433 = vrsqrt.f32 %v4071_v54  ;;  %v4072_v25 = vadd.f32 1e-05, %v4048_v31  ;;  %v4049_v49 = vmul.f32 0.015625, %v3999_v51 }
 0x589   :  { %v6426_v33 = vpop.eup %6425  ;;  %v4114_v14 = vmul.f32 %v6424_v27, %v9605_v37  ;;  %v4002_v34 = vpop.xlane.xlu0 %4001  ;;  %v4191_v48 = vpack.c.bf16 %v9766_v7, %v9763_v4  ;;  %v9776_v45 = vadd.f32 %v9757_v19, %v4141_v21 }
 0x58a   :  { %v4115_v58 = vmul.f32 %v6426_v33, %v9608_v13  ;;  %6435 = vrsqrt.f32 %v4072_v25  ;;  %v4073_v0 = vadd.f32 1e-05, %v4049_v49  ;;  %v4050_v29 = vmul.f32 0.015625, %v4002_v34 }
 0x58b   :  { %v4142_v23 = vmul.f32 %v9751_v50, %v4114_v14  ;;  %5895 = vmatprep.mubr.msk.bf16.mxu1 %vm189_vm0, %v4191_v48 }
 0x58c   :  { %v6428_v17 = vpop.eup %6427  ;;  %6437 = vrsqrt.f32 %v4073_v0  ;;  %v4074_v20 = vadd.f32 1e-05, %v4050_v29  ;;  %v4143_v13 = vmul.f32 %v9751_v50, %v4115_v58 }
 0x58d   :  { %v6430_v24 = vpop.eup %6429  ;;  %v9779_v37 = vadd.f32 %v9757_v19, %v4142_v23  ;;  %v4116_v3 = vmul.f32 %v6428_v17, %v9616_v6 }
 0x58e   :  { %v4117_v55 = vmul.f32 %v6430_v24, %v9619_v44  ;;  %6439 = vrsqrt.f32 %v4074_v20  ;;  %v9790_v57 = vadd.f32 %v9757_v19, %v4143_v13 }
 0x58f   :  { %v4192_v53 = vpack.c.bf16 %v9779_v37, %v9776_v45  ;;  %v4144_v60 = vmul.f32 %v9751_v50, %v4116_v3 }
 0x590   :  { %v6432_v56 = vpop.eup %6431  ;;  %v4145_v10 = vmul.f32 %v9751_v50, %v4117_v55 }
 0x591   :  { %v4118_v11 = vmul.f32 %v6432_v56, %v9628_v26  ;;  %5896 = vmatmul.mubr.msk.bf16.vlgmr.msra.gmra.mrb[108].mxu1 %vm189_vm0, %v4192_v53  ;;  %v9793_v6 = vadd.f32 %v9757_v19, %v4144_v60 }
 0x592   :  { %v6434_v44 = vpop.eup %6433  ;;  %v9803_v63 = vadd.f32 %v9757_v19, %v4145_v10 }
 0x593   :  { %v4119_v2 = vmul.f32 %v6434_v44, %v9633_v61  ;;  %v4193_v30 = vpack.c.bf16 %v9793_v6, %v9790_v57  ;;  %v4146_v47 = vmul.f32 %v9751_v50, %v4118_v11 }
 0x594   :  { %v6436_v59 = vpop.eup %6435 }
 0x595   :  { %v4120_v26 = vmul.f32 %v6436_v59, %v9638_v40  ;;  %5899 = vmatprep.mubr.msk.bf16.mxu1 %vm189_vm0, %v4193_v30  ;;  %v9806_v16 = vadd.f32 %v9757_v19, %v4146_v47  ;;  %v4147_v52 = vmul.f32 %v9751_v50, %v4119_v2 }
 0x596   :  { %v4005_v35 = vpop.xlane.xlu1 %4004  ;;  %v6438_v61 = vpop.eup %6437 }
 0x597   :  { %v4051_v5 = vmul.f32 0.015625, %v4005_v35  ;;  %v4121_v62 = vmul.f32 %v6438_v61, %v9644_v28  ;;  %v4194_v54 = vpack.c.bf16 %v9806_v16, %v9803_v63  ;;  %v4148_v40 = vmul.f32 %v9751_v50, %v4120_v26 }
 0x598   :  { %v4008_v15 = vpop.xlane.xlu0 %4007  ;;  %v6440_v31 = vpop.eup %6439  ;;  %v9816_v33 = vadd.f32 %v9757_v19, %v4147_v52 }
 0x599   :  { %v4075_v51 = vadd.f32 1e-05, %v4051_v5  ;;  %v4052_v27 = vmul.f32 0.015625, %v4008_v15  ;;  %v4122_v25 = vmul.f32 %v6440_v31, %v9650_v38  ;;  %5900 = vmatmul.mubr.msk.bf16.gmra.mrb[112].mxu1 %vm189_vm0, %v4194_v54  ;;  %v9819_v21 = vadd.f32 %v9757_v19, %v4148_v40 }
 0x59a   :  { %v4011_v49 = vpop.xlane.xlu1 %4010  ;;  %v4149_v28 = vmul.f32 %v9751_v50, %v4121_v62 }
 0x59b   :  { %6441 = vrsqrt.f32 %v4075_v51  ;;  %v4076_v14 = vadd.f32 1e-05, %v4052_v27  ;;  %v4053_v34 = vmul.f32 0.015625, %v4011_v49  ;;  %v4195_v58 = vpack.c.bf16 %v9819_v21, %v9816_v33 }
 0x59c   :  { %v4014_v48 = vpop.xlane.xlu0 %4013  ;;  %v4150_v38 = vmul.f32 %v9751_v50, %v4122_v25  ;;  %v9827_v23 = vadd.f32 %v9757_v19, %v4149_v28 }
 0x59d   :  { %6443 = vrsqrt.f32 %v4076_v14  ;;  %v4077_v0 = vadd.f32 1e-05, %v4053_v34  ;;  %v4054_v29 = vmul.f32 0.015625, %v4014_v48  ;;  %5903 = vmatprep.mubr.msk.bf16.mxu1 %vm189_vm0, %v4195_v58 }
 0x59e   :  { %v9830_v17 = vadd.f32 %v9757_v19, %v4150_v38 }
 0x59f   :  { %6445 = vrsqrt.f32 %v4077_v0  ;;  %v4078_v20 = vadd.f32 1e-05, %v4054_v29 }
 0x5a0   :  { %v4196_v24 = vpack.c.bf16 %v9830_v17, %v9827_v23 }
 0x5a1   :  { %6447 = vrsqrt.f32 %v4078_v20 }
 0x5a2   :  { %5904 = vmatmul.mubr.msk.bf16.gmra.mrb[116].mxu1 %vm189_vm0, %v4196_v24 }
 0x5a5   :  { %v6442_v3 = vpop.eup %6441 }
 0x5a6   :  { %v4123_v13 = vmul.f32 %v6442_v3, %v9660_v39 }
 0x5a7   :  { %v6444_v55 = vpop.eup %6443 }
 0x5a8   :  { %v4124_v53 = vmul.f32 %v6444_v55, %v9663_v22  ;;  %v4151_v60 = vmul.f32 %v9751_v50, %v4123_v13  ;;  %v4017_v11 = vpop.xlane.xlu1 %4016 }
 0x5a9   :  { %v6446_v56 = vpop.eup %6445  ;;  %v4055_v44 = vmul.f32 0.015625, %v4017_v11 }
 0x5aa   :  { %v4125_v10 = vmul.f32 %v6446_v56, %v9668_v18  ;;  %v4152_v2 = vmul.f32 %v9751_v50, %v4124_v53  ;;  %v4020_v47 = vpop.xlane.xlu0 %4019  ;;  %v9841_v59 = vadd.f32 %v9757_v19, %v4151_v60 }
 0x5ab   :  { %v6448_v30 = vpop.eup %6447  ;;  %v4079_v39 = vadd.f32 1e-05, %v4055_v44  ;;  %v4056_v35 = vmul.f32 0.015625, %v4020_v47 }
 0x5ac   :  { %v4126_v26 = vmul.f32 %v6448_v30, %v9674_v32  ;;  %v9845_v22 = vadd.f32 %v9757_v19, %v4152_v2  ;;  %v4023_v52 = vpop.xlane.xlu1 %4022  ;;  %v4153_v61 = vmul.f32 %v9751_v50, %v4125_v10 }
 0x5ad   :  { %6449 = vrsqrt.f32 %v4079_v39  ;;  %v4080_v18 = vadd.f32 1e-05, %v4056_v35  ;;  %v4057_v5 = vmul.f32 0.015625, %v4023_v52 }
 0x5ae   :  { %v4197_v62 = vpack.c.bf16 %v9845_v22, %v9841_v59  ;;  %v4026_v15 = vpop.xlane.xlu0 %4025  ;;  %v4154_v54 = vmul.f32 %v9751_v50, %v4126_v26  ;;  %v9853_v31 = vadd.f32 %v9757_v19, %v4153_v61 }
 0x5af   :  { %6451 = vrsqrt.f32 %v4080_v18  ;;  %v4081_v40 = vadd.f32 1e-05, %v4057_v5  ;;  %v4058_v32 = vmul.f32 0.015625, %v4026_v15 }
 0x5b0   :  { %5907 = vmatprep.mubr.msk.bf16.mxu1 %vm189_vm0, %v4197_v62  ;;  %v9856_v51 = vadd.f32 %v9757_v19, %v4154_v54 }
 0x5b1   :  { %6453 = vrsqrt.f32 %v4081_v40  ;;  %v4082_v27 = vadd.f32 1e-05, %v4058_v32 }
 0x5b2   :  { %v4198_v25 = vpack.c.bf16 %v9856_v51, %v9853_v31 }
 0x5b3   :  { %6455 = vrsqrt.f32 %v4082_v27 }
 0x5b4   :  { %5908 = vmatmul.mubr.msk.bf16.gmra.mrb[120].mxu1 %vm189_vm0, %v4198_v25 }
 0x5b7   :  { %v6450_v49 = vpop.eup %6449 }
 0x5b8   :  { %v4127_v28 = vmul.f32 %v6450_v49, %v9690_v43 }
 0x5b9   :  { %v6452_v14 = vpop.eup %6451 }
 0x5ba   :  { %v4128_v34 = vmul.f32 %v6452_v14, %v9693_v36  ;;  %v4155_v58 = vmul.f32 %v9751_v50, %v4127_v28 }
 0x5bb   :  { %v4029_v48 = vpop.xlane.xlu1 %4028  ;;  %v6454_v38 = vpop.eup %6453 }
 0x5bc   :  { %v4059_v0 = vmul.f32 0.015625, %v4029_v48  ;;  %v4129_v29 = vmul.f32 %v6454_v38, %v9698_v12  ;;  %v4156_v24 = vmul.f32 %v9751_v50, %v4128_v34  ;;  %v9868_v43 = vadd.f32 %v9757_v19, %v4155_v58  ;;  %v9916_v34 = vld [vmem:[%s10433_s6] sm:$0xff] }
 0x5bd   :  { %v4032_v20 = vpop.xlane.xlu0 %4031  ;;  %v6456_v3 = vpop.eup %6455 }
 0x5be   :  { %v4083_v13 = vadd.f32 1e-05, %v4059_v0  ;;  %v4060_v55 = vmul.f32 0.015625, %v4032_v20  ;;  %v4130_v53 = vmul.f32 %v6456_v3, %v9704_v8  ;;  %v9871_v36 = vadd.f32 %v9757_v19, %v4156_v24 }
 0x5bf   :  { %v4035_v60 = vpop.xlane.xlu1 %4034  ;;  %v4157_v56 = vmul.f32 %v9751_v50, %v4129_v29 }
 0x5c0   :  { %6457 = vrsqrt.f32 %v4083_v13  ;;  %v4084_v11 = vadd.f32 1e-05, %v4060_v55  ;;  %v4061_v12 = vmul.f32 0.015625, %v4035_v60  ;;  %v4199_v44 = vpack.c.bf16 %v9871_v36, %v9868_v43 }
 0x5c1   :  { %v4038_v10 = vpop.xlane.xlu0 %4037  ;;  %v4158_v2 = vmul.f32 %v9751_v50, %v4130_v53  ;;  %v9879_v47 = vadd.f32 %v9757_v19, %v4157_v56 }
 0x5c2   :  { %6459 = vrsqrt.f32 %v4084_v11  ;;  %v4085_v8 = vadd.f32 1e-05, %v4061_v12  ;;  %v4062_v30 = vmul.f32 0.015625, %v4038_v10  ;;  %5911 = vmatprep.mubr.msk.bf16.mxu1 %vm189_vm0, %v4199_v44 }
 0x5c3   :  { %v9882_v26 = vadd.f32 %v9757_v19, %v4158_v2 }
 0x5c4   :  { %6461 = vrsqrt.f32 %v4085_v8  ;;  %v4086_v39 = vadd.f32 1e-05, %v4062_v30 }
 0x5c5   :  { %v4200_v35 = vpack.c.bf16 %v9882_v26, %v9879_v47 }
 0x5c6   :  { %6463 = vrsqrt.f32 %v4086_v39 }
 0x5c7   :  { %5912 = vmatmul.mubr.msk.bf16.gmra.mrb[124].mxu1 %vm189_vm0, %v4200_v35 }
 0x5ca   :  { %v6458_v52 = vpop.eup %6457 }
 0x5cb   :  { %v4131_v61 = vmul.f32 %v6458_v52, %v9714_v1 }
 0x5cc   :  { %v6460_v18 = vpop.eup %6459 }
 0x5cd   :  { %v4132_v5 = vmul.f32 %v6460_v18, %v9717_v46  ;;  %v4159_v62 = vmul.f32 %v9751_v50, %v4131_v61 }
 0x5ce   :  { %v6462_v15 = vpop.eup %6461 }
 0x5cf   :  { %v4133_v54 = vmul.f32 %v6462_v15, %v9722_v42  ;;  %v4160_v40 = vmul.f32 %v9751_v50, %v4132_v5  ;;  %v9894_v25 = vadd.f32 %v9757_v19, %v4159_v62 }
 0x5d0   :  { %v6464_v32 = vpop.eup %6463 }
 0x5d1   :  { %v4134_v27 = vmul.f32 %v6464_v32, %v9728_v9  ;;  %v9897_v49 = vadd.f32 %v9757_v19, %v4160_v40  ;;  %v4161_v1 = vmul.f32 %v9751_v50, %v4133_v54 }
 0x5d3   :  { %v4201_v46 = vpack.c.bf16 %v9897_v49, %v9894_v25  ;;  %v4162_v28 = vmul.f32 %v9751_v50, %v4134_v27  ;;  %v9905_v42 = vadd.f32 %v9757_v19, %v4161_v1  ;;  %v10945_v50 = vsub.s32 1, %v10943_v41 }
 0x5d5   :  { %5915 = vmatprep.mubr.msk.bf16.mxu1 %vm189_vm0, %v4201_v46  ;;  %v9908_v9 = vadd.f32 %v9757_v19, %v4162_v28  ;;  %v9921_v48 = vrot.slane %v9916_v34, %v10945_v50 }
 0x5d7   :  { %v4202_v14 = vpack.c.bf16 %v9908_v9, %v9905_v42 }
 0x5d9   :  { %5916 = vmatmul.mubr.msk.bf16.gmra.mrb[128].mxu1 %vm189_vm0, %v4202_v14 }
 0x664   :  { %v5897_v58 = vpop.f32.mrb[108].mxu1 }
 0x665   :  { %v4319_v38 = vadd.f32 %v5897_v58, %v9921_v48  ;;  %v4310_v19 = vpop.f32.mrb[109].mxu1 }
 0x666   :  { %v4311_v0 = vadd.f32 %v4310_v19, %v9921_v48  ;;  %v5898_v29 = vpop.f32.mrb[110].mxu1 }
 0x667   :  { %v4322_v20 = vadd.f32 %v5898_v29, %v9921_v48  ;;  %v4313_v24 = vpop.f32.mrb[111].mxu1  ;;  %v4407_v13 = vmax.f32 %v4319_v38, 0.0 }
 0x668   :  { %v4314_v3 = vadd.f32 %v4313_v24, %v9921_v48  ;;  %v4405_v53 = vmax.f32 %v4311_v0, 0.0 }
 0x669   :  { %v4408_v55 = vmax.f32 %v4322_v20, 0.0 }
 0x66a   :  { %v4406_v60 = vmax.f32 %v4314_v3, 0.0 }
 0x66b   :  { %v4430_v56 = vpack.c.bf16 %v4408_v55, %v4407_v13 }
 0x66c   :  { %v4429_v11 = vpack.c.bf16 %v4406_v60, %v4405_v53  ;;  %v5901_v12 = vpop.f32.mrb[112].mxu1 }
 0x66d   :  { %v4335_v10 = vadd.f32 %v5901_v12, %v9921_v48  ;;  %v4326_v44 = vpop.f32.mrb[113].mxu1 }
 0x66e   :  { %v4327_v2 = vadd.f32 %v4326_v44, %v9921_v48  ;;  %v5902_v8 = vpop.f32.mrb[114].mxu1  ;;  %5927 = vmatprep.mubr.msk.bf16.mxu0 %vm189_vm0, %v4429_v11 }
 0x66f   :  { %v4338_v30 = vadd.f32 %v5902_v8, %v9921_v48  ;;  %v4329_v39 = vpop.f32.mrb[115].mxu1  ;;  %5928 = vmatmul.mubr.msk.bf16.vlgmr.msra.gmra.mrb[108].mxu0 %vm189_vm0, %v4430_v56  ;;  %v4411_v52 = vmax.f32 %v4335_v10, 0.0 }
 0x670   :  { %v4330_v35 = vadd.f32 %v4329_v39, %v9921_v48  ;;  %v4409_v18 = vmax.f32 %v4327_v2, 0.0 }
 0x671   :  { %v4412_v61 = vmax.f32 %v4338_v30, 0.0 }
 0x672   :  { %v4410_v5 = vmax.f32 %v4330_v35, 0.0 }
 0x673   :  { %v4432_v62 = vpack.c.bf16 %v4412_v61, %v4411_v52 }
 0x674   :  { %v4431_v15 = vpack.c.bf16 %v4410_v5, %v4409_v18 }
 0x675   :  { %v5905_v54 = vpop.f32.mrb[116].mxu1 }
 0x676   :  { %v4351_v40 = vadd.f32 %v5905_v54, %v9921_v48  ;;  %v4342_v32 = vpop.f32.mrb[117].mxu1  ;;  %5931 = vmatprep.mubr.msk.bf16.mxu0 %vm189_vm0, %v4431_v15 }
 0x677   :  { %v4343_v27 = vadd.f32 %v4342_v32, %v9921_v48  ;;  %v5906_v1 = vpop.f32.mrb[118].mxu1  ;;  %5932 = vmatmul.mubr.msk.bf16.gmra.mrb[112].mxu0 %vm189_vm0, %v4432_v62 }
 0x678   :  { %v4354_v46 = vadd.f32 %v5906_v1, %v9921_v48  ;;  %v4345_v28 = vpop.f32.mrb[119].mxu1  ;;  %v4415_v50 = vmax.f32 %v4351_v40, 0.0 }
 0x679   :  { %v4346_v14 = vadd.f32 %v4345_v28, %v9921_v48  ;;  %v4413_v38 = vmax.f32 %v4343_v27, 0.0 }
 0x67a   :  { %v4416_v58 = vmax.f32 %v4354_v46, 0.0 }
 0x67b   :  { %v4414_v19 = vmax.f32 %v4346_v14, 0.0 }
 0x67c   :  { %v4434_v0 = vpack.c.bf16 %v4416_v58, %v4415_v50 }
 0x67d   :  { %v4433_v29 = vpack.c.bf16 %v4414_v19, %v4413_v38 }
 0x67f   :  { %5935 = vmatprep.mubr.msk.bf16.mxu0 %vm189_vm0, %v4433_v29 }
 0x680   :  { %5936 = vmatmul.mubr.msk.bf16.gmra.mrb[116].mxu0 %vm189_vm0, %v4434_v0 }
 0x687   :  { %v5909_v20 = vpop.f32.mrb[120].mxu1 }
 0x688   :  { %v4367_v24 = vadd.f32 %v5909_v20, %v9921_v48  ;;  %v4358_v3 = vpop.f32.mrb[121].mxu1 }
 0x689   :  { %v4359_v13 = vadd.f32 %v4358_v3, %v9921_v48  ;;  %v5910_v55 = vpop.f32.mrb[122].mxu1 }
 0x68a   :  { %v4370_v53 = vadd.f32 %v5910_v55, %v9921_v48  ;;  %v4361_v60 = vpop.f32.mrb[123].mxu1  ;;  %v4419_v11 = vmax.f32 %v4367_v24, 0.0 }
 0x68b   :  { %v4362_v56 = vadd.f32 %v4361_v60, %v9921_v48  ;;  %v4417_v10 = vmax.f32 %v4359_v13, 0.0 }
 0x68c   :  { %v4420_v12 = vmax.f32 %v4370_v53, 0.0  ;;  %v4452_v53 = vsub.s32 2, %v10943_v41 }
 0x68d   :  { %v4418_v44 = vmax.f32 %v4362_v56, 0.0 }
 0x68e   :  { %v4436_v2 = vpack.c.bf16 %v4420_v12, %v4419_v11  ;;  %v9961_v60 = vrot.slane %v9916_v34, %v4452_v53 }
 0x68f   :  { %v4435_v8 = vpack.c.bf16 %v4418_v44, %v4417_v10 }
 0x691   :  { %5939 = vmatprep.mubr.msk.bf16.mxu0 %vm189_vm0, %v4435_v8 }
 0x692   :  { %5940 = vmatmul.mubr.msk.bf16.gmra.mrb[120].mxu0 %vm189_vm0, %v4436_v2 }
 0x69a   :  { %v5913_v30 = vpop.f32.mrb[124].mxu1 }
 0x69b   :  { %v4383_v39 = vadd.f32 %v5913_v30, %v9921_v48  ;;  %v4374_v35 = vpop.f32.mrb[125].mxu1 }
 0x69c   :  { %v4375_v52 = vadd.f32 %v4374_v35, %v9921_v48  ;;  %v5914_v61 = vpop.f32.mrb[126].mxu1 }
 0x69d   :  { %v4386_v18 = vadd.f32 %v5914_v61, %v9921_v48  ;;  %v4377_v5 = vpop.f32.mrb[127].mxu1  ;;  %v4423_v15 = vmax.f32 %v4383_v39, 0.0 }
 0x69e   :  { %v4378_v62 = vadd.f32 %v4377_v5, %v9921_v48  ;;  %v4421_v40 = vmax.f32 %v4375_v52, 0.0 }
 0x69f   :  { %v4424_v54 = vmax.f32 %v4386_v18, 0.0 }
 0x6a0   :  { %v4422_v32 = vmax.f32 %v4378_v62, 0.0 }
 0x6a1   :  { %v4438_v27 = vpack.c.bf16 %v4424_v54, %v4423_v15 }
 0x6a2   :  { %v4437_v1 = vpack.c.bf16 %v4422_v32, %v4421_v40 }
 0x6a4   :  { %5943 = vmatprep.mubr.msk.bf16.mxu0 %vm189_vm0, %v4437_v1 }
 0x6a5   :  { %5944 = vmatmul.mubr.msk.bf16.gmra.mrb[124].mxu0 %vm189_vm0, %v4438_v27 }
 0x6ac   :  { %v5917_v46 = vpop.f32.mrb[128].mxu1 }
 0x6ad   :  { %v4399_v28 = vadd.f32 %v5917_v46, %v9921_v48  ;;  %v4390_v14 = vpop.f32.mrb[129].mxu1 }
 0x6ae   :  { %v4391_v50 = vadd.f32 %v4390_v14, %v9921_v48  ;;  %v5918_v58 = vpop.f32.mrb[130].mxu1 }
 0x6af   :  { %v4402_v38 = vadd.f32 %v5918_v58, %v9921_v48  ;;  %v4393_v19 = vpop.f32.mrb[131].mxu1  ;;  %v4427_v29 = vmax.f32 %v4399_v28, 0.0 }
 0x6b0   :  { %v4394_v0 = vadd.f32 %v4393_v19, %v9921_v48  ;;  %v4425_v24 = vmax.f32 %v4391_v50, 0.0 }
 0x6b1   :  { %v4428_v20 = vmax.f32 %v4402_v38, 0.0 }
 0x6b2   :  { %v4426_v3 = vmax.f32 %v4394_v0, 0.0 }
 0x6b3   :  { %v4440_v13 = vpack.c.bf16 %v4428_v20, %v4427_v29 }
 0x6b4   :  { %v4439_v55 = vpack.c.bf16 %v4426_v3, %v4425_v24 }
 0x6b6   :  { %5947 = vmatprep.mubr.msk.bf16.mxu0 %vm189_vm0, %v4439_v55 }
 0x6b7   :  { %5948 = vmatmul.mubr.msk.bf16.gmra.mrb[128].mxu0 %vm189_vm0, %v4440_v13 }
 0x742   :  { %v5929_v56 = vpop.f32.mrb[108].mxu0 }
 0x743   :  { %v4557_v11 = vadd.f32 %v5929_v56, %v9961_v60  ;;  %v4548_v12 = vpop.f32.mrb[109].mxu0 }
 0x744   :  { %v4549_v48 = vadd.f32 %v4548_v12, %v9961_v60  ;;  %v5930_v10 = vpop.f32.mrb[110].mxu0 }
 0x745   :  { %v4560_v44 = vadd.f32 %v5930_v10, %v9961_v60  ;;  %v4551_v2 = vpop.f32.mrb[111].mxu0  ;;  %v9967_v8 = vadd.f32 %v4557_v11, %v9776_v45 }
 0x746   :  { %v4552_v30 = vadd.f32 %v4551_v2, %v9961_v60  ;;  %v9976_v52 = vadd.f32 %v4549_v48, %v9763_v4 }
 0x747   :  { %v4673_v39 = vsel %vm189_vm0, %v9967_v8, 0.0  ;;  %v9973_v35 = vadd.f32 %v4560_v44, %v9779_v37 }
 0x748   :  { %4674 = vadd.xlane.f32.xlu1 %v4673_v39  ;;  %v9981_v18 = vadd.f32 %v4552_v30, %v9766_v7  ;;  %v4667_v15 = vsel %vm189_vm0, %v9976_v52, 0.0 }
 0x749   :  { %v4676_v61 = vsel %vm189_vm0, %v9973_v35, 0.0 }
 0x74a   :  { %4677 = vadd.xlane.f32.xlu0 %v4676_v61  ;;  %v5933_v45 = vpop.f32.mrb[112].mxu0  ;;  %v4670_v32 = vsel %vm189_vm0, %v9981_v18, 0.0 }
 0x74b   :  { %v4573_v5 = vadd.f32 %v5933_v45, %v9961_v60  ;;  %v4564_v62 = vpop.f32.mrb[113].mxu0 }
 0x74c   :  { %v4565_v37 = vadd.f32 %v4564_v62, %v9961_v60  ;;  %4668 = vadd.xlane.f32.xlu1 %v4667_v15  ;;  %v5934_v4 = vpop.f32.mrb[114].mxu0 }
 0x74d   :  { %v4576_v54 = vadd.f32 %v5934_v4, %v9961_v60  ;;  %v4567_v40 = vpop.f32.mrb[115].mxu0  ;;  %v9991_v7 = vadd.f32 %v4573_v5, %v9803_v63 }
 0x74e   :  { %v4568_v27 = vadd.f32 %v4567_v40, %v9961_v60  ;;  %4671 = vadd.xlane.f32.xlu0 %v4670_v32  ;;  %v10000_v28 = vadd.f32 %v4565_v37, %v9790_v57 }
 0x74f   :  { %v4685_v1 = vsel %vm189_vm0, %v9991_v7, 0.0  ;;  %v9997_v46 = vadd.f32 %v4576_v54, %v9806_v16 }
 0x750   :  { %4686 = vadd.xlane.f32.xlu1 %v4685_v1  ;;  %v10005_v50 = vadd.f32 %v4568_v27, %v9793_v6  ;;  %v4679_v19 = vsel %vm189_vm0, %v10000_v28, 0.0 }
 0x751   :  { %v4688_v14 = vsel %vm189_vm0, %v9997_v46, 0.0 }
 0x752   :  { %4689 = vadd.xlane.f32.xlu0 %v4688_v14  ;;  %v4682_v20 = vsel %vm189_vm0, %v10005_v50, 0.0 }
 0x753   :  { %v5937_v63 = vpop.f32.mrb[116].mxu0 }
 0x754   :  { %v4589_v58 = vadd.f32 %v5937_v63, %v9961_v60  ;;  %v4580_v38 = vpop.f32.mrb[117].mxu0  ;;  %4680 = vadd.xlane.f32.xlu1 %v4679_v19 }
 0x755   :  { %v4581_v16 = vadd.f32 %v4580_v38, %v9961_v60  ;;  %v5938_v57 = vpop.f32.mrb[118].mxu0 }
 0x756   :  { %v4592_v0 = vadd.f32 %v5938_v57, %v9961_v60  ;;  %v4583_v29 = vpop.f32.mrb[119].mxu0  ;;  %v10015_v6 = vadd.f32 %v4589_v58, %v9827_v23  ;;  %4683 = vadd.xlane.f32.xlu0 %v4682_v20 }
 0x757   :  { %v4584_v24 = vadd.f32 %v4583_v29, %v9961_v60  ;;  %v10024_v55 = vadd.f32 %v4581_v16, %v9816_v33 }
 0x758   :  { %v4697_v3 = vsel %vm189_vm0, %v10015_v6, 0.0  ;;  %v10021_v13 = vadd.f32 %v4592_v0, %v9830_v17 }
 0x759   :  { %4698 = vadd.xlane.f32.xlu1 %v4697_v3  ;;  %v10029_v56 = vadd.f32 %v4584_v24, %v9819_v21  ;;  %v4691_v23 = vsel %vm189_vm0, %v10024_v55, 0.0 }
 0x75a   :  { %v4700_v53 = vsel %vm189_vm0, %v10021_v13, 0.0 }
 0x75b   :  { %4701 = vadd.xlane.f32.xlu0 %v4700_v53  ;;  %v4694_v11 = vsel %vm189_vm0, %v10029_v56, 0.0 }
 0x75d   :  { %4692 = vadd.xlane.f32.xlu1 %v4691_v23 }
 0x75f   :  { %4695 = vadd.xlane.f32.xlu0 %v4694_v11 }
 0x765   :  { %v5941_v17 = vpop.f32.mrb[120].mxu0 }
 0x766   :  { %v4605_v33 = vadd.f32 %v5941_v17, %v9961_v60  ;;  %v4596_v12 = vpop.f32.mrb[121].mxu0 }
 0x767   :  { %v4597_v48 = vadd.f32 %v4596_v12, %v9961_v60  ;;  %v5942_v10 = vpop.f32.mrb[122].mxu0 }
 0x768   :  { %v4608_v44 = vadd.f32 %v5942_v10, %v9961_v60  ;;  %v4599_v21 = vpop.f32.mrb[123].mxu0  ;;  %v10039_v2 = vadd.f32 %v4605_v33, %v9853_v31 }
 0x769   :  { %v4600_v30 = vadd.f32 %v4599_v21, %v9961_v60  ;;  %v10048_v45 = vadd.f32 %v4597_v48, %v9841_v59 }
 0x76a   :  { %v4709_v39 = vsel %vm189_vm0, %v10039_v2, 0.0  ;;  %v10045_v61 = vadd.f32 %v4608_v44, %v9856_v51 }
 0x76b   :  { %4710 = vadd.xlane.f32.xlu1 %v4709_v39  ;;  %v10053_v62 = vadd.f32 %v4600_v30, %v9845_v22  ;;  %v4703_v31 = vsel %vm189_vm0, %v10048_v45, 0.0 }
 0x76c   :  { %v4712_v5 = vsel %vm189_vm0, %v10045_v61, 0.0 }
 0x76d   :  { %4713 = vadd.xlane.f32.xlu0 %v4712_v5  ;;  %v4706_v15 = vsel %vm189_vm0, %v10053_v62, 0.0 }
 0x76f   :  { %4704 = vadd.xlane.f32.xlu1 %v4703_v31 }
 0x771   :  { %4707 = vadd.xlane.f32.xlu0 %v4706_v15 }
 0x778   :  { %v5945_v51 = vpop.f32.mrb[124].mxu0 }
 0x779   :  { %v4621_v59 = vadd.f32 %v5945_v51, %v9961_v60  ;;  %v4612_v37 = vpop.f32.mrb[125].mxu0 }
 0x77a   :  { %v4613_v4 = vadd.f32 %v4612_v37, %v9961_v60  ;;  %v5946_v54 = vpop.f32.mrb[126].mxu0 }
 0x77b   :  { %v4624_v40 = vadd.f32 %v5946_v54, %v9961_v60  ;;  %v4615_v22 = vpop.f32.mrb[127].mxu0  ;;  %v10063_v32 = vadd.f32 %v4621_v59, %v9879_v47 }
 0x77c   :  { %v4616_v27 = vadd.f32 %v4615_v22, %v9961_v60  ;;  %v10072_v63 = vadd.f32 %v4613_v4, %v9868_v43 }
 0x77d   :  { %v4721_v1 = vsel %vm189_vm0, %v10063_v32, 0.0  ;;  %v10069_v14 = vadd.f32 %v4624_v40, %v9882_v26 }
 0x77e   :  { %4722 = vadd.xlane.f32.xlu1 %v4721_v1  ;;  %v10077_v38 = vadd.f32 %v4616_v27, %v9871_v36  ;;  %v4715_v47 = vsel %vm189_vm0, %v10072_v63, 0.0 }
 0x77f   :  { %v4724_v58 = vsel %vm189_vm0, %v10069_v14, 0.0 }
 0x780   :  { %4725 = vadd.xlane.f32.xlu0 %v4724_v58  ;;  %v4718_v19 = vsel %vm189_vm0, %v10077_v38, 0.0 }
 0x782   :  { %4716 = vadd.xlane.f32.xlu1 %v4715_v47 }
 0x784   :  { %4719 = vadd.xlane.f32.xlu0 %v4718_v19 }
 0x78a   :  { %v5949_v26 = vpop.f32.mrb[128].mxu0 }
 0x78b   :  { %v4628_v16 = vpop.f32.mrb[129].mxu0  ;;  %v4637_v43 = vadd.f32 %v5949_v26, %v9961_v60 }
 0x78c   :  { %v4629_v57 = vadd.f32 %v4628_v16, %v9961_v60  ;;  %v5950_v0 = vpop.f32.mrb[130].mxu0 }
 0x78d   :  { %v4631_v29 = vpop.f32.mrb[131].mxu0  ;;  %v4640_v36 = vadd.f32 %v5950_v0, %v9961_v60  ;;  %v10096_v23 = vadd.f32 %v4637_v43, %v9905_v42 }
 0x78e   :  { %v4632_v20 = vadd.f32 %v4631_v29, %v9961_v60  ;;  %v10088_v24 = vadd.f32 %v4629_v57, %v9894_v25 }
 0x78f   :  { %v10101_v17 = vadd.f32 %v4640_v36, %v9908_v9  ;;  %v4733_v25 = vsel %vm189_vm0, %v10096_v23, 0.0 }
 0x790   :  { %v4727_v3 = vsel %vm189_vm0, %v10088_v24, 0.0  ;;  %v10093_v53 = vadd.f32 %v4632_v20, %v9897_v49 }
 0x791   :  { %4728 = vadd.xlane.f32.xlu1 %v4727_v3  ;;  %v4736_v60 = vsel %vm189_vm0, %v10101_v17, 0.0 }
 0x792   :  { %v4730_v11 = vsel %vm189_vm0, %v10093_v53, 0.0 }
 0x793   :  { %4731 = vadd.xlane.f32.xlu0 %v4730_v11 }
 0x795   :  { %4734 = vadd.xlane.f32.xlu1 %v4733_v25 }
 0x797   :  { %4737 = vadd.xlane.f32.xlu0 %v4736_v60 }
 0x7d5   :  { %v4675_v49 = vpop.xlane.xlu1 %4674 }
 0x7d6   :  { %v4741_v33 = vmul.f32 0.015625, %v4675_v49 }
 0x7d7   :  { %v4678_v42 = vpop.xlane.xlu0 %4677 }
 0x7d8   :  { %v10108_v12 = vsub.f32 %v9967_v8, %v4741_v33  ;;  %v4742_v48 = vmul.f32 0.015625, %v4678_v42 }
 0x7d9   :  { %v4669_v10 = vpop.xlane.xlu1 %4668 }
 0x7da   :  { %v10111_v9 = vsub.f32 %v9973_v35, %v4742_v48  ;;  %v4739_v44 = vmul.f32 0.015625, %v4669_v10  ;;  %v4789_v21 = vmul.f32 %v10108_v12, %v10108_v12 }
 0x7db   :  { %v4672_v30 = vpop.xlane.xlu0 %4671 }
 0x7dc   :  { %v10116_v39 = vsub.f32 %v9976_v52, %v4739_v44  ;;  %v4740_v5 = vmul.f32 0.015625, %v4672_v30  ;;  %v4817_v31 = vsel %vm189_vm0, %v4789_v21, 0.0  ;;  %v4790_v8 = vmul.f32 %v10111_v9, %v10111_v9 }
 0x7dd   :  { %4818 = vadd.xlane.f32.xlu1 %v4817_v31  ;;  %v4687_v15 = vpop.xlane.xlu1 %4686 }
 0x7de   :  { %v10122_v51 = vsub.f32 %v9981_v18, %v4740_v5  ;;  %v4745_v35 = vmul.f32 0.015625, %v4687_v15  ;;  %v4820_v59 = vsel %vm189_vm0, %v4790_v8, 0.0  ;;  %v4787_v37 = vmul.f32 %v10116_v39, %v10116_v39 }
 0x7df   :  { %v4690_v4 = vpop.xlane.xlu0 %4689  ;;  %4821 = vadd.xlane.f32.xlu0 %v4820_v59 }
 0x7e0   :  { %v10128_v52 = vsub.f32 %v9991_v7, %v4745_v35  ;;  %v4746_v54 = vmul.f32 0.015625, %v4690_v4  ;;  %v4811_v40 = vsel %vm189_vm0, %v4787_v37, 0.0  ;;  %v4788_v22 = vmul.f32 %v10122_v51, %v10122_v51 }
 0x7e1   :  { %4812 = vadd.xlane.f32.xlu1 %v4811_v40  ;;  %v4681_v18 = vpop.xlane.xlu1 %4680 }
 0x7e2   :  { %v10134_v27 = vsub.f32 %v9997_v46, %v4746_v54  ;;  %v4743_v1 = vmul.f32 0.015625, %v4681_v18  ;;  %v4814_v58 = vsel %vm189_vm0, %v4788_v22, 0.0  ;;  %v4793_v47 = vmul.f32 %v10128_v52, %v10128_v52 }
 0x7e3   :  { %v4684_v19 = vpop.xlane.xlu0 %4683  ;;  %4815 = vadd.xlane.f32.xlu0 %v4814_v58 }
 0x7e4   :  { %v10140_v7 = vsub.f32 %v10000_v28, %v4743_v1  ;;  %v4744_v26 = vmul.f32 0.015625, %v4684_v19  ;;  %v4829_v16 = vsel %vm189_vm0, %v4793_v47, 0.0  ;;  %v4794_v43 = vmul.f32 %v10134_v27, %v10134_v27 }
 0x7e5   :  { %4830 = vadd.xlane.f32.xlu1 %v4829_v16 }
 0x7e6   :  { %v4699_v46 = vpop.xlane.xlu1 %4698  ;;  %v10146_v57 = vsub.f32 %v10005_v50, %v4744_v26  ;;  %v4832_v29 = vsel %vm189_vm0, %v4794_v43, 0.0  ;;  %v4791_v36 = vmul.f32 %v10140_v7, %v10140_v7 }
 0x7e7   :  { %v4749_v0 = vmul.f32 0.015625, %v4699_v46  ;;  %4833 = vadd.xlane.f32.xlu0 %v4832_v29 }
 0x7e8   :  { %v4702_v20 = vpop.xlane.xlu0 %4701  ;;  %v4823_v11 = vsel %vm189_vm0, %v4791_v36, 0.0  ;;  %v4792_v25 = vmul.f32 %v10146_v57, %v10146_v57 }
 0x7e9   :  { %v10152_v28 = vsub.f32 %v10015_v6, %v4749_v0  ;;  %v4750_v3 = vmul.f32 0.015625, %v4702_v20  ;;  %4824 = vadd.xlane.f32.xlu1 %v4823_v11 }
 0x7ea   :  { %v4693_v50 = vpop.xlane.xlu1 %4692  ;;  %v4826_v33 = vsel %vm189_vm0, %v4792_v25, 0.0 }
 0x7eb   :  { %v10158_v60 = vsub.f32 %v10021_v13, %v4750_v3  ;;  %v4747_v49 = vmul.f32 0.015625, %v4693_v50  ;;  %v4797_v42 = vmul.f32 %v10152_v28, %v10152_v28  ;;  %4827 = vadd.xlane.f32.xlu0 %v4826_v33 }
 0x7ec   :  { %v4696_v48 = vpop.xlane.xlu0 %4695 }
 0x7ed   :  { %v10164_v6 = vsub.f32 %v10024_v55, %v4747_v49  ;;  %v4748_v10 = vmul.f32 0.015625, %v4696_v48  ;;  %v4841_v44 = vsel %vm189_vm0, %v4797_v42, 0.0  ;;  %v4798_v21 = vmul.f32 %v10158_v60, %v10158_v60 }
 0x7ee   :  { %4842 = vadd.xlane.f32.xlu1 %v4841_v44 }
 0x7ef   :  { %v10170_v13 = vsub.f32 %v10029_v56, %v4748_v10  ;;  %v4844_v30 = vsel %vm189_vm0, %v4798_v21, 0.0  ;;  %v4795_v5 = vmul.f32 %v10164_v6, %v10164_v6 }
 0x7f0   :  { %4845 = vadd.xlane.f32.xlu0 %v4844_v30 }
 0x7f1   :  { %v4835_v31 = vsel %vm189_vm0, %v4795_v5, 0.0  ;;  %v4796_v55 = vmul.f32 %v10170_v13, %v10170_v13 }
 0x7f2   :  { %4836 = vadd.xlane.f32.xlu1 %v4835_v31 }
 0x7f3   :  { %v4838_v8 = vsel %vm189_vm0, %v4796_v55, 0.0 }
 0x7f4   :  { %4839 = vadd.xlane.f32.xlu0 %v4838_v8 }
 0x7f8   :  { %v4711_v15 = vpop.xlane.xlu1 %4710 }
 0x7f9   :  { %v4753_v35 = vmul.f32 0.015625, %v4711_v15 }
 0x7fa   :  { %v4714_v59 = vpop.xlane.xlu0 %4713 }
 0x7fb   :  { %v10180_v56 = vsub.f32 %v10039_v2, %v4753_v35  ;;  %v4754_v37 = vmul.f32 0.015625, %v4714_v59 }
 0x7fc   :  { %v4705_v4 = vpop.xlane.xlu1 %4704 }
 0x7fd   :  { %v10183_v54 = vsub.f32 %v10045_v61, %v4754_v37  ;;  %v4751_v40 = vmul.f32 0.015625, %v4705_v4  ;;  %v4801_v22 = vmul.f32 %v10180_v56, %v10180_v56 }
 0x7fe   :  { %v4708_v18 = vpop.xlane.xlu0 %4707 }
 0x7ff   :  { %v10188_v1 = vsub.f32 %v10048_v45, %v4751_v40  ;;  %v4752_v58 = vmul.f32 0.015625, %v4708_v18  ;;  %v4853_v47 = vsel %vm189_vm0, %v4801_v22, 0.0  ;;  %v4802_v2 = vmul.f32 %v10183_v54, %v10183_v54 }
 0x800   :  { %4854 = vadd.xlane.f32.xlu1 %v4853_v47 }
 0x801   :  { %v10194_v19 = vsub.f32 %v10053_v62, %v4752_v58  ;;  %v4856_v61 = vsel %vm189_vm0, %v4802_v2, 0.0  ;;  %v4799_v26 = vmul.f32 %v10188_v1, %v10188_v1 }
 0x802   :  { %4857 = vadd.xlane.f32.xlu0 %v4856_v61 }
 0x803   :  { %v4847_v16 = vsel %vm189_vm0, %v4799_v26, 0.0  ;;  %v4800_v45 = vmul.f32 %v10194_v19, %v10194_v19 }
 0x804   :  { %4848 = vadd.xlane.f32.xlu1 %v4847_v16 }
 0x805   :  { %v4850_v43 = vsel %vm189_vm0, %v4800_v45, 0.0 }
 0x806   :  { %4851 = vadd.xlane.f32.xlu0 %v4850_v43 }
 0x80b   :  { %v4723_v46 = vpop.xlane.xlu1 %4722 }
 0x80c   :  { %v4757_v0 = vmul.f32 0.015625, %v4723_v46 }
 0x80d   :  { %v4726_v29 = vpop.xlane.xlu0 %4725 }
 0x80e   :  { %v10204_v62 = vsub.f32 %v10063_v32, %v4757_v0  ;;  %v4758_v36 = vmul.f32 0.015625, %v4726_v29 }
 0x80f   :  { %v4717_v20 = vpop.xlane.xlu1 %4716 }
 0x810   :  { %v10207_v3 = vsub.f32 %v10069_v14, %v4758_v36  ;;  %v4755_v11 = vmul.f32 0.015625, %v4717_v20  ;;  %v4805_v25 = vmul.f32 %v10204_v62, %v10204_v62 }
 0x811   :  { %v4720_v50 = vpop.xlane.xlu0 %4719 }
 0x812   :  { %v10212_v49 = vsub.f32 %v10072_v63, %v4755_v11  ;;  %v4756_v33 = vmul.f32 0.015625, %v4720_v50  ;;  %v4865_v42 = vsel %vm189_vm0, %v4805_v25, 0.0  ;;  %v4806_v32 = vmul.f32 %v10207_v3, %v10207_v3 }
 0x813   :  { %4866 = vadd.xlane.f32.xlu1 %v4865_v42 }
 0x814   :  { %v10218_v48 = vsub.f32 %v10077_v38, %v4756_v33  ;;  %v4868_v14 = vsel %vm189_vm0, %v4806_v32, 0.0  ;;  %v4803_v10 = vmul.f32 %v10212_v49, %v10212_v49  ;;  %v4981_v33 = vsub.s32 5, %v10943_v41 }
 0x815   :  { %4869 = vadd.xlane.f32.xlu0 %v4868_v14 }
 0x816   :  { %v4859_v44 = vsel %vm189_vm0, %v4803_v10, 0.0  ;;  %v4804_v63 = vmul.f32 %v10218_v48, %v10218_v48  ;;  %v5009_v10 = vsub.s32 6, %v10943_v41 }
 0x817   :  { %4860 = vadd.xlane.f32.xlu1 %v4859_v44 }
 0x818   :  { %v4862_v21 = vsel %vm189_vm0, %v4804_v63, 0.0 }
 0x819   :  { %4863 = vadd.xlane.f32.xlu0 %v4862_v21 }
 0x81e   :  { %v4729_v30 = vpop.xlane.xlu1 %4728 }
 0x81f   :  { %v4759_v5 = vmul.f32 0.015625, %v4729_v30  ;;  %v10254_v30 = vrot.slane %v9916_v34, %v4981_v33 }
 0x820   :  { %v4732_v31 = vpop.xlane.xlu0 %4731 }
 0x821   :  { %v10228_v38 = vsub.f32 %v10088_v24, %v4759_v5  ;;  %v4760_v55 = vmul.f32 0.015625, %v4732_v31 }
 0x822   :  { %v4735_v8 = vpop.xlane.xlu1 %4734 }
 0x823   :  { %v10231_v15 = vsub.f32 %v10093_v53, %v4760_v55  ;;  %v4761_v35 = vmul.f32 0.015625, %v4735_v8  ;;  %v4807_v59 = vmul.f32 %v10228_v38, %v10228_v38 }
 0x824   :  { %v4738_v37 = vpop.xlane.xlu0 %4737 }
 0x825   :  { %v10236_v4 = vsub.f32 %v10096_v23, %v4761_v35  ;;  %v4762_v40 = vmul.f32 0.015625, %v4738_v37  ;;  %v4871_v22 = vsel %vm189_vm0, %v4807_v59, 0.0  ;;  %v4808_v24 = vmul.f32 %v10231_v15, %v10231_v15 }
 0x826   :  { %4872 = vadd.xlane.f32.xlu1 %v4871_v22  ;;  %v10257_v35 = vrot.slane %v9916_v34, %v5009_v10 }
 0x827   :  { %v10242_v18 = vsub.f32 %v10101_v17, %v4762_v40  ;;  %v4874_v53 = vsel %vm189_vm0, %v4808_v24, 0.0  ;;  %v4809_v58 = vmul.f32 %v10236_v4, %v10236_v4 }
 0x828   :  { %4875 = vadd.xlane.f32.xlu0 %v4874_v53 }
 0x829   :  { %v4877_v47 = vsel %vm189_vm0, %v4809_v58, 0.0  ;;  %v4810_v23 = vmul.f32 %v10242_v18, %v10242_v18 }
 0x82a   :  { %4878 = vadd.xlane.f32.xlu1 %v4877_v47 }
 0x82b   :  { %v4880_v2 = vsel %vm189_vm0, %v4810_v23, 0.0 }
 0x82c   :  { %4881 = vadd.xlane.f32.xlu0 %v4880_v2 }
 0x86a   :  { %v4819_v61 = vpop.xlane.xlu1 %4818 }
 0x86b   :  { %v4885_v26 = vmul.f32 0.015625, %v4819_v61 }
 0x86c   :  { %v4822_v16 = vpop.xlane.xlu0 %4821 }
 0x86d   :  { %v4909_v17 = vadd.f32 1e-05, %v4885_v26  ;;  %v4886_v45 = vmul.f32 0.015625, %v4822_v16 }
 0x86e   :  { %v4813_v43 = vpop.xlane.xlu1 %4812 }
 0x86f   :  { %6465 = vrsqrt.f32 %v4909_v17  ;;  %v4910_v46 = vadd.f32 1e-05, %v4886_v45  ;;  %v4883_v0 = vmul.f32 0.015625, %v4813_v43 }
 0x870   :  { %v4816_v29 = vpop.xlane.xlu0 %4815 }
 0x871   :  { %6467 = vrsqrt.f32 %v4910_v46  ;;  %v4907_v36 = vadd.f32 1e-05, %v4883_v0  ;;  %v4884_v20 = vmul.f32 0.015625, %v4816_v29 }
 0x872   :  { %v4831_v11 = vpop.xlane.xlu1 %4830 }
 0x873   :  { %6469 = vrsqrt.f32 %v4907_v36  ;;  %v4908_v25 = vadd.f32 1e-05, %v4884_v20  ;;  %v4889_v50 = vmul.f32 0.015625, %v4831_v11 }
 0x874   :  { %v4834_v42 = vpop.xlane.xlu0 %4833 }
 0x875   :  { %6471 = vrsqrt.f32 %v4908_v25  ;;  %v4913_v32 = vadd.f32 1e-05, %v4889_v50  ;;  %v4890_v14 = vmul.f32 0.015625, %v4834_v42 }
 0x876   :  { %v4825_v44 = vpop.xlane.xlu1 %4824 }
 0x877   :  { %6473 = vrsqrt.f32 %v4913_v32  ;;  %v4914_v63 = vadd.f32 1e-05, %v4890_v14  ;;  %v4887_v21 = vmul.f32 0.015625, %v4825_v44 }
 0x878   :  { %v4828_v5 = vpop.xlane.xlu0 %4827 }
 0x879   :  { %v6466_v31 = vpop.eup %6465  ;;  %6475 = vrsqrt.f32 %v4914_v63  ;;  %v4911_v55 = vadd.f32 1e-05, %v4887_v21  ;;  %v4888_v8 = vmul.f32 0.015625, %v4828_v5 }
 0x87a   :  { %v4957_v59 = vmul.f32 %v6466_v31, %v10108_v12 }
 0x87b   :  { %v4843_v37 = vpop.xlane.xlu1 %4842  ;;  %v6468_v40 = vpop.eup %6467  ;;  %6477 = vrsqrt.f32 %v4911_v55  ;;  %v4912_v41 = vadd.f32 1e-05, %v4888_v8 }
 0x87c   :  { %v4893_v22 = vmul.f32 0.015625, %v4843_v37  ;;  %v4985_v24 = vmul.f32 %v10254_v30, %v4957_v59  ;;  %v4958_v53 = vmul.f32 %v6468_v40, %v10111_v9 }
 0x87d   :  { %v4846_v58 = vpop.xlane.xlu0 %4845  ;;  %v6470_v47 = vpop.eup %6469  ;;  %6479 = vrsqrt.f32 %v4912_v41 }
 0x87e   :  { %v4917_v23 = vadd.f32 1e-05, %v4893_v22  ;;  %v4894_v2 = vmul.f32 0.015625, %v4846_v58  ;;  %v5013_v61 = vadd.f32 %v10257_v35, %v4985_v24  ;;  %v4986_v34 = vmul.f32 %v10254_v30, %v4958_v53 }
 0x87f   :  { %v4955_v12 = vmul.f32 %v6470_v47, %v10116_v39  ;;  %v4837_v26 = vpop.xlane.xlu1 %4836  ;;  %v6472_v16 = vpop.eup %6471 }
 0x880   :  { %6481 = vrsqrt.f32 %v4917_v23  ;;  %v4918_v17 = vadd.f32 1e-05, %v4894_v2  ;;  %v4891_v45 = vmul.f32 0.015625, %v4837_v26  ;;  %5037 = vst.msk [vmem:[%s10434_s7 + $0x10] sm:$0xff] %vm189_vm0, %v5013_v61  ;;  %v5014_v9 = vadd.f32 %v10257_v35, %v4986_v34 }
 0x881   :  { %v4983_v43 = vmul.f32 %v10254_v30, %v4955_v12  ;;  %v4956_v46 = vmul.f32 %v6472_v16, %v10122_v51  ;;  %v4840_v0 = vpop.xlane.xlu0 %4839  ;;  %v6474_v29 = vpop.eup %6473 }
 0x882   :  { %6483 = vrsqrt.f32 %v4918_v17  ;;  %v4915_v39 = vadd.f32 1e-05, %v4891_v45  ;;  %v4892_v36 = vmul.f32 0.015625, %v4840_v0  ;;  %5038 = vst.msk [vmem:[%s10434_s7 + $0x18] sm:$0xff] %vm189_vm0, %v5014_v9  ;;  %v4961_v25 = vmul.f32 %v6474_v29, %v10128_v52 }
 0x883   :  { %v5011_v20 = vadd.f32 %v10257_v35, %v4983_v43  ;;  %v4984_v11 = vmul.f32 %v10254_v30, %v4956_v46  ;;  %v6476_v50 = vpop.eup %6475 }
 0x884   :  { %6485 = vrsqrt.f32 %v4915_v39  ;;  %v4916_v33 = vadd.f32 1e-05, %v4892_v36  ;;  %v4989_v42 = vmul.f32 %v10254_v30, %v4961_v25  ;;  %v4962_v32 = vmul.f32 %v6476_v50, %v10134_v27 }
 0x885   :  { %5035 = vst.msk [vmem:[%s10434_s7] sm:$0xff] %vm189_vm0, %v5011_v20  ;;  %v5012_v51 = vadd.f32 %v10257_v35, %v4984_v11  ;;  %v6478_v14 = vpop.eup %6477 }
 0x886   :  { %6487 = vrsqrt.f32 %v4916_v33  ;;  %v5017_v52 = vadd.f32 %v10257_v35, %v4989_v42  ;;  %v4990_v10 = vmul.f32 %v10254_v30, %v4962_v32  ;;  %v4959_v44 = vmul.f32 %v6478_v14, %v10140_v7 }
 0x887   :  { %5036 = vst.msk [vmem:[%s10434_s7 + $0x8] sm:$0xff] %vm189_vm0, %v5012_v51  ;;  %v6480_v63 = vpop.eup %6479 }
 0x888   :  { %5041 = vst.msk [vmem:[%s10434_s7 + $0x30] sm:$0xff] %vm189_vm0, %v5017_v52  ;;  %v5018_v27 = vadd.f32 %v10257_v35, %v4990_v10  ;;  %v4987_v21 = vmul.f32 %v10254_v30, %v4959_v44  ;;  %v4960_v5 = vmul.f32 %v6480_v63, %v10146_v57 }
 0x88a   :  { %v6482_v31 = vpop.eup %6481  ;;  %5042 = vst.msk [vmem:[%s10434_s7 + $0x38] sm:$0xff] %vm189_vm0, %v5018_v27  ;;  %v5015_v7 = vadd.f32 %v10257_v35, %v4987_v21  ;;  %v4988_v55 = vmul.f32 %v10254_v30, %v4960_v5 }
 0x88b   :  { %v4965_v8 = vmul.f32 %v6482_v31, %v10152_v28 }
 0x88c   :  { %v6484_v59 = vpop.eup %6483  ;;  %5039 = vst.msk [vmem:[%s10434_s7 + $0x20] sm:$0xff] %vm189_vm0, %v5015_v7  ;;  %v5016_v57 = vadd.f32 %v10257_v35, %v4988_v55 }
 0x88d   :  { %v4993_v37 = vmul.f32 %v10254_v30, %v4965_v8  ;;  %v4966_v40 = vmul.f32 %v6484_v59, %v10158_v60  ;;  %v4855_v22 = vpop.xlane.xlu1 %4854 }
 0x88e   :  { %v6486_v41 = vpop.eup %6485  ;;  %5040 = vst.msk [vmem:[%s10434_s7 + $0x28] sm:$0xff] %vm189_vm0, %v5016_v57  ;;  %v4897_v58 = vmul.f32 0.015625, %v4855_v22 }
 0x88f   :  { %v5021_v28 = vadd.f32 %v10257_v35, %v4993_v37  ;;  %v4994_v24 = vmul.f32 %v10254_v30, %v4966_v40  ;;  %v4963_v53 = vmul.f32 %v6486_v41, %v10164_v6  ;;  %v4858_v23 = vpop.xlane.xlu0 %4857 }
 0x890   :  { %v6488_v47 = vpop.eup %6487  ;;  %v4921_v34 = vadd.f32 1e-05, %v4897_v58  ;;  %v4898_v12 = vmul.f32 0.015625, %v4858_v23 }
 0x891   :  { %5045 = vst.msk [vmem:[%s10434_s7 + $0x50] sm:$0xff] %vm189_vm0, %v5021_v28  ;;  %v5022_v60 = vadd.f32 %v10257_v35, %v4994_v24  ;;  %v4991_v2 = vmul.f32 %v10254_v30, %v4963_v53  ;;  %v4964_v61 = vmul.f32 %v6488_v47, %v10170_v13  ;;  %v4849_v26 = vpop.xlane.xlu1 %4848 }
 0x892   :  { %6489 = vrsqrt.f32 %v4921_v34  ;;  %v4895_v17 = vmul.f32 0.015625, %v4849_v26  ;;  %v4922_v45 = vadd.f32 1e-05, %v4898_v12 }
 0x893   :  { %5046 = vst.msk [vmem:[%s10434_s7 + $0x58] sm:$0xff] %vm189_vm0, %v5022_v60  ;;  %v5019_v6 = vadd.f32 %v10257_v35, %v4991_v2  ;;  %v4992_v16 = vmul.f32 %v10254_v30, %v4964_v61  ;;  %v4852_v9 = vpop.xlane.xlu0 %4851 }
 0x894   :  { %v4919_v43 = vadd.f32 1e-05, %v4895_v17  ;;  %v4896_v46 = vmul.f32 0.015625, %v4852_v9  ;;  %6491 = vrsqrt.f32 %v4922_v45 }
 0x895   :  { %5043 = vst.msk [vmem:[%s10434_s7 + $0x40] sm:$0xff] %vm189_vm0, %v5019_v6  ;;  %v5020_v13 = vadd.f32 %v10257_v35, %v4992_v16 }
 0x896   :  { %6493 = vrsqrt.f32 %v4919_v43  ;;  %v4920_v0 = vadd.f32 1e-05, %v4896_v46 }
 0x897   :  { %5044 = vst.msk [vmem:[%s10434_s7 + $0x48] sm:$0xff] %vm189_vm0, %v5020_v13 }
 0x898   :  { %6495 = vrsqrt.f32 %v4920_v0 }
 0x89c   :  { %v6490_v29 = vpop.eup %6489 }
 0x89d   :  { %v4969_v39 = vmul.f32 %v6490_v29, %v10180_v56 }
 0x89e   :  { %v6492_v36 = vpop.eup %6491 }
 0x89f   :  { %v4997_v20 = vmul.f32 %v10254_v30, %v4969_v39  ;;  %v4970_v50 = vmul.f32 %v6492_v36, %v10183_v54 }
 0x8a0   :  { %v4867_v11 = vpop.xlane.xlu1 %4866  ;;  %v6494_v25 = vpop.eup %6493 }
 0x8a1   :  { %v4901_v33 = vmul.f32 0.015625, %v4867_v11  ;;  %v5025_v51 = vadd.f32 %v10257_v35, %v4997_v20  ;;  %v4967_v42 = vmul.f32 %v6494_v25, %v10188_v1  ;;  %v4998_v52 = vmul.f32 %v10254_v30, %v4970_v50 }
 0x8a2   :  { %v4870_v32 = vpop.xlane.xlu0 %4869  ;;  %v6496_v14 = vpop.eup %6495 }
 0x8a3   :  { %v4925_v10 = vadd.f32 1e-05, %v4901_v33  ;;  %v4902_v44 = vmul.f32 0.015625, %v4870_v32  ;;  %5049 = vst.msk [vmem:[%s10434_s7 + $0x70] sm:$0xff] %vm189_vm0, %v5025_v51  ;;  %v4995_v56 = vmul.f32 %v10254_v30, %v4967_v42  ;;  %v4968_v54 = vmul.f32 %v6496_v14, %v10194_v19 }
 0x8a4   :  { %v4861_v63 = vpop.xlane.xlu1 %4860  ;;  %v5026_v27 = vadd.f32 %v10257_v35, %v4998_v52 }
 0x8a5   :  { %6497 = vrsqrt.f32 %v4925_v10  ;;  %v4926_v1 = vadd.f32 1e-05, %v4902_v44  ;;  %v4899_v21 = vmul.f32 0.015625, %v4861_v63  ;;  %v5023_v5 = vadd.f32 %v10257_v35, %v4995_v56 }
 0x8a6   :  { %v4996_v31 = vmul.f32 %v10254_v30, %v4968_v54  ;;  %v4864_v7 = vpop.xlane.xlu0 %4863  ;;  %5050 = vst.msk [vmem:[%s10434_s7 + $0x78] sm:$0xff] %vm189_vm0, %v5026_v27 }
 0x8a7   :  { %6499 = vrsqrt.f32 %v4926_v1  ;;  %v4923_v55 = vadd.f32 1e-05, %v4899_v21  ;;  %v4900_v8 = vmul.f32 0.015625, %v4864_v7  ;;  %5047 = vst.msk [vmem:[%s10434_s7 + $0x60] sm:$0xff] %vm189_vm0, %v5023_v5 }
 0x8a8   :  { %v5024_v19 = vadd.f32 %v10257_v35, %v4996_v31 }
 0x8a9   :  { %6501 = vrsqrt.f32 %v4923_v55  ;;  %v4924_v59 = vadd.f32 1e-05, %v4900_v8 }
 0x8aa   :  { %5048 = vst.msk [vmem:[%s10434_s7 + $0x68] sm:$0xff] %vm189_vm0, %v5024_v19 }
 0x8ab   :  { %6503 = vrsqrt.f32 %v4924_v59 }
 0x8af   :  { %v6498_v57 = vpop.eup %6497 }
 0x8b0   :  { %v4973_v37 = vmul.f32 %v6498_v57, %v10204_v62 }
 0x8b1   :  { %v6500_v40 = vpop.eup %6499 }
 0x8b2   :  { %v5001_v41 = vmul.f32 %v10254_v30, %v4973_v37  ;;  %v4974_v22 = vmul.f32 %v6500_v40, %v10207_v3 }
 0x8b3   :  { %v6502_v28 = vpop.eup %6501  ;;  %v4873_v24 = vpop.xlane.xlu1 %4872 }
 0x8b4   :  { %v5029_v53 = vadd.f32 %v10257_v35, %v5001_v41  ;;  %v5002_v58 = vmul.f32 %v10254_v30, %v4974_v22  ;;  %v4971_v47 = vmul.f32 %v6502_v28, %v10212_v49  ;;  %v4903_v23 = vmul.f32 0.015625, %v4873_v24 }
 0x8b5   :  { %v6504_v60 = vpop.eup %6503  ;;  %v4876_v2 = vpop.xlane.xlu0 %4875 }
 0x8b6   :  { %5053 = vst.msk [vmem:[%s10434_s7 + $0x90] sm:$0xff] %vm189_vm0, %v5029_v53  ;;  %v5030_v62 = vadd.f32 %v10257_v35, %v5002_v58  ;;  %v4999_v3 = vmul.f32 %v10254_v30, %v4971_v47  ;;  %v4972_v61 = vmul.f32 %v6504_v60, %v10218_v48  ;;  %v4927_v34 = vadd.f32 1e-05, %v4903_v23 }
 0x8b7   :  { %v4904_v12 = vmul.f32 0.015625, %v4876_v2  ;;  %v4879_v26 = vpop.xlane.xlu1 %4878 }
 0x8b8   :  { %5054 = vst.msk [vmem:[%s10434_s7 + $0x98] sm:$0xff] %vm189_vm0, %v5030_v62  ;;  %v5027_v49 = vadd.f32 %v10257_v35, %v4999_v3  ;;  %v5000_v6 = vmul.f32 %v10254_v30, %v4972_v61  ;;  %6505 = vrsqrt.f32 %v4927_v34  ;;  %v4905_v16 = vmul.f32 0.015625, %v4879_v26 }
 0x8b9   :  { %v4928_v17 = vadd.f32 1e-05, %v4904_v12  ;;  %v4882_v45 = vpop.xlane.xlu0 %4881 }
 0x8ba   :  { %5051 = vst.msk [vmem:[%s10434_s7 + $0x80] sm:$0xff] %vm189_vm0, %v5027_v49  ;;  %v5028_v48 = vadd.f32 %v10257_v35, %v5000_v6  ;;  %v4929_v9 = vadd.f32 1e-05, %v4905_v16  ;;  %v4906_v13 = vmul.f32 0.015625, %v4882_v45 }
 0x8bb   :  { %6507 = vrsqrt.f32 %v4928_v17 }
 0x8bc   :  { %5052 = vst.msk [vmem:[%s10434_s7 + $0x88] sm:$0xff] %vm189_vm0, %v5028_v48  ;;  %6509 = vrsqrt.f32 %v4929_v9  ;;  %v4930_v43 = vadd.f32 1e-05, %v4906_v13 }
 0x8be   :  { %6511 = vrsqrt.f32 %v4930_v43 }
 0x8c2   :  { %v6506_v46 = vpop.eup %6505 }
 0x8c3   :  { %v4975_v0 = vmul.f32 %v6506_v46, %v10228_v38 }
 0x8c5   :  { %v6508_v29 = vpop.eup %6507  ;;  %v5003_v39 = vmul.f32 %v10254_v30, %v4975_v0 }
 0x8c6   :  { %v6510_v36 = vpop.eup %6509  ;;  %v4976_v20 = vmul.f32 %v6508_v29, %v10231_v15 }
 0x8c7   :  { %v5031_v11 = vadd.f32 %v10257_v35, %v5003_v39  ;;  %v4977_v25 = vmul.f32 %v6510_v36, %v10236_v4 }
 0x8c8   :  { %v6512_v50 = vpop.eup %6511  ;;  %v5004_v33 = vmul.f32 %v10254_v30, %v4976_v20 }
 0x8c9   :  { %5055 = vst.msk [vmem:[%s10434_s7 + $0xa0] sm:$0xff] %vm189_vm0, %v5031_v11  ;;  %v5005_v38 = vmul.f32 %v10254_v30, %v4977_v25  ;;  %v4978_v51 = vmul.f32 %v6512_v50, %v10242_v18 }
 0x8ca   :  { %v5032_v42 = vadd.f32 %v10257_v35, %v5004_v33 }
 0x8cb   :  { %v5033_v15 = vadd.f32 %v10257_v35, %v5005_v38  ;;  %v5006_v32 = vmul.f32 %v10254_v30, %v4978_v51 }
 0x8cc   :  { %5056 = vst.msk [vmem:[%s10434_s7 + $0xa8] sm:$0xff] %vm189_vm0, %v5032_v42 }
 0x8cd   :  { %5057 = vst.msk [vmem:[%s10434_s7 + $0xb0] sm:$0xff] %vm189_vm0, %v5033_v15  ;;  %v5034_v4 = vadd.f32 %v10257_v35, %v5006_v32 }
 0x8cf   :  { %5058 = vst.msk [vmem:[%s10434_s7 + $0xb8] sm:$0xff] %vm189_vm0, %v5034_v4 }

</bundles_post_ra>
